<compile_context>
chip_gen: v6e
topology: v6e:2x2x1
jax: 0.10.0
libtpu: 0.0.40
codegen_flags: <defaults>
</compile_context>

<pallas_src>
import functools

import jax
import jax.numpy as jnp
from jax import lax
from jax.experimental import pallas as pl
from jax.experimental.pallas import tpu as pltpu

# ---- config (scaled-down but structurally identical to the PyTorch module) ----
N_EMBD = 128
N_HEAD = 4
HEAD_SIZE = N_EMBD // N_HEAD
N_LAYER = 2
BLOCK_SIZE = 128          # max context length (size of the tril buffer)
VOCAB_SIZE = 128          # synthetic vocab (len(chars) in the original)
LN_EPS = 1e-5             # torch.nn.LayerNorm default
NEG_INF = -1e30           # additive causal-mask value (NaN-safe vs true -inf)


def _layernorm_f32(x, gamma, beta):
    mu = jnp.mean(x, axis=-1, keepdims=True)
    var = jnp.mean((x - mu) ** 2, axis=-1, keepdims=True)
    return (x - mu) * lax.rsqrt(var + LN_EPS) * gamma + beta


# ------------------- single fused whole-forward kernel -------------------

def _fused_forward_kernel(idx_ref, tok_emb_ref, pos_emb_ref,
                          ln1g_ref, ln1b_ref, wqkv_ref, wproj_ref, bproj_ref,
                          ln2g_ref, ln2b_ref, wfc1_ref, bfc1_ref, wfc2_ref,
                          bfc2_ref, lnfg_ref, lnfb_ref, wlm_ref, blm_ref,
                          o_ref, x_scr, *, n_head):
    layer = pl.program_id(0)
    M, C = x_scr.shape
    T = pos_emb_ref.shape[0]
    B = M // T
    hs = C // n_head
    V = tok_emb_ref.shape[0]

    # ---- grid step 0: fused embedding (one-hot gathers on the MXU) ----
    @pl.when(layer == 0)
    def _():
        idx_col = idx_ref[...]                                        # (M, 1) i32
        tok_oh = (lax.broadcasted_iota(jnp.int32, (M, V), 1)
                  == idx_col).astype(jnp.float32)                     # (M, V)
        row = lax.broadcasted_iota(jnp.int32, (M, 1), 0)
        pos_oh = (lax.broadcasted_iota(jnp.int32, (M, T), 1)
                  == row % T).astype(jnp.float32)                     # (M, T)
        x_scr[...] = (jnp.dot(tok_oh, tok_emb_ref[...],
                              preferred_element_type=jnp.float32)
                      + jnp.dot(pos_oh, pos_emb_ref[...],
                                preferred_element_type=jnp.float32))

    x = x_scr[...]                                     # (M, C) f32 residual stream

    # ---- LN1 fused into the QKV projection: one [M,C]x[C,3C] MXU matmul ----
    h1 = _layernorm_f32(x, ln1g_ref[0], ln1b_ref[0])
    qkv = jnp.dot(h1.astype(jnp.bfloat16), wqkv_ref[0],
                  preferred_element_type=jnp.float32)                 # (M, 3C)
    qkv_bf = qkv.astype(jnp.bfloat16)     # one wide cast; per-head slices below
    wproj = wproj_ref[0]                                              # (C, C) bf16

    # additive causal mask (0 / -1e30), built once per layer
    rq = lax.broadcasted_iota(jnp.int32, (T, T), 0)
    ck = lax.broadcasted_iota(jnp.int32, (T, T), 1)
    mask_add = jnp.where(rq >= ck, jnp.float32(0.0), jnp.float32(NEG_INF))

    # ---- attention: only the score / A@V step loops per sequence & head ----
    sa_rows = []
    for b in range(B):
        r0 = b * T
        acc = jnp.zeros((T, C), jnp.float32)
        for hd in range(n_head):
            c0 = hd * hs
            qh = qkv_bf[r0:r0 + T, c0:c0 + hs]
            kh = qkv_bf[r0:r0 + T, C + c0:C + c0 + hs]
            vh = qkv_bf[r0:r0 + T, 2 * C + c0:2 * C + c0 + hs]
            # Q.K^T contracting last dims (no k transpose); C**-0.5 score
            # scale is already folded into W_q.
            wei = lax.dot_general(qh, kh, (((1,), (1,)), ((), ())),
                                  preferred_element_type=jnp.float32) + mask_add
            # Reference quirk: F.softmax(wei, dim=1) -> softmax over the QUERY
            # axis (axis 0 of the per-batch (T_q, T_k) score matrix).
            m = jnp.max(wei, axis=0, keepdims=True)
            e = jnp.exp(wei - m)
            inv = pl.reciprocal(jnp.sum(e, axis=0, keepdims=True), approx=True)
            pv = jnp.dot((e * inv).astype(jnp.bfloat16), vh,
                         preferred_element_type=jnp.float32)          # (T, hs)
            # per-head slice of W_proj, accumulated -> no lane concat needed
            acc = acc + jnp.dot(pv.astype(jnp.bfloat16), wproj[c0:c0 + hs, :],
                                preferred_element_type=jnp.float32)
        sa_rows.append(acc)
    sa = jnp.concatenate(sa_rows, axis=0) if B > 1 else sa_rows[0]    # (M, C)

    # out-proj bias + residual (dropout in eval mode == identity)
    x = x + sa + bproj_ref[0]

    # ---- LN2 fused into the feed-forward ----
    h2 = _layernorm_f32(x, ln2g_ref[0], ln2b_ref[0])
    f = jnp.dot(h2.astype(jnp.bfloat16), wfc1_ref[0],
                preferred_element_type=jnp.float32) + bfc1_ref[0]
    f = jnp.maximum(f, 0.0)                                           # ReLU (f32)
    x = x + jnp.dot(f.astype(jnp.bfloat16), wfc2_ref[0],
                    preferred_element_type=jnp.float32) + bfc2_ref[0]

    x_scr[...] = x                                 # residual stays resident in VMEM

    # ---- last grid step: final LayerNorm + lm_head ----
    @pl.when(layer == pl.num_programs(0) - 1)
    def _():
        hf = _layernorm_f32(x, lnfg_ref[...], lnfb_ref[...])
        o_ref[...] = (jnp.dot(hf.astype(jnp.bfloat16), wlm_ref[...],
                              preferred_element_type=jnp.float32)
                      + blm_ref[...]).astype(o_ref.dtype)


# ------------------------- wrapper (one pallas_call) -------------------------

def pack_params(params):
    """Stack per-layer weights on a leading L dim, cast MXU operands to bf16,
    fold the C**-0.5 score scale into W_q. Done once, outside jit."""
    C, L = N_EMBD, N_LAYER
    scale = float(C) ** -0.5          # quirk: uses C = n_embd, as in the module

    def stack(name):
        return jnp.stack([lp[name] for lp in params["blocks"]])

    wqkv = jnp.stack([jnp.concatenate([lp["wq"] * scale, lp["wk"], lp["wv"]],
                                      axis=1)
                      for lp in params["blocks"]]).astype(jnp.bfloat16)
    return dict(
        tok_emb=params["tok_emb"],                           # (V, C) f32
        pos_emb=params["pos_emb"],                           # (BLOCK_SIZE, C) f32
        ln1_g=stack("ln1_g").reshape(L, 1, C),
        ln1_b=stack("ln1_b").reshape(L, 1, C),
        wqkv=wqkv,                                           # (L, C, 3C) bf16
        w_proj=stack("w_proj").astype(jnp.bfloat16),         # (L, C, C)  bf16
        b_proj=stack("b_proj").reshape(L, 1, C),
        ln2_g=stack("ln2_g").reshape(L, 1, C),
        ln2_b=stack("ln2_b").reshape(L, 1, C),
        w_fc1=stack("w_fc1").astype(jnp.bfloat16),           # (L, C, 4C) bf16
        b_fc1=stack("b_fc1").reshape(L, 1, 4 * C),
        w_fc2=stack("w_fc2").astype(jnp.bfloat16),           # (L, 4C, C) bf16
        b_fc2=stack("b_fc2").reshape(L, 1, C),
        lnf_g=params["lnf_g"].reshape(1, C),
        lnf_b=params["lnf_b"].reshape(1, C),
        w_lm=params["w_lm"].astype(jnp.bfloat16),            # (C, V) bf16
        b_lm=params["b_lm"].reshape(1, VOCAB_SIZE),
    )


def bigram_lm_forward(packed, idx):
    B, T = idx.shape
    C, V, L = N_EMBD, VOCAB_SIZE, N_LAYER
    M = B * T
    idx2d = idx.reshape(M, 1).astype(jnp.int32)
    pos_emb = packed["pos_emb"][:T]                                   # (T, C)

    # advisory cost estimate for XLA scheduling around the single fused call
    flops_layer = (2 * M * C * 3 * C
                   + B * N_HEAD * (4 * T * T * HEAD_SIZE + 2 * T * HEAD_SIZE * C)
                   + 2 * 2 * M * C * 4 * C)
    flops = L * flops_layer + 2 * M * V * C + 2 * M * T * C + 2 * M * C * V
    param_bytes = sum(int(p.size) * p.dtype.itemsize
                      for p in jax.tree_util.tree_leaves(packed))
    cost = pl.CostEstimate(flops=flops,
                           transcendentals=L * B * N_HEAD * T * T,
                           bytes_accessed=param_bytes + 4 * M * C + 4 * M * V)

    logits = pl.pallas_call(
        functools.partial(_fused_forward_kernel, n_head=N_HEAD),
        out_shape=jax.ShapeDtypeStruct((M, V), jnp.float32),
        grid=(L,),
        in_specs=[
            pl.BlockSpec((M, 1), lambda l: (0, 0)),            # idx (resident)
            pl.BlockSpec((V, C), lambda l: (0, 0)),            # tok_emb (f32)
            pl.BlockSpec((T, C), lambda l: (0, 0)),            # pos_emb[:T]
            pl.BlockSpec((1, 1, C), lambda l: (l, 0, 0)),      # ln1 gamma
            pl.BlockSpec((1, 1, C), lambda l: (l, 0, 0)),      # ln1 beta
            pl.BlockSpec((1, C, 3 * C), lambda l: (l, 0, 0)),  # W_qkv (bf16)
            pl.BlockSpec((1, C, C), lambda l: (l, 0, 0)),      # W_proj (bf16)
            pl.BlockSpec((1, 1, C), lambda l: (l, 0, 0)),      # b_proj
            pl.BlockSpec((1, 1, C), lambda l: (l, 0, 0)),      # ln2 gamma
            pl.BlockSpec((1, 1, C), lambda l: (l, 0, 0)),      # ln2 beta
            pl.BlockSpec((1, C, 4 * C), lambda l: (l, 0, 0)),  # W_fc1 (bf16)
            pl.BlockSpec((1, 1, 4 * C), lambda l: (l, 0, 0)),  # b_fc1
            pl.BlockSpec((1, 4 * C, C), lambda l: (l, 0, 0)),  # W_fc2 (bf16)
            pl.BlockSpec((1, 1, C), lambda l: (l, 0, 0)),      # b_fc2
            pl.BlockSpec((1, C), lambda l: (0, 0)),            # ln_f gamma
            pl.BlockSpec((1, C), lambda l: (0, 0)),            # ln_f beta
            pl.BlockSpec((C, V), lambda l: (0, 0)),            # W_lm (bf16)
            pl.BlockSpec((1, V), lambda l: (0, 0)),            # b_lm
        ],
        out_specs=pl.BlockSpec((M, V), lambda l: (0, 0)),      # written on last step
        scratch_shapes=[pltpu.VMEM((M, C), jnp.float32)],      # resident residual
        compiler_params=pltpu.CompilerParams(
            dimension_semantics=("arbitrary",)),               # layers sequential
        cost_estimate=cost,
    )(idx2d, packed["tok_emb"], pos_emb,
      packed["ln1_g"], packed["ln1_b"], packed["wqkv"], packed["w_proj"],
      packed["b_proj"], packed["ln2_g"], packed["ln2_b"], packed["w_fc1"],
      packed["b_fc1"], packed["w_fc2"], packed["b_fc2"],
      packed["lnf_g"], packed["lnf_b"], packed["w_lm"], packed["b_lm"])

    return logits.reshape(B, T, V), None          # targets=None -> loss=None


# ------------------------- params + pure-JAX reference -------------------------

def init_params(key):
    def nrm(k, shape, scale=0.02):
        return (scale * jax.random.normal(k, shape)).astype(jnp.float32)

    keys = iter(jax.random.split(key, 4 + 6 * N_LAYER))
    params = {
        "tok_emb": nrm(next(keys), (VOCAB_SIZE, N_EMBD)),
        "pos_emb": nrm(next(keys), (BLOCK_SIZE, N_EMBD)),
        "lnf_g": jnp.ones((N_EMBD,), jnp.float32),
        "lnf_b": jnp.zeros((N_EMBD,), jnp.float32),
        "w_lm": nrm(next(keys), (N_EMBD, VOCAB_SIZE)),
        "b_lm": jnp.zeros((VOCAB_SIZE,), jnp.float32),
        "blocks": [],
    }
    for _ in range(N_LAYER):
        params["blocks"].append({
            "ln1_g": jnp.ones((N_EMBD,), jnp.float32),
            "ln1_b": jnp.zeros((N_EMBD,), jnp.float32),
            "ln2_g": jnp.ones((N_EMBD,), jnp.float32),
            "ln2_b": jnp.zeros((N_EMBD,), jnp.float32),
            # columns [h*hs:(h+1)*hs] are head h's projection (== torch.cat)
            "wq": nrm(next(keys), (N_EMBD, N_EMBD)),
            "wk": nrm(next(keys), (N_EMBD, N_EMBD)),
            "wv": nrm(next(keys), (N_EMBD, N_EMBD)),
            "w_proj": nrm(next(keys), (N_EMBD, N_EMBD)),
            "b_proj": jnp.zeros((N_EMBD,), jnp.float32),
            "w_fc1": nrm(next(keys), (N_EMBD, 4 * N_EMBD)),
            "b_fc1": jnp.zeros((4 * N_EMBD,), jnp.float32),
            "w_fc2": nrm(next(keys), (4 * N_EMBD, N_EMBD)),
            "b_fc2": jnp.zeros((N_EMBD,), jnp.float32),
        })
    return params


def _reference_forward(params, idx):
    """Pure-JAX f32 reference reproducing the PyTorch module (inference)."""
    B, T = idx.shape
    C = N_EMBD

    def ln(x, g, b):
        mu = x.mean(-1, keepdims=True)
        var = ((x - mu) ** 2).mean(-1, keepdims=True)
        return (x - mu) / jnp.sqrt(var + LN_EPS) * g + b

    x = params["tok_emb"][idx] + params["pos_emb"][:T][None]
    tril = jnp.tril(jnp.ones((T, T), bool))
    for lp in params["blocks"]:
        h = ln(x, lp["ln1_g"], lp["ln1_b"])
        q, k, v = h @ lp["wq"], h @ lp["wk"], h @ lp["wv"]
        outs = []
        for hd in range(N_HEAD):
            sl = slice(hd * HEAD_SIZE, (hd + 1) * HEAD_SIZE)
            wei = jnp.einsum("bqd,bkd->bqk", q[..., sl], k[..., sl]) * (C ** -0.5)
            wei = jnp.where(tril, wei, -jnp.inf)
            wei = jax.nn.softmax(wei, axis=1)          # quirk: dim=1 (query axis)
            outs.append(jnp.einsum("bqk,bkd->bqd", wei, v[..., sl]))
        x = x + jnp.concatenate(outs, -1) @ lp["w_proj"] + lp["b_proj"]
        h2 = ln(x, lp["ln2_g"], lp["ln2_b"])
        f = jnp.maximum(h2 @ lp["w_fc1"] + lp["b_fc1"], 0.0)
        x = x + f @ lp["w_fc2"] + lp["b_fc2"]
    x = ln(x, params["lnf_g"], params["lnf_b"])
    return x @ params["w_lm"] + params["b_lm"]


if __name__ == "__main__":
    key = jax.random.PRNGKey(0)
    pkey, ikey = jax.random.split(key)
    params = init_params(pkey)
    packed = pack_params(params)

    B, T = 2, 64                                   # T <= BLOCK_SIZE
    idx = jax.random.randint(ikey, (B, T), 0, VOCAB_SIZE, dtype=jnp.int32)

    logits, loss = jax.jit(bigram_lm_forward)(packed, idx)
    logits = jax.block_until_ready(logits)

    assert logits.shape == (B, T, VOCAB_SIZE)
    assert loss is None
    assert bool(jnp.all(jnp.isfinite(logits)))

    ref = _reference_forward(params, idx)
    err = float(jnp.max(jnp.abs(logits - ref)))
    assert err < 5e-2, f"kernel vs f32 reference mismatch: max abs err {err}"

    print("KERNEL_OK")
</pallas_src>

<mosaic_0001>
module attributes {stable_mosaic.version = 11 : i64} {
  func.func @_fused_forward_kernel(%arg0: i32, %arg1: memref<128x1xi32, #tpu.memory_space<vmem>>, %arg2: memref<128x128xf32, #tpu.memory_space<vmem>>, %arg3: memref<64x128xf32, #tpu.memory_space<vmem>>, %arg4: memref<1x1x128xf32, #tpu.memory_space<vmem>>, %arg5: memref<1x1x128xf32, #tpu.memory_space<vmem>>, %arg6: memref<1x128x384xbf16, #tpu.memory_space<vmem>>, %arg7: memref<1x128x128xbf16, #tpu.memory_space<vmem>>, %arg8: memref<1x1x128xf32, #tpu.memory_space<vmem>>, %arg9: memref<1x1x128xf32, #tpu.memory_space<vmem>>, %arg10: memref<1x1x128xf32, #tpu.memory_space<vmem>>, %arg11: memref<1x128x512xbf16, #tpu.memory_space<vmem>>, %arg12: memref<1x1x512xf32, #tpu.memory_space<vmem>>, %arg13: memref<1x512x128xbf16, #tpu.memory_space<vmem>>, %arg14: memref<1x1x128xf32, #tpu.memory_space<vmem>>, %arg15: memref<1x128xf32, #tpu.memory_space<vmem>>, %arg16: memref<1x128xf32, #tpu.memory_space<vmem>>, %arg17: memref<128x128xbf16, #tpu.memory_space<vmem>>, %arg18: memref<1x128xf32, #tpu.memory_space<vmem>>, %arg19: memref<128x128xf32, #tpu.memory_space<vmem>>, %arg20: memref<128x128xf32, #tpu.memory_space<vmem>>) attributes {dimension_semantics = [#tpu.dimension_semantics<arbitrary>], iteration_bounds = array<i64: 2>, scalar_prefetch = 0 : i64, scratch_operands = 1 : i64, tpu.core_type = #tpu.core_type<tc>, window_params = [{pipeline_mode = #tpu.pipeline_mode<synchronous>, transform_indices = @transform_0, window_bounds = array<i64: 128, 1>}, {pipeline_mode = #tpu.pipeline_mode<synchronous>, transform_indices = @transform_1, window_bounds = array<i64: 128, 128>}, {pipeline_mode = #tpu.pipeline_mode<synchronous>, transform_indices = @transform_2, window_bounds = array<i64: 64, 128>}, {transform_indices = @transform_3, window_bounds = array<i64: 1, 1, 128>}, {transform_indices = @transform_4, window_bounds = array<i64: 1, 1, 128>}, {transform_indices = @transform_5, window_bounds = array<i64: 1, 128, 384>}, {transform_indices = @transform_6, window_bounds = array<i64: 1, 128, 128>}, {transform_indices = @transform_7, window_bounds = array<i64: 1, 1, 128>}, {transform_indices = @transform_8, window_bounds = array<i64: 1, 1, 128>}, {transform_indices = @transform_9, window_bounds = array<i64: 1, 1, 128>}, {transform_indices = @transform_10, window_bounds = array<i64: 1, 128, 512>}, {transform_indices = @transform_11, window_bounds = array<i64: 1, 1, 512>}, {transform_indices = @transform_12, window_bounds = array<i64: 1, 512, 128>}, {transform_indices = @transform_13, window_bounds = array<i64: 1, 1, 128>}, {pipeline_mode = #tpu.pipeline_mode<synchronous>, transform_indices = @transform_14, window_bounds = array<i64: 1, 128>}, {pipeline_mode = #tpu.pipeline_mode<synchronous>, transform_indices = @transform_15, window_bounds = array<i64: 1, 128>}, {pipeline_mode = #tpu.pipeline_mode<synchronous>, transform_indices = @transform_16, window_bounds = array<i64: 128, 128>}, {pipeline_mode = #tpu.pipeline_mode<synchronous>, transform_indices = @transform_17, window_bounds = array<i64: 1, 128>}, {pipeline_mode = #tpu.pipeline_mode<synchronous>, transform_indices = @transform_18, window_bounds = array<i64: 128, 128>}]} {
    %c0_i32 = arith.constant 0 : i32
    %0 = arith.cmpi eq, %arg0, %c0_i32 : i32
    %1 = arith.extui %0 : i1 to i32
    %c0_i32_0 = arith.constant 0 : i32
    %2 = arith.cmpi ne, %1, %c0_i32_0 : i32
    scf.if %2 {
      %c0_95 = arith.constant 0 : index
      %c0_96 = arith.constant 0 : index
      %268 = vector.load %arg1[%c0_95, %c0_96] : memref<128x1xi32, #tpu.memory_space<vmem>>, vector<128x1xi32>
      %269 = tpu.iota {dimensions = array<i32: 1>} : vector<128x128xi32>
      %270 = vector.broadcast %268 : vector<128x1xi32> to vector<128x128xi32>
      %271 = arith.cmpi eq, %269, %270 : vector<128x128xi32>
      %272 = arith.extui %271 : vector<128x128xi1> to vector<128x128xi32>
      %273 = arith.sitofp %272 : vector<128x128xi32> to vector<128x128xf32>
      %274 = tpu.iota {dimensions = array<i32: 0>} : vector<128x1xi32>
      %275 = tpu.iota {dimensions = array<i32: 1>} : vector<128x64xi32>
      %c64_i32 = arith.constant 64 : i32
      %c0_i32_97 = arith.constant 0 : i32
      %276 = arith.cmpi eq, %c64_i32, %c0_i32_97 : i32
      %c1_i32_98 = arith.constant 1 : i32
      %277 = arith.select %276, %c1_i32_98, %c64_i32 : i32
      %278 = vector.broadcast %277 : i32 to vector<128x1xi32>
      %279 = arith.remsi %274, %278 : vector<128x1xi32>
      %c0_i32_99 = arith.constant 0 : i32
      %280 = vector.broadcast %c0_i32_99 : i32 to vector<128x1xi32>
      %281 = arith.cmpi ne, %279, %280 : vector<128x1xi32>
      %c0_i32_100 = arith.constant 0 : i32
      %282 = vector.broadcast %c0_i32_100 : i32 to vector<128x1xi32>
      %283 = arith.cmpi slt, %279, %282 : vector<128x1xi32>
      %c0_i32_101 = arith.constant 0 : i32
      %284 = arith.cmpi slt, %277, %c0_i32_101 : i32
      %285 = vector.broadcast %284 : i1 to vector<128x1xi1>
      %286 = vector.broadcast %285 : vector<128x1xi1> to vector<128x1xi1>
      %287 = arith.xori %283, %286 : vector<128x1xi1>
      %288 = arith.andi %287, %281 : vector<128x1xi1>
      %289 = vector.broadcast %277 : i32 to vector<128x1xi32>
      %290 = arith.addi %279, %289 : vector<128x1xi32>
      %291 = arith.select %288, %290, %279 : vector<128x1xi1>, vector<128x1xi32>
      %292 = vector.broadcast %291 : vector<128x1xi32> to vector<128x64xi32>
      %293 = arith.cmpi eq, %275, %292 : vector<128x64xi32>
      %294 = arith.extui %293 : vector<128x64xi1> to vector<128x64xi32>
      %295 = arith.sitofp %294 : vector<128x64xi32> to vector<128x64xf32>
      %c0_102 = arith.constant 0 : index
      %c0_103 = arith.constant 0 : index
      %296 = vector.load %arg2[%c0_102, %c0_103] : memref<128x128xf32, #tpu.memory_space<vmem>>, vector<128x128xf32>
      %cst_104 = arith.constant dense<0.000000e+00> : vector<128x128xf32>
      %297 = tpu.matmul %273, %296, %cst_104 {dimension_numbers = #tpu.dot_dimension_numbers<[1], [0], [0], [1], [0, 0, 1, 1], [], []>} : vector<128x128xf32>, vector<128x128xf32>, vector<128x128xf32> -> vector<128x128xf32>
      %c0_105 = arith.constant 0 : index
      %c0_106 = arith.constant 0 : index
      %298 = vector.load %arg3[%c0_105, %c0_106] : memref<64x128xf32, #tpu.memory_space<vmem>>, vector<64x128xf32>
      %cst_107 = arith.constant dense<0.000000e+00> : vector<128x128xf32>
      %299 = tpu.matmul %295, %298, %cst_107 {dimension_numbers = #tpu.dot_dimension_numbers<[1], [0], [0], [1], [0, 0, 1, 1], [], []>} : vector<128x64xf32>, vector<64x128xf32>, vector<128x128xf32> -> vector<128x128xf32>
      %300 = arith.addf %297, %299 : vector<128x128xf32>
      %c0_108 = arith.constant 0 : index
      %c0_109 = arith.constant 0 : index
      %301 = vector.load %arg20[%c0_108, %c0_109] : memref<128x128xf32, #tpu.memory_space<vmem>>, vector<128x128xf32>
      tpu.vector_store %arg20[%c0_108, %c0_109], %300 {strides = array<i32>} : memref<128x128xf32, #tpu.memory_space<vmem>>, vector<128x128xf32>,
    } else {
    }
    %c0 = arith.constant 0 : index
    %c0_1 = arith.constant 0 : index
    %3 = vector.load %arg20[%c0, %c0_1] : memref<128x128xf32, #tpu.memory_space<vmem>>, vector<128x128xf32>
    %c0_2 = arith.constant 0 : index
    %c0_3 = arith.constant 0 : index
    %c0_4 = arith.constant 0 : index
    %4 = vector.load %arg4[%c0_2, %c0_3, %c0_4] : memref<1x1x128xf32, #tpu.memory_space<vmem>>, vector<1x1x128xf32>
    %5 = vector.shape_cast %4 : vector<1x1x128xf32> to vector<1x128xf32>
    %c0_5 = arith.constant 0 : index
    %c0_6 = arith.constant 0 : index
    %c0_7 = arith.constant 0 : index
    %6 = vector.load %arg5[%c0_5, %c0_6, %c0_7] : memref<1x1x128xf32, #tpu.memory_space<vmem>>, vector<1x1x128xf32>
    %7 = vector.shape_cast %6 : vector<1x1x128xf32> to vector<1x128xf32>
    %cst = arith.constant dense<0.000000e+00> : vector<128xf32>
    %8 = vector.multi_reduction <add>, %3, %cst [1] : vector<128x128xf32> to vector<128xf32>
    %9 = vector.shape_cast %8 : vector<128xf32> to vector<128x1xf32>
    %cst_8 = arith.constant 1.280000e+02 : f32
    %10 = vector.broadcast %cst_8 : f32 to vector<128x1xf32>
    %11 = arith.divf %9, %10 : vector<128x1xf32>
    %12 = vector.broadcast %11 : vector<128x1xf32> to vector<128x128xf32>
    %13 = arith.subf %3, %12 : vector<128x128xf32>
    %14 = arith.mulf %13, %13 : vector<128x128xf32>
    %cst_9 = arith.constant dense<0.000000e+00> : vector<128xf32>
    %15 = vector.multi_reduction <add>, %14, %cst_9 [1] : vector<128x128xf32> to vector<128xf32>
    %16 = vector.shape_cast %15 : vector<128xf32> to vector<128x1xf32>
    %cst_10 = arith.constant 1.280000e+02 : f32
    %17 = vector.broadcast %cst_10 : f32 to vector<128x1xf32>
    %18 = arith.divf %16, %17 : vector<128x1xf32>
    %19 = vector.broadcast %11 : vector<128x1xf32> to vector<128x128xf32>
    %20 = arith.subf %3, %19 : vector<128x128xf32>
    %cst_11 = arith.constant 9.99999974E-6 : f32
    %21 = vector.broadcast %cst_11 : f32 to vector<128x1xf32>
    %22 = arith.addf %18, %21 : vector<128x1xf32>
    %23 = math.rsqrt %22 : vector<128x1xf32>
    %24 = vector.broadcast %23 : vector<128x1xf32> to vector<128x128xf32>
    %25 = arith.mulf %20, %24 : vector<128x128xf32>
    %26 = vector.broadcast %5 : vector<1x128xf32> to vector<128x128xf32>
    %27 = arith.mulf %25, %26 : vector<128x128xf32>
    %28 = vector.broadcast %7 : vector<1x128xf32> to vector<128x128xf32>
    %29 = arith.addf %27, %28 : vector<128x128xf32>
    %30 = arith.truncf %29 : vector<128x128xf32> to vector<128x128xbf16>
    %c0_12 = arith.constant 0 : index
    %c0_13 = arith.constant 0 : index
    %c0_14 = arith.constant 0 : index
    %31 = vector.load %arg6[%c0_12, %c0_13, %c0_14] : memref<1x128x384xbf16, #tpu.memory_space<vmem>>, vector<1x128x384xbf16>
    %32 = vector.shape_cast %31 : vector<1x128x384xbf16> to vector<128x384xbf16>
    %cst_15 = arith.constant dense<0.000000e+00> : vector<128x384xf32>
    %33 = tpu.matmul %30, %32, %cst_15 {dimension_numbers = #tpu.dot_dimension_numbers<[1], [0], [0], [1], [0, 0, 1, 1], [], []>} : vector<128x128xbf16>, vector<128x384xbf16>, vector<128x384xf32> -> vector<128x384xf32>
    %34 = arith.truncf %33 : vector<128x384xf32> to vector<128x384xbf16>
    %c0_16 = arith.constant 0 : index
    %c0_17 = arith.constant 0 : index
    %c0_18 = arith.constant 0 : index
    %35 = vector.load %arg7[%c0_16, %c0_17, %c0_18] : memref<1x128x128xbf16, #tpu.memory_space<vmem>>, vector<1x128x128xbf16>
    %36 = vector.shape_cast %35 : vector<1x128x128xbf16> to vector<128x128xbf16>
    %37 = tpu.iota {dimensions = array<i32: 0>} : vector<64x64xi32>
    %38 = tpu.iota {dimensions = array<i32: 1>} : vector<64x64xi32>
    %39 = arith.cmpi sge, %37, %38 : vector<64x64xi32>
    %cst_19 = arith.constant 0.000000e+00 : f32
    %cst_20 = arith.constant -1.000000e+30 : f32
    %40 = vector.broadcast %cst_19 : f32 to vector<64x64xf32>
    %41 = vector.broadcast %cst_20 : f32 to vector<64x64xf32>
    %42 = arith.select %39, %40, %41 : vector<64x64xi1>, vector<64x64xf32>
    %cst_21 = arith.constant 0.000000e+00 : f32
    %43 = vector.broadcast %cst_21 : f32 to vector<64x128xf32>
    %44 = vector.extract_strided_slice %34 {offsets = [0, 0], sizes = [64, 32], strides = [1, 1]} : vector<128x384xbf16> to vector<64x32xbf16>
    %45 = vector.extract_strided_slice %34 {offsets = [0, 128], sizes = [64, 32], strides = [1, 1]} : vector<128x384xbf16> to vector<64x32xbf16>
    %46 = vector.extract_strided_slice %34 {offsets = [0, 256], sizes = [64, 32], strides = [1, 1]} : vector<128x384xbf16> to vector<64x32xbf16>
    %cst_22 = arith.constant dense<0.000000e+00> : vector<64x64xf32>
    %47 = tpu.matmul %44, %45, %cst_22 {dimension_numbers = #tpu.dot_dimension_numbers<[1], [1], [0], [0], [0, 0, 1, 0], [], []>} : vector<64x32xbf16>, vector<64x32xbf16>, vector<64x64xf32> -> vector<64x64xf32>
    %48 = arith.addf %47, %42 : vector<64x64xf32>
    %cst_23 = arith.constant dense<0xFF800000> : vector<64xf32>
    %49 = vector.multi_reduction <maximumf>, %48, %cst_23 [0] : vector<64x64xf32> to vector<64xf32>
    %50 = vector.shape_cast %49 : vector<64xf32> to vector<1x64xf32>
    %51 = vector.broadcast %50 : vector<1x64xf32> to vector<64x64xf32>
    %52 = arith.subf %48, %51 : vector<64x64xf32>
    %53 = math.exp %52 : vector<64x64xf32>
    %cst_24 = arith.constant dense<0.000000e+00> : vector<64xf32>
    %54 = vector.multi_reduction <add>, %53, %cst_24 [0] : vector<64x64xf32> to vector<64xf32>
    %55 = vector.shape_cast %54 : vector<64xf32> to vector<1x64xf32>
    %56 = tpu.reciprocal %55 {approx = true} : vector<1x64xf32> -> vector<1x64xf32>
    %57 = vector.broadcast %56 : vector<1x64xf32> to vector<64x64xf32>
    %58 = arith.mulf %53, %57 : vector<64x64xf32>
    %59 = arith.truncf %58 : vector<64x64xf32> to vector<64x64xbf16>
    %cst_25 = arith.constant dense<0.000000e+00> : vector<64x32xf32>
    %60 = tpu.matmul %59, %46, %cst_25 {dimension_numbers = #tpu.dot_dimension_numbers<[1], [0], [0], [1], [0, 0, 1, 1], [], []>} : vector<64x64xbf16>, vector<64x32xbf16>, vector<64x32xf32> -> vector<64x32xf32>
    %61 = arith.truncf %60 : vector<64x32xf32> to vector<64x32xbf16>
    %62 = vector.extract_strided_slice %36 {offsets = [0, 0], sizes = [32, 128], strides = [1, 1]} : vector<128x128xbf16> to vector<32x128xbf16>
    %cst_26 = arith.constant dense<0.000000e+00> : vector<64x128xf32>
    %63 = tpu.matmul %61, %62, %cst_26 {dimension_numbers = #tpu.dot_dimension_numbers<[1], [0], [0], [1], [0, 0, 1, 1], [], []>} : vector<64x32xbf16>, vector<32x128xbf16>, vector<64x128xf32> -> vector<64x128xf32>
    %64 = arith.addf %43, %63 : vector<64x128xf32>
    %65 = vector.extract_strided_slice %34 {offsets = [0, 32], sizes = [64, 32], strides = [1, 1]} : vector<128x384xbf16> to vector<64x32xbf16>
    %66 = vector.extract_strided_slice %34 {offsets = [0, 160], sizes = [64, 32], strides = [1, 1]} : vector<128x384xbf16> to vector<64x32xbf16>
    %67 = vector.extract_strided_slice %34 {offsets = [0, 288], sizes = [64, 32], strides = [1, 1]} : vector<128x384xbf16> to vector<64x32xbf16>
    %cst_27 = arith.constant dense<0.000000e+00> : vector<64x64xf32>
    %68 = tpu.matmul %65, %66, %cst_27 {dimension_numbers = #tpu.dot_dimension_numbers<[1], [1], [0], [0], [0, 0, 1, 0], [], []>} : vector<64x32xbf16>, vector<64x32xbf16>, vector<64x64xf32> -> vector<64x64xf32>
    %69 = arith.addf %68, %42 : vector<64x64xf32>
    %cst_28 = arith.constant dense<0xFF800000> : vector<64xf32>
    %70 = vector.multi_reduction <maximumf>, %69, %cst_28 [0] : vector<64x64xf32> to vector<64xf32>
    %71 = vector.shape_cast %70 : vector<64xf32> to vector<1x64xf32>
    %72 = vector.broadcast %71 : vector<1x64xf32> to vector<64x64xf32>
    %73 = arith.subf %69, %72 : vector<64x64xf32>
    %74 = math.exp %73 : vector<64x64xf32>
    %cst_29 = arith.constant dense<0.000000e+00> : vector<64xf32>
    %75 = vector.multi_reduction <add>, %74, %cst_29 [0] : vector<64x64xf32> to vector<64xf32>
    %76 = vector.shape_cast %75 : vector<64xf32> to vector<1x64xf32>
    %77 = tpu.reciprocal %76 {approx = true} : vector<1x64xf32> -> vector<1x64xf32>
    %78 = vector.broadcast %77 : vector<1x64xf32> to vector<64x64xf32>
    %79 = arith.mulf %74, %78 : vector<64x64xf32>
    %80 = arith.truncf %79 : vector<64x64xf32> to vector<64x64xbf16>
    %cst_30 = arith.constant dense<0.000000e+00> : vector<64x32xf32>
    %81 = tpu.matmul %80, %67, %cst_30 {dimension_numbers = #tpu.dot_dimension_numbers<[1], [0], [0], [1], [0, 0, 1, 1], [], []>} : vector<64x64xbf16>, vector<64x32xbf16>, vector<64x32xf32> -> vector<64x32xf32>
    %82 = arith.truncf %81 : vector<64x32xf32> to vector<64x32xbf16>
    %83 = vector.extract_strided_slice %36 {offsets = [32, 0], sizes = [32, 128], strides = [1, 1]} : vector<128x128xbf16> to vector<32x128xbf16>
    %cst_31 = arith.constant dense<0.000000e+00> : vector<64x128xf32>
    %84 = tpu.matmul %82, %83, %cst_31 {dimension_numbers = #tpu.dot_dimension_numbers<[1], [0], [0], [1], [0, 0, 1, 1], [], []>} : vector<64x32xbf16>, vector<32x128xbf16>, vector<64x128xf32> -> vector<64x128xf32>
    %85 = arith.addf %64, %84 : vector<64x128xf32>
    %86 = vector.extract_strided_slice %34 {offsets = [0, 64], sizes = [64, 32], strides = [1, 1]} : vector<128x384xbf16> to vector<64x32xbf16>
    %87 = vector.extract_strided_slice %34 {offsets = [0, 192], sizes = [64, 32], strides = [1, 1]} : vector<128x384xbf16> to vector<64x32xbf16>
    %88 = vector.extract_strided_slice %34 {offsets = [0, 320], sizes = [64, 32], strides = [1, 1]} : vector<128x384xbf16> to vector<64x32xbf16>
    %cst_32 = arith.constant dense<0.000000e+00> : vector<64x64xf32>
    %89 = tpu.matmul %86, %87, %cst_32 {dimension_numbers = #tpu.dot_dimension_numbers<[1], [1], [0], [0], [0, 0, 1, 0], [], []>} : vector<64x32xbf16>, vector<64x32xbf16>, vector<64x64xf32> -> vector<64x64xf32>
    %90 = arith.addf %89, %42 : vector<64x64xf32>
    %cst_33 = arith.constant dense<0xFF800000> : vector<64xf32>
    %91 = vector.multi_reduction <maximumf>, %90, %cst_33 [0] : vector<64x64xf32> to vector<64xf32>
    %92 = vector.shape_cast %91 : vector<64xf32> to vector<1x64xf32>
    %93 = vector.broadcast %92 : vector<1x64xf32> to vector<64x64xf32>
    %94 = arith.subf %90, %93 : vector<64x64xf32>
    %95 = math.exp %94 : vector<64x64xf32>
    %cst_34 = arith.constant dense<0.000000e+00> : vector<64xf32>
    %96 = vector.multi_reduction <add>, %95, %cst_34 [0] : vector<64x64xf32> to vector<64xf32>
    %97 = vector.shape_cast %96 : vector<64xf32> to vector<1x64xf32>
    %98 = tpu.reciprocal %97 {approx = true} : vector<1x64xf32> -> vector<1x64xf32>
    %99 = vector.broadcast %98 : vector<1x64xf32> to vector<64x64xf32>
    %100 = arith.mulf %95, %99 : vector<64x64xf32>
    %101 = arith.truncf %100 : vector<64x64xf32> to vector<64x64xbf16>
    %cst_35 = arith.constant dense<0.000000e+00> : vector<64x32xf32>
    %102 = tpu.matmul %101, %88, %cst_35 {dimension_numbers = #tpu.dot_dimension_numbers<[1], [0], [0], [1], [0, 0, 1, 1], [], []>} : vector<64x64xbf16>, vector<64x32xbf16>, vector<64x32xf32> -> vector<64x32xf32>
    %103 = arith.truncf %102 : vector<64x32xf32> to vector<64x32xbf16>
    %104 = vector.extract_strided_slice %36 {offsets = [64, 0], sizes = [32, 128], strides = [1, 1]} : vector<128x128xbf16> to vector<32x128xbf16>
    %cst_36 = arith.constant dense<0.000000e+00> : vector<64x128xf32>
    %105 = tpu.matmul %103, %104, %cst_36 {dimension_numbers = #tpu.dot_dimension_numbers<[1], [0], [0], [1], [0, 0, 1, 1], [], []>} : vector<64x32xbf16>, vector<32x128xbf16>, vector<64x128xf32> -> vector<64x128xf32>
    %106 = arith.addf %85, %105 : vector<64x128xf32>
    %107 = vector.extract_strided_slice %34 {offsets = [0, 96], sizes = [64, 32], strides = [1, 1]} : vector<128x384xbf16> to vector<64x32xbf16>
    %108 = vector.extract_strided_slice %34 {offsets = [0, 224], sizes = [64, 32], strides = [1, 1]} : vector<128x384xbf16> to vector<64x32xbf16>
    %109 = vector.extract_strided_slice %34 {offsets = [0, 352], sizes = [64, 32], strides = [1, 1]} : vector<128x384xbf16> to vector<64x32xbf16>
    %cst_37 = arith.constant dense<0.000000e+00> : vector<64x64xf32>
    %110 = tpu.matmul %107, %108, %cst_37 {dimension_numbers = #tpu.dot_dimension_numbers<[1], [1], [0], [0], [0, 0, 1, 0], [], []>} : vector<64x32xbf16>, vector<64x32xbf16>, vector<64x64xf32> -> vector<64x64xf32>
    %111 = arith.addf %110, %42 : vector<64x64xf32>
    %cst_38 = arith.constant dense<0xFF800000> : vector<64xf32>
    %112 = vector.multi_reduction <maximumf>, %111, %cst_38 [0] : vector<64x64xf32> to vector<64xf32>
    %113 = vector.shape_cast %112 : vector<64xf32> to vector<1x64xf32>
    %114 = vector.broadcast %113 : vector<1x64xf32> to vector<64x64xf32>
    %115 = arith.subf %111, %114 : vector<64x64xf32>
    %116 = math.exp %115 : vector<64x64xf32>
    %cst_39 = arith.constant dense<0.000000e+00> : vector<64xf32>
    %117 = vector.multi_reduction <add>, %116, %cst_39 [0] : vector<64x64xf32> to vector<64xf32>
    %118 = vector.shape_cast %117 : vector<64xf32> to vector<1x64xf32>
    %119 = tpu.reciprocal %118 {approx = true} : vector<1x64xf32> -> vector<1x64xf32>
    %120 = vector.broadcast %119 : vector<1x64xf32> to vector<64x64xf32>
    %121 = arith.mulf %116, %120 : vector<64x64xf32>
    %122 = arith.truncf %121 : vector<64x64xf32> to vector<64x64xbf16>
    %cst_40 = arith.constant dense<0.000000e+00> : vector<64x32xf32>
    %123 = tpu.matmul %122, %109, %cst_40 {dimension_numbers = #tpu.dot_dimension_numbers<[1], [0], [0], [1], [0, 0, 1, 1], [], []>} : vector<64x64xbf16>, vector<64x32xbf16>, vector<64x32xf32> -> vector<64x32xf32>
    %124 = arith.truncf %123 : vector<64x32xf32> to vector<64x32xbf16>
    %125 = vector.extract_strided_slice %36 {offsets = [96, 0], sizes = [32, 128], strides = [1, 1]} : vector<128x128xbf16> to vector<32x128xbf16>
    %cst_41 = arith.constant dense<0.000000e+00> : vector<64x128xf32>
    %126 = tpu.matmul %124, %125, %cst_41 {dimension_numbers = #tpu.dot_dimension_numbers<[1], [0], [0], [1], [0, 0, 1, 1], [], []>} : vector<64x32xbf16>, vector<32x128xbf16>, vector<64x128xf32> -> vector<64x128xf32>
    %127 = arith.addf %106, %126 : vector<64x128xf32>
    %cst_42 = arith.constant 0.000000e+00 : f32
    %128 = vector.broadcast %cst_42 : f32 to vector<64x128xf32>
    %129 = vector.extract_strided_slice %34 {offsets = [64, 0], sizes = [64, 32], strides = [1, 1]} : vector<128x384xbf16> to vector<64x32xbf16>
    %130 = vector.extract_strided_slice %34 {offsets = [64, 128], sizes = [64, 32], strides = [1, 1]} : vector<128x384xbf16> to vector<64x32xbf16>
    %131 = vector.extract_strided_slice %34 {offsets = [64, 256], sizes = [64, 32], strides = [1, 1]} : vector<128x384xbf16> to vector<64x32xbf16>
    %cst_43 = arith.constant dense<0.000000e+00> : vector<64x64xf32>
    %132 = tpu.matmul %129, %130, %cst_43 {dimension_numbers = #tpu.dot_dimension_numbers<[1], [1], [0], [0], [0, 0, 1, 0], [], []>} : vector<64x32xbf16>, vector<64x32xbf16>, vector<64x64xf32> -> vector<64x64xf32>
    %133 = arith.addf %132, %42 : vector<64x64xf32>
    %cst_44 = arith.constant dense<0xFF800000> : vector<64xf32>
    %134 = vector.multi_reduction <maximumf>, %133, %cst_44 [0] : vector<64x64xf32> to vector<64xf32>
    %135 = vector.shape_cast %134 : vector<64xf32> to vector<1x64xf32>
    %136 = vector.broadcast %135 : vector<1x64xf32> to vector<64x64xf32>
    %137 = arith.subf %133, %136 : vector<64x64xf32>
    %138 = math.exp %137 : vector<64x64xf32>
    %cst_45 = arith.constant dense<0.000000e+00> : vector<64xf32>
    %139 = vector.multi_reduction <add>, %138, %cst_45 [0] : vector<64x64xf32> to vector<64xf32>
    %140 = vector.shape_cast %139 : vector<64xf32> to vector<1x64xf32>
    %141 = tpu.reciprocal %140 {approx = true} : vector<1x64xf32> -> vector<1x64xf32>
    %142 = vector.broadcast %141 : vector<1x64xf32> to vector<64x64xf32>
    %143 = arith.mulf %138, %142 : vector<64x64xf32>
    %144 = arith.truncf %143 : vector<64x64xf32> to vector<64x64xbf16>
    %cst_46 = arith.constant dense<0.000000e+00> : vector<64x32xf32>
    %145 = tpu.matmul %144, %131, %cst_46 {dimension_numbers = #tpu.dot_dimension_numbers<[1], [0], [0], [1], [0, 0, 1, 1], [], []>} : vector<64x64xbf16>, vector<64x32xbf16>, vector<64x32xf32> -> vector<64x32xf32>
    %146 = arith.truncf %145 : vector<64x32xf32> to vector<64x32xbf16>
    %147 = vector.extract_strided_slice %36 {offsets = [0, 0], sizes = [32, 128], strides = [1, 1]} : vector<128x128xbf16> to vector<32x128xbf16>
    %cst_47 = arith.constant dense<0.000000e+00> : vector<64x128xf32>
    %148 = tpu.matmul %146, %147, %cst_47 {dimension_numbers = #tpu.dot_dimension_numbers<[1], [0], [0], [1], [0, 0, 1, 1], [], []>} : vector<64x32xbf16>, vector<32x128xbf16>, vector<64x128xf32> -> vector<64x128xf32>
    %149 = arith.addf %128, %148 : vector<64x128xf32>
    %150 = vector.extract_strided_slice %34 {offsets = [64, 32], sizes = [64, 32], strides = [1, 1]} : vector<128x384xbf16> to vector<64x32xbf16>
    %151 = vector.extract_strided_slice %34 {offsets = [64, 160], sizes = [64, 32], strides = [1, 1]} : vector<128x384xbf16> to vector<64x32xbf16>
    %152 = vector.extract_strided_slice %34 {offsets = [64, 288], sizes = [64, 32], strides = [1, 1]} : vector<128x384xbf16> to vector<64x32xbf16>
    %cst_48 = arith.constant dense<0.000000e+00> : vector<64x64xf32>
    %153 = tpu.matmul %150, %151, %cst_48 {dimension_numbers = #tpu.dot_dimension_numbers<[1], [1], [0], [0], [0, 0, 1, 0], [], []>} : vector<64x32xbf16>, vector<64x32xbf16>, vector<64x64xf32> -> vector<64x64xf32>
    %154 = arith.addf %153, %42 : vector<64x64xf32>
    %cst_49 = arith.constant dense<0xFF800000> : vector<64xf32>
    %155 = vector.multi_reduction <maximumf>, %154, %cst_49 [0] : vector<64x64xf32> to vector<64xf32>
    %156 = vector.shape_cast %155 : vector<64xf32> to vector<1x64xf32>
    %157 = vector.broadcast %156 : vector<1x64xf32> to vector<64x64xf32>
    %158 = arith.subf %154, %157 : vector<64x64xf32>
    %159 = math.exp %158 : vector<64x64xf32>
    %cst_50 = arith.constant dense<0.000000e+00> : vector<64xf32>
    %160 = vector.multi_reduction <add>, %159, %cst_50 [0] : vector<64x64xf32> to vector<64xf32>
    %161 = vector.shape_cast %160 : vector<64xf32> to vector<1x64xf32>
    %162 = tpu.reciprocal %161 {approx = true} : vector<1x64xf32> -> vector<1x64xf32>
    %163 = vector.broadcast %162 : vector<1x64xf32> to vector<64x64xf32>
    %164 = arith.mulf %159, %163 : vector<64x64xf32>
    %165 = arith.truncf %164 : vector<64x64xf32> to vector<64x64xbf16>
    %cst_51 = arith.constant dense<0.000000e+00> : vector<64x32xf32>
    %166 = tpu.matmul %165, %152, %cst_51 {dimension_numbers = #tpu.dot_dimension_numbers<[1], [0], [0], [1], [0, 0, 1, 1], [], []>} : vector<64x64xbf16>, vector<64x32xbf16>, vector<64x32xf32> -> vector<64x32xf32>
    %167 = arith.truncf %166 : vector<64x32xf32> to vector<64x32xbf16>
    %168 = vector.extract_strided_slice %36 {offsets = [32, 0], sizes = [32, 128], strides = [1, 1]} : vector<128x128xbf16> to vector<32x128xbf16>
    %cst_52 = arith.constant dense<0.000000e+00> : vector<64x128xf32>
    %169 = tpu.matmul %167, %168, %cst_52 {dimension_numbers = #tpu.dot_dimension_numbers<[1], [0], [0], [1], [0, 0, 1, 1], [], []>} : vector<64x32xbf16>, vector<32x128xbf16>, vector<64x128xf32> -> vector<64x128xf32>
    %170 = arith.addf %149, %169 : vector<64x128xf32>
    %171 = vector.extract_strided_slice %34 {offsets = [64, 64], sizes = [64, 32], strides = [1, 1]} : vector<128x384xbf16> to vector<64x32xbf16>
    %172 = vector.extract_strided_slice %34 {offsets = [64, 192], sizes = [64, 32], strides = [1, 1]} : vector<128x384xbf16> to vector<64x32xbf16>
    %173 = vector.extract_strided_slice %34 {offsets = [64, 320], sizes = [64, 32], strides = [1, 1]} : vector<128x384xbf16> to vector<64x32xbf16>
    %cst_53 = arith.constant dense<0.000000e+00> : vector<64x64xf32>
    %174 = tpu.matmul %171, %172, %cst_53 {dimension_numbers = #tpu.dot_dimension_numbers<[1], [1], [0], [0], [0, 0, 1, 0], [], []>} : vector<64x32xbf16>, vector<64x32xbf16>, vector<64x64xf32> -> vector<64x64xf32>
    %175 = arith.addf %174, %42 : vector<64x64xf32>
    %cst_54 = arith.constant dense<0xFF800000> : vector<64xf32>
    %176 = vector.multi_reduction <maximumf>, %175, %cst_54 [0] : vector<64x64xf32> to vector<64xf32>
    %177 = vector.shape_cast %176 : vector<64xf32> to vector<1x64xf32>
    %178 = vector.broadcast %177 : vector<1x64xf32> to vector<64x64xf32>
    %179 = arith.subf %175, %178 : vector<64x64xf32>
    %180 = math.exp %179 : vector<64x64xf32>
    %cst_55 = arith.constant dense<0.000000e+00> : vector<64xf32>
    %181 = vector.multi_reduction <add>, %180, %cst_55 [0] : vector<64x64xf32> to vector<64xf32>
    %182 = vector.shape_cast %181 : vector<64xf32> to vector<1x64xf32>
    %183 = tpu.reciprocal %182 {approx = true} : vector<1x64xf32> -> vector<1x64xf32>
    %184 = vector.broadcast %183 : vector<1x64xf32> to vector<64x64xf32>
    %185 = arith.mulf %180, %184 : vector<64x64xf32>
    %186 = arith.truncf %185 : vector<64x64xf32> to vector<64x64xbf16>
    %cst_56 = arith.constant dense<0.000000e+00> : vector<64x32xf32>
    %187 = tpu.matmul %186, %173, %cst_56 {dimension_numbers = #tpu.dot_dimension_numbers<[1], [0], [0], [1], [0, 0, 1, 1], [], []>} : vector<64x64xbf16>, vector<64x32xbf16>, vector<64x32xf32> -> vector<64x32xf32>
    %188 = arith.truncf %187 : vector<64x32xf32> to vector<64x32xbf16>
    %189 = vector.extract_strided_slice %36 {offsets = [64, 0], sizes = [32, 128], strides = [1, 1]} : vector<128x128xbf16> to vector<32x128xbf16>
    %cst_57 = arith.constant dense<0.000000e+00> : vector<64x128xf32>
    %190 = tpu.matmul %188, %189, %cst_57 {dimension_numbers = #tpu.dot_dimension_numbers<[1], [0], [0], [1], [0, 0, 1, 1], [], []>} : vector<64x32xbf16>, vector<32x128xbf16>, vector<64x128xf32> -> vector<64x128xf32>
    %191 = arith.addf %170, %190 : vector<64x128xf32>
    %192 = vector.extract_strided_slice %34 {offsets = [64, 96], sizes = [64, 32], strides = [1, 1]} : vector<128x384xbf16> to vector<64x32xbf16>
    %193 = vector.extract_strided_slice %34 {offsets = [64, 224], sizes = [64, 32], strides = [1, 1]} : vector<128x384xbf16> to vector<64x32xbf16>
    %194 = vector.extract_strided_slice %34 {offsets = [64, 352], sizes = [64, 32], strides = [1, 1]} : vector<128x384xbf16> to vector<64x32xbf16>
    %cst_58 = arith.constant dense<0.000000e+00> : vector<64x64xf32>
    %195 = tpu.matmul %192, %193, %cst_58 {dimension_numbers = #tpu.dot_dimension_numbers<[1], [1], [0], [0], [0, 0, 1, 0], [], []>} : vector<64x32xbf16>, vector<64x32xbf16>, vector<64x64xf32> -> vector<64x64xf32>
    %196 = arith.addf %195, %42 : vector<64x64xf32>
    %cst_59 = arith.constant dense<0xFF800000> : vector<64xf32>
    %197 = vector.multi_reduction <maximumf>, %196, %cst_59 [0] : vector<64x64xf32> to vector<64xf32>
    %198 = vector.shape_cast %197 : vector<64xf32> to vector<1x64xf32>
    %199 = vector.broadcast %198 : vector<1x64xf32> to vector<64x64xf32>
    %200 = arith.subf %196, %199 : vector<64x64xf32>
    %201 = math.exp %200 : vector<64x64xf32>
    %cst_60 = arith.constant dense<0.000000e+00> : vector<64xf32>
    %202 = vector.multi_reduction <add>, %201, %cst_60 [0] : vector<64x64xf32> to vector<64xf32>
    %203 = vector.shape_cast %202 : vector<64xf32> to vector<1x64xf32>
    %204 = tpu.reciprocal %203 {approx = true} : vector<1x64xf32> -> vector<1x64xf32>
    %205 = vector.broadcast %204 : vector<1x64xf32> to vector<64x64xf32>
    %206 = arith.mulf %201, %205 : vector<64x64xf32>
    %207 = arith.truncf %206 : vector<64x64xf32> to vector<64x64xbf16>
    %cst_61 = arith.constant dense<0.000000e+00> : vector<64x32xf32>
    %208 = tpu.matmul %207, %194, %cst_61 {dimension_numbers = #tpu.dot_dimension_numbers<[1], [0], [0], [1], [0, 0, 1, 1], [], []>} : vector<64x64xbf16>, vector<64x32xbf16>, vector<64x32xf32> -> vector<64x32xf32>
    %209 = arith.truncf %208 : vector<64x32xf32> to vector<64x32xbf16>
    %210 = vector.extract_strided_slice %36 {offsets = [96, 0], sizes = [32, 128], strides = [1, 1]} : vector<128x128xbf16> to vector<32x128xbf16>
    %cst_62 = arith.constant dense<0.000000e+00> : vector<64x128xf32>
    %211 = tpu.matmul %209, %210, %cst_62 {dimension_numbers = #tpu.dot_dimension_numbers<[1], [0], [0], [1], [0, 0, 1, 1], [], []>} : vector<64x32xbf16>, vector<32x128xbf16>, vector<64x128xf32> -> vector<64x128xf32>
    %212 = arith.addf %191, %211 : vector<64x128xf32>
    %213 = tpu.concatenate %127, %212 in 0 : vector<64x128xf32>, vector<64x128xf32> -> vector<128x128xf32>
    %214 = arith.addf %3, %213 : vector<128x128xf32>
    %c0_63 = arith.constant 0 : index
    %c0_64 = arith.constant 0 : index
    %c0_65 = arith.constant 0 : index
    %215 = vector.load %arg8[%c0_63, %c0_64, %c0_65] : memref<1x1x128xf32, #tpu.memory_space<vmem>>, vector<1x1x128xf32>
    %216 = vector.shape_cast %215 : vector<1x1x128xf32> to vector<1x128xf32>
    %217 = vector.broadcast %216 : vector<1x128xf32> to vector<128x128xf32>
    %218 = arith.addf %214, %217 : vector<128x128xf32>
    %c0_66 = arith.constant 0 : index
    %c0_67 = arith.constant 0 : index
    %c0_68 = arith.constant 0 : index
    %219 = vector.load %arg9[%c0_66, %c0_67, %c0_68] : memref<1x1x128xf32, #tpu.memory_space<vmem>>, vector<1x1x128xf32>
    %220 = vector.shape_cast %219 : vector<1x1x128xf32> to vector<1x128xf32>
    %c0_69 = arith.constant 0 : index
    %c0_70 = arith.constant 0 : index
    %c0_71 = arith.constant 0 : index
    %221 = vector.load %arg10[%c0_69, %c0_70, %c0_71] : memref<1x1x128xf32, #tpu.memory_space<vmem>>, vector<1x1x128xf32>
    %222 = vector.shape_cast %221 : vector<1x1x128xf32> to vector<1x128xf32>
    %cst_72 = arith.constant dense<0.000000e+00> : vector<128xf32>
    %223 = vector.multi_reduction <add>, %218, %cst_72 [1] : vector<128x128xf32> to vector<128xf32>
    %224 = vector.shape_cast %223 : vector<128xf32> to vector<128x1xf32>
    %cst_73 = arith.constant 1.280000e+02 : f32
    %225 = vector.broadcast %cst_73 : f32 to vector<128x1xf32>
    %226 = arith.divf %224, %225 : vector<128x1xf32>
    %227 = vector.broadcast %226 : vector<128x1xf32> to vector<128x128xf32>
    %228 = arith.subf %218, %227 : vector<128x128xf32>
    %229 = arith.mulf %228, %228 : vector<128x128xf32>
    %cst_74 = arith.constant dense<0.000000e+00> : vector<128xf32>
    %230 = vector.multi_reduction <add>, %229, %cst_74 [1] : vector<128x128xf32> to vector<128xf32>
    %231 = vector.shape_cast %230 : vector<128xf32> to vector<128x1xf32>
    %cst_75 = arith.constant 1.280000e+02 : f32
    %232 = vector.broadcast %cst_75 : f32 to vector<128x1xf32>
    %233 = arith.divf %231, %232 : vector<128x1xf32>
    %234 = vector.broadcast %226 : vector<128x1xf32> to vector<128x128xf32>
    %235 = arith.subf %218, %234 : vector<128x128xf32>
    %cst_76 = arith.constant 9.99999974E-6 : f32
    %236 = vector.broadcast %cst_76 : f32 to vector<128x1xf32>
    %237 = arith.addf %233, %236 : vector<128x1xf32>
    %238 = math.rsqrt %237 : vector<128x1xf32>
    %239 = vector.broadcast %238 : vector<128x1xf32> to vector<128x128xf32>
    %240 = arith.mulf %235, %239 : vector<128x128xf32>
    %241 = vector.broadcast %220 : vector<1x128xf32> to vector<128x128xf32>
    %242 = arith.mulf %240, %241 : vector<128x128xf32>
    %243 = vector.broadcast %222 : vector<1x128xf32> to vector<128x128xf32>
    %244 = arith.addf %242, %243 : vector<128x128xf32>
    %245 = arith.truncf %244 : vector<128x128xf32> to vector<128x128xbf16>
    %c0_77 = arith.constant 0 : index
    %c0_78 = arith.constant 0 : index
    %c0_79 = arith.constant 0 : index
    %246 = vector.load %arg11[%c0_77, %c0_78, %c0_79] : memref<1x128x512xbf16, #tpu.memory_space<vmem>>, vector<1x128x512xbf16>
    %247 = vector.shape_cast %246 : vector<1x128x512xbf16> to vector<128x512xbf16>
    %cst_80 = arith.constant dense<0.000000e+00> : vector<128x512xf32>
    %248 = tpu.matmul %245, %247, %cst_80 {dimension_numbers = #tpu.dot_dimension_numbers<[1], [0], [0], [1], [0, 0, 1, 1], [], []>} : vector<128x128xbf16>, vector<128x512xbf16>, vector<128x512xf32> -> vector<128x512xf32>
    %c0_81 = arith.constant 0 : index
    %c0_82 = arith.constant 0 : index
    %c0_83 = arith.constant 0 : index
    %249 = vector.load %arg12[%c0_81, %c0_82, %c0_83] : memref<1x1x512xf32, #tpu.memory_space<vmem>>, vector<1x1x512xf32>
    %250 = vector.shape_cast %249 : vector<1x1x512xf32> to vector<1x512xf32>
    %251 = vector.broadcast %250 : vector<1x512xf32> to vector<128x512xf32>
    %252 = arith.addf %248, %251 : vector<128x512xf32>
    %cst_84 = arith.constant 0.000000e+00 : f32
    %253 = vector.broadcast %cst_84 : f32 to vector<128x512xf32>
    %254 = arith.maximumf %252, %253 : vector<128x512xf32>
    %255 = arith.truncf %254 : vector<128x512xf32> to vector<128x512xbf16>
    %c0_85 = arith.constant 0 : index
    %c0_86 = arith.constant 0 : index
    %c0_87 = arith.constant 0 : index
    %256 = vector.load %arg13[%c0_85, %c0_86, %c0_87] : memref<1x512x128xbf16, #tpu.memory_space<vmem>>, vector<1x512x128xbf16>
    %257 = vector.shape_cast %256 : vector<1x512x128xbf16> to vector<512x128xbf16>
    %cst_88 = arith.constant dense<0.000000e+00> : vector<128x128xf32>
    %258 = tpu.matmul %255, %257, %cst_88 {dimension_numbers = #tpu.dot_dimension_numbers<[1], [0], [0], [1], [0, 0, 1, 1], [], []>} : vector<128x512xbf16>, vector<512x128xbf16>, vector<128x128xf32> -> vector<128x128xf32>
    %259 = arith.addf %218, %258 : vector<128x128xf32>
    %c0_89 = arith.constant 0 : index
    %c0_90 = arith.constant 0 : index
    %c0_91 = arith.constant 0 : index
    %260 = vector.load %arg14[%c0_89, %c0_90, %c0_91] : memref<1x1x128xf32, #tpu.memory_space<vmem>>, vector<1x1x128xf32>
    %261 = vector.shape_cast %260 : vector<1x1x128xf32> to vector<1x128xf32>
    %262 = vector.broadcast %261 : vector<1x128xf32> to vector<128x128xf32>
    %263 = arith.addf %259, %262 : vector<128x128xf32>
    %c0_92 = arith.constant 0 : index
    %c0_93 = arith.constant 0 : index
    %264 = vector.load %arg20[%c0_92, %c0_93] : memref<128x128xf32, #tpu.memory_space<vmem>>, vector<128x128xf32>
    tpu.vector_store %arg20[%c0_92, %c0_93], %263 {strides = array<i32>} : memref<128x128xf32, #tpu.memory_space<vmem>>, vector<128x128xf32>,
    %c1_i32 = arith.constant 1 : i32
    %265 = arith.cmpi eq, %arg0, %c1_i32 : i32
    %266 = arith.extui %265 : i1 to i32
    %c0_i32_94 = arith.constant 0 : i32
    %267 = arith.cmpi ne, %266, %c0_i32_94 : i32
    scf.if %267 {
      %c0_95 = arith.constant 0 : index
      %c0_96 = arith.constant 0 : index
      %268 = vector.load %arg15[%c0_95, %c0_96] : memref<1x128xf32, #tpu.memory_space<vmem>>, vector<1x128xf32>
      %c0_97 = arith.constant 0 : index
      %c0_98 = arith.constant 0 : index
      %269 = vector.load %arg16[%c0_97, %c0_98] : memref<1x128xf32, #tpu.memory_space<vmem>>, vector<1x128xf32>
      %cst_99 = arith.constant dense<0.000000e+00> : vector<128xf32>
      %270 = vector.multi_reduction <add>, %263, %cst_99 [1] : vector<128x128xf32> to vector<128xf32>
      %271 = vector.shape_cast %270 : vector<128xf32> to vector<128x1xf32>
      %cst_100 = arith.constant 1.280000e+02 : f32
      %272 = vector.broadcast %cst_100 : f32 to vector<128x1xf32>
      %273 = arith.divf %271, %272 : vector<128x1xf32>
      %274 = vector.broadcast %273 : vector<128x1xf32> to vector<128x128xf32>
      %275 = arith.subf %263, %274 : vector<128x128xf32>
      %276 = arith.mulf %275, %275 : vector<128x128xf32>
      %cst_101 = arith.constant dense<0.000000e+00> : vector<128xf32>
      %277 = vector.multi_reduction <add>, %276, %cst_101 [1] : vector<128x128xf32> to vector<128xf32>
      %278 = vector.shape_cast %277 : vector<128xf32> to vector<128x1xf32>
      %cst_102 = arith.constant 1.280000e+02 : f32
      %279 = vector.broadcast %cst_102 : f32 to vector<128x1xf32>
      %280 = arith.divf %278, %279 : vector<128x1xf32>
      %281 = vector.broadcast %273 : vector<128x1xf32> to vector<128x128xf32>
      %282 = arith.subf %263, %281 : vector<128x128xf32>
      %cst_103 = arith.constant 9.99999974E-6 : f32
      %283 = vector.broadcast %cst_103 : f32 to vector<128x1xf32>
      %284 = arith.addf %280, %283 : vector<128x1xf32>
      %285 = math.rsqrt %284 : vector<128x1xf32>
      %286 = vector.broadcast %285 : vector<128x1xf32> to vector<128x128xf32>
      %287 = arith.mulf %282, %286 : vector<128x128xf32>
      %288 = vector.broadcast %268 : vector<1x128xf32> to vector<128x128xf32>
      %289 = arith.mulf %287, %288 : vector<128x128xf32>
      %290 = vector.broadcast %269 : vector<1x128xf32> to vector<128x128xf32>
      %291 = arith.addf %289, %290 : vector<128x128xf32>
      %292 = arith.truncf %291 : vector<128x128xf32> to vector<128x128xbf16>
      %c0_104 = arith.constant 0 : index
      %c0_105 = arith.constant 0 : index
      %293 = vector.load %arg17[%c0_104, %c0_105] : memref<128x128xbf16, #tpu.memory_space<vmem>>, vector<128x128xbf16>
      %cst_106 = arith.constant dense<0.000000e+00> : vector<128x128xf32>
      %294 = tpu.matmul %292, %293, %cst_106 {dimension_numbers = #tpu.dot_dimension_numbers<[1], [0], [0], [1], [0, 0, 1, 1], [], []>} : vector<128x128xbf16>, vector<128x128xbf16>, vector<128x128xf32> -> vector<128x128xf32>
      %c0_107 = arith.constant 0 : index
      %c0_108 = arith.constant 0 : index
      %295 = vector.load %arg18[%c0_107, %c0_108] : memref<1x128xf32, #tpu.memory_space<vmem>>, vector<1x128xf32>
      %296 = vector.broadcast %295 : vector<1x128xf32> to vector<128x128xf32>
      %297 = arith.addf %294, %296 : vector<128x128xf32>
      %c0_109 = arith.constant 0 : index
      %c0_110 = arith.constant 0 : index
      %298 = vector.load %arg19[%c0_109, %c0_110] : memref<128x128xf32, #tpu.memory_space<vmem>>, vector<128x128xf32>
      tpu.vector_store %arg19[%c0_109, %c0_110], %297 {strides = array<i32>} : memref<128x128xf32, #tpu.memory_space<vmem>>, vector<128x128xf32>,
    } else {
    }
    return
  }
  func.func @transform_0(%arg0: i32) -> (i32, i32) {
    %c0_i32 = arith.constant 0 : i32
    %c0_i32_0 = arith.constant 0 : i32
    %c0_i32_1 = arith.constant 0 : i32
    return %c0_i32, %c0_i32_0 : i32, i32
  }
  func.func @transform_1(%arg0: i32) -> (i32, i32) {
    %c0_i32 = arith.constant 0 : i32
    %c0_i32_0 = arith.constant 0 : i32
    %c0_i32_1 = arith.constant 0 : i32
    return %c0_i32, %c0_i32_0 : i32, i32
  }
  func.func @transform_2(%arg0: i32) -> (i32, i32) {
    %c0_i32 = arith.constant 0 : i32
    %c0_i32_0 = arith.constant 0 : i32
    %c0_i32_1 = arith.constant 0 : i32
    return %c0_i32, %c0_i32_0 : i32, i32
  }
  func.func @transform_3(%arg0: i32) -> (i32, i32, i32) {
    %c0_i32 = arith.constant 0 : i32
    %c0_i32_0 = arith.constant 0 : i32
    %c0_i32_1 = arith.constant 0 : i32
    return %arg0, %c0_i32, %c0_i32_0 : i32, i32, i32
  }
  func.func @transform_4(%arg0: i32) -> (i32, i32, i32) {
    %c0_i32 = arith.constant 0 : i32
    %c0_i32_0 = arith.constant 0 : i32
    %c0_i32_1 = arith.constant 0 : i32
    return %arg0, %c0_i32, %c0_i32_0 : i32, i32, i32
  }
  func.func @transform_5(%arg0: i32) -> (i32, i32, i32) {
    %c0_i32 = arith.constant 0 : i32
    %c0_i32_0 = arith.constant 0 : i32
    %c0_i32_1 = arith.constant 0 : i32
    return %arg0, %c0_i32, %c0_i32_0 : i32, i32, i32
  }
  func.func @transform_6(%arg0: i32) -> (i32, i32, i32) {
    %c0_i32 = arith.constant 0 : i32
    %c0_i32_0 = arith.constant 0 : i32
    %c0_i32_1 = arith.constant 0 : i32
    return %arg0, %c0_i32, %c0_i32_0 : i32, i32, i32
  }
  func.func @transform_7(%arg0: i32) -> (i32, i32, i32) {
    %c0_i32 = arith.constant 0 : i32
    %c0_i32_0 = arith.constant 0 : i32
    %c0_i32_1 = arith.constant 0 : i32
    return %arg0, %c0_i32, %c0_i32_0 : i32, i32, i32
  }
  func.func @transform_8(%arg0: i32) -> (i32, i32, i32) {
    %c0_i32 = arith.constant 0 : i32
    %c0_i32_0 = arith.constant 0 : i32
    %c0_i32_1 = arith.constant 0 : i32
    return %arg0, %c0_i32, %c0_i32_0 : i32, i32, i32
  }
  func.func @transform_9(%arg0: i32) -> (i32, i32, i32) {
    %c0_i32 = arith.constant 0 : i32
    %c0_i32_0 = arith.constant 0 : i32
    %c0_i32_1 = arith.constant 0 : i32
    return %arg0, %c0_i32, %c0_i32_0 : i32, i32, i32
  }
  func.func @transform_10(%arg0: i32) -> (i32, i32, i32) {
    %c0_i32 = arith.constant 0 : i32
    %c0_i32_0 = arith.constant 0 : i32
    %c0_i32_1 = arith.constant 0 : i32
    return %arg0, %c0_i32, %c0_i32_0 : i32, i32, i32
  }
  func.func @transform_11(%arg0: i32) -> (i32, i32, i32) {
    %c0_i32 = arith.constant 0 : i32
    %c0_i32_0 = arith.constant 0 : i32
    %c0_i32_1 = arith.constant 0 : i32
    return %arg0, %c0_i32, %c0_i32_0 : i32, i32, i32
  }
  func.func @transform_12(%arg0: i32) -> (i32, i32, i32) {
    %c0_i32 = arith.constant 0 : i32
    %c0_i32_0 = arith.constant 0 : i32
    %c0_i32_1 = arith.constant 0 : i32
    return %arg0, %c0_i32, %c0_i32_0 : i32, i32, i32
  }
  func.func @transform_13(%arg0: i32) -> (i32, i32, i32) {
    %c0_i32 = arith.constant 0 : i32
    %c0_i32_0 = arith.constant 0 : i32
    %c0_i32_1 = arith.constant 0 : i32
    return %arg0, %c0_i32, %c0_i32_0 : i32, i32, i32
  }
  func.func @transform_14(%arg0: i32) -> (i32, i32) {
    %c0_i32 = arith.constant 0 : i32
    %c0_i32_0 = arith.constant 0 : i32
    %c0_i32_1 = arith.constant 0 : i32
    return %c0_i32, %c0_i32_0 : i32, i32
  }
  func.func @transform_15(%arg0: i32) -> (i32, i32) {
    %c0_i32 = arith.constant 0 : i32
    %c0_i32_0 = arith.constant 0 : i32
    %c0_i32_1 = arith.constant 0 : i32
    return %c0_i32, %c0_i32_0 : i32, i32
  }
  func.func @transform_16(%arg0: i32) -> (i32, i32) {
    %c0_i32 = arith.constant 0 : i32
    %c0_i32_0 = arith.constant 0 : i32
    %c0_i32_1 = arith.constant 0 : i32
    return %c0_i32, %c0_i32_0 : i32, i32
  }
  func.func @transform_17(%arg0: i32) -> (i32, i32) {
    %c0_i32 = arith.constant 0 : i32
    %c0_i32_0 = arith.constant 0 : i32
    %c0_i32_1 = arith.constant 0 : i32
    return %c0_i32, %c0_i32_0 : i32, i32
  }
  func.func @transform_18(%arg0: i32) -> (i32, i32) {
    %c0_i32 = arith.constant 0 : i32
    %c0_i32_0 = arith.constant 0 : i32
    %c0_i32_1 = arith.constant 0 : i32
    return %c0_i32, %c0_i32_0 : i32, i32
  }
}

</mosaic_0001>

<bundles_post_ra>
// kernel: bigram_lm_forward.1
= control target key start
LH: loop header
LB: loop body
LE: loop exit
PB: predicated region body
PF: predicated region fallthrough
CT: control target
= control target key end

     0   :  { %s11739_s0 = inlined_call_operand.vmem [shape: s32[128,1], index: 0, kind: input, shape index: {}]   ;;  %s11740_s1 = inlined_call_operand.vmem [shape: f32[128,128], index: 1, kind: input, shape index: {}]   ;;  %s11741_s2 = inlined_call_operand.vmem [shape: f32[64,128], index: 2, kind: input, shape index: {}]   ;;  %s11742_s3 = inlined_call_operand.vmem [shape: f32[2,1,128], index: 3, kind: input, shape index: {}]   ;;  %s11743_s4 = inlined_call_operand.vmem [shape: f32[2,1,128], index: 4, kind: input, shape index: {}]   ;;  %s11744_s5 = inlined_call_operand.hbm [shape: bf16[2,128,384], index: 5, kind: input, shape index: {}]   ;;  %s11745_s6 = inlined_call_operand.hbm [shape: bf16[2,128,128], index: 6, kind: input, shape index: {}]   ;;  %s11746_s7 = inlined_call_operand.hbm [shape: f32[2,1,128], index: 7, kind: input, shape index: {}]   ;;  %s11747_s8 = inlined_call_operand.vmem [shape: f32[2,1,128], index: 8, kind: input, shape index: {}]   ;;  %s11748_s9 = inlined_call_operand.vmem [shape: f32[2,1,128], index: 9, kind: input, shape index: {}]   ;;  %s11749_s10 = inlined_call_operand.hbm [shape: bf16[2,128,512], index: 10, kind: input, shape index: {}]   ;;  %s11750_s11 = inlined_call_operand.hbm [shape: f32[2,1,512], index: 11, kind: input, shape index: {}]   ;;  %s11751_s12 = inlined_call_operand.hbm [shape: bf16[2,512,128], index: 12, kind: input, shape index: {}]   ;;  %s11752_s13 = inlined_call_operand.hbm [shape: f32[2,1,128], index: 13, kind: input, shape index: {}]   ;;  %s11753_s14 = inlined_call_operand.vmem [shape: f32[1,128], index: 14, kind: input, shape index: {}]   ;;  %s11754_s15 = inlined_call_operand.vmem [shape: f32[1,128], index: 15, kind: input, shape index: {}]   ;;  %s11755_s16 = inlined_call_operand.vmem [shape: bf16[128,128], index: 16, kind: input, shape index: {}]   ;;  %s11756_s17 = inlined_call_operand.hbm [shape: f32[1,128], index: 17, kind: input, shape index: {}]   ;;  %s11757_s18 = inlined_call_operand.hbm [shape: f32[128,128], index: 18, kind: output, shape index: {}]  }
   0x1   :  { %11784 = sst [smem:[#allocation32_spill]] %s11739_s0 }
   0x2   :  { %11785 = sst [smem:[#allocation33_spill]] %s11740_s1 }
   0x3   :  { %11786 = sst [smem:[#allocation34_spill]] %s11741_s2 }
   0x4   :  { %11787 = sst [smem:[#allocation35_spill]] %s11744_s5 }
   0x5   :  { %11788 = sst [smem:[#allocation36_spill]] %s11745_s6 }
   0x6   :  { %11789 = sst [smem:[#allocation37_spill]] %s11748_s9 }
   0x7   :  { %11790 = sst [smem:[#allocation38_spill]] %s11749_s10 }
   0x8   :  { %11791 = sst [smem:[#allocation39_spill]] %s11751_s12 }
   0x9   :  { %11792 = sst [smem:[#allocation40_spill]] %s11753_s14 }
   0xa   :  { %11793 = sst [smem:[#allocation41_spill]] %s11754_s15 }
   0xb   :  { %11794 = sst [smem:[#allocation42_spill]] %s11755_s16 }
   0xc   :  { %11795 = sst [smem:[#allocation43_spill]] %s11756_s17 }
   0xd   :  { %11796 = sst [smem:[#allocation44_spill]] %s11757_s18 }
   0xe   :  { %23 = vsyncpa [#allocation4], 0 }
   0xf   :  { %25 = vsyncpa [#allocation4 + $0x1], 0 }
  0x10   :  { %26 = vsyncpa [#allocation7], 0 }
  0x11   :  { %28 = vsyncpa [#allocation7 + $0x1], 0 }
  0x12   :  { %29 = vsyncpa [#allocation10], 0 }
  0x13   :  { %31 = vsyncpa [#allocation10 + $0x1], 0 }
  0x14   :  { %32 = vsyncpa [#allocation13], 0 }
  0x15   :  { %34 = vsyncpa [#allocation13 + $0x1], 0 }
  0x16   :  { %35 = vsyncpa [#allocation16], 0 }
  0x17   :  { %36 = vsyncpa [#allocation5], 0  ;;  %s9360_s27 = smov 0   ;;  %s9362_s28 = smov 0  }
  0x18   :  { %s9364_s29 = smov 0   ;;  %s9366_s30 = smov 0  }
  0x19 LB: > { %11797 = sst [smem:[#allocation24_spill]] %s9234_s29  ;;  %s9381_s0 = sadd.s32 1, %s9238_s30   ;;  %s9238_s30 = sphi %s9366_s30, %s11853_s30   ;;  %s9234_s29 = sphi %s9364_s29, %s11855_s29   ;;  %s9230_s28 = sphi %s9362_s28, %s11857_s28   ;;  %s9226_s27 = sphi %s9360_s27, %s11856_s27  }
  0x1a   : > { %11798 = sst [smem:[#allocation25_spill]] %s9381_s0  ;;  %s164_s19 = sadd.s32 1, %s9234_s29 }
  0x1b   : > { %s161_s1 = ssub.s32 %s9238_s30, %s9381_s0  ;;  %p171_p0 = scmp.ne.s32.totalorder %s9234_s29, %s9230_s28 }
  0x1c   : > { %p162_p1 = scmp.eq.s32.totalorder %s161_s1, 0  ;;  %p172_p2 = scmp.eq.s32.totalorder %s9238_s30, 0 }
  0x1d   : > { %p8489_p3 = scmp.lt.s32.totalorder %s9238_s30, 2  ;;  %s9394_s21 = sand.u32 1, %s9234_s29  }
  0x1e   : > { %s9391_s20 = scalar_select %p162_p1, %s9234_s29, %s164_s19  }
  0x1f   : > { %p173_p4 = por %p172_p2, %p171_p0  ;;  %s9397_s22 = sand.u32 1, %s9238_s30  }
  0x20   : > { %11799 = sst [smem:[#allocation26_spill]] %s9391_s20  ;;  %s7150_s2 = sshll.u32 %s9394_s21, 6 }
  0x21   : > { %p9400_p5 = pnand %p8489_p3, %p173_p4  ;;  %s7449_s24 = sshll.u32 %s9238_s30, 10 }
  0x22   : > { %s11801_s6 = sld [smem:[#allocation36_spill]]  ;;  %s580_s19 = scalar_lea.vmem [#allocation6], %s7150_s2 }
  0x23   : > { %s587_s20 = sshll.u32 %s580_s19, 4  ;;  %p9417_p7 = pneg %p9400_p5  ;;  %s9410_s20 = int_to_ptr.vmem [resolvable:$true] %s587_s20 }
  0x28   : > { %s9408_s1 = scalar_lea.hbm %s11801_s6, %s7449_s24  ;;  %s8943_s26 = scalar_lea.hbm %s11801_s6, 2048 }
  0x29   : > { %s8938_s0 = scalar_lea.hbm %s9408_s1, 1024  ;;  %p8944_p10 = scmp.lt.s32.totalorder %s9408_s1, %s11801_s6 }
  0x2a   : > { %p8939_p6 = scmp.ne.s32.totalorder %s9408_s1, %s8938_s0  ;;  %p8945_p11 = scmp.lt.s32.totalorder %s8943_s26, %s8938_s0 }
  0x2c   : > { %p8941_p8 = pnand %p9417_p7, %p8939_p6  ;;  %p8946_p12 = por %p8945_p11, %p8944_p10 }
  0x2e   : > { %p8942_p9 = pneg %p8941_p8 }
  0x30   : > { %p8947_p13 = pnand %p8946_p12, %p8942_p9 }
  0x32   : > { %8950 = shalt.err (!%p8947_p13)
}
  0x33   : > { %s8951_s29 = scalar_lea.vmem %s9410_s20, 1024  ;;  %s9240_s15 = smov [#allocation6]  }
  0x34   : > { %p8952_p0 = scmp.ne.s32.totalorder %s9410_s20, %s8951_s29  ;;  %s8956_s24 = sshll.u32 %s9240_s15, 4  ;;  %s8957_s24 = int_to_ptr.vmem [resolvable:$false] %s8956_s24 }
  0x35   : > { %s8958_s25 = scalar_lea.vmem %s8957_s24, 2048  ;;  %p8959_p3 = scmp.lt.s32.totalorder %s9410_s20, %s8957_s24 }
  0x36   : > { %p8954_p1 = pnand %p8952_p0, %p9417_p7  ;;  %p8960_p4 = scmp.lt.s32.totalorder %s8958_s25, %s8951_s29 }
  0x38   : > { %p8955_p2 = pneg %p8954_p1  ;;  %p8961_p6 = por %p8960_p4, %p8959_p3 }
  0x3a   : > { %p8962_p8 = pnand %p8961_p6, %p8955_p2 }
  0x3c   : > { %8965 = shalt.err (!%p8962_p8)
}
  0x3d   : > { %s11765_s0 = smov 64   ;;  %s11766_s26 = smov 4  }
  0x3e   : > { %s11803_s15 = scalar_lea.sflag [#allocation7], %s9397_s22  ;;  %s7154_s29 = sshll.u32 %s9394_s21, 8 }
  0x3f   : > { %8472 = dma.hbm_to_vmem [thread:$0]  (!%p9400_p5), %s9408_s1, 1024, %s9410_s20, %s11803_s15, %s11765_s0, %s11765_s0, %s11766_s26  }
  0x40   : > { %s7450_s2 = sshll.u32 %s9238_s30, 12  ;;  %s11804_s10 = sld [smem:[#allocation38_spill]] }
  0x41   : > { %s630_s6 = scalar_lea.vmem [#allocation9], %s7154_s29  ;;  %s11768_s16 = scalar_lea.sflag [#allocation10], %s9397_s22 }
  0x42   : > { %s637_s14 = sshll.u32 %s630_s6, 4  ;;  %s9455_s14 = int_to_ptr.vmem [resolvable:$true] %s637_s14 }
  0x46   : > { %s9451_s25 = scalar_lea.hbm %s11804_s10, %s7450_s2  ;;  %s8971_s15 = scalar_lea.hbm %s11804_s10, 8192 }
  0x47   : > { %s8966_s9 = scalar_lea.hbm %s9451_s25, 4096  ;;  %p8972_p12 = scmp.lt.s32.totalorder %s9451_s25, %s11804_s10 }
  0x48   : > { %p8967_p9 = scmp.ne.s32.totalorder %s9451_s25, %s8966_s9  ;;  %p8973_p13 = scmp.lt.s32.totalorder %s8971_s15, %s8966_s9 }
  0x4a   : > { %p8969_p10 = pnand %p8967_p9, %p9417_p7  ;;  %p8974_p0 = por %p8973_p13, %p8972_p12 }
  0x4c   : > { %p8970_p11 = pneg %p8969_p10 }
  0x4e   : > { %p8975_p1 = pnand %p8974_p0, %p8970_p11 }
  0x50   : > { %8978 = shalt.err (!%p8975_p1)
}
  0x51   : > { %s8979_s6 = scalar_lea.vmem %s9455_s14, 4096  ;;  %s9243_s0 = smov [#allocation9]  }
  0x52   : > { %p8980_p2 = scmp.ne.s32.totalorder %s9455_s14, %s8979_s6  ;;  %s8984_s20 = sshll.u32 %s9243_s0, 4  ;;  %s8985_s20 = int_to_ptr.vmem [resolvable:$false] %s8984_s20 }
  0x53   : > { %s8986_s1 = scalar_lea.vmem %s8985_s20, 8192  ;;  %p8987_p6 = scmp.lt.s32.totalorder %s9455_s14, %s8985_s20 }
  0x54   : > { %p8982_p3 = pnand %p8980_p2, %p9417_p7  ;;  %p8988_p8 = scmp.lt.s32.totalorder %s8986_s1, %s8979_s6 }
  0x56   : > { %p8983_p4 = pneg %p8982_p3  ;;  %p8989_p9 = por %p8988_p8, %p8987_p6 }
  0x58   : > { %p8990_p10 = pnand %p8989_p9, %p8983_p4 }
  0x5a   : > { %8993 = shalt.err (!%p8990_p10)
}
  0x5b   : > { %s9244_s9 = smov 256   ;;  %s9245_s15 = smov 16  }
  0x5c   : > { %8478 = dma.hbm_to_vmem [thread:$0]  (!%p9400_p5), %s9451_s25, 4096, %s9455_s14, %s11768_s16, %s9244_s9, %s9244_s9, %s9245_s15  }
  0x5d   : > { %s11805_s12 = sld [smem:[#allocation39_spill]]  ;;  %s670_s6 = scalar_lea.vmem [#allocation12], %s7154_s29 }
  0x5e   : > { %s677_s20 = sshll.u32 %s670_s6, 4  ;;  %s11767_s1 = scalar_lea.sflag [#allocation13], %s9397_s22  ;;  %s9489_s20 = int_to_ptr.vmem [resolvable:$true] %s677_s20 }
  0x63   : > { %s9485_s24 = scalar_lea.hbm %s11805_s12, %s7450_s2  ;;  %s8999_s9 = scalar_lea.hbm %s11805_s12, 8192 }
  0x64   : > { %s8994_s26 = scalar_lea.hbm %s9485_s24, 4096  ;;  %p9000_p0 = scmp.lt.s32.totalorder %s9485_s24, %s11805_s12 }
  0x65   : > { %p8995_p11 = scmp.ne.s32.totalorder %s9485_s24, %s8994_s26  ;;  %p9001_p1 = scmp.lt.s32.totalorder %s8999_s9, %s8994_s26 }
  0x67   : > { %p8997_p12 = pnand %p8995_p11, %p9417_p7  ;;  %p9002_p2 = por %p9001_p1, %p9000_p0 }
  0x69   : > { %p8998_p13 = pneg %p8997_p12 }
  0x6b   : > { %p9003_p3 = pnand %p9002_p2, %p8998_p13 }
  0x6d   : > { %9006 = shalt.err (!%p9003_p3)
}
  0x6e   : > { %s9007_s29 = scalar_lea.vmem %s9489_s20, 4096  ;;  %s9246_s0 = smov [#allocation12]  }
  0x6f   : > { %p9008_p4 = scmp.ne.s32.totalorder %s9489_s20, %s9007_s29  ;;  %s9012_s19 = sshll.u32 %s9246_s0, 4  ;;  %s9013_s19 = int_to_ptr.vmem [resolvable:$false] %s9012_s19 }
  0x70   : > { %s9014_s6 = scalar_lea.vmem %s9013_s19, 8192  ;;  %p9015_p9 = scmp.lt.s32.totalorder %s9489_s20, %s9013_s19 }
  0x71   : > { %p9010_p6 = pnand %p9008_p4, %p9417_p7  ;;  %p9016_p10 = scmp.lt.s32.totalorder %s9014_s6, %s9007_s29 }
  0x73   : > { %p9011_p8 = pneg %p9010_p6  ;;  %p9017_p11 = por %p9016_p10, %p9015_p9 }
  0x75   : > { %p9018_p12 = pnand %p9017_p11, %p9011_p8 }
  0x77   : > { %9021 = shalt.err (!%p9018_p12)
}
  0x78   : > { %s11806_s26 = smov 4   ;;  %s11807_s14 = smov 64  }
  0x79   : > { %8484 = dma.hbm_to_vmem [thread:$0]  (!%p9400_p5), %s9485_s24, 4096, %s9489_s20, %s11767_s1, %s11807_s14, %s11807_s14, %s11806_s26  }
  0x7a   : > { %s9518_s25 = sadd.s32 4294967295, %s9238_s30   ;;  %p177_p13 = scmp.ne.s32.totalorder %s9230_s28, %s9226_s27 }
  0x7b   : > { %p11769_p0 = scmp.eq.s32.totalorder %s9518_s25, 0  ;;  %p7146_p1 = scmp.ge.s32.totalorder %s9238_s30, 1 }
  0x7c   : > { %p501_p2 = scmp.lt.s32.totalorder %s9238_s30, 3  ;;  %s9247_s24 = smov [#allocation15]  }
  0x7d   : > { %p9528_p4 = por %p11769_p0, %p177_p13  ;;  %s532_s20 = sshll.u32 %s9247_s24, 4  ;;  %s533_s20 = int_to_ptr.vmem [resolvable:$true] %s532_s20 }
  0x7e   : > { %p9532_p6 = pnand %p7146_p1, %p501_p2  ;;  %s8437_s27 = smul.u32 192, %s9394_s21 }
  0x7f   : > { %s11808_s9 = scalar_select %p9528_p4, 1, 0 }
  0x80   : > { %s11809_s2 = scalar_select %p9532_p6, 1, 0 }
  0x81   : > { %p8462_p8 = pneg %p9532_p6  ;;  %s8438_s15 = smul.u32 3072, %s9238_s30 }
  0x82   : > { %s11811_s5 = sld [smem:[#allocation35_spill]]  ;;  %s559_s26 = scalar_lea.vmem [#allocation3], %s8437_s27 }
  0x83   : > { %p9542_p9 = pnand %p8462_p8, %p11769_p0  ;;  %s566_s14 = sshll.u32 %s559_s26, 4  ;;  %s9551_s14 = int_to_ptr.vmem [resolvable:$true] %s566_s14 }
  0x84   : > { %s9033_s24 = scalar_lea.vmem %s533_s20, 16  ;;  %s9040_s1 = scalar_lea.vmem %s533_s20, 32 }
  0x85   : > { %p9024_p10 = pneg %p9542_p9  ;;  %p9034_p11 = scmp.ne.s32.totalorder %s533_s20, %s9033_s24 }
  0x86   : > { %p9041_p1 = scmp.lt.s32.totalorder %s533_s20, %s533_s20  ;;  %p9042_p2 = scmp.lt.s32.totalorder %s9040_s1, %s9033_s24 }
  0x87   : > { %p9036_p12 = pnand %p9034_p11, %p9024_p10 }
  0x88   : > { %s9549_s6 = scalar_lea.hbm %s11811_s5, %s8438_s15  ;;  %p9043_p8 = por %p9042_p2, %p9041_p1 }
  0x89   : > { %p9037_p13 = pneg %p9036_p12 }
  0x8b   : > { %p9044_p3 = pnand %p9043_p8, %p9037_p13 }
  0x8d   : > { %9047 = shalt.err (!%p9044_p3)
}
  0x8e   : > { %s11812_s17 = sld [smem:[#allocation43_spill]]  ;;  %s556_s27 = scalar_lea.sflag [#allocation4], %s9394_s21 }
  0x8f   : > { %s9048_s19 = scalar_lea.hbm %s9549_s6, 3072  ;;  %s9053_s24 = scalar_lea.hbm %s11811_s5, 6144 }
  0x90   : > { %p9049_p10 = scmp.ne.s32.totalorder %s9549_s6, %s9048_s19  ;;  %p9054_p3 = scmp.lt.s32.totalorder %s9549_s6, %s11811_s5 }
  0x91   : > { %p9055_p13 = scmp.lt.s32.totalorder %s9053_s24, %s9048_s19 }
  0x92   : > { %p9051_p11 = pnand %p9049_p10, %p9417_p7 }
  0x93   : > { %p9056_p1 = por %p9055_p13, %p9054_p3 }
  0x94   : > { %8465 = dma.hbm_to_vmem [thread:$0]  (!%p9542_p9), %s11812_s17, 16, %s533_s20, [#allocation16]  }
  0x95   : > { %p9052_p12 = pneg %p9051_p11 }
  0x97   : > { %p9057_p2 = pnand %p9056_p1, %p9052_p12 }
  0x99   : > { %9060 = shalt.err (!%p9057_p2)
}
  0x9a   : > { %s9061_s20 = scalar_lea.vmem %s9551_s14, 3072  ;;  %s9248_s15 = smov [#allocation3]  }
  0x9b   : > { %p9062_p9 = scmp.ne.s32.totalorder %s9551_s14, %s9061_s20  ;;  %s9066_s0 = sshll.u32 %s9248_s15, 4  ;;  %s9067_s0 = int_to_ptr.vmem [resolvable:$false] %s9066_s0 }
  0x9c   : > { %s9068_s1 = scalar_lea.vmem %s9067_s0, 6144  ;;  %p9069_p11 = scmp.lt.s32.totalorder %s9551_s14, %s9067_s0 }
  0x9d   : > { %p9064_p8 = pnand %p9062_p9, %p9417_p7  ;;  %p9070_p0 = scmp.lt.s32.totalorder %s9068_s1, %s9061_s20 }
  0x9f   : > { %p9065_p10 = pneg %p9064_p8  ;;  %p9071_p4 = por %p9070_p0, %p9069_p11 }
  0xa1   : > { %p9072_p6 = pnand %p9071_p4, %p9065_p10 }
  0xa3   : > { %9075 = shalt.err (!%p9072_p6)
}
  0xa4   : > { %s9249_s16 = smov 192   ;;  %s9250_s19 = smov 12  }
  0xa5   : > { %8469 = dma.hbm_to_vmem [thread:$0]  (!%p9400_p5), %s9549_s6, 3072, %s9551_s14, %s556_s27, %s9249_s16, %s9249_s16, %s9250_s19  }
  0xa6   : > { %s7153_s26 = sshll.u32 %s9238_s30, 4  ;;  %s600_s24 = scalar_lea.vmem [#allocation8], %s9394_s21 }
  0xa7   : > { %s607_s29 = sshll.u32 %s600_s24, 4  ;;  %s605_s0 = scalar_lea.hbm %s11746_s7, %s7153_s26  ;;  %s608_s29 = int_to_ptr.vmem [resolvable:$true] %s607_s29 }
  0xa8   : > { %s9076_s1 = scalar_lea.hbm %s605_s0, 16  ;;  %s9081_s12 = scalar_lea.hbm %s11746_s7, 32 }
  0xa9   : > { %p9077_p0 = scmp.ne.s32.totalorder %s605_s0, %s9076_s1  ;;  %p9082_p12 = scmp.lt.s32.totalorder %s605_s0, %s11746_s7 }
  0xaa   : > { %p9083_p3 = scmp.lt.s32.totalorder %s9081_s12, %s9076_s1 }
  0xab   : > { %p9079_p4 = pnand %p9077_p0, %p9417_p7 }
  0xac   : > { %p9084_p13 = por %p9083_p3, %p9082_p12 }
  0xad   : > { %p9080_p6 = pneg %p9079_p4 }
  0xaf   : > { %p9085_p1 = pnand %p9084_p13, %p9080_p6 }
  0xb1   : > { %9088 = shalt.err (!%p9085_p1)
}
  0xb2   : > { %s9089_s14 = scalar_lea.vmem %s608_s29, 16  ;;  %s9251_s27 = smov [#allocation8]  }
  0xb3   : > { %p9090_p2 = scmp.ne.s32.totalorder %s608_s29, %s9089_s14  ;;  %s9094_s16 = sshll.u32 %s9251_s27, 4  ;;  %s9095_s16 = int_to_ptr.vmem [resolvable:$false] %s9094_s16 }
  0xb4   : > { %s9096_s19 = scalar_lea.vmem %s9095_s16, 32  ;;  %p9097_p10 = scmp.lt.s32.totalorder %s608_s29, %s9095_s16 }
  0xb5   : > { %p9092_p9 = pnand %p9090_p2, %p9417_p7  ;;  %p9098_p11 = scmp.lt.s32.totalorder %s9096_s19, %s9089_s14 }
  0xb7   : > { %p9093_p8 = pneg %p9092_p9  ;;  %p9099_p0 = por %p9098_p11, %p9097_p10 }
  0xb9   : > { %p9100_p4 = pnand %p9099_p0, %p9093_p8 }
  0xbb   : > { %9103 = shalt.err (!%p9100_p4)
}
  0xbc   : > { %s11813_s5 = scalar_lea.sflag [#allocation7], %s9397_s22  ;;  %s7157_s10 = sshll.u32 %s9394_s21, 2 }
  0xbd   : > { %8475 = dma.hbm_to_vmem [thread:$0]  (!%p9400_p5), %s605_s0, 16, %s608_s29, %s11813_s5  }
  0xbe   : > { %s7451_s12 = sshll.u32 %s9238_s30, 6  ;;  %s651_s15 = scalar_lea.vmem [#allocation11], %s7157_s10 }
  0xbf   : > { %s9609_s20 = scalar_lea.hbm %s11750_s11, %s7451_s12  ;;  %s659_s1 = sshll.u32 %s651_s15, 4  ;;  %s660_s1 = int_to_ptr.vmem [resolvable:$true] %s659_s1 }
  0xc0   : > { %s9616_s27 = scalar_lea.hbm %s11752_s13, %s7153_s26  ;;  %s9104_s29 = scalar_lea.hbm %s9609_s20, 64 }
  0xc1   : > { %p9105_p6 = scmp.ne.s32.totalorder %s9609_s20, %s9104_s29  ;;  %s9109_s19 = scalar_lea.hbm %s11750_s11, 128 }
  0xc2   : > { %p9110_p13 = scmp.lt.s32.totalorder %s9609_s20, %s11750_s11  ;;  %p9111_p1 = scmp.lt.s32.totalorder %s9109_s19, %s9104_s29 }
  0xc3   : > { %p9107_p12 = pnand %p9105_p6, %p9417_p7 }
  0xc4   : > { %p9112_p2 = por %p9111_p1, %p9110_p13 }
  0xc5   : > { %p9108_p3 = pneg %p9107_p12 }
  0xc7   : > { %p9113_p9 = pnand %p9112_p2, %p9108_p3 }
  0xc9   : > { %9116 = shalt.err (!%p9113_p9)
}
  0xca   : > { %s9117_s30 = scalar_lea.vmem %s660_s1, 64  ;;  %s9252_s26 = smov [#allocation11]  }
  0xcb   : > { %p9118_p8 = scmp.ne.s32.totalorder %s660_s1, %s9117_s30  ;;  %s9122_s10 = sshll.u32 %s9252_s26, 4  ;;  %s9123_s10 = int_to_ptr.vmem [resolvable:$false] %s9122_s10 }
  0xcc   : > { %s9124_s17 = scalar_lea.vmem %s9123_s10, 128  ;;  %p9125_p0 = scmp.lt.s32.totalorder %s660_s1, %s9123_s10 }
  0xcd   : > { %p9120_p10 = pnand %p9118_p8, %p9417_p7  ;;  %p9126_p4 = scmp.lt.s32.totalorder %s9124_s17, %s9117_s30 }
  0xcf   : > { %p9121_p11 = pneg %p9120_p10  ;;  %p9127_p6 = por %p9126_p4, %p9125_p0 }
  0xd1   : > { %p9128_p12 = pnand %p9127_p6, %p9121_p11 }
  0xd3   : > { %9131 = shalt.err (!%p9128_p12)
}
  0xd4   : > { %s11814_s24 = scalar_lea.sflag [#allocation10], %s9397_s22  ;;  %s690_s15 = scalar_lea.vmem [#allocation14], %s9394_s21 }
  0xd5   : > { %8481 = dma.hbm_to_vmem [thread:$0]  (!%p9400_p5), %s9609_s20, 64, %s660_s1, %s11814_s24  }
  0xd6   : > { %s697_s6 = sshll.u32 %s690_s15, 4  ;;  %s9132_s14 = scalar_lea.hbm %s9616_s27, 16  ;;  %s698_s6 = int_to_ptr.vmem [resolvable:$true] %s697_s6 }
  0xd7   : > { %p9133_p3 = scmp.ne.s32.totalorder %s9616_s27, %s9132_s14  ;;  %s9137_s16 = scalar_lea.hbm %s11752_s13, 32 }
  0xd8   : > { %p9138_p2 = scmp.lt.s32.totalorder %s9616_s27, %s11752_s13  ;;  %p9139_p9 = scmp.lt.s32.totalorder %s9137_s16, %s9132_s14 }
  0xd9   : > { %p9135_p13 = pnand %p9133_p3, %p9417_p7 }
  0xda   : > { %p9140_p8 = por %p9139_p9, %p9138_p2 }
  0xdb   : > { %p9136_p1 = pneg %p9135_p13 }
  0xdd   : > { %p9141_p10 = pnand %p9140_p8, %p9136_p1 }
  0xdf   : > { %9144 = shalt.err (!%p9141_p10)
}
  0xe0   : > { %s9145_s21 = scalar_lea.vmem %s698_s6, 16  ;;  %s9253_s20 = smov [#allocation14]  }
  0xe1   : > { %p9146_p11 = scmp.ne.s32.totalorder %s698_s6, %s9145_s21  ;;  %s9150_s1 = sshll.u32 %s9253_s20, 4  ;;  %s9151_s1 = int_to_ptr.vmem [resolvable:$false] %s9150_s1 }
  0xe2   : > { %s9152_s12 = scalar_lea.vmem %s9151_s1, 32  ;;  %p9153_p6 = scmp.lt.s32.totalorder %s698_s6, %s9151_s1 }
  0xe3   : > { %p9148_p0 = pnand %p9146_p11, %p9417_p7  ;;  %p9154_p12 = scmp.lt.s32.totalorder %s9152_s12, %s9145_s21 }
  0xe5   : > { %p9149_p4 = pneg %p9148_p0  ;;  %p9155_p3 = por %p9154_p12, %p9153_p6 }
  0xe7   : > { %p9156_p13 = pnand %p9155_p3, %p9149_p4 }
  0xe9   : > { %9159 = shalt.err (!%p9156_p13)
}
  0xea   : > { %s11815_s30 = scalar_lea.sflag [#allocation13], %s9397_s22  ;;  %p11816_p1 = scmp.ne.s32.totalorder %s11809_s2, 0 }
  0xeb   : > { %8487 = dma.hbm_to_vmem [thread:$0]  (!%p9400_p5), %s9616_s27, 16, %s698_s6, %s11815_s30  }
  0xec   : > { %706 = sbr.rel (%p11816_p1) target bundleno = 5349 (0x14e5), region = 92 }
  0xf1   : > { %s9658_s18 = sand.u32 1, %s9230_s28   ;;  %p11817_p7 = scmp.ne.s32.totalorder %s11808_s9, 0 }
  0xf2   : > { %s8439_s26 = smul.u32 192, %s9658_s18  ;;  %s709_s10 = scalar_lea.sflag [#allocation4], %s9658_s18 }
  0xf4   : > { %s9662_s17 = scalar_lea.vmem [#allocation3], %s8439_s26 }
  0xf5   : > { %9201 = dma.done.wait (%p11817_p7), %s709_s10, 3072  }
  0xf6   : > { %9203 = vsyncadd (%p11817_p7), %s709_s10, 4294964224  ;;  %s717_s22 = sand.u32 1, %s9518_s25   ;;  %s7165_s23 = sshll.u32 %s9658_s18, 6 }
  0xf7   : > { %s718_s2 = scalar_lea.sflag [#allocation7], %s717_s22  ;;  %s9670_s27 = scalar_lea.vmem [#allocation6], %s7165_s23 }
  0xf8   : > { %9205 = dma.done.wait (%p11817_p7), %s718_s2, 1040  }
  0xf9   : > { %9207 = vsyncadd (%p11817_p7), %s718_s2, 4294966256  ;;  %s7166_s24 = sshll.u32 %s9658_s18, 8  ;;  %s735_s6 = scalar_lea.sflag [#allocation10], %s717_s22 }
  0xfa   : > { %s9678_s14 = scalar_lea.vmem [#allocation9], %s7166_s24 }
  0xfb   : > { %9209 = dma.done.wait (%p11817_p7), %s735_s6, 4160  }
  0xfc   : > { %9211 = vsyncadd (%p11817_p7), %s735_s6, 4294963136  ;;  %s7167_s29 = sshll.u32 %s9658_s18, 2  ;;  %s753_s16 = scalar_lea.sflag [#allocation13], %s717_s22 }
  0xfd   : > { %s9685_s0 = scalar_lea.vmem [#allocation11], %s7167_s29  ;;  %s9687_s19 = scalar_lea.vmem [#allocation12], %s7166_s24 }
  0xfe   : > { %9213 = dma.done.wait (%p11817_p7), %s753_s16, 4112  }
  0xff   : > { %9215 = vsyncadd (%p11817_p7), %s753_s16, 4294963184  ;;  %p11818_p5 = scmp.eq.s32.totalorder %s9518_s25, 0 }
 0x101   : > { %9217 = dma.done.wait (%p11818_p5), [#allocation16], 16   ;;  %p11819_p2 = pmov %p11818_p5 }
 0x102   : > { %p856_p9 = scmp.lt.s32.totalorder %s9518_s25, 1  ;;  %p11821_p8 = scmp.ne.s32.totalorder %s9518_s25, 0 }
 0x103   : > { %9219 = vsyncadd (%p11819_p2), [#allocation16], 4294967280  ;;  %s11822_s1 = sld [smem:[#allocation32_spill]] (!%p11821_p8) }
 0x104   : > { %s9700_s21 = scalar_select %p856_p9, %s9518_s25, 1 }
 0x105   : > { %872 = sbr.rel (%p11821_p8) target bundleno = 619 (0x26b), region = 128  ;;  %s11823_s6 = sld [smem:[#allocation34_spill]] (!%p11821_p8) }
 0x106   : > { %s858_s9 = scalar_lea.vmem %s11742_s3, %s9700_s21  ;;  %s861_s26 = scalar_lea.vmem %s11743_s4, %s9700_s21 }
 0x107   : > { %s864_s23 = scalar_lea.vmem %s11747_s8, %s9700_s21  ;;  %s11824_s5 = sld [smem:[#allocation33_spill]] (!%p11821_p8) }
 0x10a   : > { %v879_v0 = vld [vmem:[%s11822_s1 + $0x30] sm:$0xff]  ;;  %v877_v1 = vld [vmem:[%s11822_s1 + $0x20] sm:$0xff]  ;;  %v9254_v2 = vmov 0   ;;  %v880_v3 = vld [vmem:[%s11822_s1 + $0x38] sm:$0xff]  ;;  %v889_v9 = vlaneseq  ;;  %v9255_v36 = vmov 0.0   ;;  %vm1268_vm1 = vcmask 523264  }
 0x10b   : > { %8544 = vset.pattern.permute.xlu1 %v9254_v2  ;;  %8543 = vset.pattern.permute.xlu0 %v9254_v2  ;;  %v878_v4 = vld [vmem:[%s11822_s1 + $0x28] sm:$0xff]  ;;  %v1267_v5 = vld [vmem:[%s11823_s6 + $0x38] sm:$0xff]  ;;  %v1266_v7 = vld [vmem:[%s11823_s6 + $0x30] sm:$0xff] }
 0x10c   : > { %910 = vperm.xlu1 %8544, %v879_v0   ;;  %904 = vperm.xlu0 %8543, %v877_v1   ;;  %v882_v10 = vld [vmem:[%s11822_s1 + $0x48] sm:$0xff]  ;;  %v881_v11 = vld [vmem:[%s11822_s1 + $0x40] sm:$0xff]  ;;  %v9765_v14 = vshrl.u32 %v889_v9, 7  ;;  %v884_v15 = vld [vmem:[%s11822_s1 + $0x58] sm:$0xff]  ;;  %v9800_v24 = vand.u32 127, %v889_v9 }
 0x10d   : > { %v9738_v6 = vld [vmem:[%s11824_s5 + $0x78] sm:$0xff]  ;;  %v9746_v8 = vld [vmem:[%s11824_s5 + $0x70] sm:$0xff]  ;;  %7845 = vmatprep.subr.mxu0 %v1267_v5  ;;  %v1265_v12 = vld [vmem:[%s11823_s6 + $0x28] sm:$0xff] }
 0x10e   : > { %8357 = vmatprep.subr.mxu1 %v9738_v6  ;;  %7846 = vmatpush3.msra.mxu0 %v1267_v5  ;;  %v9763_v13 = vld [vmem:[%s11824_s5 + $0x68] sm:$0xff]  ;;  %v883_v16 = vld [vmem:[%s11822_s1 + $0x50] sm:$0xff]  ;;  %v1264_v17 = vld [vmem:[%s11823_s6 + $0x20] sm:$0xff]  ;;  %v989_v21 = vadd.s32 8, %v9765_v14  ;;  %v1008_v25 = vand.u32 63, %v9765_v14  ;;  %v990_v29 = vadd.s32 16, %v9765_v14 }
 0x10f   : > { %8373 = vmatpush3.msra.mxu1 %v9738_v6  ;;  %7847 = vmatprep.subr.mxu0 %v1266_v7  ;;  %v9781_v18 = vld [vmem:[%s11824_s5 + $0x60] sm:$0xff]  ;;  %v1263_v19 = vld [vmem:[%s11823_s6 + $0x18] sm:$0xff]  ;;  %v1262_v26 = vld [vmem:[%s11823_s6 + $0x10] sm:$0xff]  ;;  %v991_v32 = vadd.s32 24, %v9765_v14  ;;  %v992_v42 = vadd.s32 32, %v9765_v14  ;;  %v993_v44 = vadd.s32 40, %v9765_v14 }
 0x110   : > { %913 = vperm.xlu1 %8544, %v880_v3   ;;  %907 = vperm.xlu0 %8543, %v878_v4   ;;  %v9790_v20 = vld [vmem:[%s11824_s5 + $0x58] sm:$0xff]  ;;  %v885_v22 = vld [vmem:[%s11822_s1 + $0x60] sm:$0xff]  ;;  %v9811_v27 = vld [vmem:[%s11824_s5 + $0x50] sm:$0xff]  ;;  %v1015_v28 = vand.u32 63, %v989_v21  ;;  %vm1196_vm0 = vcmp.eq.s32.totalorder %v9800_v24, %v1008_v25  ;;  %v1022_v38 = vand.u32 63, %v990_v29  ;;  %v994_v51 = vadd.s32 48, %v9765_v14 }
 0x111   : > { %8358 = vmatprep.subr.mxu1 %v9746_v8  ;;  %7848 = vmatpush3.msra.mxu0 %v1266_v7  ;;  %v873_v23 = vld [vmem:[%s11822_s1] sm:$0xff]  ;;  %v886_v30 = vld [vmem:[%s11822_s1 + $0x68] sm:$0xff]  ;;  %v7187_v37 = vsel %vm1196_vm0, 1.0, %v9255_v36  ;;  %v887_v39 = vld [vmem:[%s11822_s1 + $0x70] sm:$0xff]  ;;  %v1029_v41 = vand.u32 63, %v991_v32  ;;  %v1036_v49 = vand.u32 63, %v992_v42 }
 0x112   : > { %8374 = vmatpush3.msra.mxu1 %v9746_v8  ;;  %7849 = vmatprep.subr.mxu0 %v1265_v12  ;;  %v874_v31 = vld [vmem:[%s11822_s1 + $0x8] sm:$0xff]  ;;  %v1260_v35 = vld [vmem:[%s11823_s6] sm:$0xff]  ;;  %vm1197_vm2 = vcmp.eq.s32.totalorder %v9800_v24, %v1015_v28  ;;  %v875_v40 = vld [vmem:[%s11822_s1 + $0x10] sm:$0xff]  ;;  %vm1198_vm3 = vcmp.eq.s32.totalorder %v9800_v24, %v1022_v38  ;;  %v1043_v50 = vand.u32 63, %v993_v44  ;;  %v995_v53 = vadd.s32 56, %v9765_v14 }
 0x113   : > { %8359 = vmatprep.subr.mxu1 %v9763_v13  ;;  %7850 = vmatpush3.msra.mxu0 %v1265_v12  ;;  %v1261_v33 = vld [vmem:[%s11823_s6 + $0x8] sm:$0xff]  ;;  %v9850_v43 = vld [vmem:[%s11824_s5 + $0x40] sm:$0xff]  ;;  %v7188_v45 = vsel %vm1197_vm2, 1.0, %v9255_v36  ;;  %v9858_v46 = vld [vmem:[%s11824_s5 + $0x38] sm:$0xff]  ;;  %vm1199_vm4 = vcmp.eq.s32.totalorder %v9800_v24, %v1029_v41  ;;  %v7189_v52 = vsel %vm1198_vm3, 1.0, %v9255_v36  ;;  %vm1200_vm5 = vcmp.eq.s32.totalorder %v9800_v24, %v1036_v49 }
 0x114   : > { %919 = vperm.xlu1 %8544, %v882_v10   ;;  %916 = vperm.xlu0 %8543, %v881_v11   ;;  %v9830_v34 = vld [vmem:[%s11824_s5 + $0x48] sm:$0xff]  ;;  %v888_v47 = vld [vmem:[%s11822_s1 + $0x78] sm:$0xff]  ;;  %v9879_v54 = vld [vmem:[%s11824_s5 + $0x30] sm:$0xff]  ;;  %v7190_v55 = vsel %vm1199_vm4, 1.0, %v9255_v36  ;;  %vm1201_vm6 = vcmp.eq.s32.totalorder %v9800_v24, %v1043_v50  ;;  %v1050_v57 = vand.u32 63, %v994_v51  ;;  %v1057_v58 = vand.u32 63, %v995_v53 }
 0x115   : > { %8375 = vmatpush3.msra.mxu1 %v9763_v13  ;;  %7851 = vmatprep.subr.mxu0 %v1264_v17  ;;  %v876_v48 = vld [vmem:[%s11822_s1 + $0x18] sm:$0xff]  ;;  %v9890_v56 = vld [vmem:[%s11824_s5 + $0x28] sm:$0xff]  ;;  %v996_v59 = vadd.s32 64, %v9765_v14  ;;  %v7191_v60 = vsel %vm1200_vm5, 1.0, %v9255_v36  ;;  %v997_v61 = vadd.s32 72, %v9765_v14  ;;  %v9905_v62 = vld [vmem:[%s11824_s5 + $0x20] sm:$0xff] }
 0x116   : > { %8360 = vmatprep.subr.mxu1 %v9781_v18  ;;  %7852 = vmatpush3.msra.mxu0 %v1264_v17  ;;  %v7192_v63 = vsel %vm1201_vm6, 1.0, %v9255_v36  ;;  %vm1202_vm7 = vcmp.eq.s32.totalorder %v9800_v24, %v1050_v57  ;;  %v998_v0 = vadd.s32 80, %v9765_v14  ;;  %v9917_v1 = vld [vmem:[%s11824_s5 + $0x18] sm:$0xff]  ;;  %vm1203_vm8 = vcmp.eq.s32.totalorder %v9800_v24, %v1057_v58  ;;  %v9932_v7 = vld [vmem:[%s11824_s5 + $0x10] sm:$0xff]  ;;  %v1245_v10 = vld [vmem:[%s11824_s5 + $0x8] sm:$0xff] }
 0x117   : > { %8376 = vmatpush3.msra.mxu1 %v9781_v18  ;;  %7853 = vmatprep.subr.mxu0 %v1263_v19  ;;  %v1064_v2 = vand.u32 63, %v996_v59  ;;  %v1071_v3 = vand.u32 63, %v997_v61  ;;  %v999_v4 = vadd.s32 88, %v9765_v14  ;;  %v7193_v5 = vsel %vm1202_vm7, 1.0, %v9255_v36  ;;  %v1244_v17 = vld [vmem:[%s11824_s5] sm:$0xff] }
 0x118   : > { %925 = vperm.xlu1 %8544, %v884_v15   ;;  %922 = vperm.xlu0 %8543, %v883_v16   ;;  %v1078_v9 = vand.u32 63, %v998_v0  ;;  %v1001_v12 = vadd.s32 104, %v9765_v14  ;;  %v1002_v15 = vadd.s32 112, %v9765_v14 }
 0x119   : > { %8361 = vmatprep.subr.mxu1 %v9790_v20  ;;  %7854 = vmatpush3.msra.mxu0 %v1263_v19  ;;  %vm1204_vm9 = vcmp.eq.s32.totalorder %v9800_v24, %v1064_v2  ;;  %vm1205_vm10 = vcmp.eq.s32.totalorder %v9800_v24, %v1071_v3  ;;  %v1085_v11 = vand.u32 63, %v999_v4 }
 0x11a   : > { %8377 = vmatpush3.msra.mxu1 %v9790_v20  ;;  %7855 = vmatprep.subr.mxu0 %v1262_v26  ;;  %v7195_v16 = vsel %vm1204_vm9, 1.0, %v9255_v36  ;;  %vm1206_vm11 = vcmp.eq.s32.totalorder %v9800_v24, %v1078_v9  ;;  %v1099_v19 = vand.u32 63, %v1001_v12 }
 0x11b   : > { %8362 = vmatprep.subr.mxu1 %v9811_v27  ;;  %7856 = vmatpush3.msra.mxu0 %v1262_v26  ;;  %vm1207_vm12 = vcmp.eq.s32.totalorder %v9800_v24, %v1085_v11  ;;  %v7197_v21 = vsel %vm1206_vm11, 1.0, %v9255_v36 }
 0x11c   : > { %928 = vperm.xlu1 %8544, %v885_v22   ;;  %892 = vperm.xlu0 %8543, %v873_v23   ;;  %v1106_v22 = vand.u32 63, %v1002_v15  ;;  %v7198_v23 = vsel %vm1207_vm12, 1.0, %v9255_v36  ;;  %vm1209_vm14 = vcmp.eq.s32.totalorder %v9800_v24, %v1099_v19 }
 0x11d   : > { %8378 = vmatpush3.msra.mxu1 %v9811_v27  ;;  %7857 = vmatprep.subr.mxu0 %v1261_v33  ;;  %v7200_v26 = vsel %vm1209_vm14, 1.0, %v9255_v36 }
 0x11e   : > { %8363 = vmatprep.subr.mxu1 %v9830_v34  ;;  %7858 = vmatpush3.msra.mxu0 %v1261_v33  ;;  %vm1210_vm15 = vcmp.eq.s32.totalorder %v9800_v24, %v1106_v22 }
 0x11f   : > { %8379 = vmatpush3.msra.mxu1 %v9830_v34  ;;  %7859 = vmatprep.subr.mxu0 %v1260_v35 }
 0x120   : > { %931 = vperm.xlu1 %8544, %v886_v30   ;;  %895 = vperm.xlu0 %8543, %v874_v31   ;;  %v9256_v31 = vmov 1.0  }
 0x121   : > { %7861 = vmatprep.mubr.msk.f32.mxu0 %vm1268_vm1, %v7187_v37  ;;  %7860 = vmatpush3.msra.mxu0 %v1260_v35 }
 0x122   : > { %8364 = vmatprep.subr.mxu1 %v9850_v43  ;;  %7862 = vmatmul.mubr.msk.f32.vlgmr.msra.gmra.mxu0 %vm1268_vm1, %v7188_v45 }
 0x123   : > { %8380 = vmatpush3.msra.mxu1 %v9850_v43  ;;  %7885 = vmatprep.subr.mxu0 %v9738_v6 }
 0x124   : > { %934 = vperm.xlu1 %8544, %v887_v39   ;;  %898 = vperm.xlu0 %8543, %v875_v40  }
 0x125   : > { %8365 = vmatprep.subr.mxu1 %v9858_v46  ;;  %7886 = vmatpush3.msra.mxu0 %v9738_v6  ;;  %v1000_v6 = vadd.s32 96, %v9765_v14 }
 0x126   : > { %8381 = vmatpush3.msra.mxu1 %v9858_v46  ;;  %7864 = vmatprep.mubr.msk.f32.mxu0 %vm1268_vm1, %v7189_v52 }
 0x127   : > { %7887 = vmatprep.subr.mxu0 %v9746_v8  ;;  %8366 = vmatprep.subr.mxu1 %v9879_v54 }
 0x128   : > { %937 = vperm.xlu1 %8544, %v888_v47   ;;  %901 = vperm.xlu0 %8543, %v876_v48  }
 0x129   : > { %7865 = vmatmul.mubr.msk.f32.gmra.mxu0 %vm1268_vm1, %v7190_v55  ;;  %8382 = vmatpush3.msra.mxu1 %v9879_v54 }
 0x12a   : > { %7888 = vmatpush3.msra.mxu0 %v9746_v8  ;;  %8367 = vmatprep.subr.mxu1 %v9890_v56  ;;  %v7194_v8 = vsel %vm1203_vm8, 1.0, %v9255_v36 }
 0x12b   : > { %7889 = vmatprep.subr.mxu0 %v9763_v13  ;;  %8383 = vmatpush3.msra.mxu1 %v9890_v56 }
 0x12c   : > { %7890 = vmatpush3.msra.mxu0 %v9763_v13  ;;  %7867 = vmatprep.mubr.msk.f32.mxu0 %vm1268_vm1, %v7191_v60  ;;  %v1092_v13 = vand.u32 63, %v1000_v6 }
 0x12d   : > { %7891 = vmatprep.subr.mxu0 %v9781_v18  ;;  %8368 = vmatprep.subr.mxu1 %v9905_v62 }
 0x12e   : > { %7868 = vmatmul.mubr.msk.f32.gmra.mxu0 %vm1268_vm1, %v7192_v63  ;;  %8384 = vmatpush3.msra.mxu1 %v9905_v62  ;;  %vm1208_vm13 = vcmp.eq.s32.totalorder %v9800_v24, %v1092_v13 }
 0x12f   : > { %7892 = vmatpush3.msra.mxu0 %v9781_v18  ;;  %8369 = vmatprep.subr.mxu1 %v9917_v1  ;;  %v7196_v18 = vsel %vm1205_vm10, 1.0, %v9255_v36 }
 0x130   : > { %7893 = vmatprep.subr.mxu0 %v9790_v20  ;;  %8385 = vmatpush3.msra.mxu1 %v9917_v1 }
 0x131   : > { %7894 = vmatpush3.msra.mxu0 %v9790_v20  ;;  %7870 = vmatprep.mubr.msk.f32.mxu0 %vm1268_vm1, %v7193_v5  ;;  %v1003_v20 = vadd.s32 120, %v9765_v14  ;;  %v7199_v14 = vsel %vm1208_vm13, 1.0, %v9255_v36 }
 0x132   : > { %7895 = vmatprep.subr.mxu0 %v9811_v27  ;;  %8370 = vmatprep.subr.mxu1 %v9932_v7 }
 0x133   : > { %7871 = vmatmul.mubr.msk.f32.gmra.mxu0 %vm1268_vm1, %v7194_v8  ;;  %8386 = vmatpush3.msra.mxu1 %v9932_v7  ;;  %v1113_v25 = vand.u32 63, %v1003_v20 }
 0x134   : > { %7896 = vmatpush3.msra.mxu0 %v9811_v27  ;;  %8371 = vmatprep.subr.mxu1 %v1245_v10  ;;  %v7201_v27 = vsel %vm1210_vm15, 1.0, %v9255_v36 }
 0x135   : > { %7897 = vmatprep.subr.mxu0 %v9830_v34  ;;  %8387 = vmatpush3.msra.mxu1 %v1245_v10  ;;  %vm1211_vm0 = vcmp.eq.s32.totalorder %v9800_v24, %v1113_v25 }
 0x136   : > { %7898 = vmatpush3.msra.mxu0 %v9830_v34  ;;  %7873 = vmatprep.mubr.msk.f32.mxu0 %vm1268_vm1, %v7195_v16  ;;  %v7202_v28 = vsel %vm1211_vm0, 1.0, %v9255_v36 }
 0x137   : > { %7899 = vmatprep.subr.mxu0 %v9850_v43  ;;  %8372 = vmatprep.subr.mxu1 %v1244_v17 }
 0x138   : > { %7874 = vmatmul.mubr.msk.f32.gmra.mxu0 %vm1268_vm1, %v7196_v18  ;;  %8388 = vmatpush3.msra.mxu1 %v1244_v17 }
 0x139   : > { %7900 = vmatpush3.msra.mxu0 %v9850_v43  ;;  %7876 = vmatprep.mubr.msk.f32.mxu0 %vm1268_vm1, %v7197_v21 }
 0x13a   : > { %7901 = vmatprep.subr.mxu0 %v9858_v46 }
 0x13b   : > { %7902 = vmatpush3.msra.mxu0 %v9858_v46 }
 0x13c   : > { %7903 = vmatprep.subr.mxu0 %v9879_v54  ;;  %7877 = vmatmul.mubr.msk.f32.gmra.mxu0 %vm1268_vm1, %v7198_v23 }
 0x13d   : > { %7904 = vmatpush3.msra.mxu0 %v9879_v54  ;;  %7879 = vmatprep.mubr.msk.f32.mxu0 %vm1268_vm1, %v7199_v14 }
 0x13e   : > { %7905 = vmatprep.subr.mxu0 %v9890_v56 }
 0x13f   : > { %7906 = vmatpush3.msra.mxu0 %v9890_v56 }
 0x140   : > { %7907 = vmatprep.subr.mxu0 %v9905_v62  ;;  %7880 = vmatmul.mubr.msk.f32.gmra.mxu0 %vm1268_vm1, %v7200_v26 }
 0x141   : > { %7908 = vmatpush3.msra.mxu0 %v9905_v62  ;;  %7882 = vmatprep.mubr.msk.f32.mxu0 %vm1268_vm1, %v7201_v27 }
 0x142   : > { %7909 = vmatprep.subr.mxu0 %v9917_v1 }
 0x143   : > { %7910 = vmatpush3.msra.mxu0 %v9917_v1 }
 0x144   : > { %7911 = vmatprep.subr.mxu0 %v9932_v7  ;;  %7883 = vmatmul.mubr.msk.f32.gmra.mxu0 %vm1268_vm1, %v7202_v28 }
 0x145   : > { %7912 = vmatpush3.msra.mxu0 %v9932_v7 }
 0x146   : > { %7913 = vmatprep.subr.mxu0 %v1245_v10 }
 0x147   : > { %7914 = vmatpush3.msra.mxu0 %v1245_v10 }
 0x148   : > { %7915 = vmatprep.subr.mxu0 %v1244_v17 }
 0x149   : > { %7916 = vmatpush3.msra.mxu0 %v1244_v17 }
 0x187   : > { %v911_v29 = vpop.permute.xlu1 %910  ;;  %v905_v30 = vpop.permute.xlu0 %904 }
 0x188   : > { %vm943_vm2 = vcmp.eq.s32.totalorder %v9800_v24, %v905_v30  ;;  %vm945_vm4 = vcmp.eq.s32.totalorder %v9800_v24, %v911_v29 }
 0x189   : > { %7923 = vmatprep.mubr.msk.f32.mxu1 %vm943_vm2, %v9256_v31 }
 0x18b   : > { %v914_v32 = vpop.permute.xlu1 %913  ;;  %v908_v33 = vpop.permute.xlu0 %907 }
 0x18c   : > { %vm944_vm3 = vcmp.eq.s32.totalorder %v9800_v24, %v908_v33  ;;  %vm946_vm1 = vcmp.eq.s32.totalorder %v9800_v24, %v914_v32 }
 0x18d   : > { %7924 = vmatmul.mubr.msk.f32.vlgmr.msra.gmra.mxu1 %vm944_vm3, %v9256_v31 }
 0x18e   : > { %7926 = vmatprep.mubr.msk.f32.mxu1 %vm945_vm4, %v9256_v31 }
 0x18f   : > { %v920_v34 = vpop.permute.xlu1 %919  ;;  %v917_v35 = vpop.permute.xlu0 %916 }
 0x190   : > { %vm947_vm5 = vcmp.eq.s32.totalorder %v9800_v24, %v917_v35  ;;  %vm948_vm6 = vcmp.eq.s32.totalorder %v9800_v24, %v920_v34 }
 0x191   : > { %7927 = vmatmul.mubr.msk.f32.gmra.mxu1 %vm946_vm1, %v9256_v31 }
 0x192   : > { %7929 = vmatprep.mubr.msk.f32.mxu1 %vm947_vm5, %v9256_v31 }
 0x193   : > { %v926_v36 = vpop.permute.xlu1 %925  ;;  %v923_v37 = vpop.permute.xlu0 %922 }
 0x194   : > { %vm949_vm7 = vcmp.eq.s32.totalorder %v9800_v24, %v923_v37  ;;  %vm950_vm8 = vcmp.eq.s32.totalorder %v9800_v24, %v926_v36 }
 0x195   : > { %7930 = vmatmul.mubr.msk.f32.gmra.mxu1 %vm948_vm6, %v9256_v31 }
 0x196   : > { %7932 = vmatprep.mubr.msk.f32.mxu1 %vm949_vm7, %v9256_v31 }
 0x197   : > { %v929_v38 = vpop.permute.xlu1 %928  ;;  %v893_v39 = vpop.permute.xlu0 %892 }
 0x198   : > { %vm951_vm9 = vcmp.eq.s32.totalorder %v9800_v24, %v929_v38  ;;  %vm939_vm10 = vcmp.eq.s32.totalorder %v9800_v24, %v893_v39 }
 0x199   : > { %7917 = vmatprep.mubr.msk.f32.mxu0 %vm939_vm10, %v9256_v31  ;;  %7933 = vmatmul.mubr.msk.f32.gmra.mxu1 %vm950_vm8, %v9256_v31 }
 0x19a   : > { %7935 = vmatprep.mubr.msk.f32.mxu1 %vm951_vm9, %v9256_v31 }
 0x19b   : > { %v932_v40 = vpop.permute.xlu1 %931  ;;  %v896_v41 = vpop.permute.xlu0 %895 }
 0x19c   : > { %vm952_vm11 = vcmp.eq.s32.totalorder %v9800_v24, %v932_v40  ;;  %vm940_vm12 = vcmp.eq.s32.totalorder %v9800_v24, %v896_v41 }
 0x19d   : > { %7918 = vmatmul.mubr.msk.f32.vlgmr.msra.gmra.mxu0 %vm940_vm12, %v9256_v31  ;;  %7936 = vmatmul.mubr.msk.f32.gmra.mxu1 %vm952_vm11, %v9256_v31 }
 0x19f   : > { %v935_v42 = vpop.permute.xlu1 %934  ;;  %v899_v43 = vpop.permute.xlu0 %898 }
 0x1a0   : > { %vm953_vm13 = vcmp.eq.s32.totalorder %v9800_v24, %v935_v42  ;;  %vm941_vm14 = vcmp.eq.s32.totalorder %v9800_v24, %v899_v43 }
 0x1a1   : > { %7920 = vmatprep.mubr.msk.f32.mxu0 %vm941_vm14, %v9256_v31  ;;  %7938 = vmatprep.mubr.msk.f32.mxu1 %vm953_vm13, %v9256_v31 }
 0x1a3   : > { %v938_v44 = vpop.permute.xlu1 %937  ;;  %v902_v45 = vpop.permute.xlu0 %901 }
 0x1a4   : > { %vm954_vm15 = vcmp.eq.s32.totalorder %v9800_v24, %v938_v44  ;;  %vm942_vm0 = vcmp.eq.s32.totalorder %v9800_v24, %v902_v45 }
 0x1a5   : > { %7921 = vmatmul.mubr.msk.f32.gmra.mxu0 %vm942_vm0, %v9256_v31  ;;  %7939 = vmatmul.mubr.msk.f32.gmra.mxu1 %vm954_vm15, %v9256_v31 }
 0x1e2   : > { %v7863_v46 = vpop.f32.mrf.mxu0 }
 0x1e4   : > { %v1383_v47 = vpop.f32.mrf.mxu0 }
 0x1e9   : > { %v7866_v48 = vpop.f32.mrf.mxu0 }
 0x1eb   : > { %v1393_v49 = vpop.f32.mrf.mxu0 }
 0x1ee   : > { %v7869_v50 = vpop.f32.mrf.mxu0 }
 0x1f0   : > { %v1403_v51 = vpop.f32.mrf.mxu0 }
 0x1f3   : > { %v7872_v52 = vpop.f32.mrf.mxu0 }
 0x1f5   : > { %v1413_v53 = vpop.f32.mrf.mxu0 }
 0x1f8   : > { %v7875_v54 = vpop.f32.mrf.mxu0 }
 0x1fa   : > { %v1423_v55 = vpop.f32.mrf.mxu0 }
 0x1fc   : > { %v7878_v56 = vpop.f32.mrf.mxu0 }
 0x1fe   : > { %v1433_v57 = vpop.f32.mrf.mxu0 }
 0x200   : > { %v7881_v59 = vpop.f32.mrf.mxu0 }
 0x202   : > { %v1443_v63 = vpop.f32.mrf.mxu0 }
 0x204   : > { %v7884_v4 = vpop.f32.mrf.mxu0 }
 0x206   : > { %v1453_v9 = vpop.f32.mrf.mxu0 }
 0x24d   : > { %v7925_v58 = vpop.f32.mrf.mxu1 }
 0x24e   : > { %v1554_v60 = vadd.f32 %v7925_v58, %v7869_v50 }
 0x24f   : > { %v1548_v61 = vpop.f32.mrf.mxu1 }
 0x250   : > { %1612 = vst [vmem:[#allocation2 + $0x68] sm:$0xff] %v1554_v60  ;;  %v1549_v24 = vadd.f32 %v1548_v61, %v1403_v51 }
 0x251   : > { %v7928_v62 = vpop.f32.mrf.mxu1 }
 0x252   : > { %1611 = vst [vmem:[#allocation2 + $0x50] sm:$0xff] %v1549_v24  ;;  %v1564_v0 = vadd.f32 %v7928_v62, %v7872_v52 }
 0x253   : > { %v1558_v1 = vpop.f32.mrf.mxu1 }
 0x254   : > { %1614 = vst [vmem:[#allocation2 + $0x48] sm:$0xff] %v1564_v0  ;;  %v1559_v2 = vadd.f32 %v1558_v1, %v1413_v53 }
 0x255   : > { %v7931_v3 = vpop.f32.mrf.mxu1 }
 0x256   : > { %1613 = vst [vmem:[#allocation2 + $0x8] sm:$0xff] %v1559_v2  ;;  %v1574_v5 = vadd.f32 %v7931_v3, %v7875_v54 }
 0x257   : > { %v1568_v6 = vpop.f32.mrf.mxu1 }
 0x258   : > { %1616 = vst [vmem:[#allocation2 + $0x20] sm:$0xff] %v1574_v5  ;;  %v1569_v7 = vadd.f32 %v1568_v6, %v1423_v55 }
 0x259   : > { %v7934_v8 = vpop.f32.mrf.mxu1 }
 0x25a   : > { %1615 = vst [vmem:[#allocation2 + $0x40] sm:$0xff] %v1569_v7  ;;  %v1584_v10 = vadd.f32 %v7934_v8, %v7878_v56 }
 0x25b   : > { %v1578_v11 = vpop.f32.mrf.mxu1 }
 0x25c   : > { %1618 = vst [vmem:[#allocation2 + $0x38] sm:$0xff] %v1584_v10  ;;  %v1579_v12 = vadd.f32 %v1578_v11, %v1433_v57 }
 0x25d   : > { %v7919_v13 = vpop.f32.mrf.mxu0  ;;  %v7937_v15 = vpop.f32.mrf.mxu1 }
 0x25e   : > { %1617 = vst [vmem:[#allocation2 + $0x10] sm:$0xff] %v1579_v12  ;;  %v1534_v16 = vadd.f32 %v7919_v13, %v7863_v46  ;;  %v1594_v17 = vadd.f32 %v7937_v15, %v7881_v59 }
 0x25f   : > { %v1528_v18 = vpop.f32.mrf.mxu0  ;;  %v1588_v19 = vpop.f32.mrf.mxu1 }
 0x260   : > { %1608 = vst [vmem:[#allocation2] sm:$0xff] %v1534_v16  ;;  %1620 = vst [vmem:[#allocation2 + $0x70] sm:$0xff] %v1594_v17  ;;  %v1529_v20 = vadd.f32 %v1528_v18, %v1383_v47  ;;  %v1589_v21 = vadd.f32 %v1588_v19, %v1443_v63 }
 0x262   : > { %1607 = vst [vmem:[#allocation2 + $0x30] sm:$0xff] %v1529_v20  ;;  %1619 = vst [vmem:[#allocation2 + $0x60] sm:$0xff] %v1589_v21 }
 0x265   : > { %v7922_v22 = vpop.f32.mrf.mxu0  ;;  %v7940_v23 = vpop.f32.mrf.mxu1 }
 0x266   : > { %v1544_v14 = vadd.f32 %v7922_v22, %v7866_v48  ;;  %v1604_v25 = vadd.f32 %v7940_v23, %v7884_v4 }
 0x267   : > { %v1538_v26 = vpop.f32.mrf.mxu0  ;;  %v1598_v27 = vpop.f32.mrf.mxu1 }
 0x268   : > { %1610 = vst [vmem:[#allocation2 + $0x18] sm:$0xff] %v1544_v14  ;;  %1622 = vst [vmem:[#allocation2 + $0x28] sm:$0xff] %v1604_v25  ;;  %v1539_v28 = vadd.f32 %v1538_v26, %v1393_v49  ;;  %v1599_v29 = vadd.f32 %v1598_v27, %v1453_v9 }
 0x26a   : > { %1609 = vst [vmem:[#allocation2 + $0x58] sm:$0xff] %v1539_v28  ;;  %1621 = vst [vmem:[#allocation2 + $0x78] sm:$0xff] %v1599_v29 }
 0x26b PF: > { %v1623_v30 = vld [vmem:[#allocation2 + $0x30] sm:$0xff]  ;;  %v1624_v32 = vld [vmem:[#allocation2] sm:$0xff]  ;;  %v1628_v35 = vld [vmem:[#allocation2 + $0x68] sm:$0xff]  ;;  %vm2307_vm2 = vcmask 261120   ;;  %s9259_s15 = smov 64   ;;  %s9260_s20 = smov 32  }
 0x26c   : > { %1641 = vadd.xlane.f32.xlu0 %v1623_v30  ;;  %v1627_v34 = vld [vmem:[#allocation2 + $0x50] sm:$0xff]  ;;  %v1629_v36 = vld [vmem:[#allocation2 + $0x8] sm:$0xff]  ;;  %v10045_v10 = vld [vmem:[#allocation2 + $0x40] sm:$0xff]  ;;  %vm2397_vm10 = vcmask 523264   ;;  %s11833_s12 = scalar_lea.vmem [#allocation8], %s9658_s18  ;;  %s11845_s2 = sld [smem:[#allocation37_spill]] }
 0x26d   : > { %v1630_v37 = vld [vmem:[#allocation2 + $0x48] sm:$0xff]  ;;  %v8548_v6 = vld [vmem:[%s9662_s17 + $0x94] ss:$12 sps:$4 sm:$0xff]   ;;  %v8550_v7 = vld [vmem:[%s9662_s17 + $0xb0] ss:$12 sps:$4 sm:$0xff]   ;;  %p7433_p10 = scmp.ne.s32.totalorder %s9518_s25, 1 }
 0x26e   : > { %v8545_v38 = vld [vmem:[%s9662_s17 + $0xac] ss:$12 sps:$4 sm:$0xff]   ;;  %v8547_v39 = vld [vmem:[%s9662_s17 + $0xa8] ss:$12 sps:$4 sm:$0xff]   ;;  %v8551_v8 = vld [vmem:[%s9662_s17 + $0x90] ss:$12 sps:$4 sm:$0xff]   ;;  %7941 = vmatprep.subr.bf16.mxu1 %v8550_v7 }
 0x26f   : > { %v1626_v33 = vld [vmem:[#allocation2 + $0x18] sm:$0xff]  ;;  %2030 = vmatprep.subr.bf16.mxu0 %v8545_v38  ;;  %7942 = vmatpush3.bf16.msra.mxu1 %v8550_v7  ;;  %v10051_v15 = vld [vmem:[#allocation2 + $0x20] sm:$0xff]  ;;  %v10053_v16 = vld [vmem:[#allocation2 + $0x10] sm:$0xff] }
 0x270   : > { %1643 = vadd.xlane.f32.xlu0 %v1624_v32  ;;  %2031 = vmatpush1.bf16.msra.mxu0 %v8547_v39  ;;  %v8552_v11 = vld [vmem:[%s9662_s17 + $0x7c] ss:$12 sps:$4 sm:$0xff]   ;;  %v8554_v12 = vld [vmem:[%s9662_s17 + $0x98] ss:$12 sps:$4 sm:$0xff]   ;;  %v8558_v18 = vld [vmem:[%s9662_s17 + $0x80] ss:$12 sps:$4 sm:$0xff]  }
 0x271   : > { %v1625_v31 = vld [vmem:[#allocation2 + $0x58] sm:$0xff]  ;;  %2032 = vmatprep.subr.bf16.mxu0 %v8548_v6  ;;  %7943 = vmatprep.subr.bf16.mxu1 %v8554_v12  ;;  %v8556_v17 = vld [vmem:[%s9662_s17 + $0x64] ss:$12 sps:$4 sm:$0xff]   ;;  %v8559_v19 = vld [vmem:[%s9662_s17 + $0x60] ss:$12 sps:$4 sm:$0xff]  }
 0x272   : > { %1645 = vadd.xlane.f32.xlu1 %v1625_v31  ;;  %v8555_v13 = vld [vmem:[%s9662_s17 + $0x78] ss:$12 sps:$4 sm:$0xff]   ;;  %v8562_v23 = vld [vmem:[%s9662_s17 + $0x68] ss:$12 sps:$4 sm:$0xff]   ;;  %v8566_v28 = vld [vmem:[%s9662_s17 + $0x50] ss:$12 sps:$4 sm:$0xff]   ;;  %s11846_s24 = scalar_lea.vmem %s11845_s2, %s9700_s21 }
 0x273   : > { %7944 = vmatpush3.bf16.msra.mxu1 %v8554_v12  ;;  %v10060_v20 = vld [vmem:[#allocation2 + $0x38] sm:$0xff]  ;;  %v10062_v21 = vld [vmem:[#allocation2 + $0x60] sm:$0xff]  ;;  %v8563_v14 = vld [vmem:[%s9662_s17 + $0x48] ss:$12 sps:$4 sm:$0xff]   ;;  %s11849_s21 = sld [smem:[#allocation42_spill]] (!%p7433_p10) }
 0x274   : > { %1649 = vadd.xlane.f32.xlu0 %v1627_v34  ;;  %2033 = vmatpush1.bf16.msra.mxu0 %v8551_v8  ;;  %v8560_v22 = vld [vmem:[%s9662_s17 + $0x4c] ss:$12 sps:$4 sm:$0xff]   ;;  %v10069_v25 = vld [vmem:[#allocation2 + $0x70] sm:$0xff] }
 0x275   : > { %2034 = vmatprep.subr.bf16.mxu0 %v8552_v11  ;;  %7945 = vmatprep.subr.bf16.mxu1 %v8558_v18  ;;  %v10071_v26 = vld [vmem:[#allocation2 + $0x78] sm:$0xff]  ;;  %v8564_v27 = vld [vmem:[%s9662_s17 + $0x34] ss:$12 sps:$4 sm:$0xff]  }
 0x276   : > { %1647 = vadd.xlane.f32.xlu1 %v1626_v33  ;;  %v8567_v29 = vld [vmem:[%s9662_s17 + $0x30] ss:$12 sps:$4 sm:$0xff]   ;;  %v8576_v38 = vld [vmem:[%s9662_s17 + $0x8] ss:$12 sps:$4 sm:$0xff]   ;;  %v10097_v11 = vld [vmem:[%s858_s9] ss:$0 sm:$0xff] }
 0x277   : > { %7946 = vmatpush3.bf16.msra.mxu1 %v8558_v18 }
 0x278   : > { %1653 = vadd.xlane.f32.xlu0 %v1629_v36  ;;  %2035 = vmatpush1.bf16.msra.mxu0 %v8555_v13 }
 0x279   : > { %2036 = vmatprep.subr.bf16.mxu0 %v8556_v17  ;;  %7947 = vmatprep.subr.bf16.mxu1 %v8562_v23 }
 0x27a   : > { %1651 = vadd.xlane.f32.xlu1 %v1628_v35 }
 0x27b   : > { %7948 = vmatpush3.bf16.msra.mxu1 %v8562_v23 }
 0x27c   : > { %2037 = vmatpush1.bf16.msra.mxu0 %v8559_v19  ;;  %7949 = vmatprep.subr.bf16.mxu1 %v8566_v28 }
 0x27d   : > { %2038 = vmatprep.subr.bf16.mxu0 %v8560_v22 }
 0x27e   : > { %1655 = vadd.xlane.f32.xlu1 %v1630_v37 }
 0x27f   : > { %7950 = vmatpush3.bf16.msra.mxu1 %v8566_v28 }
 0x280   : > { %2039 = vmatpush1.bf16.msra.mxu0 %v8563_v14 }
 0x281   : > { %2040 = vmatprep.subr.bf16.mxu0 %v8564_v27 }
 0x284   : > { %2041 = vmatpush1.bf16.msra.mxu0 %v8567_v29 }
 0x2f5   : > { %v1642_v40 = vpop.xlane.xlu0 %1641 }
 0x2f6   : > { %v1674_v42 = vmul.f32 0.0078125, %v1642_v40 }
 0x2f8   : > { %v10010_v44 = vsub.f32 %v1623_v30, %v1674_v42  ;;  %v10078_v30 = vld [vmem:[#allocation2 + $0x28] sm:$0xff] }
 0x2f9   : > { %v1644_v46 = vpop.xlane.xlu0 %1643 }
 0x2fa   : > { %v1675_v48 = vmul.f32 0.0078125, %v1644_v46  ;;  %v1706_v49 = vmul.f32 %v10010_v44, %v10010_v44 }
 0x2fb   : > { %v1646_v41 = vpop.xlane.xlu1 %1645 }
 0x2fc   : > { %v1676_v43 = vmul.f32 0.0078125, %v1646_v41  ;;  %1722 = vadd.xlane.f32.xlu0 %v1706_v49  ;;  %v10018_v52 = vsub.f32 %v1624_v32, %v1675_v48  ;;  %v8570_v32 = vld [vmem:[%s9662_s17 + $0x38] ss:$12 sps:$4 sm:$0xff]  }
 0x2fd   : > { %v1650_v54 = vpop.xlane.xlu0 %1649  ;;  %7951 = vmatprep.subr.bf16.mxu1 %v8570_v32 }
 0x2fe   : > { %v10012_v45 = vsub.f32 %v1625_v31, %v1676_v43  ;;  %v1678_v56 = vmul.f32 0.0078125, %v1650_v54  ;;  %v1707_v57 = vmul.f32 %v10018_v52, %v10018_v52  ;;  %v8568_v31 = vld [vmem:[%s9662_s17 + $0x1c] ss:$12 sps:$4 sm:$0xff]   ;;  %7952 = vmatpush3.bf16.msra.mxu1 %v8570_v32 }
 0x2ff   : > { %v1648_v47 = vpop.xlane.xlu1 %1647  ;;  %2042 = vmatprep.subr.bf16.mxu0 %v8568_v31 }
 0x300   : > { %v1677_v50 = vmul.f32 0.0078125, %v1648_v47  ;;  %v1708_v51 = vmul.f32 %v10012_v45, %v10012_v45  ;;  %1724 = vadd.xlane.f32.xlu1 %v1707_v57  ;;  %v10026_v60 = vsub.f32 %v1627_v34, %v1678_v56  ;;  %v8572_v34 = vld [vmem:[%s9662_s17 + $0x4] ss:$12 sps:$4 sm:$0xff]  }
 0x301   : > { %v1654_v24 = vpop.xlane.xlu0 %1653 }
 0x302   : > { %v10020_v53 = vsub.f32 %v1626_v33, %v1677_v50  ;;  %1726 = vadd.xlane.f32.xlu0 %v1708_v51  ;;  %v1680_v63 = vmul.f32 0.0078125, %v1654_v24  ;;  %v1710_v0 = vmul.f32 %v10026_v60, %v10026_v60  ;;  %v8571_v33 = vld [vmem:[%s9662_s17 + $0x18] ss:$12 sps:$4 sm:$0xff]  }
 0x303   : > { %v1652_v55 = vpop.xlane.xlu1 %1651  ;;  %2043 = vmatpush1.bf16.msra.mxu0 %v8571_v33 }
 0x304   : > { %v1679_v58 = vmul.f32 0.0078125, %v1652_v55  ;;  %v1709_v59 = vmul.f32 %v10020_v53, %v10020_v53  ;;  %v10034_v3 = vsub.f32 %v1629_v36, %v1680_v63  ;;  %2044 = vmatprep.subr.bf16.mxu0 %v8572_v34  ;;  %v8575_v36 = vld [vmem:[%s9662_s17] ss:$12 sps:$4 sm:$0xff]  }
 0x306   : > { %v10028_v61 = vsub.f32 %v1628_v35, %v1679_v58  ;;  %1728 = vadd.xlane.f32.xlu1 %v1709_v59  ;;  %1730 = vadd.xlane.f32.xlu0 %v1710_v0  ;;  %v1712_v5 = vmul.f32 %v10034_v3, %v10034_v3  ;;  %v8574_v35 = vld [vmem:[%s9662_s17 + $0x20] ss:$12 sps:$4 sm:$0xff]  }
 0x307   : > { %v1656_v62 = vpop.xlane.xlu1 %1655  ;;  %7953 = vmatprep.subr.bf16.mxu1 %v8574_v35  ;;  %2045 = vmatpush1.bf16.msra.mxu0 %v8575_v36 }
 0x308   : > { %v1681_v1 = vmul.f32 0.0078125, %v1656_v62  ;;  %v1711_v2 = vmul.f32 %v10028_v61, %v10028_v61  ;;  %7954 = vmatpush3.bf16.msra.mxu1 %v8574_v35 }
 0x309   : > { %7955 = vmatprep.subr.bf16.mxu1 %v8576_v38 }
 0x30a   : > { %v10036_v4 = vsub.f32 %v1630_v37, %v1681_v1  ;;  %1732 = vadd.xlane.f32.xlu1 %v1711_v2  ;;  %1734 = vadd.xlane.f32.xlu0 %v1712_v5  ;;  %v11772_v37 = vmov 0  }
 0x30b   : > { %2062 = vmatprep.mubr.bf16.mxu0 %v11772_v37 }
 0x30c   : > { %v1713_v9 = vmul.f32 %v10036_v4, %v10036_v4  ;;  %7956 = vmatpush3.bf16.msra.mxu1 %v8576_v38 }
 0x30e   : > { %1736 = vadd.xlane.f32.xlu1 %v1713_v9  ;;  %1657 = vadd.xlane.f32.xlu0 %v10045_v10 }
 0x312   : > { %1659 = vadd.xlane.f32.xlu1 %v10051_v15  ;;  %1661 = vadd.xlane.f32.xlu0 %v10053_v16 }
 0x316   : > { %1663 = vadd.xlane.f32.xlu1 %v10060_v20  ;;  %1665 = vadd.xlane.f32.xlu0 %v10062_v21 }
 0x31a   : > { %1667 = vadd.xlane.f32.xlu1 %v10069_v25  ;;  %1669 = vadd.xlane.f32.xlu0 %v10071_v26 }
 0x31e   : > { %1671 = vadd.xlane.f32.xlu1 %v10078_v30 }
 0x385   : > { %v1723_v39 = vpop.xlane.xlu0 %1722 }
 0x386   : > { %v1754_v40 = vmul.f32 0.0078125, %v1723_v39 }
 0x388   : > { %v1770_v41 = vadd.f32 1e-05, %v1754_v40 }
 0x389   : > { %v1725_v42 = vpop.xlane.xlu1 %1724 }
 0x38a   : > { %8665 = vrsqrt.f32 %v1770_v41  ;;  %v1755_v46 = vmul.f32 0.0078125, %v1725_v42 }
 0x38b   : > { %v1727_v43 = vpop.xlane.xlu0 %1726 }
 0x38c   : > { %v1756_v47 = vmul.f32 0.0078125, %v1727_v43  ;;  %v1771_v48 = vadd.f32 1e-05, %v1755_v46 }
 0x38e   : > { %v1772_v49 = vadd.f32 1e-05, %v1756_v47  ;;  %8667 = vrsqrt.f32 %v1771_v48 }
 0x38f   : > { %v1729_v50 = vpop.xlane.xlu1 %1728  ;;  %v1731_v51 = vpop.xlane.xlu0 %1730 }
 0x390   : > { %v1757_v54 = vmul.f32 0.0078125, %v1729_v50  ;;  %v1758_v55 = vmul.f32 0.0078125, %v1731_v51  ;;  %8669 = vrsqrt.f32 %v1772_v49 }
 0x392   : > { %v1773_v56 = vadd.f32 1e-05, %v1757_v54  ;;  %v1774_v57 = vadd.f32 1e-05, %v1758_v55 }
 0x393   : > { %v1733_v58 = vpop.xlane.xlu1 %1732  ;;  %v1735_v59 = vpop.xlane.xlu0 %1734 }
 0x394   : > { %8671 = vrsqrt.f32 %v1773_v56  ;;  %v1759_v24 = vmul.f32 0.0078125, %v1733_v58  ;;  %v1760_v62 = vmul.f32 0.0078125, %v1735_v59 }
 0x395   : > { %8673 = vrsqrt.f32 %v1774_v57 }
 0x396   : > { %v1775_v63 = vadd.f32 1e-05, %v1759_v24  ;;  %v1776_v0 = vadd.f32 1e-05, %v1760_v62 }
 0x397   : > { %v1737_v1 = vpop.xlane.xlu1 %1736  ;;  %v1658_v2 = vpop.xlane.xlu0 %1657 }
 0x398   : > { %8675 = vrsqrt.f32 %v1775_v63  ;;  %v1761_v5 = vmul.f32 0.0078125, %v1737_v1  ;;  %v1682_v6 = vmul.f32 0.0078125, %v1658_v2  ;;  %v8666_v7 = vpop.eup %8665 }
 0x399   : > { %8677 = vrsqrt.f32 %v1776_v0  ;;  %v1802_v12 = vmul.f32 %v8666_v7, %v10010_v44  ;;  %v10111_v44 = vld [vmem:[%s861_s26] ss:$0 sm:$0xff]  ;;  %s9258_s26 = smov 96  }
 0x39a   : > { %v1777_v8 = vadd.f32 1e-05, %v1761_v5  ;;  %v10090_v9 = vsub.f32 %v10045_v10, %v1682_v6 }
 0x39b   : > { %v1660_v13 = vpop.xlane.xlu1 %1659  ;;  %v1662_v17 = vpop.xlane.xlu0 %1661  ;;  %v1824_v10 = vmul.f32 %v10097_v11, %v1802_v12 }
 0x39c   : > { %8679 = vrsqrt.f32 %v1777_v8  ;;  %v1683_v18 = vmul.f32 0.0078125, %v1660_v13  ;;  %v1714_v19 = vmul.f32 %v10090_v9, %v10090_v9  ;;  %v1684_v22 = vmul.f32 0.0078125, %v1662_v17  ;;  %v8668_v23 = vpop.eup %8667 }
 0x39d   : > { %v8670_v14 = vpop.eup %8669  ;;  %v1803_v28 = vmul.f32 %v8668_v23, %v10018_v52  ;;  %v1846_v39 = vadd.f32 %v10111_v44, %v1824_v10 }
 0x39e   : > { %v10104_v27 = vsub.f32 %v10051_v15, %v1683_v18  ;;  %1738 = vadd.xlane.f32.xlu0 %v1714_v19  ;;  %v10115_v29 = vsub.f32 %v10053_v16, %v1684_v22  ;;  %v1804_v32 = vmul.f32 %v8670_v14, %v10012_v45 }
 0x39f   : > { %v1664_v31 = vpop.xlane.xlu1 %1663  ;;  %v1666_v33 = vpop.xlane.xlu0 %1665  ;;  %v1825_v35 = vmul.f32 %v10097_v11, %v1803_v28 }
 0x3a0   : > { %v1715_v15 = vmul.f32 %v10104_v27, %v10104_v27  ;;  %v1685_v34 = vmul.f32 0.0078125, %v1664_v31  ;;  %v1716_v36 = vmul.f32 %v10115_v29, %v10115_v29  ;;  %v1826_v52 = vmul.f32 %v10097_v11, %v1804_v32 }
 0x3a1   : > { %v8672_v38 = vpop.eup %8671  ;;  %v1686_v16 = vmul.f32 0.0078125, %v1666_v33  ;;  %v1847_v45 = vadd.f32 %v10111_v44, %v1825_v35 }
 0x3a2   : > { %v8674_v40 = vpop.eup %8673  ;;  %1740 = vadd.xlane.f32.xlu1 %v1715_v15  ;;  %v10127_v41 = vsub.f32 %v10060_v20, %v1685_v34  ;;  %v1805_v42 = vmul.f32 %v8672_v38, %v10020_v53  ;;  %1742 = vadd.xlane.f32.xlu0 %v1716_v36  ;;  %v1848_v20 = vadd.f32 %v10111_v44, %v1826_v52 }
 0x3a3   : > { %v1668_v43 = vpop.xlane.xlu1 %1667  ;;  %v1806_v46 = vmul.f32 %v8674_v40, %v10026_v60  ;;  %v10132_v47 = vsub.f32 %v10062_v21, %v1686_v16  ;;  %v1670_v48 = vpop.xlane.xlu0 %1669  ;;  %v1862_v49 = vpack.c.bf16 %v1847_v45, %v1846_v39 }
 0x3a4   : > { %v1717_v50 = vmul.f32 %v10127_v41, %v10127_v41  ;;  %v1827_v51 = vmul.f32 %v10097_v11, %v1805_v42  ;;  %v1687_v54 = vmul.f32 0.0078125, %v1668_v43  ;;  %v1688_v60 = vmul.f32 0.0078125, %v1670_v48 }
 0x3a5   : > { %v8676_v55 = vpop.eup %8675  ;;  %v1828_v53 = vmul.f32 %v10097_v11, %v1806_v46  ;;  %v1718_v56 = vmul.f32 %v10132_v47, %v10132_v47  ;;  %2063 = vmatmul.mubr.bf16.vlgmr.msra.gmra.mxu0 %v1862_v49  ;;  %7957 = vmatprep.mubr.bf16.mxu1 %v1862_v49 }
 0x3a6   : > { %v8678_v57 = vpop.eup %8677  ;;  %v1849_v21 = vadd.f32 %v10111_v44, %v1827_v51  ;;  %v1807_v58 = vmul.f32 %v8676_v55, %v10028_v61  ;;  %v10144_v59 = vsub.f32 %v10069_v25, %v1687_v54  ;;  %1744 = vadd.xlane.f32.xlu1 %v1717_v50  ;;  %2072 = vmatprep.mubr.bf16.mxu0 %v11772_v37 }
 0x3a7   : > { %v1808_v24 = vmul.f32 %v8678_v57, %v10034_v3  ;;  %v1672_v62 = vpop.xlane.xlu1 %1671  ;;  %v10149_v63 = vsub.f32 %v10071_v26, %v1688_v60  ;;  %1746 = vadd.xlane.f32.xlu0 %v1718_v56  ;;  %v1850_v25 = vadd.f32 %v10111_v44, %v1828_v53 }
 0x3a8   : > { %v1863_v0 = vpack.c.bf16 %v1849_v21, %v1848_v20  ;;  %v1829_v1 = vmul.f32 %v10097_v11, %v1807_v58  ;;  %v1719_v2 = vmul.f32 %v10144_v59, %v10144_v59  ;;  %v1689_v61 = vmul.f32 0.0078125, %v1672_v62 }
 0x3a9   : > { %v8680_v5 = vpop.eup %8679  ;;  %v1720_v6 = vmul.f32 %v10149_v63, %v10149_v63  ;;  %v1830_v7 = vmul.f32 %v10097_v11, %v1808_v24 }
 0x3aa   : > { %7958 = vmatmul.mubr.bf16.vlgmr.msra.gmra.mxu1 %v1863_v0  ;;  %v1851_v3 = vadd.f32 %v10111_v44, %v1829_v1  ;;  %v1809_v26 = vmul.f32 %v8680_v5, %v10036_v4  ;;  %v10161_v8 = vsub.f32 %v10078_v30, %v1689_v61  ;;  %1748 = vadd.xlane.f32.xlu1 %v1719_v2 }
 0x3ab   : > { %1750 = vadd.xlane.f32.xlu0 %v1720_v6  ;;  %v1852_v18 = vadd.f32 %v10111_v44, %v1830_v7 }
 0x3ac   : > { %v1864_v12 = vpack.c.bf16 %v1851_v3, %v1850_v25  ;;  %v1831_v13 = vmul.f32 %v10097_v11, %v1809_v26  ;;  %v1721_v17 = vmul.f32 %v10161_v8, %v10161_v8 }
 0x3ad   : > { %2073 = vmatmul.mubr.bf16.gmra.mxu0 %v1863_v0 }
 0x3ae   : > { %7961 = vmatprep.mubr.bf16.mxu1 %v1864_v12  ;;  %v1853_v19 = vadd.f32 %v10111_v44, %v1831_v13  ;;  %2082 = vmatprep.mubr.bf16.mxu0 %v11772_v37 }
 0x3af   : > { %1752 = vadd.xlane.f32.xlu1 %v1721_v17 }
 0x3b0   : > { %v1865_v4 = vpack.c.bf16 %v1853_v19, %v1852_v18 }
 0x3b2   : > { %7962 = vmatmul.mubr.bf16.gmra.mxu1 %v1865_v4 }
 0x3b5   : > { %2083 = vmatmul.mubr.bf16.gmra.mxu0 %v1864_v12 }
 0x3b6   : > { %2092 = vmatprep.mubr.bf16.mxu0 %v11772_v37 }
 0x3bd   : > { %2093 = vmatmul.mubr.bf16.gmra.mxu0 %v1865_v4 }
 0x3be   : > { %2102 = vmatprep.mubr.bf16.mxu0 %v11772_v37 }
 0x427   : > { %v1739_v30 = vpop.xlane.xlu0 %1738 }
 0x428   : > { %v1762_v22 = vmul.f32 0.0078125, %v1739_v30 }
 0x42a   : > { %v1778_v23 = vadd.f32 1e-05, %v1762_v22 }
 0x42b   : > { %v1741_v10 = vpop.xlane.xlu1 %1740  ;;  %v1743_v14 = vpop.xlane.xlu0 %1742 }
 0x42c   : > { %v1763_v28 = vmul.f32 0.0078125, %v1741_v10  ;;  %8681 = vrsqrt.f32 %v1778_v23  ;;  %v1764_v31 = vmul.f32 0.0078125, %v1743_v14 }
 0x42e   : > { %v1779_v32 = vadd.f32 1e-05, %v1763_v28  ;;  %v1780_v33 = vadd.f32 1e-05, %v1764_v31 }
 0x42f   : > { %v1745_v15 = vpop.xlane.xlu1 %1744 }
 0x430   : > { %8683 = vrsqrt.f32 %v1779_v32  ;;  %v1765_v34 = vmul.f32 0.0078125, %v1745_v15  ;;  %v1747_v35 = vpop.xlane.xlu0 %1746 }
 0x431   : > { %8685 = vrsqrt.f32 %v1780_v33  ;;  %v1766_v36 = vmul.f32 0.0078125, %v1747_v35 }
 0x432   : > { %v1781_v38 = vadd.f32 1e-05, %v1765_v34 }
 0x433   : > { %v1749_v39 = vpop.xlane.xlu1 %1748  ;;  %v1782_v52 = vadd.f32 1e-05, %v1766_v36 }
 0x434   : > { %8687 = vrsqrt.f32 %v1781_v38  ;;  %v1767_v16 = vmul.f32 0.0078125, %v1749_v39  ;;  %v1751_v40 = vpop.xlane.xlu0 %1750 }
 0x435   : > { %8689 = vrsqrt.f32 %v1782_v52  ;;  %v1768_v45 = vmul.f32 0.0078125, %v1751_v40 }
 0x436   : > { %v1783_v42 = vadd.f32 1e-05, %v1767_v16 }
 0x437   : > { %v1784_v46 = vadd.f32 1e-05, %v1768_v45 }
 0x438   : > { %v1753_v43 = vpop.xlane.xlu1 %1752  ;;  %8691 = vrsqrt.f32 %v1783_v42 }
 0x439   : > { %v8682_v48 = vpop.eup %8681  ;;  %v1769_v49 = vmul.f32 0.0078125, %v1753_v43  ;;  %8693 = vrsqrt.f32 %v1784_v46 }
 0x43a   : > { %v1810_v50 = vmul.f32 %v8682_v48, %v10090_v9 }
 0x43b   : > { %v1785_v51 = vadd.f32 1e-05, %v1769_v49 }
 0x43c   : > { %v1832_v54 = vmul.f32 %v10097_v11, %v1810_v50 }
 0x43d   : > { %v8684_v55 = vpop.eup %8683  ;;  %8695 = vrsqrt.f32 %v1785_v51 }
 0x43e   : > { %v8686_v20 = vpop.eup %8685  ;;  %v1811_v53 = vmul.f32 %v8684_v55, %v10104_v27  ;;  %v1854_v57 = vadd.f32 %v10111_v44, %v1832_v54 }
 0x43f   : > { %v1812_v56 = vmul.f32 %v8686_v20, %v10115_v29 }
 0x440   : > { %v1833_v60 = vmul.f32 %v10097_v11, %v1811_v53 }
 0x441   : > { %v1834_v21 = vmul.f32 %v10097_v11, %v1812_v56  ;;  %v8688_v58 = vpop.eup %8687 }
 0x442   : > { %v1855_v24 = vadd.f32 %v10111_v44, %v1833_v60  ;;  %v8690_v9 = vpop.eup %8689  ;;  %v1813_v62 = vmul.f32 %v8688_v58, %v10127_v41 }
 0x443   : > { %v1814_v1 = vmul.f32 %v8690_v9, %v10132_v47  ;;  %v1856_v27 = vadd.f32 %v10111_v44, %v1834_v21 }
 0x444   : > { %v1866_v0 = vpack.c.bf16 %v1855_v24, %v1854_v57  ;;  %v1835_v2 = vmul.f32 %v10097_v11, %v1813_v62 }
 0x445   : > { %v8692_v29 = vpop.eup %8691  ;;  %v1836_v61 = vmul.f32 %v10097_v11, %v1814_v1 }
 0x446   : > { %2103 = vmatmul.mubr.bf16.gmra.mxu0 %v1866_v0  ;;  %7965 = vmatprep.mubr.bf16.mxu1 %v1866_v0  ;;  %v8694_v5 = vpop.eup %8693  ;;  %v1857_v25 = vadd.f32 %v10111_v44, %v1835_v2  ;;  %v1815_v6 = vmul.f32 %v8692_v29, %v10144_v59 }
 0x447   : > { %2112 = vmatprep.mubr.bf16.mxu0 %v11772_v37  ;;  %v1816_v41 = vmul.f32 %v8694_v5, %v10149_v63  ;;  %v1858_v26 = vadd.f32 %v10111_v44, %v1836_v61 }
 0x448   : > { %v1867_v3 = vpack.c.bf16 %v1857_v25, %v1856_v27  ;;  %v1837_v47 = vmul.f32 %v10097_v11, %v1815_v6 }
 0x449   : > { %v1838_v12 = vmul.f32 %v10097_v11, %v1816_v41 }
 0x44a   : > { %v8696_v7 = vpop.eup %8695  ;;  %v1859_v13 = vadd.f32 %v10111_v44, %v1837_v47  ;;  %7966 = vmatmul.mubr.bf16.gmra.mxu1 %v1867_v3 }
 0x44b   : > { %v1817_v17 = vmul.f32 %v8696_v7, %v10161_v8  ;;  %v1860_v59 = vadd.f32 %v10111_v44, %v1838_v12 }
 0x44c   : > { %v1868_v18 = vpack.c.bf16 %v1859_v13, %v1858_v26 }
 0x44d   : > { %v1839_v19 = vmul.f32 %v10097_v11, %v1817_v17  ;;  %v10264_v17 = vld [vmem:[%s9670_s27 + $0x18] sm:$0xff]  }
 0x44e   : > { %2113 = vmatmul.mubr.bf16.gmra.mxu0 %v1867_v3  ;;  %7969 = vmatprep.mubr.bf16.mxu1 %v1868_v18 }
 0x44f   : > { %2122 = vmatprep.mubr.bf16.mxu0 %v11772_v37  ;;  %v1861_v63 = vadd.f32 %v10111_v44, %v1839_v19 }
 0x451   : > { %v1869_v4 = vpack.c.bf16 %v1861_v63, %v1860_v59 }
 0x453   : > { %7970 = vmatmul.mubr.bf16.gmra.mxu1 %v1869_v4 }
 0x456   : > { %2123 = vmatmul.mubr.bf16.gmra.mxu0 %v1868_v18 }
 0x457   : > { %2132 = vmatprep.mubr.bf16.mxu0 %v11772_v37 }
 0x45e   : > { %2133 = vmatmul.mubr.bf16.gmra.mxu0 %v1869_v4 }
 0x465   : > { %v2064_v30 = vpop.f32.mrf.mxu0 }
 0x467   : > { %v2066_v8 = vpop.f32.mrf.mxu0 }
 0x469   : > { %v2068_v22 = vpop.f32.mrf.mxu0 }
 0x46a   : > { %v10198_v23 = vpack.c.bf16 %v2068_v22, %v2064_v30  ;;  %v7959_v44 = vpop.f32.mrf.mxu1 }
 0x46b   : > { %v2070_v11 = vpop.f32.mrf.mxu0 }
 0x46c   : > { %7981 = vmatprep.mubr.msk.bf16.mxu1 %vm2307_vm2, %v10198_v23  ;;  %v2177_v32 = vpop.f32.mrf.mxu1  ;;  %v2241_v46 = vpack.c.bf16 %v2070_v11, %v2066_v8  ;;  %v8578_v11 = vld [vmem:[%s9670_s27 + $0x10] sm:$0xff]  }
 0x46d   : > { %v2074_v10 = vpop.f32.mrf.mxu0 }
 0x46e   : > { %v7960_v34 = vpop.f32.mrf.mxu1  ;;  %v2321_v9 = vsel %vm2307_vm2, %v2241_v46, 0 }
 0x46f   : > { %v2076_v14 = vpop.f32.mrf.mxu0  ;;  %v2245_v58 = vpack.c.bf16 %v7960_v34, %v7959_v44 }
 0x470   : > { %v2180_v39 = vpop.f32.mrf.mxu1 }
 0x471   : > { %v2078_v28 = vpop.f32.mrf.mxu0  ;;  %v2242_v21 = vpack.c.bf16 %v2180_v39, %v2177_v32 }
 0x472   : > { %v7963_v45 = vpop.f32.mrf.mxu1  ;;  %v2243_v51 = vpack.c.bf16 %v2078_v28, %v2074_v10 }
 0x473   : > { %v2080_v31 = vpop.f32.mrf.mxu0 }
 0x474   : > { %v2244_v40 = vpack.c.bf16 %v2080_v31, %v2076_v14  ;;  %v2193_v49 = vpop.f32.mrf.mxu1 }
 0x475   : > { %v2084_v33 = vpop.f32.mrf.mxu0 }
 0x476   : > { %v7964_v54 = vpop.f32.mrf.mxu1  ;;  %v2324_v24 = vsel %vm2307_vm2, %v2244_v40, 0 }
 0x477   : > { %v2086_v15 = vpop.f32.mrf.mxu0  ;;  %v2251_v57 = vpack.c.bf16 %v7964_v54, %v7963_v45 }
 0x478   : > { %v2196_v20 = vpop.f32.mrf.mxu1 }
 0x479   : > { %v2088_v35 = vpop.f32.mrf.mxu0  ;;  %v2248_v60 = vpack.c.bf16 %v2196_v20, %v2193_v49 }
 0x47a   : > { %v2246_v53 = vpack.c.bf16 %v2088_v35, %v2084_v33 }
 0x47b   : > { %v2090_v36 = vpop.f32.mrf.mxu0 }
 0x47c   : > { %v2247_v38 = vpack.c.bf16 %v2090_v36, %v2086_v15 }
 0x47d   : > { %v2094_v52 = vpop.f32.mrf.mxu0 }
 0x47e   : > { %2578 = vrot.lane.b32.xlu1 %v2247_v38, %s9258_s26  ;;  %v2327_v56 = vsel %vm2307_vm2, %v2247_v38, 0 }
 0x47f   : > { %v2096_v16 = vpop.f32.mrf.mxu0 }
 0x481   : > { %v2098_v42 = vpop.f32.mrf.mxu0 }
 0x482   : > { %2576 = vrot.lane.b32.xlu1 %v2244_v40, %s9258_s26  ;;  %v2249_v55 = vpack.c.bf16 %v2098_v42, %v2094_v52 }
 0x483   : > { %v2100_v43 = vpop.f32.mrf.mxu0 }
 0x484   : > { %v2250_v48 = vpack.c.bf16 %v2100_v43, %v2096_v16 }
 0x486   : > { %2574 = vrot.lane.b32.xlu1 %v2241_v46, %s9258_s26  ;;  %8405 = vmatprep.subr.msk.bf16.mxu1 %vm2307_vm2, %v2250_v48  ;;  %v2330_v50 = vsel %vm2307_vm2, %v2250_v48, 0 }
 0x487   : > { %2580 = vrot.lane.b32.xlu0 %v2250_v48, %s9258_s26  ;;  %7974 = vmatpush3.bf16.xpose.msra.mxu1 %v2330_v50 }
 0x488   : > { %8406 = vmatprep.subr.msk.bf16.mxu1 %vm2307_vm2, %v2247_v38 }
 0x48a   : > { %2564 = vrot.lane.b32.xlu1 %v2243_v51, %s9258_s26 }
 0x48b   : > { %2562 = vrot.lane.b32.xlu0 %v10198_v23, %s9258_s26 }
 0x48e   : > { %2568 = vrot.lane.b32.xlu1 %v2249_v55, %s9258_s26 }
 0x48f   : > { %2566 = vrot.lane.b32.xlu0 %v2246_v53, %s9258_s26  ;;  %7976 = vmatpush3.bf16.xpose.msra.mxu1 %v2327_v56 }
 0x490   : > { %8407 = vmatprep.subr.msk.bf16.mxu1 %vm2307_vm2, %v2244_v40 }
 0x492   : > { %2758 = vrot.lane.b32.xlu1 %v2248_v60, %s9258_s26 }
 0x493   : > { %2760 = vrot.lane.b32.xlu0 %v2251_v57, %s9258_s26 }
 0x496   : > { %2754 = vrot.lane.b32.xlu1 %v2242_v21, %s9258_s26 }
 0x497   : > { %2756 = vrot.lane.b32.xlu0 %v2245_v58, %s9258_s26  ;;  %7978 = vmatpush3.bf16.xpose.msra.mxu1 %v2324_v24 }
 0x498   : > { %8408 = vmatprep.subr.msk.bf16.mxu1 %vm2307_vm2, %v2241_v46 }
 0x49a   : > { %3037 = vrot.lane.b32.xlu1 %v2247_v38, %s9259_s15 }
 0x49b   : > { %3039 = vrot.lane.b32.xlu0 %v2250_v48, %s9259_s15 }
 0x49e   : > { %3033 = vrot.lane.b32.xlu1 %v2241_v46, %s9259_s15 }
 0x49f   : > { %3035 = vrot.lane.b32.xlu0 %v2244_v40, %s9259_s15  ;;  %7980 = vmatpush3.bf16.xpose.msra.mxu1 %v2321_v9 }
 0x4a0   : > { %7989 = vmatprep.subr.bf16.mxu1 %v2251_v57 }
 0x4a2   : > { %3027 = vrot.lane.b32.xlu1 %v2243_v51, %s9259_s15 }
 0x4a3   : > { %3025 = vrot.lane.b32.xlu0 %v10198_v23, %s9259_s15 }
 0x4a6   : > { %3031 = vrot.lane.b32.xlu1 %v2249_v55, %s9259_s15  ;;  %7982 = vmatmul.mubr.msk.bf16.vlgmr.msra.gmra.mxu1 %vm2307_vm2, %v2243_v51 }
 0x4a7   : > { %3029 = vrot.lane.b32.xlu0 %v2246_v53, %s9259_s15  ;;  %7985 = vmatprep.mubr.msk.bf16.mxu1 %vm2307_vm2, %v2246_v53 }
 0x4a8   : > { %7990 = vmatpush3.bf16.msra.mxu1 %v2251_v57 }
 0x4a9   : > { %7991 = vmatprep.subr.bf16.mxu1 %v2248_v60 }
 0x4aa   : > { %3411 = vrot.lane.b32.xlu1 %v2247_v38, %s9260_s20 }
 0x4ab   : > { %3413 = vrot.lane.b32.xlu0 %v2250_v48, %s9260_s20 }
 0x4ac   : > { %7992 = vmatpush3.bf16.msra.mxu1 %v2248_v60 }
 0x4ad   : > { %7993 = vmatprep.subr.bf16.mxu1 %v2245_v58 }
 0x4ae   : > { %3407 = vrot.lane.b32.xlu1 %v2241_v46, %s9260_s20  ;;  %7986 = vmatmul.mubr.msk.bf16.gmra.mxu1 %vm2307_vm2, %v2249_v55 }
 0x4af   : > { %3409 = vrot.lane.b32.xlu0 %v2244_v40, %s9260_s20 }
 0x4b0   : > { %7994 = vmatpush3.bf16.msra.mxu1 %v2245_v58 }
 0x4b1   : > { %7995 = vmatprep.subr.bf16.mxu1 %v2242_v21 }
 0x4b2   : > { %3401 = vrot.lane.b32.xlu1 %v2243_v51, %s9260_s20 }
 0x4b3   : > { %3399 = vrot.lane.b32.xlu0 %v10198_v23, %s9260_s20 }
 0x4b4   : > { %7996 = vmatpush3.bf16.msra.mxu1 %v2242_v21 }
 0x4b6   : > { %3405 = vrot.lane.b32.xlu1 %v2249_v55, %s9260_s20  ;;  %v2280_v55 = vlaneseq }
 0x4b7   : > { %3403 = vrot.lane.b32.xlu0 %v2246_v53, %s9260_s20 }
 0x4b8   : > { %v10371_v20 = vshrl.u32 %v2280_v55, 7 }
 0x4ba   : > { %3213 = vrot.lane.b32.xlu1 %v2248_v60, %s9259_s15  ;;  %11825 = vst [vmem:[#allocation27_spill] sm:$0xff] %v10371_v20  ;;  %v2284_v56 = vadd.s32 24, %v10371_v20  ;;  %v2282_v9 = vadd.s32 8, %v10371_v20 }
 0x4bb   : > { %3215 = vrot.lane.b32.xlu0 %v2251_v57, %s9259_s15 }
 0x4be   : > { %3209 = vrot.lane.b32.xlu1 %v2242_v21, %s9259_s15 }
 0x4bf   : > { %3211 = vrot.lane.b32.xlu0 %v2245_v58, %s9259_s15 }
 0x4c2   : > { %3587 = vrot.lane.b32.xlu1 %v2248_v60, %s9260_s20  ;;  %v2287_v60 = vadd.s32 48, %v10371_v20 }
 0x4c3   : > { %3589 = vrot.lane.b32.xlu0 %v2251_v57, %s9260_s20  ;;  %v2285_v57 = vadd.s32 32, %v10371_v20 }
 0x4c6   : > { %3583 = vrot.lane.b32.xlu1 %v2242_v21, %s9260_s20  ;;  %v2283_v21 = vadd.s32 16, %v10371_v20 }
 0x4c7   : > { %3585 = vrot.lane.b32.xlu0 %v2245_v58, %s9260_s20  ;;  %v2290_v58 = vand.u32 127, %v2280_v55 }
 0x4c9   : > { %vm2294_vm3 = vcmp.ge.s32.totalorder %v2284_v56, %v2290_v58  ;;  %vm2297_vm4 = vcmp.ge.s32.totalorder %v2287_v60, %v2290_v58  ;;  %vm2295_vm1 = vcmp.ge.s32.totalorder %v2285_v57, %v2290_v58  ;;  %vm2293_vm5 = vcmp.ge.s32.totalorder %v2283_v21, %v2290_v58 }
 0x4ca   : > { %vm2291_vm6 = vcmp.ge.s32.totalorder %v10371_v20, %v2290_v58  ;;  %vm2292_vm7 = vcmp.ge.s32.totalorder %v2282_v9, %v2290_v58 }
 0x4f0   : > { %v2579_v1 = vpop.permute.xlu1 %2578 }
 0x4f1   : > { %v2601_v29 = vsel %vm2307_vm2, %v2579_v1, 0 }
 0x4f4   : > { %v2577_v61 = vpop.permute.xlu1 %2576 }
 0x4f5   : > { %v2598_v3 = vsel %vm2307_vm2, %v2577_v61, 0 }
 0x4f8   : > { %v2575_v47 = vpop.permute.xlu1 %2574 }
 0x4f9   : > { %v2581_v62 = vpop.permute.xlu0 %2580  ;;  %v2595_v59 = vsel %vm2307_vm2, %v2575_v47, 0 }
 0x4fa   : > { %8409 = vmatprep.subr.msk.bf16.mxu0 %vm2307_vm2, %v2581_v62  ;;  %v2604_v0 = vsel %vm2307_vm2, %v2581_v62, 0  ;;  %v2288_v62 = vadd.s32 56, %v10371_v20 }
 0x4fb   : > { %8006 = vmatpush3.bf16.xpose.msra.mxu0 %v2604_v0 }
 0x4fc   : > { %8410 = vmatprep.subr.msk.bf16.mxu0 %vm2307_vm2, %v2579_v1  ;;  %v2565_v22 = vpop.permute.xlu1 %2564  ;;  %v2286_v1 = vadd.s32 40, %v10371_v20  ;;  %vm2298_vm8 = vcmp.ge.s32.totalorder %v2288_v62, %v2290_v58 }
 0x4fd   : > { %v2563_v2 = vpop.permute.xlu0 %2562 }
 0x4fe   : > { %8013 = vmatprep.mubr.msk.bf16.mxu0 %vm2307_vm2, %v2563_v2  ;;  %vm2296_vm9 = vcmp.ge.s32.totalorder %v2286_v1, %v2290_v58 }
 0x500   : > { %v2569_v34 = vpop.permute.xlu1 %2568 }
 0x501   : > { %v2567_v27 = vpop.permute.xlu0 %2566 }
 0x503   : > { %8008 = vmatpush3.bf16.xpose.msra.mxu0 %v2601_v29 }
 0x504   : > { %8411 = vmatprep.subr.msk.bf16.mxu0 %vm2307_vm2, %v2577_v61 }
 0x505   : > { %v10258_v5 = vpop.permute.xlu0 %2760 }
 0x506   : > { %v2104_v25 = vpop.f32.mrf.mxu0  ;;  %8021 = vmatprep.subr.bf16.mxu1 %v10258_v5 }
 0x508   : > { %v2106_v6 = vpop.f32.mrf.mxu0 }
 0x509   : > { %v10268_v23 = vpop.permute.xlu0 %2756 }
 0x50a   : > { %v2108_v41 = vpop.f32.mrf.mxu0  ;;  %v7967_v12 = vpop.f32.mrf.mxu1 }
 0x50b   : > { %8010 = vmatpush3.bf16.xpose.msra.mxu0 %v2598_v3  ;;  %v10303_v46 = vpack.c.bf16 %v2108_v41, %v2104_v25 }
 0x50c   : > { %v2110_v26 = vpop.f32.mrf.mxu0  ;;  %8412 = vmatprep.subr.msk.bf16.mxu0 %vm2307_vm2, %v2575_v47  ;;  %v2209_v19 = vpop.f32.mrf.mxu1 }
 0x50d   : > { %v10278_v33 = vpop.permute.xlu0 %3039  ;;  %v10280_v35 = vpack.c.bf16 %v2110_v26, %v2106_v6 }
 0x50e   : > { %v2114_v7 = vpop.f32.mrf.mxu0  ;;  %v7968_v30 = vpop.f32.mrf.mxu1 }
 0x50f   : > { %v10325_v54 = vpack.c.bf16 %v7968_v30, %v7967_v12 }
 0x510   : > { %v2116_v13 = vpop.f32.mrf.mxu0  ;;  %v2212_v14 = vpop.f32.mrf.mxu1 }
 0x511   : > { %v10313_v50 = vpack.c.bf16 %v2212_v14, %v2209_v19 }
 0x512   : > { %v2118_v18 = vpop.f32.mrf.mxu0 }
 0x513   : > { %8012 = vmatpush3.bf16.xpose.msra.mxu0 %v2595_v59  ;;  %v7971_v32 = vpop.f32.mrf.mxu1  ;;  %v10287_v52 = vpack.c.bf16 %v2118_v18, %v2114_v7 }
 0x514   : > { %v2120_v63 = vpop.f32.mrf.mxu0  ;;  %8037 = vmatprep.subr.bf16.mxu0 %v10264_v17 }
 0x515   : > { %v2225_v38 = vpop.f32.mrf.mxu1  ;;  %v10295_v45 = vpack.c.bf16 %v2120_v63, %v2116_v13 }
 0x516   : > { %v2124_v4 = vpop.f32.mrf.mxu0 }
 0x517   : > { %v7972_v40 = vpop.f32.mrf.mxu1 }
 0x518   : > { %v2126_v8 = vpop.f32.mrf.mxu0  ;;  %v10319_v51 = vpack.c.bf16 %v7972_v40, %v7971_v32 }
 0x519   : > { %v2228_v43 = vpop.f32.mrf.mxu1 }
 0x51a   : > { %v2128_v10 = vpop.f32.mrf.mxu0  ;;  %8014 = vmatmul.mubr.msk.bf16.vlgmr.msra.gmra.mxu0 %vm2307_vm2, %v2565_v22  ;;  %v10305_v48 = vpack.c.bf16 %v2228_v43, %v2225_v38 }
 0x51b   : > { %8017 = vmatprep.mubr.msk.bf16.mxu0 %vm2307_vm2, %v2567_v27  ;;  %8038 = vmatpush3.bf16.msra.mxu0 %v10264_v17  ;;  %v10311_v49 = vpack.c.bf16 %v2128_v10, %v2124_v4  ;;  %v9261_v27 = vmov -1e+30  }
 0x51c   : > { %v2130_v44 = vpop.f32.mrf.mxu0  ;;  %8039 = vmatprep.subr.bf16.mxu0 %v8578_v11  ;;  %v10385_v29 = vsel %vm2294_vm3, 0.0, %v9261_v27  ;;  %v10387_v61 = vsel %vm2297_vm4, 0.0, %v9261_v27  ;;  %v10389_v6 = vsel %vm2295_vm1, 0.0, %v9261_v27  ;;  %v10391_v41 = vsel %vm2293_vm5, 0.0, %v9261_v27 }
 0x51d   : > { %v10274_v28 = vpack.c.bf16 %v2130_v44, %v2126_v8  ;;  %v10393_v3 = vsel %vm2291_vm6, 0.0, %v9261_v27  ;;  %v10396_v26 = vsel %vm2292_vm7, 0.0, %v9261_v27  ;;  %v10398_v12 = vsel %vm2298_vm8, 0.0, %v9261_v27 }
 0x51e   : > { %v2134_v31 = vpop.f32.mrf.mxu0  ;;  %v10402_v59 = vsel %vm2296_vm9, 0.0, %v9261_v27 }
 0x51f   : > { %4042 = vrot.lane.b32.xlu1 %v10274_v28, %s9258_s26  ;;  %8040 = vmatpush3.bf16.msra.mxu0 %v8578_v11 }
 0x520   : > { %v2136_v15 = vpop.f32.mrf.mxu0  ;;  %8413 = vmatprep.subr.msk.bf16.mxu0 %vm2307_vm2, %v10278_v33 }
 0x522   : > { %v2138_v36 = vpop.f32.mrf.mxu0  ;;  %8018 = vmatmul.mubr.msk.bf16.gmra.mxu0 %vm2307_vm2, %v2569_v34 }
 0x523   : > { %4038 = vrot.lane.b32.xlu1 %v10280_v35, %s9258_s26  ;;  %v10297_v42 = vpack.c.bf16 %v2138_v36, %v2134_v31 }
 0x524   : > { %v2140_v39 = vpop.f32.mrf.mxu0 }
 0x525   : > { %v10289_v16 = vpack.c.bf16 %v2140_v39, %v2136_v15 }
 0x527   : > { %4028 = vrot.lane.b32.xlu1 %v10287_v52, %s9258_s26  ;;  %4044 = vrot.lane.b32.xlu0 %v10289_v16, %s9258_s26 }
 0x52b   : > { %4032 = vrot.lane.b32.xlu1 %v10297_v42, %s9258_s26  ;;  %4040 = vrot.lane.b32.xlu0 %v10295_v45, %s9258_s26 }
 0x52f   : > { %4222 = vrot.lane.b32.xlu1 %v10305_v48, %s9258_s26  ;;  %4026 = vrot.lane.b32.xlu0 %v10303_v46, %s9258_s26 }
 0x533   : > { %4218 = vrot.lane.b32.xlu1 %v10313_v50, %s9258_s26  ;;  %4030 = vrot.lane.b32.xlu0 %v10311_v49, %s9258_s26 }
 0x537   : > { %4477 = vrot.lane.b32.xlu1 %v10274_v28, %s9259_s15  ;;  %4224 = vrot.lane.b32.xlu0 %v10319_v51, %s9258_s26 }
 0x53b   : > { %4473 = vrot.lane.b32.xlu1 %v10280_v35, %s9259_s15  ;;  %4220 = vrot.lane.b32.xlu0 %v10325_v54, %s9258_s26 }
 0x53f   : > { %4467 = vrot.lane.b32.xlu1 %v10287_v52, %s9259_s15  ;;  %4479 = vrot.lane.b32.xlu0 %v10289_v16, %s9259_s15 }
 0x543   : > { %4471 = vrot.lane.b32.xlu1 %v10297_v42, %s9259_s15  ;;  %4475 = vrot.lane.b32.xlu0 %v10295_v45, %s9259_s15 }
 0x547   : > { %4839 = vrot.lane.b32.xlu1 %v10274_v28, %s9260_s20  ;;  %4465 = vrot.lane.b32.xlu0 %v10303_v46, %s9259_s15 }
 0x54b   : > { %4835 = vrot.lane.b32.xlu1 %v10280_v35, %s9260_s20  ;;  %4469 = vrot.lane.b32.xlu0 %v10311_v49, %s9259_s15 }
 0x54f   : > { %4829 = vrot.lane.b32.xlu1 %v10287_v52, %s9260_s20  ;;  %4841 = vrot.lane.b32.xlu0 %v10289_v16, %s9260_s20 }
 0x553   : > { %4833 = vrot.lane.b32.xlu1 %v10297_v42, %s9260_s20  ;;  %4837 = vrot.lane.b32.xlu0 %v10295_v45, %s9260_s20 }
 0x557   : > { %4653 = vrot.lane.b32.xlu1 %v10305_v48, %s9259_s15  ;;  %4827 = vrot.lane.b32.xlu0 %v10303_v46, %s9260_s20 }
 0x55b   : > { %4649 = vrot.lane.b32.xlu1 %v10313_v50, %s9259_s15  ;;  %4831 = vrot.lane.b32.xlu0 %v10311_v49, %s9260_s20 }
 0x55f   : > { %5015 = vrot.lane.b32.xlu1 %v10305_v48, %s9260_s20  ;;  %4655 = vrot.lane.b32.xlu0 %v10319_v51, %s9259_s15 }
 0x563   : > { %5011 = vrot.lane.b32.xlu1 %v10313_v50, %s9260_s20  ;;  %4651 = vrot.lane.b32.xlu0 %v10325_v54, %s9259_s15 }
 0x566   : > { %v7983_v53 = vpop.f32.mrf.mxu1 }
 0x567   : > { %5017 = vrot.lane.b32.xlu0 %v10319_v51, %s9260_s20  ;;  %v2375_v63 = vadd.f32 %v7983_v53, %v10391_v41 }
 0x568   : > { %v2366_v24 = vpop.f32.mrf.mxu1 }
 0x569   : > { %v2367_v4 = vadd.f32 %v2366_v24, %v10393_v3  ;;  %v2400_v15 = vsel %vm2397_vm10, %v2375_v63, -inf }
 0x56a   : > { %v7984_v0 = vpop.f32.mrf.mxu1 }
 0x56b   : > { %5013 = vrot.lane.b32.xlu0 %v10325_v54, %s9260_s20  ;;  %v2378_v47 = vadd.f32 %v7984_v0, %v10385_v29  ;;  %v2398_v34 = vsel %vm2397_vm10, %v2367_v4, -inf }
 0x56c   : > { %v2369_v2 = vpop.f32.mrf.mxu1 }
 0x56d   : > { %v2370_v30 = vadd.f32 %v2369_v2, %v10396_v26  ;;  %v2401_v22 = vsel %vm2397_vm10, %v2378_v47, -inf }
 0x56e   : > { %v7987_v25 = vpop.f32.mrf.mxu1 }
 0x56f   : > { %v2391_v13 = vadd.f32 %v7987_v25, %v10387_v61  ;;  %v2399_v36 = vsel %vm2397_vm10, %v2370_v30, -inf }
 0x570   : > { %v2382_v7 = vpop.f32.mrf.mxu1 }
 0x571   : > { %v2383_v18 = vadd.f32 %v2382_v7, %v10389_v6  ;;  %v2406_v10 = vsel %vm2397_vm10, %v2391_v13, -inf }
 0x572   : > { %v7988_v19 = vpop.f32.mrf.mxu1  ;;  %v2407_v39 = vmax.f32 %v2400_v15, %v2406_v10 }
 0x573   : > { %v2394_v8 = vadd.f32 %v7988_v19, %v10398_v12  ;;  %v2402_v14 = vsel %vm2397_vm10, %v2383_v18, -inf }
 0x574   : > { %v2385_v11 = vpop.f32.mrf.mxu1  ;;  %v2403_v40 = vmax.f32 %v2398_v34, %v2402_v14 }
 0x575   : > { %v2408_v44 = vsel %vm2397_vm10, %v2394_v8, -inf  ;;  %v2386_v31 = vadd.f32 %v2385_v11, %v10402_v59 }
 0x576   : > { %v2409_v32 = vmax.f32 %v2401_v22, %v2408_v44 }
 0x577   : > { %v2404_v38 = vsel %vm2397_vm10, %v2386_v31, -inf }
 0x578   : > { %v2405_v43 = vmax.f32 %v2399_v36, %v2404_v38  ;;  %v2411_v55 = vmax.f32 %v2407_v39, %v2409_v32 }
 0x57a   : > { %v2410_v53 = vmax.f32 %v2403_v40, %v2405_v43 }
 0x57c   : > { %v2412_v56 = vmax.f32 %v2410_v53, %v2411_v55 }
 0x57e   : > { %v2413_v60 = vrot.slane %v2412_v56, 4 }
 0x580   : > { %v2414_v57 = vmax.f32 %v2412_v56, %v2413_v60 }
 0x582   : > { %v2415_v21 = vrot.slane %v2414_v57, 2 }
 0x584   : > { %v2416_v58 = vmax.f32 %v2414_v57, %v2415_v21 }
 0x586   : > { %v2417_v24 = vrot.slane %v2416_v58, 1 }
 0x588   : > { %v2418_v9 = vmax.f32 %v2416_v58, %v2417_v24 }
 0x58a   : > { %v2419_v62 = vsub.f32 %v2367_v4, %v2418_v9  ;;  %v2420_v0 = vsub.f32 %v2370_v30, %v2418_v9  ;;  %v2421_v1 = vsub.f32 %v2375_v63, %v2418_v9  ;;  %v2422_v2 = vsub.f32 %v2378_v47, %v2418_v9 }
 0x58b   : > { %v2423_v27 = vsub.f32 %v2383_v18, %v2418_v9  ;;  %v2424_v22 = vsub.f32 %v2386_v31, %v2418_v9  ;;  %v2425_v10 = vsub.f32 %v2391_v13, %v2418_v9  ;;  %v2426_v44 = vsub.f32 %v2394_v8, %v2418_v9 }
 0x58c   : > { %v2427_v25 = vmul.f32 1.442695, %v2419_v62  ;;  %v2429_v7 = vmul.f32 1.442695, %v2420_v0  ;;  %v2431_v19 = vmul.f32 1.442695, %v2421_v1 }
 0x58d   : > { %v2433_v11 = vmul.f32 1.442695, %v2422_v2  ;;  %v2435_v14 = vmul.f32 1.442695, %v2423_v27  ;;  %v2437_v32 = vmul.f32 1.442695, %v2424_v22 }
 0x58e   : > { %8697 = vpow2.f32 %v2427_v25  ;;  %v2439_v15 = vmul.f32 1.442695, %v2425_v10  ;;  %v2441_v4 = vmul.f32 1.442695, %v2426_v44 }
 0x58f   : > { %8699 = vpow2.f32 %v2429_v7 }
 0x590   : > { %8701 = vpow2.f32 %v2431_v19 }
 0x591   : > { %8703 = vpow2.f32 %v2433_v11 }
 0x592   : > { %8705 = vpow2.f32 %v2435_v14 }
 0x593   : > { %8707 = vpow2.f32 %v2437_v32 }
 0x594   : > { %8709 = vpow2.f32 %v2439_v15 }
 0x595   : > { %8711 = vpow2.f32 %v2441_v4 }
 0x59b   : > { %v8698_v47 = vpop.eup %8697 }
 0x59c   : > { %v8700_v18 = vpop.eup %8699  ;;  %v2443_v63 = vsel %vm2397_vm10, %v8698_v47, 0.0 }
 0x59d   : > { %v8702_v30 = vpop.eup %8701  ;;  %v2444_v31 = vsel %vm2397_vm10, %v8700_v18, 0.0 }
 0x59e   : > { %v8704_v13 = vpop.eup %8703  ;;  %v2445_v34 = vadd.f32 %v2444_v31, %v2443_v63  ;;  %v2446_v36 = vsel %vm2397_vm10, %v8702_v30, 0.0  ;;  %v2759_v31 = vpop.permute.xlu1 %2758 }
 0x59f   : > { %v8706_v8 = vpop.eup %8705  ;;  %v2448_v39 = vsel %vm2397_vm10, %v8704_v13, 0.0 }
 0x5a0   : > { %v2447_v38 = vadd.f32 %v2446_v36, %v2445_v34  ;;  %v8708_v40 = vpop.eup %8707  ;;  %v2450_v55 = vsel %vm2397_vm10, %v8706_v8, 0.0  ;;  %v10433_v34 = vld [vmem:[%s9670_s27 + $0x8] sm:$0xff]  }
 0x5a1   : > { %v8710_v53 = vpop.eup %8709  ;;  %v2452_v60 = vsel %vm2397_vm10, %v8708_v40, 0.0 }
 0x5a2   : > { %v2449_v43 = vadd.f32 %v2448_v39, %v2447_v38  ;;  %v8712_v57 = vpop.eup %8711  ;;  %v2454_v58 = vsel %vm2397_vm10, %v8710_v53, 0.0 }
 0x5a3   : > { %v2456_v9 = vsel %vm2397_vm10, %v8712_v57, 0.0 }
 0x5a4   : > { %v2451_v56 = vadd.f32 %v2450_v55, %v2449_v43 }
 0x5a6   : > { %v2453_v21 = vadd.f32 %v2452_v60, %v2451_v56 }
 0x5a8   : > { %v2455_v24 = vadd.f32 %v2454_v58, %v2453_v21 }
 0x5aa   : > { %v2457_v62 = vadd.f32 %v2456_v9, %v2455_v24 }
 0x5ac   : > { %v2458_v0 = vrot.slane %v2457_v62, 4 }
 0x5ae   : > { %v2459_v1 = vadd.f32 %v2458_v0, %v2457_v62 }
 0x5b0   : > { %v2460_v2 = vrot.slane %v2459_v1, 2 }
 0x5b2   : > { %v2461_v27 = vadd.f32 %v2460_v2, %v2459_v1 }
 0x5b4   : > { %v2462_v25 = vrot.slane %v2461_v27, 1 }
 0x5b6   : > { %v2463_v7 = vadd.f32 %v2462_v25, %v2461_v27 }
 0x5b8   : > { %8713 = vrcp.f32 %v2463_v7 }
 0x5c5   : > { %v8714_v19 = vpop.eup %8713 }
 0x5c6   : > { %v2465_v22 = vmul.f32 %v8714_v19, %v8698_v47  ;;  %v2466_v11 = vmul.f32 %v8714_v19, %v8700_v18  ;;  %v2467_v10 = vmul.f32 %v8714_v19, %v8702_v30  ;;  %v2468_v14 = vmul.f32 %v8714_v19, %v8704_v13  ;;  %v2755_v13 = vpop.permute.xlu1 %2754 }
 0x5c7   : > { %v2469_v44 = vmul.f32 %v8714_v19, %v8706_v8  ;;  %v2470_v32 = vmul.f32 %v8714_v19, %v8708_v40  ;;  %v2471_v47 = vmul.f32 %v8714_v19, %v8710_v53  ;;  %v2472_v18 = vmul.f32 %v8714_v19, %v8712_v57 }
 0x5c8   : > { %v2473_v15 = vpack.c.bf16 %v2466_v11, %v2465_v22  ;;  %v2474_v4 = vpack.c.bf16 %v2468_v14, %v2467_v10 }
 0x5c9   : > { %v2475_v63 = vpack.c.bf16 %v2470_v32, %v2469_v44  ;;  %v2476_v30 = vpack.c.bf16 %v2472_v18, %v2471_v47 }
 0x5ca   : > { %7997 = vmatprep.mubr.msk.bf16.mxu1 %vm2397_vm10, %v2473_v15 }
 0x5cb   : > { %7998 = vmatmul.mubr.msk.bf16.vlgmr.msra.gmra.mxu1 %vm2397_vm10, %v2474_v4 }
 0x5cc   : > { %8022 = vmatpush3.bf16.msra.mxu1 %v10258_v5  ;;  %8001 = vmatprep.mubr.msk.bf16.mxu1 %vm2397_vm10, %v2475_v63 }
 0x5cd   : > { %8023 = vmatprep.subr.bf16.mxu1 %v2759_v31 }
 0x5d0   : > { %8024 = vmatpush3.bf16.msra.mxu1 %v2759_v31 }
 0x5d1   : > { %8025 = vmatprep.subr.bf16.mxu1 %v10268_v23 }
 0x5d3   : > { %8002 = vmatmul.mubr.msk.bf16.gmra.mxu1 %vm2397_vm10, %v2476_v30 }
 0x5d4   : > { %8026 = vmatpush3.bf16.msra.mxu1 %v10268_v23 }
 0x5d5   : > { %8027 = vmatprep.subr.bf16.mxu1 %v2755_v13 }
 0x5d8   : > { %8028 = vmatpush3.bf16.msra.mxu1 %v2755_v13 }
 0x5d9   : > { %8049 = vmatprep.subr.bf16.mxu1 %v10433_v34 }
 0x5da   : > { %v8015_v5 = vpop.f32.mrf.mxu0 }
 0x5db   : > { %v2649_v23 = vadd.f32 %v8015_v5, %v10391_v41 }
 0x5dc   : > { %v2640_v36 = vpop.f32.mrf.mxu0 }
 0x5dd   : > { %v2641_v60 = vadd.f32 %v2640_v36, %v10393_v3  ;;  %v2673_v27 = vsel %vm2397_vm10, %v2649_v23, -inf }
 0x5de   : > { %v8016_v8 = vpop.f32.mrf.mxu0 }
 0x5df   : > { %v2652_v40 = vadd.f32 %v8016_v8, %v10385_v29  ;;  %v2671_v25 = vsel %vm2397_vm10, %v2641_v60, -inf }
 0x5e0   : > { %v2643_v38 = vpop.f32.mrf.mxu0 }
 0x5e1   : > { %v2644_v57 = vadd.f32 %v2643_v38, %v10396_v26  ;;  %v2674_v58 = vsel %vm2397_vm10, %v2652_v40, -inf }
 0x5e2   : > { %v8019_v39 = vpop.f32.mrf.mxu0 }
 0x5e3   : > { %v2665_v55 = vadd.f32 %v8019_v39, %v10387_v61  ;;  %v2672_v7 = vsel %vm2397_vm10, %v2644_v57, -inf }
 0x5e4   : > { %v2656_v43 = vpop.f32.mrf.mxu0 }
 0x5e5   : > { %v2657_v53 = vadd.f32 %v2656_v43, %v10389_v6  ;;  %v2679_v9 = vsel %vm2397_vm10, %v2665_v55, -inf }
 0x5e6   : > { %v8020_v56 = vpop.f32.mrf.mxu0  ;;  %v2680_v22 = vmax.f32 %v2673_v27, %v2679_v9 }
 0x5e7   : > { %v2668_v21 = vadd.f32 %v8020_v56, %v10398_v12  ;;  %v2675_v62 = vsel %vm2397_vm10, %v2657_v53, -inf }
 0x5e8   : > { %v2659_v24 = vpop.f32.mrf.mxu0  ;;  %v2676_v11 = vmax.f32 %v2671_v25, %v2675_v62 }
 0x5e9   : > { %v2681_v0 = vsel %vm2397_vm10, %v2668_v21, -inf  ;;  %v2660_v1 = vadd.f32 %v2659_v24, %v10402_v59 }
 0x5ea   : > { %v2682_v2 = vmax.f32 %v2674_v58, %v2681_v0 }
 0x5eb   : > { %v2677_v19 = vsel %vm2397_vm10, %v2660_v1, -inf }
 0x5ec   : > { %v2678_v10 = vmax.f32 %v2672_v7, %v2677_v19  ;;  %v2684_v14 = vmax.f32 %v2680_v22, %v2682_v2 }
 0x5ee   : > { %v2683_v44 = vmax.f32 %v2676_v11, %v2678_v10 }
 0x5f0   : > { %v2685_v32 = vmax.f32 %v2683_v44, %v2684_v14 }
 0x5f2   : > { %v2686_v15 = vrot.slane %v2685_v32, 4 }
 0x5f4   : > { %v2687_v4 = vmax.f32 %v2685_v32, %v2686_v15 }
 0x5f6   : > { %v2688_v63 = vrot.slane %v2687_v4, 2 }
 0x5f8   : > { %v2689_v31 = vmax.f32 %v2687_v4, %v2688_v63  ;;  %v10458_v4 = vpop.permute.xlu0 %3035 }
 0x5fa   : > { %v2690_v47 = vrot.slane %v2689_v31, 1 }
 0x5fc   : > { %v2691_v18 = vmax.f32 %v2689_v31, %v2690_v47 }
 0x5fe   : > { %v2692_v30 = vsub.f32 %v2641_v60, %v2691_v18  ;;  %v2693_v13 = vsub.f32 %v2644_v57, %v2691_v18  ;;  %v2694_v5 = vsub.f32 %v2649_v23, %v2691_v18  ;;  %v2695_v36 = vsub.f32 %v2652_v40, %v2691_v18 }
 0x5ff   : > { %v2696_v8 = vsub.f32 %v2657_v53, %v2691_v18  ;;  %v2697_v56 = vsub.f32 %v2660_v1, %v2691_v18  ;;  %v2698_v24 = vsub.f32 %v2665_v55, %v2691_v18  ;;  %v2699_v62 = vsub.f32 %v2668_v21, %v2691_v18 }
 0x600   : > { %v2700_v38 = vmul.f32 1.442695, %v2692_v30  ;;  %v2702_v39 = vmul.f32 1.442695, %v2693_v13  ;;  %v2704_v43 = vmul.f32 1.442695, %v2694_v5  ;;  %v10462_v13 = vpop.permute.xlu0 %3025 }
 0x601   : > { %v2706_v58 = vmul.f32 1.442695, %v2695_v36  ;;  %v2708_v9 = vmul.f32 1.442695, %v2696_v8  ;;  %v2710_v0 = vmul.f32 1.442695, %v2697_v56 }
 0x602   : > { %8715 = vpow2.f32 %v2700_v38  ;;  %v2712_v2 = vmul.f32 1.442695, %v2698_v24  ;;  %v2714_v60 = vmul.f32 1.442695, %v2699_v62 }
 0x603   : > { %8717 = vpow2.f32 %v2702_v39 }
 0x604   : > { %8719 = vpow2.f32 %v2704_v43  ;;  %v10464_v38 = vpop.permute.xlu0 %3029 }
 0x605   : > { %8721 = vpow2.f32 %v2706_v58 }
 0x606   : > { %8723 = vpow2.f32 %v2708_v9 }
 0x607   : > { %8725 = vpow2.f32 %v2710_v0 }
 0x608   : > { %8727 = vpow2.f32 %v2712_v2  ;;  %v10466_v58 = vpop.permute.xlu0 %3413 }
 0x609   : > { %8729 = vpow2.f32 %v2714_v60 }
 0x60c   : > { %v10468_v24 = vpop.permute.xlu0 %3409 }
 0x60f   : > { %v8716_v40 = vpop.eup %8715 }
 0x610   : > { %v8718_v53 = vpop.eup %8717  ;;  %v2716_v23 = vsel %vm2397_vm10, %v8716_v40, 0.0  ;;  %v10470_v9 = vpop.permute.xlu0 %3399 }
 0x611   : > { %v8720_v57 = vpop.eup %8719  ;;  %v2717_v1 = vsel %vm2397_vm10, %v8718_v53, 0.0 }
 0x612   : > { %v8722_v55 = vpop.eup %8721  ;;  %v2718_v27 = vadd.f32 %v2717_v1, %v2716_v23  ;;  %v2719_v25 = vsel %vm2397_vm10, %v8720_v57, 0.0 }
 0x613   : > { %v8724_v21 = vpop.eup %8723  ;;  %v2721_v19 = vsel %vm2397_vm10, %v8722_v55, 0.0 }
 0x614   : > { %v2720_v7 = vadd.f32 %v2719_v25, %v2718_v27  ;;  %v8726_v22 = vpop.eup %8725  ;;  %v2723_v10 = vsel %vm2397_vm10, %v8724_v21, 0.0 }
 0x615   : > { %v8728_v14 = vpop.eup %8727  ;;  %v2725_v32 = vsel %vm2397_vm10, %v8726_v22, 0.0 }
 0x616   : > { %v2722_v11 = vadd.f32 %v2721_v19, %v2720_v7  ;;  %v8730_v15 = vpop.eup %8729  ;;  %v2727_v31 = vsel %vm2397_vm10, %v8728_v14, 0.0  ;;  %v8580_v19 = vld [vmem:[%s9670_s27] sm:$0xff]  }
 0x617   : > { %v2729_v18 = vsel %vm2397_vm10, %v8730_v15, 0.0 }
 0x618   : > { %v2724_v44 = vadd.f32 %v2723_v10, %v2722_v11  ;;  %v10473_v11 = vpop.permute.xlu0 %3403 }
 0x61a   : > { %v2726_v63 = vadd.f32 %v2725_v32, %v2724_v44 }
 0x61c   : > { %v2728_v47 = vadd.f32 %v2727_v31, %v2726_v63 }
 0x61e   : > { %v2730_v30 = vadd.f32 %v2729_v18, %v2728_v47 }
 0x620   : > { %v2731_v5 = vrot.slane %v2730_v30, 4 }
 0x622   : > { %v2732_v36 = vadd.f32 %v2731_v5, %v2730_v30 }
 0x624   : > { %v2733_v8 = vrot.slane %v2732_v36, 2 }
 0x626   : > { %v2734_v39 = vadd.f32 %v2733_v8, %v2732_v36 }
 0x628   : > { %v2735_v43 = vrot.slane %v2734_v39, 1 }
 0x62a   : > { %v2736_v56 = vadd.f32 %v2735_v43, %v2734_v39 }
 0x62c   : > { %8731 = vrcp.f32 %v2736_v56 }
 0x639   : > { %v8732_v62 = vpop.eup %8731 }
 0x63a   : > { %v2738_v0 = vmul.f32 %v8732_v62, %v8716_v40  ;;  %v2739_v2 = vmul.f32 %v8732_v62, %v8718_v53  ;;  %v2740_v60 = vmul.f32 %v8732_v62, %v8720_v57  ;;  %v2741_v23 = vmul.f32 %v8732_v62, %v8722_v55  ;;  %v3216_v57 = vpop.permute.xlu0 %3215 }
 0x63b   : > { %v2742_v1 = vmul.f32 %v8732_v62, %v8724_v21  ;;  %v2743_v27 = vmul.f32 %v8732_v62, %v8726_v22  ;;  %v2744_v40 = vmul.f32 %v8732_v62, %v8728_v14  ;;  %v2745_v53 = vmul.f32 %v8732_v62, %v8730_v15  ;;  %v3038_v21 = vpop.permute.xlu1 %3037 }
 0x63c   : > { %v2746_v25 = vpack.c.bf16 %v2739_v2, %v2738_v0  ;;  %v2747_v7 = vpack.c.bf16 %v2741_v23, %v2740_v60 }
 0x63d   : > { %v2748_v10 = vpack.c.bf16 %v2743_v27, %v2742_v1  ;;  %v2749_v55 = vpack.c.bf16 %v2745_v53, %v2744_v40  ;;  %v3063_v53 = vsel %vm2307_vm2, %v10278_v33, 0  ;;  %v3057_v33 = vsel %vm2307_vm2, %v10458_v4, 0 }
 0x63e   : > { %8029 = vmatprep.mubr.msk.bf16.mxu1 %vm2397_vm10, %v2746_v25  ;;  %v3212_v0 = vpop.permute.xlu0 %3211 }
 0x63f   : > { %8030 = vmatmul.mubr.msk.bf16.vlgmr.msra.gmra.mxu1 %vm2397_vm10, %v2747_v7  ;;  %v3034_v22 = vpop.permute.xlu1 %3033 }
 0x640   : > { %8050 = vmatpush3.bf16.msra.mxu1 %v10433_v34  ;;  %8033 = vmatprep.mubr.msk.bf16.mxu1 %vm2397_vm10, %v2748_v10 }
 0x641   : > { %8051 = vmatprep.subr.bf16.mxu1 %v8580_v19 }
 0x643   : > { %v3028_v44 = vpop.permute.xlu1 %3027 }
 0x644   : > { %8052 = vmatpush3.bf16.msra.mxu1 %v8580_v19 }
 0x645   : > { %8077 = vmatprep.subr.bf16.mxu1 %v3216_v57 }
 0x647   : > { %8034 = vmatmul.mubr.msk.bf16.gmra.mxu1 %vm2397_vm10, %v2749_v55  ;;  %v10480_v32 = vpop.permute.xlu1 %3031 }
 0x64b   : > { %v10482_v63 = vpop.permute.xlu1 %3411 }
 0x64f   : > { %v10484_v31 = vpop.permute.xlu1 %3407 }
 0x653   : > { %v10486_v34 = vpop.permute.xlu1 %3401 }
 0x657   : > { %v10488_v18 = vpop.permute.xlu1 %3405 }
 0x65b   : > { %v3214_v43 = vpop.permute.xlu1 %3213 }
 0x65f   : > { %v3210_v23 = vpop.permute.xlu1 %3209 }
 0x68b   : > { %v7999_v47 = vpop.f32.mrf.mxu1 }
 0x68d   : > { %v2523_v14 = vpop.f32.mrf.mxu1 }
 0x68f   : > { %v8000_v15 = vpop.f32.mrf.mxu1 }
 0x690   : > { %v2555_v36 = vpack.c.bf16 %v8000_v15, %v7999_v47 }
 0x691   : > { %v2526_v30 = vpop.f32.mrf.mxu1 }
 0x692   : > { %v2554_v5 = vpack.c.bf16 %v2526_v30, %v2523_v14  ;;  %v3060_v30 = vsel %vm2307_vm2, %v3038_v21, 0 }
 0x693   : > { %v8003_v8 = vpop.f32.mrf.mxu1 }
 0x694   : > { %8053 = vmatprep.mubr.msk.bf16.mxu1 %vm2307_vm2, %v2554_v5  ;;  %v3054_v5 = vsel %vm2307_vm2, %v3034_v22, 0 }
 0x695   : > { %v2539_v39 = vpop.f32.mrf.mxu1  ;;  %8054 = vmatmul.mubr.msk.bf16.vlgmr.msra.gmra.mxu1 %vm2307_vm2, %v2555_v36  ;;  %v3789_v36 = vsel %vm2307_vm2, %v10295_v45, 0 }
 0x696   : > { %8078 = vmatpush3.bf16.msra.mxu1 %v3216_v57 }
 0x697   : > { %8079 = vmatprep.subr.bf16.mxu1 %v3214_v43  ;;  %v8004_v56 = vpop.f32.mrf.mxu1 }
 0x698   : > { %v2557_v60 = vpack.c.bf16 %v8004_v56, %v8003_v8 }
 0x699   : > { %v2542_v62 = vpop.f32.mrf.mxu1 }
 0x69a   : > { %v2556_v2 = vpack.c.bf16 %v2542_v62, %v2539_v39  ;;  %8080 = vmatpush3.bf16.msra.mxu1 %v3214_v43  ;;  %v10593_v62 = vld [vmem:[%s9670_s27 + $0x28] sm:$0xff]  }
 0x69b   : > { %8081 = vmatprep.subr.bf16.mxu1 %v3212_v0 }
 0x69c   : > { %8057 = vmatprep.mubr.msk.bf16.mxu1 %vm2307_vm2, %v2556_v2 }
 0x69d   : > { %8058 = vmatmul.mubr.msk.bf16.gmra.mxu1 %vm2307_vm2, %v2557_v60 }
 0x69e   : > { %8082 = vmatpush3.bf16.msra.mxu1 %v3212_v0 }
 0x69f   : > { %8083 = vmatprep.subr.bf16.mxu1 %v3210_v23 }
 0x6a2   : > { %8084 = vmatpush3.bf16.msra.mxu1 %v3210_v23 }
 0x6a3   : > { %8093 = vmatprep.subr.bf16.mxu1 %v10593_v62 }
 0x6ff   : > { %v8031_v1 = vpop.f32.mrf.mxu1 }
 0x701   : > { %v2812_v27 = vpop.f32.mrf.mxu1 }
 0x703   : > { %v8032_v25 = vpop.f32.mrf.mxu1 }
 0x704   : > { %v2844_v10 = vpack.c.bf16 %v8032_v25, %v8031_v1 }
 0x705   : > { %v2815_v7 = vpop.f32.mrf.mxu1 }
 0x706   : > { %v2843_v19 = vpack.c.bf16 %v2815_v7, %v2812_v27 }
 0x707   : > { %v8035_v40 = vpop.f32.mrf.mxu1 }
 0x708   : > { %8041 = vmatprep.mubr.msk.bf16.mxu0 %vm2307_vm2, %v2843_v19 }
 0x709   : > { %v2828_v57 = vpop.f32.mrf.mxu1  ;;  %8042 = vmatmul.mubr.msk.bf16.vlgmr.msra.gmra.mxu0 %vm2307_vm2, %v2844_v10 }
 0x70a   : > { %8062 = vmatpush3.bf16.xpose.msra.mxu0 %v3063_v53 }
 0x70b   : > { %8414 = vmatprep.subr.msk.bf16.mxu0 %vm2307_vm2, %v3038_v21  ;;  %v8036_v55 = vpop.f32.mrf.mxu1  ;;  %v3437_v21 = vsel %vm2307_vm2, %v10466_v58, 0 }
 0x70c   : > { %v2846_v15 = vpack.c.bf16 %v8036_v55, %v8035_v40 }
 0x70d   : > { %v2831_v47 = vpop.f32.mrf.mxu1 }
 0x70e   : > { %v2845_v14 = vpack.c.bf16 %v2831_v47, %v2828_v57 }
 0x710   : > { %8045 = vmatprep.mubr.msk.bf16.mxu0 %vm2307_vm2, %v2845_v14 }
 0x711   : > { %8046 = vmatmul.mubr.msk.bf16.gmra.mxu0 %vm2307_vm2, %v2846_v15 }
 0x712   : > { %8064 = vmatpush3.bf16.xpose.msra.mxu0 %v3060_v30  ;;  %8069 = vmatprep.mubr.msk.bf16.mxu0 %vm2307_vm2, %v10462_v13  ;;  %v3431_v13 = vsel %vm2307_vm2, %v10468_v24, 0 }
 0x713   : > { %8415 = vmatprep.subr.msk.bf16.mxu0 %vm2307_vm2, %v10458_v4  ;;  %v3434_v4 = vsel %vm2307_vm2, %v10482_v63, 0 }
 0x71a   : > { %8066 = vmatpush3.bf16.xpose.msra.mxu0 %v3057_v33 }
 0x71b   : > { %8416 = vmatprep.subr.msk.bf16.mxu0 %vm2307_vm2, %v3034_v22  ;;  %v10539_v22 = vpop.permute.xlu1 %3587 }
 0x722   : > { %8068 = vmatpush3.bf16.xpose.msra.mxu0 %v3054_v5 }
 0x723   : > { %8417 = vmatprep.subr.msk.bf16.mxu0 %vm2307_vm2, %v10466_v58  ;;  %v3428_v58 = vsel %vm2307_vm2, %v10484_v31, 0 }
 0x729   : > { %8070 = vmatmul.mubr.msk.bf16.vlgmr.msra.gmra.mxu0 %vm2307_vm2, %v3028_v44 }
 0x72a   : > { %8073 = vmatprep.mubr.msk.bf16.mxu0 %vm2307_vm2, %v10464_v38  ;;  %8106 = vmatpush3.bf16.xpose.msra.mxu0 %v3437_v21  ;;  %v10531_v38 = vpop.permute.xlu0 %3589 }
 0x72b   : > { %8418 = vmatprep.subr.msk.bf16.mxu0 %vm2307_vm2, %v10482_v63 }
 0x731   : > { %8074 = vmatmul.mubr.msk.bf16.gmra.mxu0 %vm2307_vm2, %v10480_v32  ;;  %v10551_v32 = vpop.permute.xlu1 %3583 }
 0x732   : > { %8108 = vmatpush3.bf16.xpose.msra.mxu0 %v3434_v4  ;;  %8113 = vmatprep.mubr.msk.bf16.mxu0 %vm2307_vm2, %v10470_v9  ;;  %v10537_v9 = vpop.permute.xlu0 %3585 }
 0x733   : > { %8419 = vmatprep.subr.msk.bf16.mxu0 %vm2307_vm2, %v10468_v24  ;;  %v3795_v24 = vsel %vm2307_vm2, %v10289_v16, 0 }
 0x736   : > { %v10545_v44 = vpop.permute.xlu0 %4044 }
 0x73a   : > { %8110 = vmatpush3.bf16.xpose.msra.mxu0 %v3431_v13  ;;  %v10553_v63 = vpop.permute.xlu0 %4040 }
 0x73b   : > { %8420 = vmatprep.subr.msk.bf16.mxu0 %vm2307_vm2, %v10484_v31  ;;  %v3792_v31 = vsel %vm2307_vm2, %v10274_v28, 0 }
 0x742   : > { %8112 = vmatpush3.bf16.xpose.msra.mxu0 %v3428_v58 }
 0x743   : > { %8421 = vmatprep.subr.msk.bf16.mxu0 %vm2307_vm2, %v10289_v16  ;;  %v10559_v16 = vpop.permute.xlu1 %4042 }
 0x749   : > { %8114 = vmatmul.mubr.msk.bf16.vlgmr.msra.gmra.mxu0 %vm2307_vm2, %v10486_v34  ;;  %v10567_v34 = vpop.permute.xlu1 %4038 }
 0x74a   : > { %8117 = vmatprep.mubr.msk.bf16.mxu0 %vm2307_vm2, %v10473_v11  ;;  %8150 = vmatpush3.bf16.xpose.msra.mxu0 %v3795_v24  ;;  %v10565_v11 = vpop.permute.xlu0 %4026 }
 0x74b   : > { %8422 = vmatprep.subr.msk.bf16.mxu0 %vm2307_vm2, %v10274_v28 }
 0x74e   : > { %v10573_v28 = vpop.permute.xlu0 %4030 }
 0x74f   : > { %11826 = vst [vmem:[#allocation28_spill] sm:$0xff] %v10573_v28 }
 0x751   : > { %8118 = vmatmul.mubr.msk.bf16.gmra.mxu0 %vm2307_vm2, %v10488_v18  ;;  %v10575_v18 = vpop.permute.xlu1 %4028 }
 0x752   : > { %8152 = vmatpush3.bf16.xpose.msra.mxu0 %v3792_v31  ;;  %8157 = vmatprep.mubr.msk.bf16.mxu0 %vm2307_vm2, %v10303_v46  ;;  %v3786_v46 = vsel %vm2307_vm2, %v10280_v35, 0  ;;  %v4225_v8 = vpop.permute.xlu0 %4224 }
 0x753   : > { %8423 = vmatprep.subr.msk.bf16.mxu0 %vm2307_vm2, %v10295_v45 }
 0x755   : > { %v10579_v39 = vpop.permute.xlu1 %4032 }
 0x756   : > { %11827 = vst [vmem:[#allocation29_spill] sm:$0xff] %v10579_v39  ;;  %v4221_v43 = vpop.permute.xlu0 %4220 }
 0x759   : > { %v4223_v45 = vpop.permute.xlu1 %4222 }
 0x75a   : > { %8154 = vmatpush3.bf16.xpose.msra.mxu0 %v3789_v36 }
 0x75b   : > { %8424 = vmatprep.subr.msk.bf16.mxu0 %vm2307_vm2, %v10280_v35 }
 0x75d   : > { %v4219_v35 = vpop.permute.xlu1 %4218 }
 0x762   : > { %8156 = vmatpush3.bf16.xpose.msra.mxu0 %v3786_v46 }
 0x763   : > { %8197 = vmatprep.subr.bf16.mxu0 %v4225_v8 }
 0x769   : > { %8158 = vmatmul.mubr.msk.bf16.vlgmr.msra.gmra.mxu0 %vm2307_vm2, %v10287_v52 }
 0x76a   : > { %8161 = vmatprep.mubr.msk.bf16.mxu0 %vm2307_vm2, %v10311_v49  ;;  %8198 = vmatpush3.bf16.msra.mxu0 %v4225_v8 }
 0x76b   : > { %8199 = vmatprep.subr.bf16.mxu0 %v4223_v45 }
 0x76e   : > { %8200 = vmatpush3.bf16.msra.mxu0 %v4223_v45 }
 0x76f   : > { %8201 = vmatprep.subr.bf16.mxu0 %v4221_v43 }
 0x771   : > { %8162 = vmatmul.mubr.msk.bf16.gmra.mxu0 %vm2307_vm2, %v10297_v42 }
 0x772   : > { %8202 = vmatpush3.bf16.msra.mxu0 %v4221_v43 }
 0x773   : > { %8203 = vmatprep.subr.bf16.mxu0 %v4219_v35 }
 0x776   : > { %8204 = vmatpush3.bf16.msra.mxu0 %v4219_v35 }
 0x777   : > { %8213 = vmatprep.subr.bf16.mxu0 %v10264_v17 }
 0x7c9   : > { %v10588_v52 = vpop.f32.mrf.mxu0 }
 0x7cb   : > { %v10590_v56 = vpop.f32.mrf.mxu0 }
 0x7cd   : > { %v10595_v49 = vpop.f32.mrf.mxu0 }
 0x7cf   : > { %v10598_v0 = vpop.f32.mrf.mxu0 }
 0x7d0   : > { %11828 = vst [vmem:[#allocation30_spill] sm:$0xff] %v10598_v0 }
 0x7d1   : > { %v10600_v2 = vpop.f32.mrf.mxu0 }
 0x7d3   : > { %v10602_v42 = vpop.f32.mrf.mxu0 }
 0x7d5   : > { %v10604_v60 = vpop.f32.mrf.mxu0 }
 0x7d7   : > { %v10606_v23 = vpop.f32.mrf.mxu0 }
 0x7d8   : > { %11829 = vst [vmem:[#allocation31_spill] sm:$0xff] %v10606_v23 }
 0x7e9   : > { %v8071_v17 = vpop.f32.mrf.mxu0 }
 0x7ea   : > { %v3108_v55 = vadd.f32 %v8071_v17, %v10391_v41 }
 0x7eb   : > { %v3099_v1 = vpop.f32.mrf.mxu0 }
 0x7ec   : > { %v3100_v47 = vadd.f32 %v3099_v1, %v10393_v3  ;;  %v3132_v24 = vsel %vm2397_vm10, %v3108_v55, -inf }
 0x7ed   : > { %v8072_v27 = vpop.f32.mrf.mxu0 }
 0x7ee   : > { %v3111_v19 = vadd.f32 %v8072_v27, %v10385_v29  ;;  %v3130_v31 = vsel %vm2397_vm10, %v3100_v47, -inf }
 0x7ef   : > { %v3102_v25 = vpop.f32.mrf.mxu0 }
 0x7f0   : > { %v3103_v14 = vadd.f32 %v3102_v25, %v10396_v26  ;;  %v3133_v30 = vsel %vm2397_vm10, %v3111_v19, -inf }
 0x7f1   : > { %v8075_v7 = vpop.f32.mrf.mxu0 }
 0x7f2   : > { %v3124_v40 = vadd.f32 %v8075_v7, %v10387_v61  ;;  %v3131_v36 = vsel %vm2397_vm10, %v3103_v14, -inf }
 0x7f3   : > { %v3115_v10 = vpop.f32.mrf.mxu0 }
 0x7f4   : > { %v3116_v53 = vadd.f32 %v3115_v10, %v10389_v6  ;;  %v3138_v5 = vsel %vm2397_vm10, %v3124_v40, -inf }
 0x7f5   : > { %v8076_v57 = vpop.f32.mrf.mxu0  ;;  %v3139_v8 = vmax.f32 %v3132_v24, %v3138_v5 }
 0x7f6   : > { %v3127_v15 = vadd.f32 %v8076_v57, %v10398_v12  ;;  %v3134_v21 = vsel %vm2397_vm10, %v3116_v53, -inf }
 0x7f7   : > { %v3118_v33 = vpop.f32.mrf.mxu0  ;;  %v3135_v45 = vmax.f32 %v3130_v31, %v3134_v21 }
 0x7f8   : > { %v3140_v4 = vsel %vm2397_vm10, %v3127_v15, -inf  ;;  %v3119_v13 = vadd.f32 %v3118_v33, %v10402_v59 }
 0x7f9   : > { %v3141_v58 = vmax.f32 %v3133_v30, %v3140_v4 }
 0x7fa   : > { %v3136_v46 = vsel %vm2397_vm10, %v3119_v13, -inf }
 0x7fb   : > { %v3137_v43 = vmax.f32 %v3131_v36, %v3136_v46  ;;  %v3143_v35 = vmax.f32 %v3139_v8, %v3141_v58 }
 0x7fd   : > { %v3142_v17 = vmax.f32 %v3135_v45, %v3137_v43 }
 0x7ff   : > { %v3144_v1 = vmax.f32 %v3142_v17, %v3143_v35 }
 0x801   : > { %v3145_v27 = vrot.slane %v3144_v1, 4 }
 0x803   : > { %v3146_v25 = vmax.f32 %v3144_v1, %v3145_v27 }
 0x805   : > { %v3147_v7 = vrot.slane %v3146_v25, 2 }
 0x807   : > { %v3148_v10 = vmax.f32 %v3146_v25, %v3147_v7 }
 0x809   : > { %v3149_v57 = vrot.slane %v3148_v10, 1 }
 0x80b   : > { %v3150_v30 = vmax.f32 %v3148_v10, %v3149_v57 }
 0x80d   : > { %v3151_v33 = vsub.f32 %v3100_v47, %v3150_v30  ;;  %v3152_v4 = vsub.f32 %v3103_v14, %v3150_v30  ;;  %v3153_v37 = vsub.f32 %v3108_v55, %v3150_v30  ;;  %v3154_v20 = vsub.f32 %v3111_v19, %v3150_v30 }
 0x80e   : > { %v3155_v23 = vsub.f32 %v3116_v53, %v3150_v30  ;;  %v3156_v5 = vsub.f32 %v3119_v13, %v3150_v30  ;;  %v3157_v58 = vsub.f32 %v3124_v40, %v3150_v30  ;;  %v3158_v31 = vsub.f32 %v3127_v15, %v3150_v30 }
 0x80f   : > { %v3159_v0 = vmul.f32 1.442695, %v3151_v33  ;;  %v3161_v39 = vmul.f32 1.442695, %v3152_v4  ;;  %v3163_v28 = vmul.f32 1.442695, %v3153_v37 }
 0x810   : > { %v3165_v21 = vmul.f32 1.442695, %v3154_v20  ;;  %v3167_v24 = vmul.f32 1.442695, %v3155_v23  ;;  %v3169_v36 = vmul.f32 1.442695, %v3156_v5 }
 0x811   : > { %8733 = vpow2.f32 %v3159_v0  ;;  %v3171_v46 = vmul.f32 1.442695, %v3157_v58  ;;  %v3173_v47 = vmul.f32 1.442695, %v3158_v31 }
 0x812   : > { %8735 = vpow2.f32 %v3161_v39 }
 0x813   : > { %8737 = vpow2.f32 %v3163_v28 }
 0x814   : > { %8739 = vpow2.f32 %v3165_v21 }
 0x815   : > { %8741 = vpow2.f32 %v3167_v24 }
 0x816   : > { %8743 = vpow2.f32 %v3169_v36 }
 0x817   : > { %8745 = vpow2.f32 %v3171_v46 }
 0x818   : > { %8747 = vpow2.f32 %v3173_v47 }
 0x81e   : > { %v8734_v19 = vpop.eup %8733 }
 0x81f   : > { %v8736_v53 = vpop.eup %8735  ;;  %v3175_v37 = vsel %vm2397_vm10, %v8734_v19, 0.0 }
 0x820   : > { %v8738_v55 = vpop.eup %8737  ;;  %v3176_v20 = vsel %vm2397_vm10, %v8736_v53, 0.0 }
 0x821   : > { %v8740_v0 = vpop.eup %8739  ;;  %v3177_v39 = vadd.f32 %v3176_v20, %v3175_v37  ;;  %v3178_v28 = vsel %vm2397_vm10, %v8738_v55, 0.0 }
 0x822   : > { %v8742_v23 = vpop.eup %8741  ;;  %v3180_v14 = vsel %vm2397_vm10, %v8740_v0, 0.0 }
 0x823   : > { %v3179_v40 = vadd.f32 %v3178_v28, %v3177_v39  ;;  %v8744_v15 = vpop.eup %8743  ;;  %v3182_v8 = vsel %vm2397_vm10, %v8742_v23, 0.0  ;;  %v8582_v28 = vld [vmem:[%s9670_s27 + $0x20] sm:$0xff]  }
 0x824   : > { %v8746_v45 = vpop.eup %8745  ;;  %v3184_v35 = vsel %vm2397_vm10, %v8744_v15, 0.0 }
 0x825   : > { %v3181_v13 = vadd.f32 %v3180_v14, %v3179_v40  ;;  %v8748_v17 = vpop.eup %8747  ;;  %v3186_v27 = vsel %vm2397_vm10, %v8746_v45, 0.0 }
 0x826   : > { %v3188_v7 = vsel %vm2397_vm10, %v8748_v17, 0.0 }
 0x827   : > { %v3183_v43 = vadd.f32 %v3182_v8, %v3181_v13 }
 0x829   : > { %v3185_v1 = vadd.f32 %v3184_v35, %v3183_v43 }
 0x82b   : > { %v3187_v25 = vadd.f32 %v3186_v27, %v3185_v1 }
 0x82d   : > { %v3189_v10 = vadd.f32 %v3188_v7, %v3187_v25 }
 0x82f   : > { %v3190_v57 = vrot.slane %v3189_v10, 4 }
 0x831   : > { %v3191_v30 = vadd.f32 %v3190_v57, %v3189_v10 }
 0x833   : > { %v3192_v33 = vrot.slane %v3191_v30, 2 }
 0x835   : > { %v3193_v4 = vadd.f32 %v3192_v33, %v3191_v30 }
 0x837   : > { %v3194_v5 = vrot.slane %v3193_v4, 1 }
 0x839   : > { %v3195_v21 = vadd.f32 %v3194_v5, %v3193_v4 }
 0x83b   : > { %8749 = vrcp.f32 %v3195_v21 }
 0x848   : > { %v8750_v58 = vpop.eup %8749 }
 0x849   : > { %v3197_v24 = vmul.f32 %v8750_v58, %v8734_v19  ;;  %v3198_v31 = vmul.f32 %v8750_v58, %v8736_v53  ;;  %v3199_v36 = vmul.f32 %v8750_v58, %v8738_v55  ;;  %v3200_v46 = vmul.f32 %v8750_v58, %v8740_v0  ;;  %v8115_v55 = vpop.f32.mrf.mxu0 }
 0x84a   : > { %v3201_v47 = vmul.f32 %v8750_v58, %v8742_v23  ;;  %v3202_v37 = vmul.f32 %v8750_v58, %v8744_v15  ;;  %v3203_v14 = vmul.f32 %v8750_v58, %v8746_v45  ;;  %v3204_v19 = vmul.f32 %v8750_v58, %v8748_v17 }
 0x84b   : > { %v3205_v20 = vpack.c.bf16 %v3198_v31, %v3197_v24  ;;  %v3206_v39 = vpack.c.bf16 %v3200_v46, %v3199_v36  ;;  %v3473_v0 = vpop.f32.mrf.mxu0  ;;  %v3482_v57 = vadd.f32 %v8115_v55, %v10391_v41 }
 0x84c   : > { %v3207_v40 = vpack.c.bf16 %v3202_v37, %v3201_v47  ;;  %v3208_v53 = vpack.c.bf16 %v3204_v19, %v3203_v14  ;;  %v3474_v27 = vadd.f32 %v3473_v0, %v10393_v3 }
 0x84d   : > { %8085 = vmatprep.mubr.msk.bf16.mxu1 %vm2397_vm10, %v3205_v20  ;;  %v8116_v23 = vpop.f32.mrf.mxu0  ;;  %v3506_v46 = vsel %vm2397_vm10, %v3482_v57, -inf }
 0x84e   : > { %8086 = vmatmul.mubr.msk.bf16.vlgmr.msra.gmra.mxu1 %vm2397_vm10, %v3206_v39  ;;  %v3485_v25 = vadd.f32 %v8116_v23, %v10385_v29  ;;  %v3504_v21 = vsel %vm2397_vm10, %v3474_v27, -inf }
 0x84f   : > { %8094 = vmatpush3.bf16.msra.mxu1 %v10593_v62  ;;  %8089 = vmatprep.mubr.msk.bf16.mxu1 %vm2397_vm10, %v3207_v40  ;;  %v3476_v15 = vpop.f32.mrf.mxu0 }
 0x850   : > { %8095 = vmatprep.subr.bf16.mxu1 %v8582_v28  ;;  %v3477_v1 = vadd.f32 %v3476_v15, %v10396_v26  ;;  %v3507_v58 = vsel %vm2397_vm10, %v3485_v25, -inf }
 0x851   : > { %v8119_v13 = vpop.f32.mrf.mxu0 }
 0x852   : > { %v3498_v7 = vadd.f32 %v8119_v13, %v10387_v61  ;;  %v3505_v30 = vsel %vm2397_vm10, %v3477_v1, -inf }
 0x853   : > { %8096 = vmatpush3.bf16.msra.mxu1 %v8582_v28  ;;  %v3489_v8 = vpop.f32.mrf.mxu0 }
 0x854   : > { %8121 = vmatprep.subr.bf16.mxu1 %v10531_v38  ;;  %v3490_v45 = vadd.f32 %v3489_v8, %v10389_v6  ;;  %v3512_v24 = vsel %vm2397_vm10, %v3498_v7, -inf }
 0x855   : > { %v8120_v43 = vpop.f32.mrf.mxu0  ;;  %v3513_v47 = vmax.f32 %v3506_v46, %v3512_v24 }
 0x856   : > { %8090 = vmatmul.mubr.msk.bf16.gmra.mxu1 %vm2397_vm10, %v3208_v53  ;;  %v3501_v17 = vadd.f32 %v8120_v43, %v10398_v12  ;;  %v3508_v33 = vsel %vm2397_vm10, %v3490_v45, -inf }
 0x857   : > { %v3492_v35 = vpop.f32.mrf.mxu0  ;;  %v3509_v31 = vmax.f32 %v3504_v21, %v3508_v33 }
 0x858   : > { %v3493_v62 = vadd.f32 %v3492_v35, %v10402_v59  ;;  %v3514_v4 = vsel %vm2397_vm10, %v3501_v17, -inf }
 0x859   : > { %v3515_v36 = vmax.f32 %v3507_v58, %v3514_v4 }
 0x85a   : > { %v3510_v10 = vsel %vm2397_vm10, %v3493_v62, -inf }
 0x85b   : > { %v3511_v5 = vmax.f32 %v3505_v30, %v3510_v10  ;;  %v3517_v20 = vmax.f32 %v3513_v47, %v3515_v36 }
 0x85d   : > { %v3516_v37 = vmax.f32 %v3509_v31, %v3511_v5 }
 0x85f   : > { %v3518_v39 = vmax.f32 %v3516_v37, %v3517_v20 }
 0x861   : > { %v3519_v28 = vrot.slane %v3518_v39, 4 }
 0x863   : > { %v3520_v40 = vmax.f32 %v3518_v39, %v3519_v28 }
 0x865   : > { %v3521_v14 = vrot.slane %v3520_v40, 2 }
 0x867   : > { %v3522_v19 = vmax.f32 %v3520_v40, %v3521_v14 }
 0x869   : > { %v3523_v53 = vrot.slane %v3522_v19, 1 }
 0x86b   : > { %v3524_v55 = vmax.f32 %v3522_v19, %v3523_v53 }
 0x86d   : > { %v3525_v0 = vsub.f32 %v3474_v27, %v3524_v55  ;;  %v3526_v23 = vsub.f32 %v3477_v1, %v3524_v55  ;;  %v3527_v8 = vsub.f32 %v3482_v57, %v3524_v55  ;;  %v3528_v43 = vsub.f32 %v3485_v25, %v3524_v55 }
 0x86e   : > { %v3529_v10 = vsub.f32 %v3490_v45, %v3524_v55  ;;  %v3530_v33 = vsub.f32 %v3493_v62, %v3524_v55  ;;  %v3531_v58 = vsub.f32 %v3498_v7, %v3524_v55  ;;  %v3532_v57 = vsub.f32 %v3501_v17, %v3524_v55 }
 0x86f   : > { %v3533_v15 = vmul.f32 1.442695, %v3525_v0  ;;  %v3535_v13 = vmul.f32 1.442695, %v3526_v23  ;;  %v3537_v35 = vmul.f32 1.442695, %v3527_v8 }
 0x870   : > { %v3539_v30 = vmul.f32 1.442695, %v3528_v43  ;;  %v3541_v4 = vmul.f32 1.442695, %v3529_v10  ;;  %v3543_v24 = vmul.f32 1.442695, %v3530_v33 }
 0x871   : > { %8751 = vpow2.f32 %v3533_v15  ;;  %v3545_v31 = vmul.f32 1.442695, %v3531_v58  ;;  %v3547_v36 = vmul.f32 1.442695, %v3532_v57 }
 0x872   : > { %8753 = vpow2.f32 %v3535_v13  ;;  %v10669_v13 = vpop.f32.mrf.mxu1 }
 0x873   : > { %8755 = vpow2.f32 %v3537_v35 }
 0x874   : > { %8757 = vpow2.f32 %v3539_v30  ;;  %v10671_v43 = vpop.f32.mrf.mxu1 }
 0x875   : > { %8759 = vpow2.f32 %v3541_v4 }
 0x876   : > { %8761 = vpow2.f32 %v3543_v24  ;;  %v10673_v10 = vpop.f32.mrf.mxu1 }
 0x877   : > { %8763 = vpow2.f32 %v3545_v31 }
 0x878   : > { %8765 = vpow2.f32 %v3547_v36  ;;  %v10675_v33 = vpop.f32.mrf.mxu1 }
 0x87a   : > { %v10677_v58 = vpop.f32.mrf.mxu1 }
 0x87e   : > { %v8752_v5 = vpop.eup %8751 }
 0x87f   : > { %v8754_v21 = vpop.eup %8753  ;;  %v3549_v1 = vsel %vm2397_vm10, %v8752_v5, 0.0 }
 0x880   : > { %v3550_v27 = vsel %vm2397_vm10, %v8754_v21, 0.0  ;;  %v10657_v25 = vpop.eup %8755 }
 0x881   : > { %v3551_v45 = vadd.f32 %v3550_v27, %v3549_v1  ;;  %v3552_v62 = vsel %vm2397_vm10, %v10657_v25, 0.0  ;;  %v8758_v46 = vpop.eup %8757  ;;  %v10679_v1 = vpop.f32.mrf.mxu1 }
 0x882   : > { %v3554_v7 = vsel %vm2397_vm10, %v8758_v46, 0.0  ;;  %v8760_v37 = vpop.eup %8759 }
 0x883   : > { %v3553_v47 = vadd.f32 %v3552_v62, %v3551_v45  ;;  %v3556_v39 = vsel %vm2397_vm10, %v8760_v37, 0.0  ;;  %v8762_v17 = vpop.eup %8761  ;;  %v10681_v57 = vpop.f32.mrf.mxu1 }
 0x884   : > { %v3558_v40 = vsel %vm2397_vm10, %v8762_v17, 0.0  ;;  %v10664_v14 = vpop.eup %8763 }
 0x885   : > { %v3555_v20 = vadd.f32 %v3554_v7, %v3553_v47  ;;  %v3560_v53 = vsel %vm2397_vm10, %v10664_v14, 0.0  ;;  %v8766_v55 = vpop.eup %8765  ;;  %v10683_v31 = vpop.f32.mrf.mxu1 }
 0x886   : > { %v3562_v23 = vsel %vm2397_vm10, %v8766_v55, 0.0 }
 0x887   : > { %v3557_v28 = vadd.f32 %v3556_v39, %v3555_v20 }
 0x889   : > { %v3559_v19 = vadd.f32 %v3558_v40, %v3557_v28 }
 0x88b   : > { %v3561_v0 = vadd.f32 %v3560_v53, %v3559_v19 }
 0x88d   : > { %v3563_v15 = vadd.f32 %v3562_v23, %v3561_v0 }
 0x88f   : > { %v3564_v8 = vrot.slane %v3563_v15, 4 }
 0x891   : > { %v3565_v35 = vadd.f32 %v3564_v8, %v3563_v15 }
 0x893   : > { %v3566_v30 = vrot.slane %v3565_v35, 2 }
 0x895   : > { %v3567_v4 = vadd.f32 %v3566_v30, %v3565_v35 }
 0x897   : > { %v3568_v24 = vrot.slane %v3567_v4, 1 }
 0x899   : > { %v3569_v27 = vadd.f32 %v3568_v24, %v3567_v4  ;;  %v8584_v24 = vld [vmem:[%s9670_s27 + $0x30] sm:$0xff]  }
 0x89b   : > { %8767 = vrcp.f32 %v3569_v27 }
 0x8a8   : > { %v8768_v28 = vpop.eup %8767 }
 0x8a9   : > { %v3571_v53 = vmul.f32 %v8768_v28, %v8752_v5  ;;  %v3572_v0 = vmul.f32 %v8768_v28, %v8754_v21  ;;  %v3573_v5 = vmul.f32 %v8768_v28, %v10657_v25  ;;  %v3574_v21 = vmul.f32 %v8768_v28, %v8758_v46 }
 0x8aa   : > { %v3576_v30 = vmul.f32 %v8768_v28, %v8762_v17 }
 0x8ab   : > { %v3579_v35 = vpack.c.bf16 %v3572_v0, %v3571_v53  ;;  %v3580_v4 = vpack.c.bf16 %v3574_v21, %v3573_v5 }
 0x90e   : > { %v8087_v45 = vpop.f32.mrf.mxu1 }
 0x910   : > { %v3267_v36 = vpop.f32.mrf.mxu1 }
 0x912   : > { %v8088_v62 = vpop.f32.mrf.mxu1 }
 0x913   : > { %v3299_v20 = vpack.c.bf16 %v8088_v62, %v8087_v45  ;;  %v3578_v45 = vmul.f32 %v8768_v28, %v8766_v55 }
 0x914   : > { %v3270_v47 = vpop.f32.mrf.mxu1 }
 0x915   : > { %v3298_v7 = vpack.c.bf16 %v3270_v47, %v3267_v36 }
 0x916   : > { %v8091_v39 = vpop.f32.mrf.mxu1 }
 0x917   : > { %8097 = vmatprep.mubr.msk.bf16.mxu1 %vm2307_vm2, %v3298_v7 }
 0x918   : > { %v3283_v40 = vpop.f32.mrf.mxu1  ;;  %8098 = vmatmul.mubr.msk.bf16.vlgmr.msra.gmra.mxu1 %vm2307_vm2, %v3299_v20 }
 0x919   : > { %8122 = vmatpush3.bf16.msra.mxu1 %v10531_v38  ;;  %v8583_v38 = vld [vmem:[%s9670_s27 + $0x38] sm:$0xff]  }
 0x91a   : > { %8123 = vmatprep.subr.bf16.mxu1 %v10539_v22  ;;  %v8092_v19 = vpop.f32.mrf.mxu1 }
 0x91b   : > { %v3301_v8 = vpack.c.bf16 %v8092_v19, %v8091_v39 }
 0x91c   : > { %v3286_v23 = vpop.f32.mrf.mxu1 }
 0x91d   : > { %v3300_v15 = vpack.c.bf16 %v3286_v23, %v3283_v40  ;;  %8124 = vmatpush3.bf16.msra.mxu1 %v10539_v22  ;;  %v3575_v22 = vmul.f32 %v8768_v28, %v8760_v37 }
 0x91e   : > { %8125 = vmatprep.subr.bf16.mxu1 %v10537_v9 }
 0x91f   : > { %8101 = vmatprep.mubr.msk.bf16.mxu1 %vm2307_vm2, %v3300_v15  ;;  %v3581_v27 = vpack.c.bf16 %v3576_v30, %v3575_v22 }
 0x920   : > { %8102 = vmatmul.mubr.msk.bf16.gmra.mxu1 %vm2307_vm2, %v3301_v8 }
 0x921   : > { %8126 = vmatpush3.bf16.msra.mxu1 %v10537_v9  ;;  %8129 = vmatprep.mubr.msk.bf16.mxu1 %vm2397_vm10, %v3579_v35  ;;  %v3577_v9 = vmul.f32 %v8768_v28, %v10664_v14 }
 0x922   : > { %8127 = vmatprep.subr.bf16.mxu1 %v10551_v32 }
 0x923   : > { %v3582_v25 = vpack.c.bf16 %v3578_v45, %v3577_v9 }
 0x925   : > { %8128 = vmatpush3.bf16.msra.mxu1 %v10551_v32  ;;  %v8159_v32 = vpop.f32.mrf.mxu0 }
 0x926   : > { %8137 = vmatprep.subr.bf16.mxu1 %v8583_v38  ;;  %v3840_v0 = vadd.f32 %v8159_v32, %v10391_v41 }
 0x927   : > { %v3831_v46 = vpop.f32.mrf.mxu0 }
 0x928   : > { %8130 = vmatmul.mubr.msk.bf16.vlgmr.msra.gmra.mxu1 %vm2397_vm10, %v3580_v4  ;;  %v3832_v28 = vadd.f32 %v3831_v46, %v10393_v3  ;;  %v3864_v4 = vsel %vm2397_vm10, %v3840_v0, -inf }
 0x929   : > { %8138 = vmatpush3.bf16.msra.mxu1 %v8583_v38  ;;  %8133 = vmatprep.mubr.msk.bf16.mxu1 %vm2397_vm10, %v3581_v27  ;;  %v8160_v37 = vpop.f32.mrf.mxu0 }
 0x92a   : > { %8139 = vmatprep.subr.bf16.mxu1 %v8584_v24  ;;  %v3843_v40 = vadd.f32 %v8160_v37, %v10385_v29  ;;  %v3862_v38 = vsel %vm2397_vm10, %v3832_v28, -inf }
 0x92b   : > { %v3834_v17 = vpop.f32.mrf.mxu0 }
 0x92c   : > { %v3835_v39 = vadd.f32 %v3834_v17, %v10396_v26  ;;  %v3865_v5 = vsel %vm2397_vm10, %v3843_v40, -inf }
 0x92d   : > { %8140 = vmatpush3.bf16.msra.mxu1 %v8584_v24  ;;  %v8163_v36 = vpop.f32.mrf.mxu0 }
 0x92e   : > { %8165 = vmatprep.subr.bf16.mxu1 %v10319_v51  ;;  %v3856_v19 = vadd.f32 %v8163_v36, %v10387_v61  ;;  %v3863_v23 = vsel %vm2397_vm10, %v3835_v39, -inf }
 0x92f   : > { %v3847_v62 = vpop.f32.mrf.mxu0 }
 0x930   : > { %8134 = vmatmul.mubr.msk.bf16.gmra.mxu1 %vm2397_vm10, %v3582_v25  ;;  %v3848_v14 = vadd.f32 %v3847_v62, %v10389_v6  ;;  %v3870_v21 = vsel %vm2397_vm10, %v3856_v19, -inf }
 0x931   : > { %v8164_v47 = vpop.f32.mrf.mxu0  ;;  %v3871_v24 = vmax.f32 %v3864_v4, %v3870_v21 }
 0x932   : > { %v3859_v55 = vadd.f32 %v8164_v47, %v10398_v12  ;;  %v3866_v15 = vsel %vm2397_vm10, %v3848_v14, -inf }
 0x933   : > { %v3850_v7 = vpop.f32.mrf.mxu0  ;;  %v3867_v22 = vmax.f32 %v3862_v38, %v3866_v15 }
 0x934   : > { %v3851_v20 = vadd.f32 %v3850_v7, %v10402_v59  ;;  %v3872_v8 = vsel %vm2397_vm10, %v3859_v55, -inf }
 0x935   : > { %v3873_v30 = vmax.f32 %v3865_v5, %v3872_v8 }
 0x936   : > { %v3868_v53 = vsel %vm2397_vm10, %v3851_v20, -inf }
 0x937   : > { %v3869_v35 = vmax.f32 %v3863_v23, %v3868_v53  ;;  %v3875_v9 = vmax.f32 %v3871_v24, %v3873_v30 }
 0x939   : > { %v3874_v27 = vmax.f32 %v3867_v22, %v3869_v35 }
 0x93b   : > { %v3876_v45 = vmax.f32 %v3874_v27, %v3875_v9 }
 0x93d   : > { %v3877_v25 = vrot.slane %v3876_v45, 4 }
 0x93f   : > { %v3878_v32 = vmax.f32 %v3876_v45, %v3877_v25 }
 0x941   : > { %v3879_v46 = vrot.slane %v3878_v32, 2 }
 0x943   : > { %v3880_v37 = vmax.f32 %v3878_v32, %v3879_v46 }
 0x945   : > { %v3881_v17 = vrot.slane %v3880_v37, 1 }
 0x947   : > { %v3882_v36 = vmax.f32 %v3880_v37, %v3881_v17 }
 0x949   : > { %v3883_v62 = vsub.f32 %v3832_v28, %v3882_v36  ;;  %v3884_v47 = vsub.f32 %v3835_v39, %v3882_v36  ;;  %v3885_v23 = vsub.f32 %v3840_v0, %v3882_v36  ;;  %v3886_v15 = vsub.f32 %v3843_v40, %v3882_v36 }
 0x94a   : > { %v3887_v38 = vsub.f32 %v3848_v14, %v3882_v36  ;;  %v3888_v5 = vsub.f32 %v3851_v20, %v3882_v36  ;;  %v3889_v4 = vsub.f32 %v3856_v19, %v3882_v36  ;;  %v3890_v0 = vsub.f32 %v3859_v55, %v3882_v36 }
 0x94b   : > { %v3891_v7 = vmul.f32 1.442695, %v3883_v62  ;;  %v3893_v53 = vmul.f32 1.442695, %v3884_v47  ;;  %v3895_v8 = vmul.f32 1.442695, %v3885_v23 }
 0x94c   : > { %v3897_v35 = vmul.f32 1.442695, %v3886_v15  ;;  %v3899_v21 = vmul.f32 1.442695, %v3887_v38  ;;  %v3901_v39 = vmul.f32 1.442695, %v3888_v5 }
 0x94d   : > { %8769 = vpow2.f32 %v3891_v7  ;;  %v3903_v14 = vmul.f32 1.442695, %v3889_v4  ;;  %v3905_v27 = vmul.f32 1.442695, %v3890_v0 }
 0x94e   : > { %8771 = vpow2.f32 %v3893_v53 }
 0x94f   : > { %8773 = vpow2.f32 %v3895_v8 }
 0x950   : > { %8775 = vpow2.f32 %v3897_v35 }
 0x951   : > { %8777 = vpow2.f32 %v3899_v21  ;;  %v3003_v21 = vadd.f32 %v10669_v13, %v10588_v52  ;;  %v3019_v52 = vadd.f32 %v10677_v58, %v10600_v2 }
 0x952   : > { %8779 = vpow2.f32 %v3901_v39  ;;  %v2995_v39 = vadd.f32 %v10671_v43, %v10590_v56  ;;  %v3011_v56 = vadd.f32 %v10679_v1, %v10602_v42 }
 0x953   : > { %8781 = vpow2.f32 %v3903_v14  ;;  %v3006_v14 = vadd.f32 %v10673_v10, %v10595_v49  ;;  %v3022_v49 = vadd.f32 %v10681_v57, %v10604_v60 }
 0x954   : > { %8783 = vpow2.f32 %v3905_v27 }
 0x95a   : > { %v10721_v22 = vpop.eup %8769 }
 0x95b   : > { %v10723_v30 = vpop.eup %8771  ;;  %v3907_v28 = vsel %vm2397_vm10, %v10721_v22, 0.0 }
 0x95c   : > { %v3908_v40 = vsel %vm2397_vm10, %v10723_v30, 0.0  ;;  %v10729_v24 = vpop.eup %8773 }
 0x95d   : > { %v3909_v20 = vadd.f32 %v3908_v40, %v3907_v28  ;;  %v3910_v9 = vsel %vm2397_vm10, %v10729_v24, 0.0  ;;  %v10733_v19 = vpop.eup %8775 }
 0x95e   : > { %v3912_v25 = vsel %vm2397_vm10, %v10733_v19, 0.0  ;;  %v10737_v32 = vpop.eup %8777 }
 0x95f   : > { %v3911_v45 = vadd.f32 %v3910_v9, %v3909_v20  ;;  %v3914_v46 = vsel %vm2397_vm10, %v10737_v32, 0.0  ;;  %v10741_v37 = vpop.eup %8779 }
 0x960   : > { %v3916_v36 = vsel %vm2397_vm10, %v10741_v37, 0.0  ;;  %v10745_v62 = vpop.eup %8781 }
 0x961   : > { %v3913_v55 = vadd.f32 %v3912_v25, %v3911_v45  ;;  %v3918_v7 = vsel %vm2397_vm10, %v10745_v62, 0.0  ;;  %v10749_v53 = vpop.eup %8783 }
 0x962   : > { %v3920_v15 = vsel %vm2397_vm10, %v10749_v53, 0.0 }
 0x963   : > { %v3915_v17 = vadd.f32 %v3914_v46, %v3913_v55 }
 0x965   : > { %v3917_v47 = vadd.f32 %v3916_v36, %v3915_v17 }
 0x967   : > { %v3919_v23 = vadd.f32 %v3918_v7, %v3917_v47 }
 0x969   : > { %v3921_v8 = vadd.f32 %v3920_v15, %v3919_v23 }
 0x96b   : > { %v3922_v38 = vrot.slane %v3921_v8, 4 }
 0x96d   : > { %v3923_v35 = vadd.f32 %v3922_v38, %v3921_v8 }
 0x96f   : > { %v3924_v5 = vrot.slane %v3923_v35, 2 }
 0x971   : > { %v3925_v28 = vadd.f32 %v3924_v5, %v3923_v35 }
 0x973   : > { %v3926_v9 = vrot.slane %v3925_v28, 1 }
 0x975   : > { %v3927_v43 = vadd.f32 %v3926_v9, %v3925_v28  ;;  %v4059_v9 = vsel %vm2307_vm2, %v10567_v34, 0 }
 0x977   : > { %8785 = vrcp.f32 %v3927_v43 }
 0x984   : > { %v8786_v8 = vpop.eup %8785 }
 0x985   : > { %v3929_v57 = vmul.f32 %v8786_v8, %v10721_v22  ;;  %v3930_v35 = vmul.f32 %v8786_v8, %v10723_v30  ;;  %v3932_v22 = vmul.f32 %v8786_v8, %v10733_v19  ;;  %v3936_v19 = vmul.f32 %v8786_v8, %v10749_v53 }
 0x986   : > { %v4062_v53 = vsel %vm2307_vm2, %v10553_v63, 0 }
 0x987   : > { %v3937_v28 = vpack.c.bf16 %v3930_v35, %v3929_v57 }
 0x9d8   : > { %v8099_v4 = vpop.f32.mrf.mxu1 }
 0x9d9   : > { %v10757_v40 = vadd.f32 %v8099_v4, %v3003_v21  ;;  %v10787_v21 = vpop.permute.xlu0 %4479 }
 0x9da   : > { %v3360_v0 = vpop.f32.mrf.mxu1 }
 0x9db   : > { %v10761_v20 = vadd.f32 %v3360_v0, %v2995_v39  ;;  %v3934_v0 = vmul.f32 %v8786_v8, %v10741_v37 }
 0x9dc   : > { %v8100_v27 = vpop.f32.mrf.mxu1 }
 0x9dd   : > { %v10763_v45 = vadd.f32 %v8100_v27, %v3006_v14  ;;  %v10798_v30 = vpop.permute.xlu0 %4475  ;;  %v4068_v27 = vsel %vm2307_vm2, %v10545_v44, 0 }
 0x9de   : > { %v10765_v25 = vpop.f32.mrf.mxu1 }
 0x9e0   : > { %v8103_v13 = vpop.f32.mrf.mxu1 }
 0x9e1   : > { %v10771_v55 = vadd.f32 %v8103_v13, %v3019_v52 }
 0x9e2   : > { %v3376_v46 = vpop.f32.mrf.mxu1 }
 0x9e3   : > { %v10775_v10 = vadd.f32 %v3376_v46, %v3011_v56  ;;  %v8874_v56 = vld [vmem:[%s9670_s27] sm:$0xff]   ;;  %v10849_v46 = vpop.permute.xlu1 %4477 }
 0x9e4   : > { %v8104_v17 = vpop.f32.mrf.mxu1 }
 0x9e5   : > { %v10777_v36 = vadd.f32 %v8104_v17, %v3022_v49 }
 0x9e6   : > { %v10779_v47 = vpop.f32.mrf.mxu1 }
 0x9e7   : > { %v10851_v49 = vpop.permute.xlu1 %4473 }
 0x9e8   : > { %v8131_v2 = vpop.f32.mrf.mxu1 }
 0x9ea   : > { %v3641_v58 = vpop.f32.mrf.mxu1 }
 0x9ec   : > { %v8132_v7 = vpop.f32.mrf.mxu1 }
 0x9ed   : > { %v3673_v1 = vpack.c.bf16 %v8132_v7, %v8131_v2  ;;  %v11832_v7 = vld [vmem:[#allocation30_spill] sm:$0xff] }
 0x9ee   : > { %v3644_v23 = vpop.f32.mrf.mxu1 }
 0x9ef   : > { %v3672_v42 = vpack.c.bf16 %v3644_v23, %v3641_v58  ;;  %v2998_v23 = vadd.f32 %v10675_v33, %v11832_v7 }
 0x9f0   : > { %v8135_v15 = vpop.f32.mrf.mxu1 }
 0x9f1   : > { %8141 = vmatprep.mubr.msk.bf16.mxu1 %vm2307_vm2, %v3672_v42 }
 0x9f2   : > { %v3657_v38 = vpop.f32.mrf.mxu1  ;;  %8142 = vmatmul.mubr.msk.bf16.vlgmr.msra.gmra.mxu1 %vm2307_vm2, %v3673_v1 }
 0x9f3   : > { %8166 = vmatpush3.bf16.msra.mxu1 %v10319_v51  ;;  %v3931_v51 = vmul.f32 %v8786_v8, %v10729_v24  ;;  %v10808_v24 = vpop.permute.xlu0 %4465 }
 0x9f4   : > { %8167 = vmatprep.subr.bf16.mxu1 %v10305_v48  ;;  %v8136_v60 = vpop.f32.mrf.mxu1 }
 0x9f5   : > { %v3675_v39 = vpack.c.bf16 %v8136_v60, %v8135_v15  ;;  %v8875_v60 = vld [vmem:[#allocation2 + $0x30] sm:$0xff] }
 0x9f6   : > { %v3660_v5 = vpop.f32.mrf.mxu1 }
 0x9f7   : > { %v3674_v4 = vpack.c.bf16 %v3660_v5, %v3657_v38  ;;  %8168 = vmatpush3.bf16.msra.mxu1 %v10305_v48  ;;  %v3933_v48 = vmul.f32 %v8786_v8, %v10737_v32  ;;  %v10815_v37 = vpop.permute.xlu0 %4469  ;;  %v3392_v38 = vadd.f32 %v10765_v25, %v2998_v23  ;;  %v7365_v5 = vld [vmem:[%s11833_s12] ss:$0 sm:$0xff]  ;;  %v11834_v25 = vld [vmem:[#allocation31_spill] sm:$0xff] }
 0x9f8   : > { %8169 = vmatprep.subr.bf16.mxu1 %v10325_v54  ;;  %v8881_v23 = vld [vmem:[#allocation2 + $0x8] sm:$0xff] }
 0x9f9   : > { %8145 = vmatprep.mubr.msk.bf16.mxu1 %vm2307_vm2, %v3674_v4  ;;  %v3939_v14 = vpack.c.bf16 %v3934_v0, %v3933_v48  ;;  %v8876_v4 = vld [vmem:[#allocation2 + $0x58] sm:$0xff]  ;;  %v3014_v0 = vadd.f32 %v10683_v31, %v11834_v25  ;;  %v8879_v31 = vld [vmem:[#allocation2 + $0x50] sm:$0xff] }
 0x9fa   : > { %8146 = vmatmul.mubr.msk.bf16.gmra.mxu1 %vm2307_vm2, %v3675_v39 }
 0x9fb   : > { %8170 = vmatpush3.bf16.msra.mxu1 %v10325_v54  ;;  %8173 = vmatprep.mubr.msk.bf16.mxu1 %vm2397_vm10, %v3937_v28  ;;  %v3938_v54 = vpack.c.bf16 %v3932_v22, %v3931_v51  ;;  %v8877_v22 = vld [vmem:[#allocation2] sm:$0xff] }
 0x9fc   : > { %8171 = vmatprep.subr.bf16.mxu1 %v10313_v50 }
 0x9ff   : > { %8172 = vmatpush3.bf16.msra.mxu1 %v10313_v50  ;;  %v3935_v50 = vmul.f32 %v8786_v8, %v10745_v62  ;;  %v10824_v62 = vpop.permute.xlu0 %4841 }
 0xa00   : > { %8425 = vmatprep.subr.msk.bf16.mxu1 %vm2307_vm2, %v10545_v44  ;;  %v4065_v44 = vsel %vm2307_vm2, %v10559_v16, 0 }
 0xa01   : > { %v3940_v32 = vpack.c.bf16 %v3936_v19, %v3935_v50 }
 0xa02   : > { %8174 = vmatmul.mubr.msk.bf16.vlgmr.msra.gmra.mxu1 %vm2397_vm10, %v3938_v54 }
 0xa03   : > { %8182 = vmatpush3.bf16.xpose.msra.mxu1 %v4068_v27  ;;  %8177 = vmatprep.mubr.msk.bf16.mxu1 %vm2397_vm10, %v3939_v14  ;;  %v8878_v14 = vld [vmem:[#allocation2 + $0x18] sm:$0xff] }
 0xa04   : > { %8426 = vmatprep.subr.msk.bf16.mxu1 %vm2307_vm2, %v10559_v16  ;;  %v10830_v16 = vpop.permute.xlu0 %4837 }
 0xa08   : > { %v10834_v52 = vpop.permute.xlu0 %4827 }
 0xa0a   : > { %8178 = vmatmul.mubr.msk.bf16.gmra.mxu1 %vm2397_vm10, %v3940_v32 }
 0xa0b   : > { %8184 = vmatpush3.bf16.xpose.msra.mxu1 %v4065_v44  ;;  %8189 = vmatprep.mubr.msk.bf16.mxu1 %vm2307_vm2, %v10565_v11  ;;  %v8873_v11 = vld [vmem:[%s9670_s27 + $0x8] sm:$0xff]   ;;  %v3396_v44 = vadd.f32 %v10779_v47, %v3014_v0 }
 0xa0c   : > { %8427 = vmatprep.subr.msk.bf16.mxu1 %vm2307_vm2, %v10553_v63  ;;  %v10837_v13 = vpop.permute.xlu0 %4831  ;;  %v11830_v63 = vld [vmem:[#allocation28_spill] sm:$0xff] }
 0xa10   : > { %v10844_v43 = vpop.permute.xlu0 %4655 }
 0xa13   : > { %8186 = vmatpush3.bf16.xpose.msra.mxu1 %v4062_v53 }
 0xa14   : > { %8428 = vmatprep.subr.msk.bf16.mxu1 %vm2307_vm2, %v10567_v34  ;;  %v11831_v34 = vld [vmem:[#allocation29_spill] sm:$0xff]  ;;  %v4652_v0 = vpop.permute.xlu0 %4651 }
 0xa1b   : > { %8188 = vmatpush3.bf16.xpose.msra.mxu1 %v4059_v9 }
 0xa1c   : > { %8225 = vmatprep.subr.bf16.mxu1 %v8873_v11 }
 0xa22   : > { %8190 = vmatmul.mubr.msk.bf16.vlgmr.msra.gmra.mxu1 %vm2307_vm2, %v10575_v18  ;;  %v10853_v18 = vpop.permute.xlu1 %4467 }
 0xa23   : > { %8193 = vmatprep.mubr.msk.bf16.mxu1 %vm2307_vm2, %v11830_v63  ;;  %8226 = vmatpush3.bf16.msra.mxu1 %v8873_v11 }
 0xa24   : > { %8227 = vmatprep.subr.bf16.mxu1 %v8874_v56 }
 0xa26   : > { %v10855_v17 = vpop.permute.xlu1 %4471 }
 0xa27   : > { %8228 = vmatpush3.bf16.msra.mxu1 %v8874_v56 }
 0xa28   : > { %8253 = vmatprep.subr.bf16.mxu1 %v10844_v43 }
 0xa2a   : > { %8194 = vmatmul.mubr.msk.bf16.gmra.mxu1 %vm2307_vm2, %v11831_v34  ;;  %v10861_v15 = vpop.permute.xlu1 %4839 }
 0xa2e   : > { %v10870_v48 = vpop.permute.xlu1 %4835 }
 0xa32   : > { %v10886_v34 = vpop.permute.xlu1 %4829 }
 0xab2   : > { %v8143_v2 = vpop.f32.mrf.mxu1 }
 0xab3   : > { %v3767_v42 = vadd.f32 %v8143_v2, %v10757_v40 }
 0xab4   : > { %v3734_v58 = vpop.f32.mrf.mxu1 }
 0xab5   : > { %v3765_v1 = vadd.f32 %v3734_v58, %v10761_v20  ;;  %v5191_v39 = vadd.f32 %v8876_v4, %v3767_v42  ;;  %v8880_v58 = vld [vmem:[#allocation2 + $0x68] sm:$0xff] }
 0xab6   : > { %v8144_v8 = vpop.f32.mrf.mxu1 }
 0xab7   : > { %v5189_v57 = vadd.f32 %v8875_v60, %v3765_v1  ;;  %v3768_v28 = vadd.f32 %v8144_v8, %v10763_v45  ;;  %v10875_v19 = vadd.f32 %v7365_v5, %v5191_v39  ;;  %v8882_v1 = vld [vmem:[#allocation2 + $0x48] sm:$0xff]  ;;  %v10895_v60 = vpop.permute.xlu1 %4833 }
 0xab8   : > { %v3737_v35 = vpop.f32.mrf.mxu1 }
 0xab9   : > { %v3766_v51 = vadd.f32 %v3737_v35, %v3392_v38  ;;  %v10867_v33 = vadd.f32 %v7365_v5, %v5189_v57  ;;  %v5192_v27 = vadd.f32 %v8878_v14, %v3768_v28 }
 0xaba   : > { %v8147_v40 = vpop.f32.mrf.mxu1 }
 0xabb   : > { %v5190_v20 = vadd.f32 %v8877_v22, %v3766_v51  ;;  %5230 = vadd.xlane.f32.xlu0 %v10867_v33  ;;  %v3771_v53 = vadd.f32 %v8147_v40, %v10771_v55  ;;  %v4654_v22 = vpop.permute.xlu1 %4653 }
 0xabc   : > { %v3750_v54 = vpop.f32.mrf.mxu1 }
 0xabd   : > { %v3769_v50 = vadd.f32 %v3750_v54, %v10775_v10  ;;  %v10877_v45 = vadd.f32 %v7365_v5, %v5190_v20  ;;  %v10884_v10 = vadd.f32 %v7365_v5, %v5192_v27  ;;  %v5195_v42 = vadd.f32 %v8881_v23, %v3771_v53  ;;  %v10909_v27 = vld [vmem:[%s9670_s27 + $0x28] sm:$0xff]  }
 0xabe   : > { %v8148_v32 = vpop.f32.mrf.mxu1 }
 0xabf   : > { %5234 = vadd.xlane.f32.xlu0 %v10875_v19  ;;  %5232 = vadd.xlane.f32.xlu1 %v10877_v45  ;;  %v5193_v11 = vadd.f32 %v8879_v31, %v3769_v50  ;;  %v3772_v63 = vadd.f32 %v8148_v32, %v10777_v36  ;;  %v10897_v4 = vadd.f32 %v7365_v5, %v5195_v42  ;;  %v4650_v14 = vpop.permute.xlu1 %4649 }
 0xac0   : > { %v3753_v9 = vpop.f32.mrf.mxu1 }
 0xac1   : > { %v3770_v56 = vadd.f32 %v3753_v9, %v3396_v44  ;;  %v5196_v55 = vadd.f32 %v8882_v1, %v3772_v63  ;;  %v10889_v8 = vadd.f32 %v7365_v5, %v5193_v11  ;;  %11837 = vst [vmem:[#allocation30_spill] sm:$0xff] %v10897_v4 }
 0xac2   : > { %v8175_v2 = vpop.f32.mrf.mxu1 }
 0xac3   : > { %v5194_v7 = vadd.f32 %v8880_v58, %v3770_v56  ;;  %5236 = vadd.xlane.f32.xlu0 %v10884_v10  ;;  %11835 = vst [vmem:[#allocation28_spill] sm:$0xff] %v10889_v8  ;;  %v10899_v39 = vadd.f32 %v7365_v5, %v5196_v55 }
 0xac4   : > { %v3987_v47 = vpop.f32.mrf.mxu1 }
 0xac5   : > { %v10891_v38 = vadd.f32 %v7365_v5, %v5194_v7  ;;  %11838 = vst [vmem:[#allocation31_spill] sm:$0xff] %v10899_v39 }
 0xac6   : > { %v8176_v36 = vpop.f32.mrf.mxu1 }
 0xac7   : > { %11836 = vst [vmem:[#allocation29_spill] sm:$0xff] %v10891_v38  ;;  %5238 = vadd.xlane.f32.xlu0 %v10889_v8  ;;  %5240 = vadd.xlane.f32.xlu1 %v10891_v38  ;;  %v4019_v51 = vpack.c.bf16 %v8176_v36, %v8175_v2 }
 0xac8   : > { %v3990_v57 = vpop.f32.mrf.mxu1 }
 0xac9   : > { %v4018_v35 = vpack.c.bf16 %v3990_v57, %v3987_v47 }
 0xaca   : > { %v8179_v28 = vpop.f32.mrf.mxu1 }
 0xacb   : > { %5242 = vadd.xlane.f32.xlu0 %v10897_v4  ;;  %5244 = vadd.xlane.f32.xlu1 %v10899_v39 }
 0xacc   : > { %8229 = vmatprep.mubr.msk.bf16.mxu1 %vm2307_vm2, %v4018_v35  ;;  %v4003_v40 = vpop.f32.mrf.mxu1 }
 0xacd   : > { %8230 = vmatmul.mubr.msk.bf16.vlgmr.msra.gmra.mxu1 %vm2307_vm2, %v4019_v51 }
 0xace   : > { %8254 = vmatpush3.bf16.msra.mxu1 %v10844_v43  ;;  %v8180_v20 = vpop.f32.mrf.mxu1 }
 0xacf   : > { %8255 = vmatprep.subr.bf16.mxu1 %v4654_v22  ;;  %v4021_v54 = vpack.c.bf16 %v8180_v20, %v8179_v28 }
 0xad0   : > { %v4006_v25 = vpop.f32.mrf.mxu1 }
 0xad1   : > { %v4020_v5 = vpack.c.bf16 %v4006_v25, %v4003_v40 }
 0xad2   : > { %8256 = vmatpush3.bf16.msra.mxu1 %v4654_v22 }
 0xad3   : > { %8257 = vmatprep.subr.bf16.mxu1 %v4652_v0  ;;  %8233 = vmatprep.mubr.msk.bf16.mxu1 %vm2307_vm2, %v4020_v5 }
 0xad5   : > { %8234 = vmatmul.mubr.msk.bf16.gmra.mxu1 %vm2307_vm2, %v4021_v54 }
 0xad6   : > { %8258 = vmatpush3.bf16.msra.mxu1 %v4652_v0 }
 0xad7   : > { %8259 = vmatprep.subr.bf16.mxu1 %v4650_v14 }
 0xada   : > { %8260 = vmatpush3.bf16.msra.mxu1 %v4650_v14 }
 0xadb   : > { %8269 = vmatprep.subr.bf16.mxu1 %v10909_v27 }
 0xae2   : > { %v8191_v43 = vpop.f32.mrf.mxu1 }
 0xae3   : > { %v4113_v2 = vadd.f32 %v8191_v43, %v10391_v41 }
 0xae4   : > { %v4104_v50 = vpop.f32.mrf.mxu1 }
 0xae5   : > { %v4105_v58 = vadd.f32 %v4104_v50, %v10393_v3  ;;  %v4137_v28 = vsel %vm2397_vm10, %v4113_v2, -inf }
 0xae6   : > { %v8192_v32 = vpop.f32.mrf.mxu1 }
 0xae7   : > { %v4116_v9 = vadd.f32 %v8192_v32, %v10385_v29  ;;  %v4135_v51 = vsel %vm2397_vm10, %v4105_v58, -inf }
 0xae8   : > { %v4107_v44 = vpop.f32.mrf.mxu1 }
 0xae9   : > { %v4108_v7 = vadd.f32 %v4107_v44, %v10396_v26  ;;  %v4138_v23 = vsel %vm2397_vm10, %v4116_v9, -inf }
 0xaea   : > { %v8195_v53 = vpop.f32.mrf.mxu1 }
 0xaeb   : > { %v4129_v11 = vadd.f32 %v8195_v53, %v10387_v61  ;;  %v4136_v40 = vsel %vm2397_vm10, %v4108_v7, -inf }
 0xaec   : > { %v4120_v31 = vpop.f32.mrf.mxu1 }
 0xaed   : > { %v4121_v63 = vadd.f32 %v4120_v31, %v10389_v6  ;;  %v4143_v1 = vsel %vm2397_vm10, %v4129_v11, -inf }
 0xaee   : > { %v8196_v56 = vpop.f32.mrf.mxu1  ;;  %v4144_v20 = vmax.f32 %v4137_v28, %v4143_v1 }
 0xaef   : > { %v4132_v47 = vadd.f32 %v8196_v56, %v10398_v12  ;;  %v4139_v55 = vsel %vm2397_vm10, %v4121_v63, -inf }
 0xaf0   : > { %v4123_v42 = vpop.f32.mrf.mxu1  ;;  %v4140_v25 = vmax.f32 %v4135_v51, %v4139_v55 }
 0xaf1   : > { %v4145_v36 = vsel %vm2397_vm10, %v4132_v47, -inf  ;;  %v4124_v57 = vadd.f32 %v4123_v42, %v10402_v59 }
 0xaf2   : > { %v4146_v35 = vmax.f32 %v4138_v23, %v4145_v36 }
 0xaf3   : > { %v4141_v22 = vsel %vm2397_vm10, %v4124_v57, -inf }
 0xaf4   : > { %v4142_v5 = vmax.f32 %v4136_v40, %v4141_v22  ;;  %v4148_v0 = vmax.f32 %v4144_v20, %v4146_v35 }
 0xaf6   : > { %v4147_v54 = vmax.f32 %v4140_v25, %v4142_v5 }
 0xaf8   : > { %v4149_v14 = vmax.f32 %v4147_v54, %v4148_v0 }
 0xafa   : > { %v4150_v43 = vrot.slane %v4149_v14, 4 }
 0xafc   : > { %v4151_v50 = vmax.f32 %v4149_v14, %v4150_v43 }
 0xafe   : > { %v4152_v32 = vrot.slane %v4151_v50, 2 }
 0xb00   : > { %v4153_v44 = vmax.f32 %v4151_v50, %v4152_v32 }
 0xb02   : > { %v4154_v53 = vrot.slane %v4153_v44, 1 }
 0xb04   : > { %v4155_v31 = vmax.f32 %v4153_v44, %v4154_v53 }
 0xb06   : > { %v4156_v56 = vsub.f32 %v4105_v58, %v4155_v31  ;;  %v4157_v23 = vsub.f32 %v4108_v7, %v4155_v31  ;;  %v4158_v42 = vsub.f32 %v4113_v2, %v4155_v31  ;;  %v4159_v36 = vsub.f32 %v4116_v9, %v4155_v31 }
 0xb07   : > { %v4160_v39 = vsub.f32 %v4121_v63, %v4155_v31  ;;  %v4161_v1 = vsub.f32 %v4124_v57, %v4155_v31  ;;  %v4162_v35 = vsub.f32 %v4129_v11, %v4155_v31  ;;  %v4163_v51 = vsub.f32 %v4132_v47, %v4155_v31 }
 0xb08   : > { %v4164_v4 = vmul.f32 1.442695, %v4156_v56  ;;  %v4166_v38 = vmul.f32 1.442695, %v4157_v23  ;;  %v4168_v8 = vmul.f32 1.442695, %v4158_v42 }
 0xb09   : > { %v4170_v55 = vmul.f32 1.442695, %v4159_v36  ;;  %v4172_v28 = vmul.f32 1.442695, %v4160_v39  ;;  %v4174_v40 = vmul.f32 1.442695, %v4161_v1 }
 0xb0a   : > { %8787 = vpow2.f32 %v4164_v4  ;;  %v4176_v22 = vmul.f32 1.442695, %v4162_v35  ;;  %v4178_v58 = vmul.f32 1.442695, %v4163_v51 }
 0xb0b   : > { %8789 = vpow2.f32 %v4166_v38 }
 0xb0c   : > { %8791 = vpow2.f32 %v4168_v8 }
 0xb0d   : > { %8793 = vpow2.f32 %v4170_v55 }
 0xb0e   : > { %8795 = vpow2.f32 %v4172_v28 }
 0xb0f   : > { %8797 = vpow2.f32 %v4174_v40 }
 0xb10   : > { %8799 = vpow2.f32 %v4176_v22 }
 0xb11   : > { %8801 = vpow2.f32 %v4178_v58 }
 0xb17   : > { %v8788_v9 = vpop.eup %8787 }
 0xb18   : > { %v8790_v63 = vpop.eup %8789  ;;  %v4180_v2 = vsel %vm2397_vm10, %v8788_v9, 0.0 }
 0xb19   : > { %v8792_v7 = vpop.eup %8791  ;;  %v4181_v4 = vsel %vm2397_vm10, %v8790_v63, 0.0 }
 0xb1a   : > { %v8794_v11 = vpop.eup %8793  ;;  %v4182_v38 = vadd.f32 %v4181_v4, %v4180_v2  ;;  %v4183_v8 = vsel %vm2397_vm10, %v8792_v7, 0.0 }
 0xb1b   : > { %v8796_v39 = vpop.eup %8795  ;;  %v4185_v57 = vsel %vm2397_vm10, %v8794_v11, 0.0 }
 0xb1c   : > { %v4184_v47 = vadd.f32 %v4183_v8, %v4182_v38  ;;  %v8798_v20 = vpop.eup %8797  ;;  %v4187_v5 = vsel %vm2397_vm10, %v8796_v39, 0.0 }
 0xb1d   : > { %v8800_v0 = vpop.eup %8799  ;;  %v4189_v14 = vsel %vm2397_vm10, %v8798_v20, 0.0 }
 0xb1e   : > { %v4186_v25 = vadd.f32 %v4185_v57, %v4184_v47  ;;  %v8802_v43 = vpop.eup %8801  ;;  %v4191_v32 = vsel %vm2397_vm10, %v8800_v0, 0.0  ;;  %v8884_v47 = vld [vmem:[%s9670_s27 + $0x18] sm:$0xff]   ;;  %v8885_v57 = vld [vmem:[%s9670_s27 + $0x10] sm:$0xff]  }
 0xb1f   : > { %v4193_v53 = vsel %vm2397_vm10, %v8802_v43, 0.0 }
 0xb20   : > { %v4188_v54 = vadd.f32 %v4187_v5, %v4186_v25 }
 0xb22   : > { %v4190_v50 = vadd.f32 %v4189_v14, %v4188_v54 }
 0xb24   : > { %v4192_v44 = vadd.f32 %v4191_v32, %v4190_v50 }
 0xb26   : > { %v4194_v31 = vadd.f32 %v4193_v53, %v4192_v44 }
 0xb28   : > { %v4195_v56 = vrot.slane %v4194_v31, 4 }
 0xb2a   : > { %v4196_v23 = vadd.f32 %v4195_v56, %v4194_v31  ;;  %v4500_v31 = vsel %vm2307_vm2, %v10849_v46, 0  ;;  %v4494_v56 = vsel %vm2307_vm2, %v10851_v49, 0 }
 0xb2c   : > { %v4197_v42 = vrot.slane %v4196_v23, 2 }
 0xb2e   : > { %v4198_v36 = vadd.f32 %v4197_v42, %v4196_v23 }
 0xb30   : > { %v4199_v1 = vrot.slane %v4198_v36, 1 }
 0xb32   : > { %v4200_v55 = vadd.f32 %v4199_v1, %v4198_v36 }
 0xb34   : > { %8803 = vrcp.f32 %v4200_v55 }
 0xb41   : > { %v8804_v35 = vpop.eup %8803 }
 0xb42   : > { %v4202_v28 = vmul.f32 %v8804_v35, %v8788_v9  ;;  %v4203_v51 = vmul.f32 %v8804_v35, %v8790_v63  ;;  %v4204_v40 = vmul.f32 %v8804_v35, %v8792_v7  ;;  %v4205_v22 = vmul.f32 %v8804_v35, %v8794_v11 }
 0xb43   : > { %v4206_v58 = vmul.f32 %v8804_v35, %v8796_v39  ;;  %v4207_v2 = vmul.f32 %v8804_v35, %v8798_v20  ;;  %v4208_v25 = vmul.f32 %v8804_v35, %v8800_v0  ;;  %v4209_v9 = vmul.f32 %v8804_v35, %v8802_v43 }
 0xb44   : > { %v4210_v4 = vpack.c.bf16 %v4203_v51, %v4202_v28  ;;  %v4211_v38 = vpack.c.bf16 %v4205_v22, %v4204_v40  ;;  %v4503_v0 = vsel %vm2307_vm2, %v10787_v21, 0 }
 0xb45   : > { %v4212_v8 = vpack.c.bf16 %v4207_v2, %v4206_v58  ;;  %v4213_v63 = vpack.c.bf16 %v4209_v9, %v4208_v25 }
 0xb46   : > { %8205 = vmatprep.mubr.msk.bf16.mxu0 %vm2397_vm10, %v4210_v4 }
 0xb47   : > { %8206 = vmatmul.mubr.msk.bf16.vlgmr.msra.gmra.mxu0 %vm2397_vm10, %v4211_v38 }
 0xb48   : > { %8214 = vmatpush3.bf16.msra.mxu0 %v8884_v47  ;;  %8209 = vmatprep.mubr.msk.bf16.mxu0 %vm2397_vm10, %v4212_v8 }
 0xb49   : > { %8215 = vmatprep.subr.bf16.mxu0 %v8885_v57 }
 0xb4c   : > { %8216 = vmatpush3.bf16.msra.mxu0 %v8885_v57 }
 0xb4d   : > { %8429 = vmatprep.subr.msk.bf16.mxu0 %vm2307_vm2, %v10787_v21  ;;  %v4497_v21 = vsel %vm2307_vm2, %v10798_v30, 0 }
 0xb4f   : > { %8210 = vmatmul.mubr.msk.bf16.gmra.mxu0 %vm2397_vm10, %v4213_v63 }
 0xc07   : > { %v8207_v7 = vpop.f32.mrf.mxu0 }
 0xc09   : > { %v4276_v11 = vpop.f32.mrf.mxu0 }
 0xc0b   : > { %v8208_v39 = vpop.f32.mrf.mxu0 }
 0xc0c   : > { %v4308_v54 = vpack.c.bf16 %v8208_v39, %v8207_v7 }
 0xc0d   : > { %v4279_v20 = vpop.f32.mrf.mxu0 }
 0xc0e   : > { %v4307_v5 = vpack.c.bf16 %v4279_v20, %v4276_v11 }
 0xc0f   : > { %v8211_v14 = vpop.f32.mrf.mxu0 }
 0xc10   : > { %8217 = vmatprep.mubr.msk.bf16.mxu0 %vm2307_vm2, %v4307_v5 }
 0xc11   : > { %v4292_v43 = vpop.f32.mrf.mxu0  ;;  %8218 = vmatmul.mubr.msk.bf16.vlgmr.msra.gmra.mxu0 %vm2307_vm2, %v4308_v54 }
 0xc12   : > { %8238 = vmatpush3.bf16.xpose.msra.mxu0 %v4503_v0 }
 0xc13   : > { %8430 = vmatprep.subr.msk.bf16.mxu0 %vm2307_vm2, %v10849_v46  ;;  %v8212_v50 = vpop.f32.mrf.mxu0 }
 0xc14   : > { %v4310_v53 = vpack.c.bf16 %v8212_v50, %v8211_v14 }
 0xc15   : > { %v4295_v32 = vpop.f32.mrf.mxu0 }
 0xc16   : > { %v4309_v44 = vpack.c.bf16 %v4295_v32, %v4292_v43 }
 0xc18   : > { %8221 = vmatprep.mubr.msk.bf16.mxu0 %vm2307_vm2, %v4309_v44 }
 0xc19   : > { %8222 = vmatmul.mubr.msk.bf16.gmra.mxu0 %vm2307_vm2, %v4310_v53 }
 0xc1a   : > { %8240 = vmatpush3.bf16.xpose.msra.mxu0 %v4500_v31  ;;  %8245 = vmatprep.mubr.msk.bf16.mxu0 %vm2307_vm2, %v10808_v24  ;;  %v4865_v24 = vsel %vm2307_vm2, %v10824_v62, 0 }
 0xc1b   : > { %8431 = vmatprep.subr.msk.bf16.mxu0 %vm2307_vm2, %v10798_v30  ;;  %v4862_v30 = vsel %vm2307_vm2, %v10861_v15, 0 }
 0xc22   : > { %8242 = vmatpush3.bf16.xpose.msra.mxu0 %v4497_v21 }
 0xc23   : > { %8432 = vmatprep.subr.msk.bf16.mxu0 %vm2307_vm2, %v10851_v49 }
 0xc2a   : > { %8244 = vmatpush3.bf16.xpose.msra.mxu0 %v4494_v56 }
 0xc2b   : > { %8433 = vmatprep.subr.msk.bf16.mxu0 %vm2307_vm2, %v10824_v62  ;;  %v4856_v62 = vsel %vm2307_vm2, %v10870_v48, 0 }
 0xc31   : > { %8246 = vmatmul.mubr.msk.bf16.vlgmr.msra.gmra.mxu0 %vm2307_vm2, %v10853_v18 }
 0xc32   : > { %8249 = vmatprep.mubr.msk.bf16.mxu0 %vm2307_vm2, %v10815_v37  ;;  %8282 = vmatpush3.bf16.xpose.msra.mxu0 %v4865_v24  ;;  %v4859_v37 = vsel %vm2307_vm2, %v10830_v16, 0 }
 0xc33   : > { %8434 = vmatprep.subr.msk.bf16.mxu0 %vm2307_vm2, %v10861_v15 }
 0xc39   : > { %8250 = vmatmul.mubr.msk.bf16.gmra.mxu0 %vm2307_vm2, %v10855_v17 }
 0xc3a   : > { %8284 = vmatpush3.bf16.xpose.msra.mxu0 %v4862_v30  ;;  %8289 = vmatprep.mubr.msk.bf16.mxu0 %vm2307_vm2, %v10834_v52  ;;  %v11839_v52 = vmov 0  }
 0xc3b   : > { %8435 = vmatprep.subr.msk.bf16.mxu0 %vm2307_vm2, %v10830_v16 }
 0xc42   : > { %8286 = vmatpush3.bf16.xpose.msra.mxu0 %v4859_v37 }
 0xc43   : > { %8436 = vmatprep.subr.msk.bf16.mxu0 %vm2307_vm2, %v10870_v48 }
 0xc4a   : > { %8288 = vmatpush3.bf16.xpose.msra.mxu0 %v4856_v62 }
 0xc51   : > { %8290 = vmatmul.mubr.msk.bf16.vlgmr.msra.gmra.mxu0 %vm2307_vm2, %v10886_v34 }
 0xc52   : > { %8293 = vmatprep.mubr.msk.bf16.mxu0 %vm2307_vm2, %v10837_v13 }
 0xc59   : > { %8294 = vmatmul.mubr.msk.bf16.gmra.mxu0 %vm2307_vm2, %v10895_v60 }
 0xc5a   : > { %5704 = vmatprep.mubr.bf16.mxu0 %v11839_v52 }
 0xcd1   : > { %v10995_v16 = vpop.f32.mrf.mxu0 }
 0xcd3   : > { %v10997_v46 = vpop.f32.mrf.mxu0 }
 0xcd5   : > { %v10999_v49 = vpop.f32.mrf.mxu0 }
 0xcd7   : > { %v11001_v18 = vpop.f32.mrf.mxu0 }
 0xcd9   : > { %v11003_v17 = vpop.f32.mrf.mxu0 }
 0xcdb   : > { %v11005_v15 = vpop.f32.mrf.mxu0 }
 0xcdd   : > { %v11007_v48 = vpop.f32.mrf.mxu0 }
 0xcdf   : > { %v11009_v13 = vpop.f32.mrf.mxu0 }
 0xcf1   : > { %v8247_v34 = vpop.f32.mrf.mxu0 }
 0xcf2   : > { %v4548_v40 = vadd.f32 %v8247_v34, %v10391_v41 }
 0xcf3   : > { %v4539_v60 = vpop.f32.mrf.mxu0 }
 0xcf4   : > { %v4540_v22 = vadd.f32 %v4539_v60, %v10393_v3  ;;  %v4572_v63 = vsel %vm2397_vm10, %v4548_v40, -inf }
 0xcf5   : > { %v8248_v23 = vpop.f32.mrf.mxu0 }
 0xcf6   : > { %v4551_v1 = vadd.f32 %v8248_v23, %v10385_v29  ;;  %v4570_v7 = vsel %vm2397_vm10, %v4540_v22, -inf }
 0xcf7   : > { %v4542_v42 = vpop.f32.mrf.mxu0 }
 0xcf8   : > { %v4543_v58 = vadd.f32 %v4542_v42, %v10396_v26  ;;  %v4573_v4 = vsel %vm2397_vm10, %v4551_v1, -inf }
 0xcf9   : > { %v8251_v36 = vpop.f32.mrf.mxu0 }
 0xcfa   : > { %v4564_v35 = vadd.f32 %v8251_v36, %v10387_v61  ;;  %v4571_v11 = vsel %vm2397_vm10, %v4543_v58, -inf }
 0xcfb   : > { %v4555_v55 = vpop.f32.mrf.mxu0 }
 0xcfc   : > { %v4556_v28 = vadd.f32 %v4555_v55, %v10389_v6  ;;  %v4578_v8 = vsel %vm2397_vm10, %v4564_v35, -inf }
 0xcfd   : > { %v8252_v51 = vpop.f32.mrf.mxu0  ;;  %v4579_v20 = vmax.f32 %v4572_v63, %v4578_v8 }
 0xcfe   : > { %v4567_v2 = vadd.f32 %v8252_v51, %v10398_v12  ;;  %v4574_v47 = vsel %vm2397_vm10, %v4556_v28, -inf }
 0xcff   : > { %v4558_v38 = vpop.f32.mrf.mxu0  ;;  %v4575_v5 = vmax.f32 %v4570_v7, %v4574_v47 }
 0xd00   : > { %v4580_v57 = vsel %vm2397_vm10, %v4567_v2, -inf  ;;  %v4559_v25 = vadd.f32 %v4558_v38, %v10402_v59 }
 0xd01   : > { %v4581_v9 = vmax.f32 %v4573_v4, %v4580_v57 }
 0xd02   : > { %v4576_v39 = vsel %vm2397_vm10, %v4559_v25, -inf }
 0xd03   : > { %v4577_v54 = vmax.f32 %v4571_v11, %v4576_v39  ;;  %v4583_v14 = vmax.f32 %v4579_v20, %v4581_v9 }
 0xd05   : > { %v4582_v0 = vmax.f32 %v4575_v5, %v4577_v54 }
 0xd07   : > { %v4584_v43 = vmax.f32 %v4582_v0, %v4583_v14 }
 0xd09   : > { %v4585_v50 = vrot.slane %v4584_v43, 4 }
 0xd0b   : > { %v4586_v32 = vmax.f32 %v4584_v43, %v4585_v50 }
 0xd0d   : > { %v4587_v44 = vrot.slane %v4586_v32, 2 }
 0xd0f   : > { %v4588_v53 = vmax.f32 %v4586_v32, %v4587_v44 }
 0xd11   : > { %v4589_v31 = vrot.slane %v4588_v53, 1 }
 0xd13   : > { %v4590_v21 = vmax.f32 %v4588_v53, %v4589_v31 }
 0xd15   : > { %v4591_v56 = vsub.f32 %v4540_v22, %v4590_v21  ;;  %v4592_v24 = vsub.f32 %v4543_v58, %v4590_v21  ;;  %v4593_v30 = vsub.f32 %v4548_v40, %v4590_v21  ;;  %v4594_v37 = vsub.f32 %v4551_v1, %v4590_v21 }
 0xd16   : > { %v4595_v62 = vsub.f32 %v4556_v28, %v4590_v21  ;;  %v4596_v42 = vsub.f32 %v4559_v25, %v4590_v21  ;;  %v4597_v55 = vsub.f32 %v4564_v35, %v4590_v21  ;;  %v4598_v4 = vsub.f32 %v4567_v2, %v4590_v21 }
 0xd17   : > { %v4599_v34 = vmul.f32 1.442695, %v4591_v56  ;;  %v4601_v60 = vmul.f32 1.442695, %v4592_v24  ;;  %v4603_v23 = vmul.f32 1.442695, %v4593_v30 }
 0xd18   : > { %v4605_v36 = vmul.f32 1.442695, %v4594_v37  ;;  %v4607_v51 = vmul.f32 1.442695, %v4595_v62  ;;  %v4609_v38 = vmul.f32 1.442695, %v4596_v42 }
 0xd19   : > { %8805 = vpow2.f32 %v4599_v34  ;;  %v4611_v8 = vmul.f32 1.442695, %v4597_v55  ;;  %v4613_v22 = vmul.f32 1.442695, %v4598_v4 }
 0xd1a   : > { %8807 = vpow2.f32 %v4601_v60 }
 0xd1b   : > { %8809 = vpow2.f32 %v4603_v23 }
 0xd1c   : > { %8811 = vpow2.f32 %v4605_v36 }
 0xd1d   : > { %8813 = vpow2.f32 %v4607_v51 }
 0xd1e   : > { %8815 = vpow2.f32 %v4609_v38  ;;  %v8886_v38 = vld [vmem:[%s9670_s27 + $0x20] sm:$0xff]  }
 0xd1f   : > { %8817 = vpow2.f32 %v4611_v8 }
 0xd20   : > { %8819 = vpow2.f32 %v4613_v22 }
 0xd26   : > { %v8806_v1 = vpop.eup %8805 }
 0xd27   : > { %v8808_v28 = vpop.eup %8807  ;;  %v4615_v40 = vsel %vm2397_vm10, %v8806_v1, 0.0 }
 0xd28   : > { %v8810_v58 = vpop.eup %8809  ;;  %v4616_v47 = vsel %vm2397_vm10, %v8808_v28, 0.0 }
 0xd29   : > { %v8812_v35 = vpop.eup %8811  ;;  %v4617_v57 = vadd.f32 %v4616_v47, %v4615_v40  ;;  %v4618_v25 = vsel %vm2397_vm10, %v8810_v58, 0.0  ;;  %v8291_v40 = vpop.f32.mrf.mxu0 }
 0xd2a   : > { %v8814_v2 = vpop.eup %8813  ;;  %v4620_v63 = vsel %vm2397_vm10, %v8812_v35, 0.0 }
 0xd2b   : > { %v4619_v9 = vadd.f32 %v4618_v25, %v4617_v57  ;;  %v8816_v7 = vpop.eup %8815  ;;  %v4622_v39 = vsel %vm2397_vm10, %v8814_v2, 0.0 }
 0xd2c   : > { %v8818_v20 = vpop.eup %8817  ;;  %v4624_v54 = vsel %vm2397_vm10, %v8816_v7, 0.0 }
 0xd2d   : > { %v4621_v11 = vadd.f32 %v4620_v63, %v4619_v9  ;;  %v8820_v14 = vpop.eup %8819  ;;  %v4626_v43 = vsel %vm2397_vm10, %v8818_v20, 0.0 }
 0xd2e   : > { %v4628_v32 = vsel %vm2397_vm10, %v8820_v14, 0.0 }
 0xd2f   : > { %v4623_v5 = vadd.f32 %v4622_v39, %v4621_v11 }
 0xd31   : > { %v4625_v0 = vadd.f32 %v4624_v54, %v4623_v5 }
 0xd33   : > { %v4627_v50 = vadd.f32 %v4626_v43, %v4625_v0 }
 0xd35   : > { %v4629_v44 = vadd.f32 %v4628_v32, %v4627_v50 }
 0xd37   : > { %v4630_v53 = vrot.slane %v4629_v44, 4 }
 0xd39   : > { %v4631_v31 = vadd.f32 %v4630_v53, %v4629_v44 }
 0xd3b   : > { %v4632_v21 = vrot.slane %v4631_v31, 2 }
 0xd3d   : > { %v4633_v56 = vadd.f32 %v4632_v21, %v4631_v31 }
 0xd3f   : > { %v4634_v24 = vrot.slane %v4633_v56, 1 }
 0xd41   : > { %v4635_v30 = vadd.f32 %v4634_v24, %v4633_v56 }
 0xd43   : > { %8821 = vrcp.f32 %v4635_v30 }
 0xd50   : > { %v8822_v37 = vpop.eup %8821 }
 0xd51   : > { %v4637_v62 = vmul.f32 %v8822_v37, %v8806_v1  ;;  %v4638_v34 = vmul.f32 %v8822_v37, %v8808_v28  ;;  %v4639_v60 = vmul.f32 %v8822_v37, %v8810_v58  ;;  %v4640_v23 = vmul.f32 %v8822_v37, %v8812_v35  ;;  %v11040_v1 = vpop.permute.xlu0 %5017  ;;  %v4901_v58 = vpop.f32.mrf.mxu0 }
 0xd52   : > { %v4641_v42 = vmul.f32 %v8822_v37, %v8814_v2  ;;  %v4642_v36 = vmul.f32 %v8822_v37, %v8816_v7  ;;  %v4643_v8 = vmul.f32 %v8822_v37, %v8818_v20  ;;  %v4644_v22 = vmul.f32 %v8822_v37, %v8820_v14 }
 0xd53   : > { %v4645_v55 = vpack.c.bf16 %v4638_v34, %v4637_v62  ;;  %v4646_v51 = vpack.c.bf16 %v4640_v23, %v4639_v60  ;;  %v8292_v47 = vpop.f32.mrf.mxu0  ;;  %v4902_v39 = vadd.f32 %v4901_v58, %v10393_v3  ;;  %v4910_v14 = vadd.f32 %v8291_v40, %v10391_v41 }
 0xd54   : > { %v4647_v4 = vpack.c.bf16 %v4642_v36, %v4641_v42  ;;  %v4648_v28 = vpack.c.bf16 %v4644_v22, %v4643_v8  ;;  %v4913_v20 = vadd.f32 %v8292_v47, %v10385_v29 }
 0xd55   : > { %8261 = vmatprep.mubr.msk.bf16.mxu1 %vm2397_vm10, %v4645_v55  ;;  %v4904_v35 = vpop.f32.mrf.mxu0 }
 0xd56   : > { %8262 = vmatmul.mubr.msk.bf16.vlgmr.msra.gmra.mxu1 %vm2397_vm10, %v4646_v51  ;;  %v4905_v63 = vadd.f32 %v4904_v35, %v10396_v26 }
 0xd57   : > { %8270 = vmatpush3.bf16.msra.mxu1 %v10909_v27  ;;  %8265 = vmatprep.mubr.msk.bf16.mxu1 %vm2397_vm10, %v4647_v4  ;;  %v8295_v57 = vpop.f32.mrf.mxu0 }
 0xd58   : > { %8271 = vmatprep.subr.bf16.mxu1 %v8886_v38  ;;  %v4926_v5 = vadd.f32 %v8295_v57, %v10387_v61  ;;  %v4933_v0 = vsel %vm2397_vm10, %v4905_v63, -inf  ;;  %v4934_v61 = vsel %vm2397_vm10, %v4910_v14, -inf }
 0xd59   : > { %v4917_v27 = vpop.f32.mrf.mxu0 }
 0xd5a   : > { %v4918_v7 = vadd.f32 %v4917_v27, %v10389_v6  ;;  %v4932_v6 = vsel %vm2397_vm10, %v4902_v39, -inf  ;;  %v4940_v3 = vsel %vm2397_vm10, %v4926_v5, -inf }
 0xd5b   : > { %8272 = vmatpush3.bf16.msra.mxu1 %v8886_v38  ;;  %v8296_v25 = vpop.f32.mrf.mxu0  ;;  %v4941_v32 = vmax.f32 %v4934_v61, %v4940_v3  ;;  %v11077_v61 = vpop.f32.mrf.mxu1 }
 0xd5c   : > { %8297 = vmatprep.subr.bf16.mxu1 %v11040_v1  ;;  %v4929_v11 = vadd.f32 %v8296_v25, %v10398_v12  ;;  %v4935_v12 = vsel %vm2397_vm10, %v4913_v20, -inf }
 0xd5d   : > { %v4920_v2 = vpop.f32.mrf.mxu0 }
 0xd5e   : > { %8266 = vmatmul.mubr.msk.bf16.gmra.mxu1 %vm2397_vm10, %v4648_v28  ;;  %v4921_v9 = vadd.f32 %v4920_v2, %v10402_v59  ;;  %v4936_v59 = vsel %vm2397_vm10, %v4918_v7, -inf  ;;  %v4942_v26 = vsel %vm2397_vm10, %v4929_v11, -inf }
 0xd5f   : > { %v4937_v29 = vmax.f32 %v4932_v6, %v4936_v59  ;;  %v4943_v50 = vmax.f32 %v4935_v12, %v4942_v26 }
 0xd60   : > { %v4938_v54 = vsel %vm2397_vm10, %v4921_v9, -inf }
 0xd61   : > { %v4939_v43 = vmax.f32 %v4933_v0, %v4938_v54  ;;  %v4945_v41 = vmax.f32 %v4941_v32, %v4943_v50 }
 0xd63   : > { %v4944_v44 = vmax.f32 %v4937_v29, %v4939_v43 }
 0xd65   : > { %v4946_v53 = vmax.f32 %v4944_v44, %v4945_v41  ;;  %v11079_v44 = vpop.f32.mrf.mxu1 }
 0xd67   : > { %v4947_v31 = vrot.slane %v4946_v53, 4 }
 0xd69   : > { %v4948_v21 = vmax.f32 %v4946_v53, %v4947_v31  ;;  %v11081_v53 = vpop.f32.mrf.mxu1 }
 0xd6b   : > { %v4949_v56 = vrot.slane %v4948_v21, 2 }
 0xd6d   : > { %v4950_v24 = vmax.f32 %v4948_v21, %v4949_v56  ;;  %v11083_v21 = vpop.f32.mrf.mxu1 }
 0xd6f   : > { %v4951_v30 = vrot.slane %v4950_v24, 1 }
 0xd71   : > { %v4952_v37 = vmax.f32 %v4950_v24, %v4951_v30  ;;  %v11085_v24 = vpop.f32.mrf.mxu1 }
 0xd73   : > { %v4953_v62 = vsub.f32 %v4902_v39, %v4952_v37  ;;  %v4954_v34 = vsub.f32 %v4905_v63, %v4952_v37  ;;  %v4955_v42 = vsub.f32 %v4910_v14, %v4952_v37  ;;  %v4956_v36 = vsub.f32 %v4913_v20, %v4952_v37 }
 0xd74   : > { %v4957_v51 = vsub.f32 %v4918_v7, %v4952_v37  ;;  %v4958_v38 = vsub.f32 %v4921_v9, %v4952_v37  ;;  %v4959_v40 = vsub.f32 %v4926_v5, %v4952_v37  ;;  %v4960_v57 = vsub.f32 %v4929_v11, %v4952_v37  ;;  %v11087_v37 = vpop.f32.mrf.mxu1 }
 0xd75   : > { %v4961_v60 = vmul.f32 1.442695, %v4953_v62  ;;  %v4963_v23 = vmul.f32 1.442695, %v4954_v34  ;;  %v4965_v55 = vmul.f32 1.442695, %v4955_v42 }
 0xd76   : > { %v4967_v4 = vmul.f32 1.442695, %v4956_v36  ;;  %v4969_v8 = vmul.f32 1.442695, %v4957_v51  ;;  %v4971_v58 = vmul.f32 1.442695, %v4958_v38  ;;  %v11089_v34 = vpop.f32.mrf.mxu1 }
 0xd77   : > { %8823 = vpow2.f32 %v4961_v60  ;;  %v4973_v27 = vmul.f32 1.442695, %v4959_v40  ;;  %v4975_v63 = vmul.f32 1.442695, %v4960_v57 }
 0xd78   : > { %8825 = vpow2.f32 %v4963_v23  ;;  %v11091_v60 = vpop.f32.mrf.mxu1 }
 0xd79   : > { %8827 = vpow2.f32 %v4965_v55 }
 0xd7a   : > { %8829 = vpow2.f32 %v4967_v4 }
 0xd7b   : > { %8831 = vpow2.f32 %v4969_v8 }
 0xd7c   : > { %8833 = vpow2.f32 %v4971_v58  ;;  %v5016_v58 = vpop.permute.xlu1 %5015 }
 0xd7d   : > { %8835 = vpow2.f32 %v4973_v27 }
 0xd7e   : > { %8837 = vpow2.f32 %v4975_v63 }
 0xd84   : > { %v8824_v22 = vpop.eup %8823 }
 0xd85   : > { %v8826_v28 = vpop.eup %8825  ;;  %v4977_v47 = vsel %vm2397_vm10, %v8824_v22, 0.0 }
 0xd86   : > { %v4978_v35 = vsel %vm2397_vm10, %v8826_v28, 0.0  ;;  %v11062_v25 = vpop.eup %8827 }
 0xd87   : > { %v4979_v2 = vadd.f32 %v4978_v35, %v4977_v47  ;;  %v4980_v9 = vsel %vm2397_vm10, %v11062_v25, 0.0  ;;  %v11066_v7 = vpop.eup %8829 }
 0xd88   : > { %v4982_v20 = vsel %vm2397_vm10, %v11066_v7, 0.0  ;;  %v8832_v5 = vpop.eup %8831 }
 0xd89   : > { %v4981_v39 = vadd.f32 %v4980_v9, %v4979_v2  ;;  %v4984_v11 = vsel %vm2397_vm10, %v8832_v5, 0.0  ;;  %v8834_v14 = vpop.eup %8833  ;;  %v5014_v2 = vpop.permute.xlu0 %5013 }
 0xd8a   : > { %v4986_v59 = vsel %vm2397_vm10, %v8834_v14, 0.0  ;;  %v11072_v26 = vpop.eup %8835 }
 0xd8b   : > { %v4983_v54 = vadd.f32 %v4982_v20, %v4981_v39  ;;  %v4988_v6 = vsel %vm2397_vm10, %v11072_v26, 0.0  ;;  %v8838_v12 = vpop.eup %8837  ;;  %v5012_v20 = vpop.permute.xlu1 %5011 }
 0xd8c   : > { %v4990_v29 = vsel %vm2397_vm10, %v8838_v12, 0.0 }
 0xd8d   : > { %v4985_v0 = vadd.f32 %v4984_v11, %v4983_v54 }
 0xd8f   : > { %v4987_v43 = vadd.f32 %v4986_v59, %v4985_v0  ;;  %v8887_v0 = vld [vmem:[%s9670_s27 + $0x38] sm:$0xff]  }
 0xd91   : > { %v4989_v3 = vadd.f32 %v4988_v6, %v4987_v43 }
 0xd93   : > { %v4991_v50 = vadd.f32 %v4990_v29, %v4989_v3  ;;  %v8888_v3 = vld [vmem:[%s9670_s27 + $0x30] sm:$0xff]   ;;  %s11840_s27 = smov %s11833_s12 }
 0xd95   : > { %v4992_v32 = vrot.slane %v4991_v50, 4 }
 0xd97   : > { %v4993_v41 = vadd.f32 %v4992_v32, %v4991_v50  ;;  %v4446_v32 = vadd.f32 %v11081_v53, %v10999_v49  ;;  %v4462_v49 = vadd.f32 %v11089_v34, %v11007_v48 }
 0xd99   : > { %v4994_v31 = vrot.slane %v4993_v41, 2 }
 0xd9b   : > { %v4995_v56 = vadd.f32 %v4994_v31, %v4993_v41  ;;  %v4438_v41 = vadd.f32 %v11083_v21, %v11001_v18  ;;  %v4454_v18 = vadd.f32 %v11091_v60, %v11009_v13  ;;  %v5231_v13 = vpop.xlane.xlu0 %5230 }
 0xd9d   : > { %v4996_v30 = vrot.slane %v4995_v56, 1 }
 0xd9f   : > { %v4997_v62 = vadd.f32 %v4996_v30, %v4995_v56  ;;  %v4459_v30 = vadd.f32 %v11085_v24, %v11003_v17 }
 0xda1   : > { %8839 = vrcp.f32 %v4997_v62 }
 0xdae   : > { %v8840_v8 = vpop.eup %8839 }
 0xdaf   : > { %v4999_v35 = vmul.f32 %v8840_v8, %v8824_v22  ;;  %v5000_v57 = vmul.f32 %v8840_v8, %v8826_v28  ;;  %v5002_v22 = vmul.f32 %v8840_v8, %v11066_v7  ;;  %v5003_v28 = vmul.f32 %v8840_v8, %v8832_v5 }
 0xdb0   : > { %v5004_v54 = vmul.f32 %v8840_v8, %v8834_v14  ;;  %v5005_v43 = vmul.f32 %v8840_v8, %v11072_v26  ;;  %v5006_v6 = vmul.f32 %v8840_v8, %v8838_v12  ;;  %v4443_v7 = vadd.f32 %v11077_v61, %v10995_v16 }
 0xdb1   : > { %v5007_v39 = vpack.c.bf16 %v5000_v57, %v4999_v35  ;;  %v4435_v14 = vadd.f32 %v11079_v44, %v10997_v46  ;;  %v4451_v46 = vadd.f32 %v11087_v37, %v11005_v15 }
 0xdb2   : > { %v5009_v59 = vpack.c.bf16 %v5004_v54, %v5003_v28  ;;  %v8891_v28 = vld [vmem:[%s11840_s27] ss:$0 sm:$0xff] }
 0xe16   : > { %v8263_v23 = vpop.f32.mrf.mxu1 }
 0xe18   : > { %v4707_v42 = vpop.f32.mrf.mxu1 }
 0xe1a   : > { %v8264_v36 = vpop.f32.mrf.mxu1 }
 0xe1b   : > { %v4739_v4 = vpack.c.bf16 %v8264_v36, %v8263_v23 }
 0xe1c   : > { %v4710_v55 = vpop.f32.mrf.mxu1 }
 0xe1d   : > { %v4738_v51 = vpack.c.bf16 %v4710_v55, %v4707_v42 }
 0xe1e   : > { %v8267_v38 = vpop.f32.mrf.mxu1 }
 0xe1f   : > { %8273 = vmatprep.mubr.msk.bf16.mxu1 %vm2307_vm2, %v4738_v51 }
 0xe20   : > { %v4723_v40 = vpop.f32.mrf.mxu1  ;;  %8274 = vmatmul.mubr.msk.bf16.vlgmr.msra.gmra.mxu1 %vm2307_vm2, %v4739_v4 }
 0xe21   : > { %8298 = vmatpush3.bf16.msra.mxu1 %v11040_v1  ;;  %v5001_v1 = vmul.f32 %v8840_v8, %v11062_v25  ;;  %v5010_v25 = vpack.c.bf16 %v5006_v6, %v5005_v43  ;;  %v8893_v43 = vld [vmem:[#allocation2 + $0x38] sm:$0xff] }
 0xe22   : > { %8299 = vmatprep.subr.bf16.mxu1 %v5016_v58  ;;  %v8268_v47 = vpop.f32.mrf.mxu1 }
 0xe23   : > { %v4741_v9 = vpack.c.bf16 %v8268_v47, %v8267_v38  ;;  %v5008_v11 = vpack.c.bf16 %v5002_v22, %v5001_v1 }
 0xe24   : > { %v4726_v27 = vpop.f32.mrf.mxu1 }
 0xe25   : > { %v4740_v63 = vpack.c.bf16 %v4726_v27, %v4723_v40  ;;  %8300 = vmatpush3.bf16.msra.mxu1 %v5016_v58  ;;  %v8889_v27 = vld [vmem:[#allocation2 + $0x40] sm:$0xff] }
 0xe26   : > { %8301 = vmatprep.subr.bf16.mxu1 %v5014_v2 }
 0xe27   : > { %8277 = vmatprep.mubr.msk.bf16.mxu1 %vm2307_vm2, %v4740_v63  ;;  %v5235_v63 = vpop.xlane.xlu0 %5234 }
 0xe28   : > { %8278 = vmatmul.mubr.msk.bf16.gmra.mxu1 %vm2307_vm2, %v4741_v9 }
 0xe29   : > { %8302 = vmatpush3.bf16.msra.mxu1 %v5014_v2  ;;  %8305 = vmatprep.mubr.msk.bf16.mxu1 %vm2397_vm10, %v5007_v39 }
 0xe2a   : > { %8303 = vmatprep.subr.bf16.mxu1 %v5012_v20 }
 0xe2d   : > { %8304 = vmatpush3.bf16.msra.mxu1 %v5012_v20  ;;  %v8890_v20 = vld [vmem:[#allocation2 + $0x10] sm:$0xff] }
 0xe2e   : > { %8313 = vmatprep.subr.bf16.mxu1 %v8887_v0 }
 0xe30   : > { %8306 = vmatmul.mubr.msk.bf16.vlgmr.msra.gmra.mxu1 %vm2397_vm10, %v5008_v11 }
 0xe31   : > { %8309 = vmatprep.mubr.msk.bf16.mxu1 %vm2397_vm10, %v5009_v59  ;;  %8314 = vmatpush3.bf16.msra.mxu1 %v8887_v0  ;;  %v8892_v0 = vld [vmem:[#allocation2 + $0x20] sm:$0xff] }
 0xe32   : > { %8315 = vmatprep.subr.bf16.mxu1 %v8888_v3 }
 0xe35   : > { %8316 = vmatpush3.bf16.msra.mxu1 %v8888_v3 }
 0xe38   : > { %8310 = vmatmul.mubr.msk.bf16.gmra.mxu1 %vm2397_vm10, %v5010_v25 }
 0xee0   : > { %v8275_v5 = vpop.f32.mrf.mxu1 }
 0xee1   : > { %v4821_v29 = vadd.f32 %v8275_v5, %v4443_v7 }
 0xee2   : > { %v4788_v50 = vpop.f32.mrf.mxu1 }
 0xee3   : > { %v4819_v26 = vadd.f32 %v4788_v50, %v4435_v14 }
 0xee4   : > { %v8276_v12 = vpop.f32.mrf.mxu1 }
 0xee5   : > { %v4822_v31 = vadd.f32 %v8276_v12, %v4446_v32  ;;  %v8894_v32 = vld [vmem:[#allocation2 + $0x60] sm:$0xff]  ;;  %v5262_v12 = vmul.f32 0.0078125, %v5231_v13 }
 0xee6   : > { %v4791_v56 = vpop.f32.mrf.mxu1 }
 0xee7   : > { %v4820_v16 = vadd.f32 %v4791_v56, %v4438_v41  ;;  %v5233_v56 = vpop.xlane.xlu1 %5232 }
 0xee8   : > { %v8279_v61 = vpop.f32.mrf.mxu1 }
 0xee9   : > { %v4825_v44 = vadd.f32 %v8279_v61, %v4459_v30  ;;  %v8895_v30 = vld [vmem:[#allocation2 + $0x78] sm:$0xff] }
 0xeea   : > { %v4804_v62 = vpop.f32.mrf.mxu1 }
 0xeeb   : > { %v4823_v53 = vadd.f32 %v4804_v62, %v4451_v46  ;;  %v8896_v62 = vld [vmem:[#allocation2 + $0x70] sm:$0xff] }
 0xeec   : > { %v8280_v23 = vpop.f32.mrf.mxu1 }
 0xeed   : > { %v4826_v21 = vadd.f32 %v8280_v23, %v4462_v49  ;;  %v5263_v23 = vmul.f32 0.0078125, %v5233_v56  ;;  %v8600_v56 = vld [vmem:[%s9678_s14 + $0xa8] ss:$16 sps:$4 sm:$0xff]  }
 0xeee   : > { %v4807_v42 = vpop.f32.mrf.mxu1 }
 0xeef   : > { %v4824_v36 = vadd.f32 %v4807_v42, %v4454_v18  ;;  %v5264_v42 = vmul.f32 0.0078125, %v5235_v63 }
 0xef0   : > { %v8307_v55 = vpop.f32.mrf.mxu1 }
 0xef2   : > { %v5069_v17 = vpop.f32.mrf.mxu1 }
 0xef4   : > { %v8308_v24 = vpop.f32.mrf.mxu1 }
 0xef5   : > { %v5101_v38 = vpack.c.bf16 %v8308_v24, %v8307_v55  ;;  %v8897_v55 = vld [vmem:[#allocation2 + $0x28] sm:$0xff] }
 0xef6   : > { %v5072_v51 = vpop.f32.mrf.mxu1 }
 0xef7   : > { %v5100_v4 = vpack.c.bf16 %v5072_v51, %v5069_v17 }
 0xef8   : > { %v8311_v15 = vpop.f32.mrf.mxu1 }
 0xef9   : > { %8317 = vmatprep.mubr.msk.bf16.mxu1 %vm2307_vm2, %v5100_v4  ;;  %v5241_v4 = vpop.xlane.xlu1 %5240 }
 0xefa   : > { %v5085_v37 = vpop.f32.mrf.mxu1  ;;  %8318 = vmatmul.mubr.msk.bf16.vlgmr.msra.gmra.mxu1 %vm2307_vm2, %v5101_v38  ;;  %v11158_v38 = vsub.f32 %v10875_v19, %v5264_v42  ;;  %v5267_v13 = vmul.f32 0.0078125, %v5241_v4  ;;  %v8615_v42 = vld [vmem:[%s9678_s14 + $0x40] ss:$16 sps:$4 sm:$0xff]   ;;  %v8623_v4 = vld [vmem:[%s9678_s14 + $0x24] ss:$16 sps:$4 sm:$0xff]  }
 0xefc   : > { %v8312_v48 = vpop.f32.mrf.mxu1 }
 0xefd   : > { %v5103_v40 = vpack.c.bf16 %v8312_v48, %v8311_v15 }
 0xefe   : > { %v5088_v34 = vpop.f32.mrf.mxu1 }
 0xeff   : > { %v5102_v8 = vpack.c.bf16 %v5088_v34, %v5085_v37 }
 0xf01   : > { %8321 = vmatprep.mubr.msk.bf16.mxu1 %vm2307_vm2, %v5102_v8 }
 0xf02   : > { %8322 = vmatmul.mubr.msk.bf16.gmra.mxu1 %vm2307_vm2, %v5103_v40 }
 0xf03   : > { %5817 = vmatprep.mubr.bf16.mxu1 %v11839_v52 }
 0xfba   : > { %v8319_v60 = vpop.f32.mrf.mxu1 }
 0xfbb   : > { %v5183_v47 = vadd.f32 %v8319_v60, %v4821_v29  ;;  %v5237_v29 = vpop.xlane.xlu0 %5236  ;;  %v11841_v60 = vld [vmem:[#allocation28_spill] sm:$0xff] }
 0xfbc   : > { %v5150_v58 = vpop.f32.mrf.mxu1  ;;  %v5265_v51 = vmul.f32 0.0078125, %v5237_v29  ;;  %v8596_v29 = vld [vmem:[%s9678_s14 + $0xcc] ss:$16 sps:$4 sm:$0xff]  }
 0xfbd   : > { %v5181_v35 = vadd.f32 %v5150_v58, %v4819_v26  ;;  %v5199_v1 = vadd.f32 %v8890_v20, %v5183_v47 }
 0xfbe   : > { %v8320_v57 = vpop.f32.mrf.mxu1  ;;  %v11166_v8 = vsub.f32 %v10884_v10, %v5265_v51  ;;  %v8620_v51 = vld [vmem:[%s9678_s14 + $0x4c] ss:$16 sps:$4 sm:$0xff]  }
 0xfbf   : > { %v5197_v2 = vadd.f32 %v8889_v27, %v5181_v35  ;;  %v5184_v9 = vadd.f32 %v8320_v57, %v4822_v31  ;;  %v11133_v5 = vadd.f32 %v8891_v28, %v5199_v1  ;;  %v5239_v18 = vpop.xlane.xlu0 %5238  ;;  %v5296_v35 = vmul.f32 %v11158_v38, %v11158_v38  ;;  %v5245_v57 = vpop.xlane.xlu1 %5244 }
 0xfc0   : > { %v5153_v39 = vpop.f32.mrf.mxu1  ;;  %v5266_v15 = vmul.f32 0.0078125, %v5239_v18  ;;  %v5297_v27 = vmul.f32 %v11166_v8, %v11166_v8  ;;  %v8612_v18 = vld [vmem:[%s9678_s14 + $0x68] ss:$16 sps:$4 sm:$0xff]  }
 0xfc1   : > { %v5182_v22 = vadd.f32 %v5153_v39, %v4820_v16  ;;  %v11130_v54 = vadd.f32 %v8891_v28, %v5197_v2  ;;  %v5200_v6 = vadd.f32 %v8893_v43, %v5184_v9  ;;  %v11842_v2 = vld [vmem:[#allocation29_spill] sm:$0xff]  ;;  %v5269_v9 = vmul.f32 0.0078125, %v5245_v57  ;;  %v11843_v39 = vld [vmem:[#allocation30_spill] sm:$0xff] }
 0xfc2   : > { %v8323_v11 = vpop.f32.mrf.mxu1  ;;  %v11171_v58 = vsub.f32 %v11841_v60, %v5266_v15  ;;  %v11178_v63 = vsub.f32 %v11842_v2, %v5267_v13  ;;  %v8626_v15 = vld [vmem:[%s9678_s14 + $0x2c] ss:$16 sps:$4 sm:$0xff]  }
 0xfc3   : > { %v5198_v59 = vadd.f32 %v8892_v0, %v5182_v22  ;;  %5246 = vadd.xlane.f32.xlu0 %v11130_v54  ;;  %v5187_v25 = vadd.f32 %v8323_v11, %v4825_v44  ;;  %v11139_v31 = vadd.f32 %v8891_v28, %v5200_v6  ;;  %v5243_v34 = vpop.xlane.xlu0 %5242  ;;  %v8585_v22 = vld [vmem:[%s9678_s14 + $0xe0] ss:$16 sps:$4 sm:$0xff]   ;;  %v8588_v11 = vld [vmem:[%s9678_s14 + $0xe8] ss:$16 sps:$4 sm:$0xff]   ;;  %v8590_v0 = vld [vmem:[%s9678_s14 + $0xec] ss:$16 sps:$4 sm:$0xff]  }
 0xfc4   : > { %v5166_v3 = vpop.f32.mrf.mxu1  ;;  %v5268_v47 = vmul.f32 0.0078125, %v5243_v34  ;;  %v5298_v1 = vmul.f32 %v11171_v58, %v11171_v58  ;;  %v5299_v6 = vmul.f32 %v11178_v63, %v11178_v63  ;;  %5785 = vmatprep.subr.bf16.mxu1 %v8590_v0  ;;  %v8624_v34 = vld [vmem:[%s9678_s14 + $0x28] ss:$16 sps:$4 sm:$0xff]   ;;  %v8632_v13 = vld [vmem:[%s9678_s14 + $0xc] ss:$16 sps:$4 sm:$0xff]  }
 0xfc5   : > { %v5185_v7 = vadd.f32 %v5166_v3, %v4823_v53  ;;  %v11135_v14 = vadd.f32 %v8891_v28, %v5198_v59  ;;  %v5203_v16 = vadd.f32 %v8895_v30, %v5187_v25  ;;  %v11146_v53 = vsub.f32 %v10867_v33, %v5262_v12  ;;  %v11844_v59 = vld [vmem:[#allocation31_spill] sm:$0xff]  ;;  %5786 = vmatpush1.bf16.msra.mxu1 %v8588_v11  ;;  %v8605_v30 = vld [vmem:[%s9678_s14 + $0x84] ss:$16 sps:$4 sm:$0xff]  }
 0xfc6   : > { %v8324_v50 = vpop.f32.mrf.mxu1  ;;  %v11181_v20 = vsub.f32 %v11843_v39, %v5268_v47  ;;  %v11190_v43 = vsub.f32 %v11844_v59, %v5269_v9  ;;  %5787 = vmatprep.subr.bf16.mxu1 %v8596_v29  ;;  %v8602_v12 = vld [vmem:[%s9678_s14 + $0xac] ss:$16 sps:$4 sm:$0xff]   ;;  %v8627_v47 = vld [vmem:[%s9678_s14] ss:$16 sps:$4 sm:$0xff]  }
 0xfc7   : > { %v5201_v26 = vadd.f32 %v8894_v32, %v5185_v7  ;;  %5250 = vadd.xlane.f32.xlu0 %v11133_v5  ;;  %5248 = vadd.xlane.f32.xlu1 %v11135_v14  ;;  %v5188_v61 = vadd.f32 %v8324_v50, %v4826_v21  ;;  %v11148_v24 = vadd.f32 %v8891_v28, %v5203_v16  ;;  %v8593_v7 = vld [vmem:[%s9678_s14 + $0xc4] ss:$16 sps:$4 sm:$0xff]   ;;  %v8591_v50 = vld [vmem:[%s9678_s14 + $0xc0] ss:$16 sps:$4 sm:$0xff]   ;;  %v8594_v32 = vld [vmem:[%s9678_s14 + $0xc8] ss:$16 sps:$4 sm:$0xff]  }
 0xfc8   : > { %v5169_v41 = vpop.f32.mrf.mxu1  ;;  %v5294_v48 = vmul.f32 %v11146_v53, %v11146_v53  ;;  %v5300_v3 = vmul.f32 %v11181_v20, %v11181_v20  ;;  %v5301_v25 = vmul.f32 %v11190_v43, %v11190_v43  ;;  %v8608_v16 = vld [vmem:[%s9678_s14 + $0x8c] ss:$16 sps:$4 sm:$0xff]  }
 0xfc9   : > { %v5186_v46 = vadd.f32 %v5169_v41, %v4824_v36  ;;  %v11141_v44 = vadd.f32 %v8891_v28, %v5201_v26  ;;  %v5204_v17 = vadd.f32 %v8897_v55, %v5188_v61  ;;  %v11155_v36 = vsub.f32 %v10877_v45, %v5263_v23  ;;  %5788 = vmatpush1.bf16.msra.mxu1 %v8594_v32  ;;  %v8599_v26 = vld [vmem:[%s9678_s14 + $0xa4] ss:$16 sps:$4 sm:$0xff]   ;;  %v8597_v41 = vld [vmem:[%s9678_s14 + $0xa0] ss:$16 sps:$4 sm:$0xff]  }
 0xfca   : > { %5789 = vmatprep.subr.bf16.mxu1 %v8602_v12  ;;  %v8603_v61 = vld [vmem:[%s9678_s14 + $0x80] ss:$16 sps:$4 sm:$0xff]   ;;  %v8617_v55 = vld [vmem:[%s9678_s14 + $0x44] ss:$16 sps:$4 sm:$0xff]  }
 0xfcb   : > { %v5202_v49 = vadd.f32 %v8896_v62, %v5186_v46  ;;  %5252 = vadd.xlane.f32.xlu1 %v11139_v31  ;;  %5254 = vadd.xlane.f32.xlu0 %v11141_v44  ;;  %v11160_v37 = vadd.f32 %v8891_v28, %v5204_v17  ;;  %v5295_v40 = vmul.f32 %v11155_v36, %v11155_v36  ;;  %v8606_v46 = vld [vmem:[%s9678_s14 + $0x88] ss:$16 sps:$4 sm:$0xff]   ;;  %v8611_v62 = vld [vmem:[%s9678_s14 + $0x64] ss:$16 sps:$4 sm:$0xff]   ;;  %v8609_v23 = vld [vmem:[%s9678_s14 + $0x60] ss:$16 sps:$4 sm:$0xff]  }
 0xfcc   : > { %v8618_v17 = vld [vmem:[%s9678_s14 + $0x48] ss:$16 sps:$4 sm:$0xff]  }
 0xfcd   : > { %v11150_v21 = vadd.f32 %v8891_v28, %v5202_v49  ;;  %v8587_v28 = vld [vmem:[%s9678_s14 + $0xe4] ss:$16 sps:$4 sm:$0xff]   ;;  %5790 = vmatpush1.bf16.msra.mxu1 %v8600_v56  ;;  %v8614_v49 = vld [vmem:[%s9678_s14 + $0x6c] ss:$16 sps:$4 sm:$0xff]  }
 0xfce   : > { %5672 = vmatprep.subr.bf16.mxu0 %v8587_v28  ;;  %5791 = vmatprep.subr.bf16.mxu1 %v8608_v16 }
 0xfcf   : > { %5258 = vadd.xlane.f32.xlu0 %v11148_v24  ;;  %5256 = vadd.xlane.f32.xlu1 %v11150_v21 }
 0xfd0   : > { %5673 = vmatpush1.bf16.msra.mxu0 %v8585_v22 }
 0xfd1   : > { %5674 = vmatprep.subr.bf16.mxu0 %v8593_v7  ;;  %5792 = vmatpush1.bf16.msra.mxu1 %v8606_v46 }
 0xfd2   : > { %5793 = vmatprep.subr.bf16.mxu1 %v8614_v49 }
 0xfd3   : > { %5260 = vadd.xlane.f32.xlu1 %v11160_v37  ;;  %5310 = vadd.xlane.f32.xlu0 %v5294_v48  ;;  %v8621_v48 = vld [vmem:[%s9678_s14 + $0x20] ss:$16 sps:$4 sm:$0xff]  }
 0xfd4   : > { %5675 = vmatpush1.bf16.msra.mxu0 %v8591_v50 }
 0xfd5   : > { %5676 = vmatprep.subr.bf16.mxu0 %v8599_v26  ;;  %5794 = vmatpush1.bf16.msra.mxu1 %v8612_v18 }
 0xfd6   : > { %5795 = vmatprep.subr.bf16.mxu1 %v8620_v51 }
 0xfd7   : > { %5312 = vadd.xlane.f32.xlu1 %v5295_v40  ;;  %5314 = vadd.xlane.f32.xlu0 %v5296_v35  ;;  %v8629_v40 = vld [vmem:[%s9678_s14 + $0x4] ss:$16 sps:$4 sm:$0xff]   ;;  %v8630_v35 = vld [vmem:[%s9678_s14 + $0x8] ss:$16 sps:$4 sm:$0xff]  }
 0xfd8   : > { %5677 = vmatpush1.bf16.msra.mxu0 %v8597_v41 }
 0xfd9   : > { %5678 = vmatprep.subr.bf16.mxu0 %v8605_v30  ;;  %5796 = vmatpush1.bf16.msra.mxu1 %v8618_v17 }
 0xfda   : > { %5797 = vmatprep.subr.bf16.mxu1 %v8626_v15 }
 0xfdb   : > { %5316 = vadd.xlane.f32.xlu1 %v5297_v27  ;;  %5318 = vadd.xlane.f32.xlu0 %v5298_v1 }
 0xfdc   : > { %5679 = vmatpush1.bf16.msra.mxu0 %v8603_v61 }
 0xfdd   : > { %5680 = vmatprep.subr.bf16.mxu0 %v8611_v62  ;;  %5798 = vmatpush1.bf16.msra.mxu1 %v8624_v34 }
 0xfde   : > { %5799 = vmatprep.subr.bf16.mxu1 %v8632_v13 }
 0xfdf   : > { %5320 = vadd.xlane.f32.xlu1 %v5299_v6  ;;  %5322 = vadd.xlane.f32.xlu0 %v5300_v3 }
 0xfe0   : > { %5681 = vmatpush1.bf16.msra.mxu0 %v8609_v23 }
 0xfe1   : > { %5682 = vmatprep.subr.bf16.mxu0 %v8617_v55  ;;  %5800 = vmatpush1.bf16.msra.mxu1 %v8630_v35 }
 0xfe3   : > { %5324 = vadd.xlane.f32.xlu1 %v5301_v25 }
 0xfe4   : > { %5683 = vmatpush1.bf16.msra.mxu0 %v8615_v42 }
 0xfe5   : > { %5684 = vmatprep.subr.bf16.mxu0 %v8623_v4 }
 0xfe8   : > { %5685 = vmatpush1.bf16.msra.mxu0 %v8621_v48 }
 0xfe9   : > { %5686 = vmatprep.subr.bf16.mxu0 %v8629_v40 }
 0xfec   : > { %5687 = vmatpush1.bf16.msra.mxu0 %v8627_v47 }
0x104c   : > { %v5247_v57 = vpop.xlane.xlu0 %5246 }
0x104d   : > { %v5270_v27 = vmul.f32 0.0078125, %v5247_v57 }
0x104f   : > { %v11227_v9 = vsub.f32 %v11130_v54, %v5270_v27 }
0x1050   : > { %v5249_v1 = vpop.xlane.xlu1 %5248  ;;  %v5251_v22 = vpop.xlane.xlu0 %5250 }
0x1051   : > { %v5271_v28 = vmul.f32 0.0078125, %v5249_v1  ;;  %v5272_v11 = vmul.f32 0.0078125, %v5251_v22  ;;  %v5302_v0 = vmul.f32 %v11227_v9, %v11227_v9 }
0x1053   : > { %v11232_v6 = vsub.f32 %v11135_v14, %v5271_v28  ;;  %v11235_v3 = vsub.f32 %v11133_v5, %v5272_v11  ;;  %5326 = vadd.xlane.f32.xlu0 %v5302_v0 }
0x1054   : > { %v5253_v25 = vpop.xlane.xlu1 %5252  ;;  %v5255_v7 = vpop.xlane.xlu0 %5254 }
0x1055   : > { %v5273_v29 = vmul.f32 0.0078125, %v5253_v25  ;;  %v5274_v50 = vmul.f32 0.0078125, %v5255_v7  ;;  %v5303_v32 = vmul.f32 %v11232_v6, %v11232_v6  ;;  %v5304_v26 = vmul.f32 %v11235_v3, %v11235_v3 }
0x1057   : > { %v11242_v12 = vsub.f32 %v11139_v31, %v5273_v29  ;;  %v11245_v41 = vsub.f32 %v11141_v44, %v5274_v50  ;;  %5328 = vadd.xlane.f32.xlu1 %v5303_v32  ;;  %5330 = vadd.xlane.f32.xlu0 %v5304_v26 }
0x1058   : > { %v5257_v56 = vpop.xlane.xlu1 %5256  ;;  %v5259_v30 = vpop.xlane.xlu0 %5258 }
0x1059   : > { %v5275_v16 = vmul.f32 0.0078125, %v5257_v56  ;;  %v5276_v61 = vmul.f32 0.0078125, %v5259_v30  ;;  %v5305_v46 = vmul.f32 %v11242_v12, %v11242_v12  ;;  %v5306_v62 = vmul.f32 %v11245_v41, %v11245_v41 }
0x105b   : > { %v11252_v49 = vsub.f32 %v11150_v21, %v5275_v16  ;;  %v11255_v23 = vsub.f32 %v11148_v24, %v5276_v61  ;;  %5332 = vadd.xlane.f32.xlu1 %v5305_v46  ;;  %5334 = vadd.xlane.f32.xlu0 %v5306_v62  ;;  %v11272_v46 = vld [vmem:[%s864_s23] ss:$0 sm:$0xff]  ;;  %s11851_s23 = sld [smem:[#allocation41_spill]] (!%p7433_p10) }
0x105c   : > { %v5261_v18 = vpop.xlane.xlu1 %5260  ;;  %v5311_v42 = vpop.xlane.xlu0 %5310 }
0x105d   : > { %v5277_v55 = vmul.f32 0.0078125, %v5261_v18  ;;  %v5342_v17 = vmul.f32 0.0078125, %v5311_v42  ;;  %v5307_v51 = vmul.f32 %v11252_v49, %v11252_v49  ;;  %v5308_v4 = vmul.f32 %v11255_v23, %v11255_v23 }
0x105f   : > { %v11262_v15 = vsub.f32 %v11160_v37, %v5277_v55  ;;  %v5358_v48 = vadd.f32 1e-05, %v5342_v17  ;;  %5336 = vadd.xlane.f32.xlu1 %v5307_v51  ;;  %5338 = vadd.xlane.f32.xlu0 %v5308_v4 }
0x1060   : > { %v5313_v34 = vpop.xlane.xlu1 %5312  ;;  %v5315_v40 = vpop.xlane.xlu0 %5314 }
0x1061   : > { %8841 = vrsqrt.f32 %v5358_v48  ;;  %v5343_v13 = vmul.f32 0.0078125, %v5313_v34  ;;  %v5344_v47 = vmul.f32 0.0078125, %v5315_v40  ;;  %v5309_v35 = vmul.f32 %v11262_v15, %v11262_v15 }
0x1063   : > { %v5359_v57 = vadd.f32 1e-05, %v5343_v13  ;;  %v5360_v27 = vadd.f32 1e-05, %v5344_v47  ;;  %5340 = vadd.xlane.f32.xlu1 %v5309_v35 }
0x1064   : > { %v5317_v1 = vpop.xlane.xlu1 %5316  ;;  %v5319_v22 = vpop.xlane.xlu0 %5318 }
0x1065   : > { %8843 = vrsqrt.f32 %v5359_v57  ;;  %v5345_v28 = vmul.f32 0.0078125, %v5317_v1  ;;  %v5346_v0 = vmul.f32 0.0078125, %v5319_v22 }
0x1066   : > { %8845 = vrsqrt.f32 %v5360_v27 }
0x1067   : > { %v5361_v11 = vadd.f32 1e-05, %v5345_v28  ;;  %v5362_v29 = vadd.f32 1e-05, %v5346_v0 }
0x1068   : > { %v5321_v25 = vpop.xlane.xlu1 %5320  ;;  %v5323_v32 = vpop.xlane.xlu0 %5322 }
0x1069   : > { %8847 = vrsqrt.f32 %v5361_v11  ;;  %v5347_v7 = vmul.f32 0.0078125, %v5321_v25  ;;  %v5348_v16 = vmul.f32 0.0078125, %v5323_v32 }
0x106b   : > { %v5363_v50 = vadd.f32 1e-05, %v5347_v7  ;;  %v5364_v42 = vadd.f32 1e-05, %v5348_v16 }
0x106c   : > { %v5325_v26 = vpop.xlane.xlu1 %5324 }
0x106d   : > { %8849 = vrsqrt.f32 %v5363_v50  ;;  %v5349_v56 = vmul.f32 0.0078125, %v5325_v26 }
0x106e   : > { %v8842_v30 = vpop.eup %8841  ;;  %8851 = vrsqrt.f32 %v5362_v29 }
0x106f   : > { %v5390_v61 = vmul.f32 %v8842_v30, %v11146_v53  ;;  %v5365_v62 = vadd.f32 1e-05, %v5349_v56  ;;  %v11281_v53 = vld [vmem:[%s11846_s24] ss:$0 sm:$0xff] }
0x1071   : > { %v5412_v17 = vmul.f32 %v11272_v46, %v5390_v61  ;;  %8853 = vrsqrt.f32 %v5365_v62  ;;  %v8633_v61 = vld [vmem:[%s9687_s19 + $0x78] sm:$0xff]  }
0x1072   : > { %v8844_v18 = vpop.eup %8843  ;;  %8855 = vrsqrt.f32 %v5364_v42  ;;  %v8634_v62 = vld [vmem:[%s9687_s19 + $0xf8] sm:$0xff]   ;;  %7701 = vmatprep.subr.bf16.mxu0 %v8633_v61 }
0x1073   : > { %v5391_v55 = vmul.f32 %v8844_v18, %v11155_v36  ;;  %v8846_v51 = vpop.eup %8845  ;;  %v5434_v34 = vadd.f32 %v11281_v53, %v5412_v17  ;;  %v8635_v18 = vld [vmem:[%s9687_s19 + $0x38] sm:$0xff]   ;;  %v8638_v17 = vld [vmem:[%s9687_s19 + $0xf0] sm:$0xff]   ;;  %7765 = vmatprep.subr.bf16.mxu1 %v8634_v62 }
0x1074   : > { %v5392_v36 = vmul.f32 %v8846_v51, %v11158_v38  ;;  %v8636_v42 = vld [vmem:[%s9687_s19 + $0xb8] sm:$0xff]   ;;  %v8639_v51 = vld [vmem:[%s9687_s19 + $0x30] sm:$0xff]  }
0x1075   : > { %v5413_v4 = vmul.f32 %v11272_v46, %v5391_v55  ;;  %v8637_v55 = vld [vmem:[%s9687_s19 + $0x70] sm:$0xff]  }
0x1076   : > { %v8848_v48 = vpop.eup %8847  ;;  %v5414_v27 = vmul.f32 %v11272_v46, %v5392_v36  ;;  %v8644_v36 = vld [vmem:[%s9687_s19 + $0xa8] sm:$0xff]  }
0x1077   : > { %v5435_v40 = vadd.f32 %v11281_v53, %v5413_v4  ;;  %v5393_v13 = vmul.f32 %v8848_v48, %v11166_v8  ;;  %v8640_v4 = vld [vmem:[%s9687_s19 + $0xb0] sm:$0xff]   ;;  %v8641_v48 = vld [vmem:[%s9687_s19 + $0x68] sm:$0xff]  }
0x1078   : > { %v5436_v38 = vadd.f32 %v11281_v53, %v5414_v27  ;;  %v8649_v27 = vld [vmem:[%s9687_s19 + $0x58] sm:$0xff]  }
0x1079   : > { %v5450_v47 = vpack.c.bf16 %v5435_v40, %v5434_v34  ;;  %v5415_v35 = vmul.f32 %v11272_v46, %v5393_v13  ;;  %v8642_v34 = vld [vmem:[%s9687_s19 + $0xe8] sm:$0xff]   ;;  %v8645_v13 = vld [vmem:[%s9687_s19 + $0x60] sm:$0xff]  }
0x107a   : > { %v8850_v57 = vpop.eup %8849  ;;  %v8643_v40 = vld [vmem:[%s9687_s19 + $0x28] sm:$0xff]  }
0x107b   : > { %5705 = vmatmul.mubr.bf16.vlgmr.msra.gmra.mxu0 %v5450_v47  ;;  %5818 = vmatmul.mubr.bf16.vlgmr.msra.gmra.mxu1 %v5450_v47  ;;  %v8852_v1 = vpop.eup %8851  ;;  %v5437_v22 = vadd.f32 %v11281_v53, %v5415_v35  ;;  %v5395_v28 = vmul.f32 %v8850_v57, %v11178_v63  ;;  %v8646_v47 = vld [vmem:[%s9687_s19 + $0xe0] sm:$0xff]  }
0x107c   : > { %5714 = vmatprep.mubr.bf16.mxu0 %v11839_v52  ;;  %5827 = vmatprep.mubr.bf16.mxu1 %v11839_v52  ;;  %v5394_v8 = vmul.f32 %v8852_v1, %v11171_v58  ;;  %v8647_v35 = vld [vmem:[%s9687_s19 + $0x20] sm:$0xff]   ;;  %v8650_v1 = vld [vmem:[%s9687_s19 + $0xd8] sm:$0xff]  }
0x107d   : > { %v5451_v11 = vpack.c.bf16 %v5437_v22, %v5436_v38  ;;  %v5417_v0 = vmul.f32 %v11272_v46, %v5395_v28  ;;  %7702 = vmatpush3.bf16.msra.mxu0 %v8635_v18  ;;  %7766 = vmatpush3.bf16.msra.mxu1 %v8636_v42  ;;  %v8648_v57 = vld [vmem:[%s9687_s19 + $0xa0] sm:$0xff]   ;;  %v8651_v22 = vld [vmem:[%s9687_s19 + $0x18] sm:$0xff]   ;;  %v8653_v38 = vld [vmem:[%s9687_s19 + $0x50] sm:$0xff]  }
0x107e   : > { %v8854_v25 = vpop.eup %8853  ;;  %v5416_v29 = vmul.f32 %v11272_v46, %v5394_v8  ;;  %7703 = vmatprep.subr.bf16.mxu0 %v8637_v55  ;;  %7767 = vmatprep.subr.bf16.mxu1 %v8638_v17  ;;  %v8652_v28 = vld [vmem:[%s9687_s19 + $0x98] sm:$0xff]   ;;  %v8654_v8 = vld [vmem:[%s9687_s19 + $0xd0] sm:$0xff]  }
0x107f   : > { %v8856_v7 = vpop.eup %8855  ;;  %v5439_v50 = vadd.f32 %v11281_v53, %v5417_v0  ;;  %v5397_v63 = vmul.f32 %v8854_v25, %v11190_v43  ;;  %v8656_v0 = vld [vmem:[%s9687_s19 + $0x90] sm:$0xff]   ;;  %v8657_v25 = vld [vmem:[%s9687_s19 + $0x48] sm:$0xff]  }
0x1080   : > { %v5438_v58 = vadd.f32 %v11281_v53, %v5416_v29  ;;  %v5396_v32 = vmul.f32 %v8856_v7, %v11181_v20  ;;  %v8658_v7 = vld [vmem:[%s9687_s19 + $0xc8] sm:$0xff]  }
0x1081   : > { %v5419_v56 = vmul.f32 %v11272_v46, %v5397_v63  ;;  %7704 = vmatpush3.bf16.msra.mxu0 %v8639_v51  ;;  %7768 = vmatpush3.bf16.msra.mxu1 %v8640_v4  ;;  %v8659_v29 = vld [vmem:[%s9687_s19 + $0x8] sm:$0xff]   ;;  %v8661_v63 = vld [vmem:[%s9687_s19 + $0x40] sm:$0xff]  }
0x1082   : > { %v5452_v26 = vpack.c.bf16 %v5439_v50, %v5438_v58  ;;  %v5418_v30 = vmul.f32 %v11272_v46, %v5396_v32  ;;  %7705 = vmatprep.subr.bf16.mxu0 %v8641_v48  ;;  %7769 = vmatprep.subr.bf16.mxu1 %v8642_v34  ;;  %v8660_v50 = vld [vmem:[%s9687_s19 + $0x88] sm:$0xff]   ;;  %v8662_v58 = vld [vmem:[%s9687_s19 + $0xc0] sm:$0xff]  }
0x1083   : > { %5715 = vmatmul.mubr.bf16.gmra.mxu0 %v5451_v11  ;;  %5828 = vmatmul.mubr.bf16.gmra.mxu1 %v5451_v11  ;;  %v5441_v43 = vadd.f32 %v11281_v53, %v5419_v56  ;;  %v8655_v11 = vld [vmem:[%s9687_s19 + $0x10] sm:$0xff]   ;;  %v8663_v32 = vld [vmem:[%s9687_s19] sm:$0xff]  }
0x1084   : > { %5724 = vmatprep.mubr.bf16.mxu0 %v11839_v52  ;;  %5837 = vmatprep.mubr.bf16.mxu1 %v11839_v52  ;;  %v5440_v16 = vadd.f32 %v11281_v53, %v5418_v30 }
0x1085   : > { %7706 = vmatpush3.bf16.msra.mxu0 %v8643_v40  ;;  %7770 = vmatpush3.bf16.msra.mxu1 %v8644_v36 }
0x1086   : > { %v5453_v20 = vpack.c.bf16 %v5441_v43, %v5440_v16  ;;  %7707 = vmatprep.subr.bf16.mxu0 %v8645_v13  ;;  %7771 = vmatprep.subr.bf16.mxu1 %v8646_v47 }
0x1089   : > { %7708 = vmatpush3.bf16.msra.mxu0 %v8647_v35  ;;  %7772 = vmatpush3.bf16.msra.mxu1 %v8648_v57 }
0x108a   : > { %7709 = vmatprep.subr.bf16.mxu0 %v8649_v27  ;;  %7773 = vmatprep.subr.bf16.mxu1 %v8650_v1 }
0x108b   : > { %5725 = vmatmul.mubr.bf16.gmra.mxu0 %v5452_v26  ;;  %5838 = vmatmul.mubr.bf16.gmra.mxu1 %v5452_v26  ;;  %v8664_v26 = vld [vmem:[%s9687_s19 + $0x80] sm:$0xff]  }
0x108c   : > { %5734 = vmatprep.mubr.bf16.mxu0 %v11839_v52  ;;  %5847 = vmatprep.mubr.bf16.mxu1 %v11839_v52 }
0x108d   : > { %7710 = vmatpush3.bf16.msra.mxu0 %v8651_v22  ;;  %7774 = vmatpush3.bf16.msra.mxu1 %v8652_v28 }
0x108e   : > { %7711 = vmatprep.subr.bf16.mxu0 %v8653_v38  ;;  %7775 = vmatprep.subr.bf16.mxu1 %v8654_v8 }
0x1091   : > { %7712 = vmatpush3.bf16.msra.mxu0 %v8655_v11  ;;  %7776 = vmatpush3.bf16.msra.mxu1 %v8656_v0 }
0x1092   : > { %7713 = vmatprep.subr.bf16.mxu0 %v8657_v25  ;;  %7777 = vmatprep.subr.bf16.mxu1 %v8658_v7 }
0x1093   : > { %5735 = vmatmul.mubr.bf16.gmra.mxu0 %v5453_v20  ;;  %5848 = vmatmul.mubr.bf16.gmra.mxu1 %v5453_v20 }
0x1094   : > { %5744 = vmatprep.mubr.bf16.mxu0 %v11839_v52  ;;  %5857 = vmatprep.mubr.bf16.mxu1 %v11839_v52 }
0x1095   : > { %7714 = vmatpush3.bf16.msra.mxu0 %v8659_v29  ;;  %7778 = vmatpush3.bf16.msra.mxu1 %v8660_v50 }
0x1096   : > { %7715 = vmatprep.subr.bf16.mxu0 %v8661_v63  ;;  %7779 = vmatprep.subr.bf16.mxu1 %v8662_v58 }
0x1099   : > { %7716 = vmatpush3.bf16.msra.mxu0 %v8663_v32  ;;  %7780 = vmatpush3.bf16.msra.mxu1 %v8664_v26 }
0x10dc   : > { %v5327_v56 = vpop.xlane.xlu0 %5326 }
0x10dd   : > { %v5350_v30 = vmul.f32 0.0078125, %v5327_v56 }
0x10df   : > { %v5366_v43 = vadd.f32 1e-05, %v5350_v30 }
0x10e0   : > { %v5329_v16 = vpop.xlane.xlu1 %5328  ;;  %v5331_v20 = vpop.xlane.xlu0 %5330 }
0x10e1   : > { %8857 = vrsqrt.f32 %v5366_v43  ;;  %v5351_v61 = vmul.f32 0.0078125, %v5329_v16  ;;  %v5352_v62 = vmul.f32 0.0078125, %v5331_v20 }
0x10e3   : > { %v5367_v18 = vadd.f32 1e-05, %v5351_v61  ;;  %v5368_v42 = vadd.f32 1e-05, %v5352_v62 }
0x10e4   : > { %v5333_v55 = vpop.xlane.xlu1 %5332  ;;  %v5335_v17 = vpop.xlane.xlu0 %5334 }
0x10e5   : > { %8859 = vrsqrt.f32 %v5367_v18  ;;  %v5353_v51 = vmul.f32 0.0078125, %v5333_v55  ;;  %v5354_v48 = vmul.f32 0.0078125, %v5335_v17 }
0x10e6   : > { %8861 = vrsqrt.f32 %v5368_v42 }
0x10e7   : > { %v5369_v4 = vadd.f32 1e-05, %v5353_v51  ;;  %v5370_v36 = vadd.f32 1e-05, %v5354_v48 }
0x10e8   : > { %v5337_v34 = vpop.xlane.xlu1 %5336  ;;  %v5339_v47 = vpop.xlane.xlu0 %5338 }
0x10e9   : > { %8863 = vrsqrt.f32 %v5369_v4  ;;  %v5355_v40 = vmul.f32 0.0078125, %v5337_v34  ;;  %v5356_v1 = vmul.f32 0.0078125, %v5339_v47 }
0x10eb   : > { %v5371_v13 = vadd.f32 1e-05, %v5355_v40  ;;  %v5372_v8 = vadd.f32 1e-05, %v5356_v1 }
0x10ec   : > { %v5341_v35 = vpop.xlane.xlu1 %5340 }
0x10ed   : > { %8865 = vrsqrt.f32 %v5371_v13  ;;  %v5357_v57 = vmul.f32 0.0078125, %v5341_v35 }
0x10ee   : > { %v8858_v27 = vpop.eup %8857  ;;  %8867 = vrsqrt.f32 %v5370_v36 }
0x10ef   : > { %v5398_v22 = vmul.f32 %v8858_v27, %v11227_v9  ;;  %v5373_v28 = vadd.f32 1e-05, %v5357_v57 }
0x10f1   : > { %v5420_v0 = vmul.f32 %v11272_v46, %v5398_v22  ;;  %8869 = vrsqrt.f32 %v5373_v28 }
0x10f2   : > { %v8860_v38 = vpop.eup %8859  ;;  %8871 = vrsqrt.f32 %v5372_v8 }
0x10f3   : > { %v5399_v11 = vmul.f32 %v8860_v38, %v11232_v6  ;;  %v8862_v25 = vpop.eup %8861  ;;  %v5442_v50 = vadd.f32 %v11281_v53, %v5420_v0 }
0x10f4   : > { %v5400_v58 = vmul.f32 %v8862_v25, %v11235_v3 }
0x10f5   : > { %v5421_v7 = vmul.f32 %v11272_v46, %v5399_v11 }
0x10f6   : > { %v8864_v29 = vpop.eup %8863  ;;  %v5422_v56 = vmul.f32 %v11272_v46, %v5400_v58 }
0x10f7   : > { %v5443_v63 = vadd.f32 %v11281_v53, %v5421_v7  ;;  %v5401_v9 = vmul.f32 %v8864_v29, %v11242_v12 }
0x10f8   : > { %v5444_v3 = vadd.f32 %v11281_v53, %v5422_v56 }
0x10f9   : > { %v5454_v32 = vpack.c.bf16 %v5443_v63, %v5442_v50  ;;  %v5423_v26 = vmul.f32 %v11272_v46, %v5401_v9 }
0x10fa   : > { %v8866_v6 = vpop.eup %8865 }
0x10fb   : > { %5745 = vmatmul.mubr.bf16.gmra.mxu0 %v5454_v32  ;;  %5858 = vmatmul.mubr.bf16.gmra.mxu1 %v5454_v32  ;;  %v8868_v30 = vpop.eup %8867  ;;  %v5445_v43 = vadd.f32 %v11281_v53, %v5423_v26  ;;  %v5403_v16 = vmul.f32 %v8866_v6, %v11252_v49 }
0x10fc   : > { %5754 = vmatprep.mubr.bf16.mxu0 %v11839_v52  ;;  %5867 = vmatprep.mubr.bf16.mxu1 %v11839_v52  ;;  %v5402_v12 = vmul.f32 %v8868_v30, %v11245_v41 }
0x10fd   : > { %v5455_v20 = vpack.c.bf16 %v5445_v43, %v5444_v3  ;;  %v5425_v61 = vmul.f32 %v11272_v46, %v5403_v16 }
0x10fe   : > { %v8870_v62 = vpop.eup %8869  ;;  %v5424_v42 = vmul.f32 %v11272_v46, %v5402_v12 }
0x10ff   : > { %v8872_v18 = vpop.eup %8871  ;;  %v5447_v55 = vadd.f32 %v11281_v53, %v5425_v61  ;;  %v5405_v49 = vmul.f32 %v8870_v62, %v11262_v15 }
0x1100   : > { %v5446_v17 = vadd.f32 %v11281_v53, %v5424_v42  ;;  %v5404_v41 = vmul.f32 %v8872_v18, %v11255_v23  ;;  %v11847_v23 = vld [vmem:[#allocation27_spill] sm:$0xff] }
0x1101   : > { %v5427_v4 = vmul.f32 %v11272_v46, %v5405_v49  ;;  %v5498_v36 = vsub.s32 1, %v11847_v23  ;;  %v5506_v13 = vsub.s32 3, %v11847_v23  ;;  %v5494_v47 = vsub.s32 0, %v11847_v23 }
0x1102   : > { %v5456_v51 = vpack.c.bf16 %v5447_v55, %v5446_v17  ;;  %v5426_v48 = vmul.f32 %v11272_v46, %v5404_v41  ;;  %v5502_v35 = vsub.s32 2, %v11847_v23  ;;  %v5490_v46 = vld [vmem:[%s9685_s0] sm:$0xf]  ;;  %s11848_s0 = scalar_lea.vmem [#allocation14], %s9658_s18 }
0x1103   : > { %5755 = vmatmul.mubr.bf16.gmra.mxu0 %v5455_v20  ;;  %5868 = vmatmul.mubr.bf16.gmra.mxu1 %v5455_v20  ;;  %v5449_v34 = vadd.f32 %v11281_v53, %v5427_v4  ;;  %v11379_v1 = vrot.slane %v5490_v46, %v5498_v36  ;;  %v11383_v22 = vrot.slane %v5490_v46, %v5494_v47 }
0x1104   : > { %5764 = vmatprep.mubr.bf16.mxu0 %v11839_v52  ;;  %5877 = vmatprep.mubr.bf16.mxu1 %v11839_v52  ;;  %v5448_v15 = vadd.f32 %v11281_v53, %v5426_v48  ;;  %v11385_v53 = vrot.slane %v5490_v46, %v5502_v35 }
0x1106   : > { %v5457_v40 = vpack.c.bf16 %v5449_v34, %v5448_v15 }
0x110b   : > { %5765 = vmatmul.mubr.bf16.gmra.mxu0 %v5456_v51  ;;  %5878 = vmatmul.mubr.bf16.gmra.mxu1 %v5456_v51 }
0x110c   : > { %5774 = vmatprep.mubr.bf16.mxu0 %v11839_v52  ;;  %5887 = vmatprep.mubr.bf16.mxu1 %v11839_v52  ;;  %v11381_v52 = vrot.slane %v5490_v46, %v5506_v13 }
0x1113   : > { %5775 = vmatmul.mubr.bf16.gmra.mxu0 %v5457_v40  ;;  %5888 = vmatmul.mubr.bf16.gmra.mxu1 %v5457_v40 }
0x113b   : > { %v5706_v57 = vpop.f32.mrf.mxu0  ;;  %v5819_v27 = vpop.f32.mrf.mxu1 }
0x113c   : > { %v5707_v50 = vadd.f32 %v5706_v57, %v11383_v22  ;;  %v5820_v63 = vadd.f32 %v5819_v27, %v11385_v53 }
0x113d   : > { %v5708_v28 = vpop.f32.mrf.mxu0  ;;  %v5821_v38 = vpop.f32.mrf.mxu1 }
0x113e   : > { %v5709_v0 = vadd.f32 %v5708_v28, %v11379_v1  ;;  %v5822_v25 = vadd.f32 %v5821_v38, %v11381_v52  ;;  %v5898_v61 = vmax.f32 %v5707_v50, 0.0  ;;  %v5900_v62 = vmax.f32 %v5820_v63, 0.0 }
0x113f   : > { %v5710_v8 = vpop.f32.mrf.mxu0  ;;  %v5823_v11 = vpop.f32.mrf.mxu1 }
0x1140   : > { %v5711_v7 = vadd.f32 %v5710_v8, %v11383_v22  ;;  %v5824_v29 = vadd.f32 %v5823_v11, %v11385_v53  ;;  %v5899_v16 = vmax.f32 %v5709_v0, 0.0  ;;  %v5901_v3 = vmax.f32 %v5822_v25, 0.0 }
0x1141   : > { %v5712_v58 = vpop.f32.mrf.mxu0  ;;  %v5825_v9 = vpop.f32.mrf.mxu1 }
0x1142   : > { %v5713_v32 = vadd.f32 %v5712_v58, %v11379_v1  ;;  %v5826_v26 = vadd.f32 %v5825_v9, %v11381_v52  ;;  %v5902_v6 = vmax.f32 %v5711_v7, 0.0  ;;  %v5904_v56 = vmax.f32 %v5824_v29, 0.0 }
0x1143   : > { %v5716_v30 = vpop.f32.mrf.mxu0  ;;  %v5829_v43 = vpop.f32.mrf.mxu1 }
0x1144   : > { %v5903_v12 = vmax.f32 %v5713_v32, 0.0  ;;  %v5905_v20 = vmax.f32 %v5826_v26, 0.0  ;;  %v5962_v17 = vpack.c.bf16 %v5902_v6, %v5898_v61  ;;  %v5964_v41 = vpack.c.bf16 %v5904_v56, %v5900_v62 }
0x1145   : > { %v5718_v18 = vpop.f32.mrf.mxu0  ;;  %v5831_v42 = vpop.f32.mrf.mxu1  ;;  %v5717_v23 = vadd.f32 %v5716_v30, %v11383_v22  ;;  %v5830_v36 = vadd.f32 %v5829_v43, %v11385_v53 }
0x1146   : > { %v5963_v55 = vpack.c.bf16 %v5903_v12, %v5899_v16  ;;  %v5965_v49 = vpack.c.bf16 %v5905_v20, %v5901_v3  ;;  %v5719_v51 = vadd.f32 %v5718_v18, %v11379_v1  ;;  %v5832_v34 = vadd.f32 %v5831_v42, %v11381_v52 }
0x1147   : > { %v5720_v4 = vpop.f32.mrf.mxu0  ;;  %v5833_v48 = vpop.f32.mrf.mxu1  ;;  %v5906_v7 = vmax.f32 %v5717_v23, 0.0  ;;  %v5908_v29 = vmax.f32 %v5830_v36, 0.0 }
0x1148   : > { %v5721_v15 = vadd.f32 %v5720_v4, %v11383_v22  ;;  %v5834_v40 = vadd.f32 %v5833_v48, %v11385_v53  ;;  %6282 = vmatprep.mubr.bf16.mxu0 %v5963_v55  ;;  %6379 = vmatprep.mubr.bf16.mxu1 %v5965_v49  ;;  %v5907_v8 = vmax.f32 %v5719_v51, 0.0  ;;  %v5909_v11 = vmax.f32 %v5832_v34, 0.0 }
0x1149   : > { %v5722_v13 = vpop.f32.mrf.mxu0  ;;  %v5835_v47 = vpop.f32.mrf.mxu1  ;;  %6283 = vmatmul.mubr.bf16.vlgmr.msra.gmra.mxu0 %v5962_v17  ;;  %6380 = vmatmul.mubr.bf16.vlgmr.msra.gmra.mxu1 %v5964_v41 }
0x114a   : > { %v5723_v35 = vadd.f32 %v5722_v13, %v11379_v1  ;;  %v5836_v46 = vadd.f32 %v5835_v47, %v11381_v52  ;;  %v5910_v57 = vmax.f32 %v5721_v15, 0.0  ;;  %v5912_v27 = vmax.f32 %v5834_v40, 0.0 }
0x114b   : > { %v5726_v28 = vpop.f32.mrf.mxu0  ;;  %v5839_v38 = vpop.f32.mrf.mxu1 }
0x114c   : > { %v5911_v0 = vmax.f32 %v5723_v35, 0.0  ;;  %v5913_v25 = vmax.f32 %v5836_v46, 0.0  ;;  %v5966_v32 = vpack.c.bf16 %v5910_v57, %v5906_v7  ;;  %v5968_v26 = vpack.c.bf16 %v5912_v27, %v5908_v29 }
0x114d   : > { %v5728_v50 = vpop.f32.mrf.mxu0  ;;  %v5841_v63 = vpop.f32.mrf.mxu1  ;;  %v5727_v12 = vadd.f32 %v5726_v28, %v11383_v22  ;;  %v5840_v20 = vadd.f32 %v5839_v38, %v11385_v53 }
0x114e   : > { %v5967_v58 = vpack.c.bf16 %v5911_v0, %v5907_v8  ;;  %v5969_v9 = vpack.c.bf16 %v5913_v25, %v5909_v11  ;;  %v5729_v6 = vadd.f32 %v5728_v50, %v11379_v1  ;;  %v5842_v43 = vadd.f32 %v5841_v63, %v11381_v52 }
0x114f   : > { %v5730_v56 = vpop.f32.mrf.mxu0  ;;  %v5843_v30 = vpop.f32.mrf.mxu1  ;;  %v5914_v15 = vmax.f32 %v5727_v12, 0.0  ;;  %v5916_v40 = vmax.f32 %v5840_v20, 0.0 }
0x1150   : > { %v5731_v16 = vadd.f32 %v5730_v56, %v11383_v22  ;;  %v5844_v3 = vadd.f32 %v5843_v30, %v11385_v53  ;;  %6290 = vmatprep.mubr.bf16.mxu0 %v5967_v58  ;;  %6387 = vmatprep.mubr.bf16.mxu1 %v5969_v9  ;;  %v5915_v51 = vmax.f32 %v5729_v6, 0.0  ;;  %v5917_v4 = vmax.f32 %v5842_v43, 0.0 }
0x1151   : > { %v5732_v61 = vpop.f32.mrf.mxu0  ;;  %v5845_v62 = vpop.f32.mrf.mxu1  ;;  %6291 = vmatmul.mubr.bf16.gmra.mxu0 %v5966_v32  ;;  %6388 = vmatmul.mubr.bf16.gmra.mxu1 %v5968_v26 }
0x1152   : > { %v5733_v18 = vadd.f32 %v5732_v61, %v11379_v1  ;;  %v5846_v42 = vadd.f32 %v5845_v62, %v11381_v52  ;;  %v5918_v55 = vmax.f32 %v5731_v16, 0.0  ;;  %v5920_v49 = vmax.f32 %v5844_v3, 0.0 }
0x1153   : > { %v5736_v17 = vpop.f32.mrf.mxu0  ;;  %v5849_v41 = vpop.f32.mrf.mxu1 }
0x1154   : > { %v5919_v48 = vmax.f32 %v5733_v18, 0.0  ;;  %v5921_v34 = vmax.f32 %v5846_v42, 0.0  ;;  %v5970_v35 = vpack.c.bf16 %v5918_v55, %v5914_v15  ;;  %v5972_v46 = vpack.c.bf16 %v5920_v49, %v5916_v40 }
0x1155   : > { %v5738_v23 = vpop.f32.mrf.mxu0  ;;  %v5851_v36 = vpop.f32.mrf.mxu1  ;;  %v5737_v0 = vadd.f32 %v5736_v17, %v11383_v22  ;;  %v5850_v25 = vadd.f32 %v5849_v41, %v11385_v53 }
0x1156   : > { %v5971_v13 = vpack.c.bf16 %v5919_v48, %v5915_v51  ;;  %v5973_v47 = vpack.c.bf16 %v5921_v34, %v5917_v4  ;;  %v5739_v57 = vadd.f32 %v5738_v23, %v11379_v1  ;;  %v5852_v38 = vadd.f32 %v5851_v36, %v11381_v52 }
0x1157   : > { %v5740_v27 = vpop.f32.mrf.mxu0  ;;  %v5853_v28 = vpop.f32.mrf.mxu1  ;;  %v5922_v30 = vmax.f32 %v5737_v0, 0.0  ;;  %v5924_v43 = vmax.f32 %v5850_v25, 0.0 }
0x1158   : > { %v5741_v8 = vadd.f32 %v5740_v27, %v11383_v22  ;;  %v5854_v11 = vadd.f32 %v5853_v28, %v11385_v53  ;;  %6298 = vmatprep.mubr.bf16.mxu0 %v5971_v13  ;;  %6395 = vmatprep.mubr.bf16.mxu1 %v5973_v47  ;;  %v5923_v32 = vmax.f32 %v5739_v57, 0.0  ;;  %v5925_v26 = vmax.f32 %v5852_v38, 0.0 }
0x1159   : > { %v5742_v7 = vpop.f32.mrf.mxu0  ;;  %v5855_v29 = vpop.f32.mrf.mxu1  ;;  %6299 = vmatmul.mubr.bf16.gmra.mxu0 %v5970_v35  ;;  %6396 = vmatmul.mubr.bf16.gmra.mxu1 %v5972_v46 }
0x115a   : > { %v5743_v50 = vadd.f32 %v5742_v7, %v11379_v1  ;;  %v5856_v63 = vadd.f32 %v5855_v29, %v11381_v52  ;;  %v5926_v58 = vmax.f32 %v5741_v8, 0.0  ;;  %v5928_v9 = vmax.f32 %v5854_v11, 0.0 }
0x115c   : > { %v5927_v6 = vmax.f32 %v5743_v50, 0.0  ;;  %v5929_v56 = vmax.f32 %v5856_v63, 0.0  ;;  %v5974_v12 = vpack.c.bf16 %v5926_v58, %v5922_v30  ;;  %v5976_v20 = vpack.c.bf16 %v5928_v9, %v5924_v43 }
0x115e   : > { %v5975_v16 = vpack.c.bf16 %v5927_v6, %v5923_v32  ;;  %v5977_v3 = vpack.c.bf16 %v5929_v56, %v5925_v26 }
0x1160   : > { %6306 = vmatprep.mubr.bf16.mxu0 %v5975_v16  ;;  %6403 = vmatprep.mubr.bf16.mxu1 %v5977_v3 }
0x1161   : > { %6307 = vmatmul.mubr.bf16.gmra.mxu0 %v5974_v12  ;;  %6404 = vmatmul.mubr.bf16.gmra.mxu1 %v5976_v20 }
0x11bb   : > { %v5746_v61 = vpop.f32.mrf.mxu0  ;;  %v5859_v62 = vpop.f32.mrf.mxu1 }
0x11bc   : > { %v5747_v48 = vadd.f32 %v5746_v61, %v11383_v22  ;;  %v5860_v34 = vadd.f32 %v5859_v62, %v11385_v53 }
0x11bd   : > { %v5748_v18 = vpop.f32.mrf.mxu0  ;;  %v5861_v42 = vpop.f32.mrf.mxu1 }
0x11be   : > { %v5749_v17 = vadd.f32 %v5748_v18, %v11379_v1  ;;  %v5862_v41 = vadd.f32 %v5861_v42, %v11381_v52  ;;  %v5930_v8 = vmax.f32 %v5747_v48, 0.0  ;;  %v5932_v11 = vmax.f32 %v5860_v34, 0.0 }
0x11bf   : > { %v5750_v55 = vpop.f32.mrf.mxu0  ;;  %v5863_v49 = vpop.f32.mrf.mxu1 }
0x11c0   : > { %v5751_v51 = vadd.f32 %v5750_v55, %v11383_v22  ;;  %v5864_v4 = vadd.f32 %v5863_v49, %v11385_v53  ;;  %v5931_v57 = vmax.f32 %v5749_v17, 0.0  ;;  %v5933_v27 = vmax.f32 %v5862_v41, 0.0 }
0x11c1   : > { %v5752_v15 = vpop.f32.mrf.mxu0  ;;  %v5865_v40 = vpop.f32.mrf.mxu1 }
0x11c2   : > { %v5753_v23 = vadd.f32 %v5752_v15, %v11379_v1  ;;  %v5866_v36 = vadd.f32 %v5865_v40, %v11381_v52  ;;  %v5934_v13 = vmax.f32 %v5751_v51, 0.0  ;;  %v5936_v47 = vmax.f32 %v5864_v4, 0.0 }
0x11c3   : > { %v5756_v35 = vpop.f32.mrf.mxu0  ;;  %v5869_v46 = vpop.f32.mrf.mxu1 }
0x11c4   : > { %v5935_v28 = vmax.f32 %v5753_v23, 0.0  ;;  %v5937_v38 = vmax.f32 %v5866_v36, 0.0  ;;  %v5978_v50 = vpack.c.bf16 %v5934_v13, %v5930_v8  ;;  %v5980_v63 = vpack.c.bf16 %v5936_v47, %v5932_v11 }
0x11c5   : > { %v5758_v0 = vpop.f32.mrf.mxu0  ;;  %v5871_v25 = vpop.f32.mrf.mxu1  ;;  %v5757_v30 = vadd.f32 %v5756_v35, %v11383_v22  ;;  %v5870_v43 = vadd.f32 %v5869_v46, %v11385_v53 }
0x11c6   : > { %v5979_v7 = vpack.c.bf16 %v5935_v28, %v5931_v57  ;;  %v5981_v29 = vpack.c.bf16 %v5937_v38, %v5933_v27  ;;  %v5759_v58 = vadd.f32 %v5758_v0, %v11379_v1  ;;  %v5872_v26 = vadd.f32 %v5871_v25, %v11381_v52 }
0x11c7   : > { %v5760_v9 = vpop.f32.mrf.mxu0  ;;  %v5873_v32 = vpop.f32.mrf.mxu1  ;;  %v5938_v51 = vmax.f32 %v5757_v30, 0.0  ;;  %v5940_v4 = vmax.f32 %v5870_v43, 0.0 }
0x11c8   : > { %v5761_v6 = vadd.f32 %v5760_v9, %v11383_v22  ;;  %v5874_v56 = vadd.f32 %v5873_v32, %v11385_v53  ;;  %6314 = vmatprep.mubr.bf16.mxu0 %v5979_v7  ;;  %6411 = vmatprep.mubr.bf16.mxu1 %v5981_v29  ;;  %v5939_v55 = vmax.f32 %v5759_v58, 0.0  ;;  %v5941_v49 = vmax.f32 %v5872_v26, 0.0 }
0x11c9   : > { %v5762_v16 = vpop.f32.mrf.mxu0  ;;  %v5875_v3 = vpop.f32.mrf.mxu1  ;;  %6315 = vmatmul.mubr.bf16.gmra.mxu0 %v5978_v50  ;;  %6412 = vmatmul.mubr.bf16.gmra.mxu1 %v5980_v63 }
0x11ca   : > { %v5763_v12 = vadd.f32 %v5762_v16, %v11379_v1  ;;  %v5876_v20 = vadd.f32 %v5875_v3, %v11381_v52  ;;  %v5942_v61 = vmax.f32 %v5761_v6, 0.0  ;;  %v5944_v62 = vmax.f32 %v5874_v56, 0.0 }
0x11cb   : > { %v5766_v18 = vpop.f32.mrf.mxu0  ;;  %v5879_v42 = vpop.f32.mrf.mxu1 }
0x11cc   : > { %v5943_v17 = vmax.f32 %v5763_v12, 0.0  ;;  %v5945_v41 = vmax.f32 %v5876_v20, 0.0  ;;  %v5982_v23 = vpack.c.bf16 %v5942_v61, %v5938_v51  ;;  %v5984_v36 = vpack.c.bf16 %v5944_v62, %v5940_v4 }
0x11cd   : > { %v5768_v48 = vpop.f32.mrf.mxu0  ;;  %v5881_v34 = vpop.f32.mrf.mxu1  ;;  %v5767_v28 = vadd.f32 %v5766_v18, %v11383_v22  ;;  %v5880_v38 = vadd.f32 %v5879_v42, %v11385_v53 }
0x11ce   : > { %v5983_v15 = vpack.c.bf16 %v5943_v17, %v5939_v55  ;;  %v5985_v40 = vpack.c.bf16 %v5945_v41, %v5941_v49  ;;  %v5769_v13 = vadd.f32 %v5768_v48, %v11379_v1  ;;  %v5882_v46 = vadd.f32 %v5881_v34, %v11381_v52 }
0x11cf   : > { %v5770_v47 = vpop.f32.mrf.mxu0  ;;  %v5883_v35 = vpop.f32.mrf.mxu1  ;;  %v5946_v6 = vmax.f32 %v5767_v28, 0.0  ;;  %v5948_v56 = vmax.f32 %v5880_v38, 0.0 }
0x11d0   : > { %v5771_v57 = vadd.f32 %v5770_v47, %v11383_v22  ;;  %v5884_v27 = vadd.f32 %v5883_v35, %v11385_v53  ;;  %6322 = vmatprep.mubr.bf16.mxu0 %v5983_v15  ;;  %6419 = vmatprep.mubr.bf16.mxu1 %v5985_v40  ;;  %v5947_v58 = vmax.f32 %v5769_v13, 0.0  ;;  %v5949_v9 = vmax.f32 %v5882_v46, 0.0 }
0x11d1   : > { %v5772_v8 = vpop.f32.mrf.mxu0  ;;  %v5885_v11 = vpop.f32.mrf.mxu1  ;;  %6323 = vmatmul.mubr.bf16.gmra.mxu0 %v5982_v23  ;;  %6420 = vmatmul.mubr.bf16.gmra.mxu1 %v5984_v36 }
0x11d2   : > { %v5773_v0 = vadd.f32 %v5772_v8, %v11379_v1  ;;  %v5886_v25 = vadd.f32 %v5885_v11, %v11381_v52  ;;  %v5950_v7 = vmax.f32 %v5771_v57, 0.0  ;;  %v5952_v29 = vmax.f32 %v5884_v27, 0.0 }
0x11d3   : > { %v5776_v50 = vpop.f32.mrf.mxu0  ;;  %v5889_v63 = vpop.f32.mrf.mxu1 }
0x11d4   : > { %v5951_v32 = vmax.f32 %v5773_v0, 0.0  ;;  %v5953_v26 = vmax.f32 %v5886_v25, 0.0  ;;  %v5986_v12 = vpack.c.bf16 %v5950_v7, %v5946_v6  ;;  %v5988_v20 = vpack.c.bf16 %v5952_v29, %v5948_v56  ;;  %v11453_v29 = vld [vmem:[%s11848_s0] ss:$0 sm:$0xff]  ;;  %s11850_s0 = sld [smem:[#allocation40_spill]] (!%p7433_p10) }
0x11d5   : > { %v5778_v30 = vpop.f32.mrf.mxu0  ;;  %v5891_v43 = vpop.f32.mrf.mxu1  ;;  %v5777_v17 = vadd.f32 %v5776_v50, %v11383_v22  ;;  %v5890_v41 = vadd.f32 %v5889_v63, %v11385_v53 }
0x11d6   : > { %v5987_v16 = vpack.c.bf16 %v5951_v32, %v5947_v58  ;;  %v5989_v3 = vpack.c.bf16 %v5953_v26, %v5949_v9  ;;  %v5779_v61 = vadd.f32 %v5778_v30, %v11379_v1  ;;  %v5892_v42 = vadd.f32 %v5891_v43, %v11381_v52 }
0x11d7   : > { %v5780_v62 = vpop.f32.mrf.mxu0  ;;  %v5893_v18 = vpop.f32.mrf.mxu1  ;;  %v5954_v35 = vmax.f32 %v5777_v17, 0.0  ;;  %v5956_v46 = vmax.f32 %v5890_v41, 0.0 }
0x11d8   : > { %v5781_v55 = vadd.f32 %v5780_v62, %v11383_v22  ;;  %v5894_v49 = vadd.f32 %v5893_v18, %v11385_v53  ;;  %6330 = vmatprep.mubr.bf16.mxu0 %v5987_v16  ;;  %6427 = vmatprep.mubr.bf16.mxu1 %v5989_v3  ;;  %v5955_v23 = vmax.f32 %v5779_v61, 0.0  ;;  %v5957_v36 = vmax.f32 %v5892_v42, 0.0 }
0x11d9   : > { %v5782_v51 = vpop.f32.mrf.mxu0  ;;  %v5895_v4 = vpop.f32.mrf.mxu1  ;;  %6331 = vmatmul.mubr.bf16.gmra.mxu0 %v5986_v12  ;;  %6428 = vmatmul.mubr.bf16.gmra.mxu1 %v5988_v20 }
0x11da   : > { %v5783_v48 = vadd.f32 %v5782_v51, %v11379_v1  ;;  %v5896_v34 = vadd.f32 %v5895_v4, %v11381_v52  ;;  %v5958_v15 = vmax.f32 %v5781_v55, 0.0  ;;  %v5960_v40 = vmax.f32 %v5894_v49, 0.0 }
0x11dc   : > { %v5959_v13 = vmax.f32 %v5783_v48, 0.0  ;;  %v5961_v47 = vmax.f32 %v5896_v34, 0.0  ;;  %v5990_v53 = vpack.c.bf16 %v5958_v15, %v5954_v35  ;;  %v5992_v27 = vpack.c.bf16 %v5960_v40, %v5956_v46 }
0x11de   : > { %v5991_v57 = vpack.c.bf16 %v5959_v13, %v5955_v23  ;;  %v5993_v22 = vpack.c.bf16 %v5961_v47, %v5957_v36 }
0x11e0   : > { %6338 = vmatprep.mubr.bf16.mxu0 %v5991_v57  ;;  %6435 = vmatprep.mubr.bf16.mxu1 %v5993_v22 }
0x11e1   : > { %6339 = vmatmul.mubr.bf16.gmra.mxu0 %v5990_v53  ;;  %6436 = vmatmul.mubr.bf16.gmra.mxu1 %v5992_v27 }
0x1209   : > { %v7717_v1 = vpop.f32.mrf.mxu0  ;;  %v7781_v28 = vpop.f32.mrf.mxu1 }
0x120b   : > { %v7718_v52 = vpop.f32.mrf.mxu0  ;;  %v7782_v38 = vpop.f32.mrf.mxu1 }
0x120c   : > { %v7719_v8 = vadd.f32 %v7718_v52, %v7717_v1  ;;  %v7783_v11 = vadd.f32 %v7782_v38, %v7781_v28 }
0x120d   : > { %v7720_v0 = vpop.f32.mrf.mxu0  ;;  %v7784_v25 = vpop.f32.mrf.mxu1 }
0x120e   : > { %v6382_v7 = vadd.f32 %v7783_v11, %v7719_v8 }
0x120f   : > { %v7721_v50 = vpop.f32.mrf.mxu0  ;;  %v7785_v63 = vpop.f32.mrf.mxu1 }
0x1210   : > { %v6444_v58 = vadd.f32 %v6382_v7, %v10867_v33  ;;  %v7722_v9 = vadd.f32 %v7721_v50, %v7720_v0  ;;  %v7786_v32 = vadd.f32 %v7785_v63, %v7784_v25 }
0x1211   : > { %v7723_v26 = vpop.f32.mrf.mxu0  ;;  %v7787_v6 = vpop.f32.mrf.mxu1 }
0x1212   : > { %v11457_v56 = vadd.f32 %v11453_v29, %v6444_v58  ;;  %v6385_v30 = vadd.f32 %v7786_v32, %v7722_v9 }
0x1213   : > { %v7724_v43 = vpop.f32.mrf.mxu0  ;;  %v7788_v16 = vpop.f32.mrf.mxu1 }
0x1214   : > { %6483 = vst [vmem:[#allocation2 + $0x30] sm:$0xff] %v11457_v56  ;;  %v6445_v3 = vadd.f32 %v6385_v30, %v10877_v45  ;;  %v7725_v12 = vadd.f32 %v7724_v43, %v7723_v26  ;;  %v7789_v20 = vadd.f32 %v7788_v16, %v7787_v6 }
0x1215   : > { %v7726_v61 = vpop.f32.mrf.mxu0  ;;  %v7790_v62 = vpop.f32.mrf.mxu1 }
0x1216   : > { %v11462_v33 = vadd.f32 %v11453_v29, %v6445_v3  ;;  %v6390_v18 = vadd.f32 %v7789_v20, %v7725_v12 }
0x1217   : > { %v7727_v42 = vpop.f32.mrf.mxu0  ;;  %v7791_v55 = vpop.f32.mrf.mxu1 }
0x1218   : > { %6484 = vst [vmem:[#allocation2] sm:$0xff] %v11462_v33  ;;  %v6446_v49 = vadd.f32 %v6390_v18, %v10875_v19  ;;  %v7728_v17 = vadd.f32 %v7727_v42, %v7726_v61  ;;  %v7792_v41 = vadd.f32 %v7791_v55, %v7790_v62 }
0x1219   : > { %v7729_v51 = vpop.f32.mrf.mxu0  ;;  %v7793_v4 = vpop.f32.mrf.mxu1 }
0x121a   : > { %v11467_v45 = vadd.f32 %v11453_v29, %v6446_v49  ;;  %v6393_v48 = vadd.f32 %v7792_v41, %v7728_v17 }
0x121b   : > { %v7730_v34 = vpop.f32.mrf.mxu0  ;;  %v7794_v15 = vpop.f32.mrf.mxu1 }
0x121c   : > { %6485 = vst [vmem:[#allocation2 + $0x58] sm:$0xff] %v11467_v45  ;;  %v6447_v40 = vadd.f32 %v6393_v48, %v10884_v10  ;;  %v7731_v23 = vadd.f32 %v7730_v34, %v7729_v51  ;;  %v7795_v36 = vadd.f32 %v7794_v15, %v7793_v4 }
0x121d   : > { %v7732_v13 = vpop.f32.mrf.mxu0  ;;  %v7796_v47 = vpop.f32.mrf.mxu1 }
0x121e   : > { %v11472_v19 = vadd.f32 %v11453_v29, %v6447_v40  ;;  %v6398_v35 = vadd.f32 %v7795_v36, %v7731_v23 }
0x121f   : > { %v7733_v46 = vpop.f32.mrf.mxu0  ;;  %v7797_v57 = vpop.f32.mrf.mxu1 }
0x1220   : > { %6486 = vst [vmem:[#allocation2 + $0x18] sm:$0xff] %v11472_v19  ;;  %v6448_v22 = vadd.f32 %v6398_v35, %v11841_v60  ;;  %v7734_v53 = vadd.f32 %v7733_v46, %v7732_v13  ;;  %v7798_v27 = vadd.f32 %v7797_v57, %v7796_v47 }
0x1221   : > { %v7735_v1 = vpop.f32.mrf.mxu0  ;;  %v7799_v28 = vpop.f32.mrf.mxu1 }
0x1222   : > { %v11477_v10 = vadd.f32 %v11453_v29, %v6448_v22  ;;  %v6401_v52 = vadd.f32 %v7798_v27, %v7734_v53 }
0x1223   : > { %v7736_v38 = vpop.f32.mrf.mxu0  ;;  %v7800_v8 = vpop.f32.mrf.mxu1 }
0x1224   : > { %6487 = vst [vmem:[#allocation2 + $0x50] sm:$0xff] %v11477_v10  ;;  %v6449_v11 = vadd.f32 %v6401_v52, %v11842_v2  ;;  %v7737_v0 = vadd.f32 %v7736_v38, %v7735_v1  ;;  %v7801_v25 = vadd.f32 %v7800_v8, %v7799_v28 }
0x1225   : > { %v7738_v7 = vpop.f32.mrf.mxu0  ;;  %v7802_v50 = vpop.f32.mrf.mxu1 }
0x1226   : > { %v11482_v60 = vadd.f32 %v11453_v29, %v6449_v11  ;;  %v6406_v63 = vadd.f32 %v7801_v25, %v7737_v0 }
0x1227   : > { %v7739_v58 = vpop.f32.mrf.mxu0  ;;  %v7803_v9 = vpop.f32.mrf.mxu1 }
0x1228   : > { %6488 = vst [vmem:[#allocation2 + $0x68] sm:$0xff] %v11482_v60  ;;  %v6450_v32 = vadd.f32 %v6406_v63, %v11843_v39  ;;  %v7740_v26 = vadd.f32 %v7739_v58, %v7738_v7  ;;  %v7804_v6 = vadd.f32 %v7803_v9, %v7802_v50 }
0x122a   : > { %v11487_v30 = vadd.f32 %v11453_v29, %v6450_v32  ;;  %v6409_v2 = vadd.f32 %v7804_v6, %v7740_v26 }
0x122c   : > { %6489 = vst [vmem:[#allocation2 + $0x8] sm:$0xff] %v11487_v30  ;;  %v6451_v43 = vadd.f32 %v6409_v2, %v11844_v59 }
0x122e   : > { %v11492_v16 = vadd.f32 %v11453_v29, %v6451_v43 }
0x1230   : > { %6490 = vst [vmem:[#allocation2 + $0x48] sm:$0xff] %v11492_v16 }
0x1289   : > { %v7741_v3 = vpop.f32.mrf.mxu0  ;;  %v7805_v12 = vpop.f32.mrf.mxu1 }
0x128b   : > { %v7742_v20 = vpop.f32.mrf.mxu0  ;;  %v7806_v61 = vpop.f32.mrf.mxu1 }
0x128c   : > { %v7743_v39 = vadd.f32 %v7742_v20, %v7741_v3  ;;  %v7807_v62 = vadd.f32 %v7806_v61, %v7805_v12 }
0x128d   : > { %v7744_v18 = vpop.f32.mrf.mxu0  ;;  %v7808_v42 = vpop.f32.mrf.mxu1 }
0x128e   : > { %v6414_v55 = vadd.f32 %v7807_v62, %v7743_v39 }
0x128f   : > { %v7745_v49 = vpop.f32.mrf.mxu0  ;;  %v7809_v17 = vpop.f32.mrf.mxu1 }
0x1290   : > { %v6452_v41 = vadd.f32 %v6414_v55, %v11130_v54  ;;  %v7746_v51 = vadd.f32 %v7745_v49, %v7744_v18  ;;  %v7810_v59 = vadd.f32 %v7809_v17, %v7808_v42 }
0x1291   : > { %v7747_v4 = vpop.f32.mrf.mxu0  ;;  %v7811_v48 = vpop.f32.mrf.mxu1 }
0x1292   : > { %v11497_v34 = vadd.f32 %v11453_v29, %v6452_v41  ;;  %v6417_v15 = vadd.f32 %v7810_v59, %v7746_v51 }
0x1293   : > { %v7748_v40 = vpop.f32.mrf.mxu0  ;;  %v7812_v23 = vpop.f32.mrf.mxu1 }
0x1294   : > { %6491 = vst [vmem:[#allocation2 + $0x40] sm:$0xff] %v11497_v34  ;;  %v6453_v36 = vadd.f32 %v6417_v15, %v11135_v14  ;;  %v7749_v13 = vadd.f32 %v7748_v40, %v7747_v4  ;;  %v7813_v47 = vadd.f32 %v7812_v23, %v7811_v48 }
0x1295   : > { %v7750_v35 = vpop.f32.mrf.mxu0  ;;  %v7814_v46 = vpop.f32.mrf.mxu1 }
0x1296   : > { %v11502_v54 = vadd.f32 %v11453_v29, %v6453_v36  ;;  %v6422_v57 = vadd.f32 %v7813_v47, %v7749_v13 }
0x1297   : > { %v7751_v22 = vpop.f32.mrf.mxu0  ;;  %v7815_v53 = vpop.f32.mrf.mxu1 }
0x1298   : > { %6492 = vst [vmem:[#allocation2 + $0x20] sm:$0xff] %v11502_v54  ;;  %v6454_v27 = vadd.f32 %v6422_v57, %v11133_v5  ;;  %v7752_v1 = vadd.f32 %v7751_v22, %v7750_v35  ;;  %v7816_v28 = vadd.f32 %v7815_v53, %v7814_v46 }
0x1299   : > { %v7753_v52 = vpop.f32.mrf.mxu0  ;;  %v7817_v38 = vpop.f32.mrf.mxu1 }
0x129a   : > { %v11507_v14 = vadd.f32 %v11453_v29, %v6454_v27  ;;  %v6425_v8 = vadd.f32 %v7816_v28, %v7752_v1 }
0x129b   : > { %v7754_v11 = vpop.f32.mrf.mxu0  ;;  %v7818_v0 = vpop.f32.mrf.mxu1 }
0x129c   : > { %6493 = vst [vmem:[#allocation2 + $0x10] sm:$0xff] %v11507_v14  ;;  %v6455_v25 = vadd.f32 %v6425_v8, %v11139_v31  ;;  %v7755_v7 = vadd.f32 %v7754_v11, %v7753_v52  ;;  %v7819_v50 = vadd.f32 %v7818_v0, %v7817_v38 }
0x129d   : > { %v7756_v63 = vpop.f32.mrf.mxu0  ;;  %v7820_v58 = vpop.f32.mrf.mxu1 }
0x129e   : > { %v11512_v5 = vadd.f32 %v11453_v29, %v6455_v25  ;;  %v6430_v9 = vadd.f32 %v7819_v50, %v7755_v7 }
0x129f   : > { %v7757_v32 = vpop.f32.mrf.mxu0  ;;  %v7821_v26 = vpop.f32.mrf.mxu1 }
0x12a0   : > { %6494 = vst [vmem:[#allocation2 + $0x38] sm:$0xff] %v11512_v5  ;;  %v6456_v6 = vadd.f32 %v6430_v9, %v11141_v44  ;;  %v7758_v2 = vadd.f32 %v7757_v32, %v7756_v63  ;;  %v7822_v43 = vadd.f32 %v7821_v26, %v7820_v58 }
0x12a1   : > { %v7759_v3 = vpop.f32.mrf.mxu0  ;;  %v7823_v12 = vpop.f32.mrf.mxu1 }
0x12a2   : > { %v11517_v31 = vadd.f32 %v11453_v29, %v6456_v6  ;;  %v6433_v20 = vadd.f32 %v7822_v43, %v7758_v2 }
0x12a3   : > { %v7760_v61 = vpop.f32.mrf.mxu0  ;;  %v7824_v39 = vpop.f32.mrf.mxu1 }
0x12a4   : > { %6495 = vst [vmem:[#allocation2 + $0x60] sm:$0xff] %v11517_v31  ;;  %v6457_v62 = vadd.f32 %v6433_v20, %v11150_v21  ;;  %v7761_v18 = vadd.f32 %v7760_v61, %v7759_v3  ;;  %v7825_v42 = vadd.f32 %v7824_v39, %v7823_v12 }
0x12a5   : > { %v7762_v55 = vpop.f32.mrf.mxu0  ;;  %v7826_v49 = vpop.f32.mrf.mxu1 }
0x12a6   : > { %v11522_v44 = vadd.f32 %v11453_v29, %v6457_v62  ;;  %v6438_v17 = vadd.f32 %v7825_v42, %v7761_v18 }
0x12a7   : > { %v7763_v41 = vpop.f32.mrf.mxu0  ;;  %v7827_v51 = vpop.f32.mrf.mxu1 }
0x12a8   : > { %6496 = vst [vmem:[#allocation2 + $0x70] sm:$0xff] %v11522_v44  ;;  %v6458_v59 = vadd.f32 %v6438_v17, %v11148_v24  ;;  %v7764_v4 = vadd.f32 %v7763_v41, %v7762_v55  ;;  %v7828_v48 = vadd.f32 %v7827_v51, %v7826_v49 }
0x12aa   : > { %v11527_v15 = vadd.f32 %v11453_v29, %v6458_v59  ;;  %v6441_v21 = vadd.f32 %v7828_v48, %v7764_v4 }
0x12ac   : > { %6497 = vst [vmem:[#allocation2 + $0x78] sm:$0xff] %v11527_v15  ;;  %v6459_v40 = vadd.f32 %v6441_v21, %v11160_v37  ;;  %6502 = sbr.rel (%p7433_p10) target bundleno = 5327 (0x14cf), region = 132 }
0x12ae   : > { %v11532_v23 = vadd.f32 %v11453_v29, %v6459_v40 }
0x12b0   : > { %6498 = vst [vmem:[#allocation2 + $0x28] sm:$0xff] %v11532_v23 }
0x12b1   : > { %6505 = vadd.xlane.f32.xlu0 %v11457_v56  ;;  %6521 = vadd.xlane.f32.xlu1 %v11497_v34 }
0x12b5   : > { %6507 = vadd.xlane.f32.xlu0 %v11462_v33  ;;  %6523 = vadd.xlane.f32.xlu1 %v11502_v54 }
0x12b9   : > { %6509 = vadd.xlane.f32.xlu0 %v11467_v45  ;;  %6511 = vadd.xlane.f32.xlu1 %v11472_v19 }
0x12bd   : > { %6525 = vadd.xlane.f32.xlu0 %v11507_v14  ;;  %6527 = vadd.xlane.f32.xlu1 %v11512_v5 }
0x12c1   : > { %6513 = vadd.xlane.f32.xlu0 %v11477_v10  ;;  %6515 = vadd.xlane.f32.xlu1 %v11482_v60 }
0x12c5   : > { %6529 = vadd.xlane.f32.xlu0 %v11517_v31  ;;  %6531 = vadd.xlane.f32.xlu1 %v11522_v44 }
0x12c9   : > { %6517 = vadd.xlane.f32.xlu0 %v11487_v30  ;;  %6519 = vadd.xlane.f32.xlu1 %v11492_v16 }
0x12cd   : > { %6533 = vadd.xlane.f32.xlu0 %v11527_v15  ;;  %6535 = vadd.xlane.f32.xlu1 %v11532_v23 }
0x133a   : > { %v6506_v24 = vpop.xlane.xlu0 %6505  ;;  %v6522_v37 = vpop.xlane.xlu1 %6521 }
0x133b   : > { %v6537_v29 = vmul.f32 0.0078125, %v6506_v24  ;;  %v6545_v36 = vmul.f32 0.0078125, %v6522_v37 }
0x133d   : > { %v11553_v13 = vsub.f32 %v11457_v56, %v6537_v29  ;;  %v11556_v47 = vsub.f32 %v11497_v34, %v6545_v36 }
0x133e   : > { %v6508_v35 = vpop.xlane.xlu0 %6507  ;;  %v6524_v46 = vpop.xlane.xlu1 %6523 }
0x133f   : > { %v6538_v57 = vmul.f32 0.0078125, %v6508_v35  ;;  %v6569_v22 = vmul.f32 %v11553_v13, %v11553_v13  ;;  %v6546_v53 = vmul.f32 0.0078125, %v6524_v46  ;;  %v6577_v56 = vmul.f32 %v11556_v47, %v11556_v47  ;;  %v8902_v35 = vld [vmem:[%s11849_s21 + $0x18] sm:$0xff]   ;;  %v8903_v46 = vld [vmem:[%s11849_s21 + $0x10] sm:$0xff]  }
0x1341   : > { %v11561_v27 = vsub.f32 %v11462_v33, %v6538_v57  ;;  %6585 = vadd.xlane.f32.xlu0 %v6569_v22  ;;  %v11564_v1 = vsub.f32 %v11502_v54, %v6546_v53  ;;  %v8904_v57 = vld [vmem:[%s11849_s21 + $0x8] sm:$0xff]   ;;  %v8905_v22 = vld [vmem:[%s11849_s21] sm:$0xff]  }
0x1342   : > { %v6510_v28 = vpop.xlane.xlu0 %6509  ;;  %v6512_v34 = vpop.xlane.xlu1 %6511 }
0x1343   : > { %v6539_v52 = vmul.f32 0.0078125, %v6510_v28  ;;  %v6570_v38 = vmul.f32 %v11561_v27, %v11561_v27  ;;  %v6540_v8 = vmul.f32 0.0078125, %v6512_v34  ;;  %v6578_v54 = vmul.f32 %v11564_v1, %v11564_v1 }
0x1345   : > { %v11571_v11 = vsub.f32 %v11467_v45, %v6539_v52  ;;  %6601 = vadd.xlane.f32.xlu0 %v6577_v56  ;;  %6587 = vadd.xlane.f32.xlu1 %v6570_v38  ;;  %v11574_v33 = vsub.f32 %v11472_v19, %v6540_v8 }
0x1346   : > { %v6526_v0 = vpop.xlane.xlu0 %6525  ;;  %v6528_v25 = vpop.xlane.xlu1 %6527 }
0x1347   : > { %v6547_v7 = vmul.f32 0.0078125, %v6526_v0  ;;  %v6571_v50 = vmul.f32 %v11571_v11, %v11571_v11  ;;  %v6548_v63 = vmul.f32 0.0078125, %v6528_v25  ;;  %v6572_v19 = vmul.f32 %v11574_v33, %v11574_v33 }
0x1349   : > { %v11581_v58 = vsub.f32 %v11507_v14, %v6547_v7  ;;  %6603 = vadd.xlane.f32.xlu1 %v6578_v54  ;;  %6589 = vadd.xlane.f32.xlu0 %v6571_v50  ;;  %v11584_v45 = vsub.f32 %v11512_v5, %v6548_v63 }
0x134a   : > { %v6514_v9 = vpop.xlane.xlu0 %6513  ;;  %v6516_v32 = vpop.xlane.xlu1 %6515 }
0x134b   : > { %v6541_v26 = vmul.f32 0.0078125, %v6514_v9  ;;  %v6579_v6 = vmul.f32 %v11581_v58, %v11581_v58  ;;  %v6542_v2 = vmul.f32 0.0078125, %v6516_v32  ;;  %v6580_v5 = vmul.f32 %v11584_v45, %v11584_v45 }
0x134d   : > { %v11591_v43 = vsub.f32 %v11477_v10, %v6541_v26  ;;  %6591 = vadd.xlane.f32.xlu1 %v6572_v19  ;;  %6605 = vadd.xlane.f32.xlu0 %v6579_v6  ;;  %v11594_v14 = vsub.f32 %v11482_v60, %v6542_v2  ;;  %v8898_v10 = vld [vmem:[%s11849_s21 + $0x38] sm:$0xff]  }
0x134e   : > { %v6530_v3 = vpop.xlane.xlu0 %6529  ;;  %v6532_v12 = vpop.xlane.xlu1 %6531  ;;  %8325 = vmatprep.subr.bf16.mxu0 %v8898_v10  ;;  %8389 = vmatprep.subr.bf16.mxu1 %v8898_v10 }
0x134f   : > { %v6549_v20 = vmul.f32 0.0078125, %v6530_v3  ;;  %v6573_v61 = vmul.f32 %v11591_v43, %v11591_v43  ;;  %v6550_v39 = vmul.f32 0.0078125, %v6532_v12  ;;  %v6574_v18 = vmul.f32 %v11594_v14, %v11594_v14  ;;  %8326 = vmatpush3.bf16.msra.mxu0 %v8898_v10  ;;  %8397 = vmatpush3.bf16.msra.mxu1 %v8898_v10 }
0x1351   : > { %v11604_v62 = vsub.f32 %v11517_v31, %v6549_v20  ;;  %6607 = vadd.xlane.f32.xlu1 %v6580_v5  ;;  %6593 = vadd.xlane.f32.xlu0 %v6573_v61  ;;  %v11607_v60 = vsub.f32 %v11522_v44, %v6550_v39  ;;  %v8899_v31 = vld [vmem:[%s11849_s21 + $0x30] sm:$0xff]  }
0x1352   : > { %v6518_v42 = vpop.xlane.xlu0 %6517  ;;  %v6520_v55 = vpop.xlane.xlu1 %6519  ;;  %8327 = vmatprep.subr.bf16.mxu0 %v8899_v31  ;;  %8390 = vmatprep.subr.bf16.mxu1 %v8899_v31 }
0x1353   : > { %v6543_v49 = vmul.f32 0.0078125, %v6518_v42  ;;  %v6581_v17 = vmul.f32 %v11604_v62, %v11604_v62  ;;  %v6544_v41 = vmul.f32 0.0078125, %v6520_v55  ;;  %v6582_v59 = vmul.f32 %v11607_v60, %v11607_v60  ;;  %8328 = vmatpush3.bf16.msra.mxu0 %v8899_v31  ;;  %8398 = vmatpush3.bf16.msra.mxu1 %v8899_v31  ;;  %v11659_v55 = vld [vmem:[%s11850_s0] ss:$0 sm:$0xff] }
0x1355   : > { %v11617_v44 = vsub.f32 %v11487_v30, %v6543_v49  ;;  %6595 = vadd.xlane.f32.xlu1 %v6574_v18  ;;  %6609 = vadd.xlane.f32.xlu0 %v6581_v17  ;;  %v11620_v51 = vsub.f32 %v11492_v16, %v6544_v41  ;;  %v8900_v30 = vld [vmem:[%s11849_s21 + $0x28] sm:$0xff]  }
0x1356   : > { %v6534_v4 = vpop.xlane.xlu0 %6533  ;;  %v6536_v48 = vpop.xlane.xlu1 %6535  ;;  %8329 = vmatprep.subr.bf16.mxu0 %v8900_v30  ;;  %8391 = vmatprep.subr.bf16.mxu1 %v8900_v30 }
0x1357   : > { %v6551_v21 = vmul.f32 0.0078125, %v6534_v4  ;;  %v6575_v40 = vmul.f32 %v11617_v44, %v11617_v44  ;;  %v6552_v24 = vmul.f32 0.0078125, %v6536_v48  ;;  %v6576_v29 = vmul.f32 %v11620_v51, %v11620_v51  ;;  %8330 = vmatpush3.bf16.msra.mxu0 %v8900_v30  ;;  %8399 = vmatpush3.bf16.msra.mxu1 %v8900_v30  ;;  %v11666_v30 = vld [vmem:[%s11851_s23] ss:$0 sm:$0xff] }
0x1359   : > { %v11630_v16 = vsub.f32 %v11527_v15, %v6551_v21  ;;  %6611 = vadd.xlane.f32.xlu1 %v6582_v59  ;;  %6597 = vadd.xlane.f32.xlu0 %v6575_v40  ;;  %v11633_v37 = vsub.f32 %v11532_v23, %v6552_v24  ;;  %v8901_v15 = vld [vmem:[%s11849_s21 + $0x20] sm:$0xff]  }
0x135a   : > { %8331 = vmatprep.subr.bf16.mxu0 %v8901_v15  ;;  %8392 = vmatprep.subr.bf16.mxu1 %v8901_v15 }
0x135b   : > { %v6583_v36 = vmul.f32 %v11630_v16, %v11630_v16  ;;  %v6584_v23 = vmul.f32 %v11633_v37, %v11633_v37  ;;  %8332 = vmatpush3.bf16.msra.mxu0 %v8901_v15  ;;  %8400 = vmatpush3.bf16.msra.mxu1 %v8901_v15 }
0x135c   : > { %8333 = vmatprep.subr.bf16.mxu0 %v8902_v35  ;;  %8393 = vmatprep.subr.bf16.mxu1 %v8902_v35 }
0x135d   : > { %6599 = vadd.xlane.f32.xlu1 %v6576_v29  ;;  %6613 = vadd.xlane.f32.xlu0 %v6583_v36 }
0x135f   : > { %8334 = vmatpush3.bf16.msra.mxu0 %v8902_v35  ;;  %8401 = vmatpush3.bf16.msra.mxu1 %v8902_v35 }
0x1360   : > { %8335 = vmatprep.subr.bf16.mxu0 %v8903_v46  ;;  %8394 = vmatprep.subr.bf16.mxu1 %v8903_v46 }
0x1361   : > { %6615 = vadd.xlane.f32.xlu1 %v6584_v23 }
0x1363   : > { %8336 = vmatpush3.bf16.msra.mxu0 %v8903_v46  ;;  %8402 = vmatpush3.bf16.msra.mxu1 %v8903_v46 }
0x1364   : > { %8337 = vmatprep.subr.bf16.mxu0 %v8904_v57  ;;  %8395 = vmatprep.subr.bf16.mxu1 %v8904_v57 }
0x1367   : > { %8338 = vmatpush3.bf16.msra.mxu0 %v8904_v57  ;;  %8403 = vmatpush3.bf16.msra.mxu1 %v8904_v57 }
0x1368   : > { %8339 = vmatprep.subr.bf16.mxu0 %v8905_v22  ;;  %8396 = vmatprep.subr.bf16.mxu1 %v8905_v22 }
0x136b   : > { %8340 = vmatpush3.bf16.msra.mxu0 %v8905_v22  ;;  %8404 = vmatpush3.bf16.msra.mxu1 %v8905_v22 }
0x13ca   : > { %v6586_v53 = vpop.xlane.xlu0 %6585 }
0x13cb   : > { %v6617_v56 = vmul.f32 0.0078125, %v6586_v53 }
0x13cd   : > { %v6633_v28 = vadd.f32 1e-05, %v6617_v56 }
0x13ce   : > { %v6588_v34 = vpop.xlane.xlu1 %6587  ;;  %v6602_v52 = vpop.xlane.xlu0 %6601 }
0x13cf   : > { %8906 = vrsqrt.f32 %v6633_v28  ;;  %v6618_v38 = vmul.f32 0.0078125, %v6588_v34  ;;  %v6625_v8 = vmul.f32 0.0078125, %v6602_v52 }
0x13d1   : > { %v6634_v54 = vadd.f32 1e-05, %v6618_v38  ;;  %v6641_v0 = vadd.f32 1e-05, %v6625_v8 }
0x13d2   : > { %v6604_v25 = vpop.xlane.xlu1 %6603  ;;  %v6590_v7 = vpop.xlane.xlu0 %6589 }
0x13d3   : > { %8908 = vrsqrt.f32 %v6634_v54  ;;  %v6626_v50 = vmul.f32 0.0078125, %v6604_v25  ;;  %v6619_v63 = vmul.f32 0.0078125, %v6590_v7 }
0x13d4   : > { %8910 = vrsqrt.f32 %v6641_v0 }
0x13d5   : > { %v6642_v19 = vadd.f32 1e-05, %v6626_v50  ;;  %v6635_v9 = vadd.f32 1e-05, %v6619_v63 }
0x13d6   : > { %v6592_v32 = vpop.xlane.xlu1 %6591  ;;  %v6606_v26 = vpop.xlane.xlu0 %6605 }
0x13d7   : > { %8912 = vrsqrt.f32 %v6642_v19  ;;  %v6620_v6 = vmul.f32 0.0078125, %v6592_v32  ;;  %v6627_v2 = vmul.f32 0.0078125, %v6606_v26 }
0x13d8   : > { %8914 = vrsqrt.f32 %v6635_v9 }
0x13d9   : > { %v6636_v5 = vadd.f32 1e-05, %v6620_v6  ;;  %v6643_v3 = vadd.f32 1e-05, %v6627_v2 }
0x13da   : > { %v6608_v12 = vpop.xlane.xlu1 %6607  ;;  %v6594_v20 = vpop.xlane.xlu0 %6593 }
0x13db   : > { %8916 = vrsqrt.f32 %v6636_v5  ;;  %v6628_v61 = vmul.f32 0.0078125, %v6608_v12  ;;  %v6621_v39 = vmul.f32 0.0078125, %v6594_v20 }
0x13dc   : > { %v8907_v10 = vpop.eup %8906  ;;  %8918 = vrsqrt.f32 %v6643_v3 }
0x13dd   : > { %v6644_v18 = vadd.f32 1e-05, %v6628_v61  ;;  %v6637_v42 = vadd.f32 1e-05, %v6621_v39  ;;  %v6665_v49 = vmul.f32 %v8907_v10, %v11553_v13 }
0x13de   : > { %v6596_v17 = vpop.xlane.xlu1 %6595  ;;  %v6610_v41 = vpop.xlane.xlu0 %6609 }
0x13df   : > { %8920 = vrsqrt.f32 %v6644_v18  ;;  %v6622_v31 = vmul.f32 0.0078125, %v6596_v17  ;;  %v6629_v59 = vmul.f32 0.0078125, %v6610_v41  ;;  %v6687_v48 = vmul.f32 %v11659_v55, %v6665_v49 }
0x13e0   : > { %v8909_v4 = vpop.eup %8908  ;;  %8922 = vrsqrt.f32 %v6637_v42 }
0x13e1   : > { %v8911_v21 = vpop.eup %8910  ;;  %v6638_v40 = vadd.f32 1e-05, %v6622_v31  ;;  %v6645_v24 = vadd.f32 1e-05, %v6629_v59  ;;  %v6666_v29 = vmul.f32 %v8909_v4, %v11561_v27  ;;  %v6709_v22 = vadd.f32 %v11666_v30, %v6687_v48 }
0x13e2   : > { %v6612_v13 = vpop.xlane.xlu1 %6611  ;;  %v6598_v36 = vpop.xlane.xlu0 %6597  ;;  %v6673_v15 = vmul.f32 %v8911_v21, %v11556_v47 }
0x13e3   : > { %8924 = vrsqrt.f32 %v6638_v40  ;;  %v6630_v23 = vmul.f32 0.0078125, %v6612_v13  ;;  %v6623_v35 = vmul.f32 0.0078125, %v6598_v36  ;;  %v6688_v46 = vmul.f32 %v11659_v55, %v6666_v29 }
0x13e4   : > { %v8913_v57 = vpop.eup %8912  ;;  %8926 = vrsqrt.f32 %v6645_v24  ;;  %v6695_v47 = vmul.f32 %v11659_v55, %v6673_v15 }
0x13e5   : > { %v8915_v53 = vpop.eup %8914  ;;  %v6646_v56 = vadd.f32 1e-05, %v6630_v23  ;;  %v6639_v28 = vadd.f32 1e-05, %v6623_v35  ;;  %v6710_v34 = vadd.f32 %v11666_v30, %v6688_v46  ;;  %v6674_v27 = vmul.f32 %v8913_v57, %v11564_v1 }
0x13e6   : > { %v6600_v52 = vpop.xlane.xlu1 %6599  ;;  %v6614_v38 = vpop.xlane.xlu0 %6613  ;;  %v6667_v8 = vmul.f32 %v8915_v53, %v11571_v11  ;;  %v6717_v6 = vadd.f32 %v11666_v30, %v6695_v47 }
0x13e7   : > { %8928 = vrsqrt.f32 %v6646_v56  ;;  %v6624_v54 = vmul.f32 0.0078125, %v6600_v52  ;;  %v6631_v0 = vmul.f32 0.0078125, %v6614_v38  ;;  %v6725_v25 = vpack.c.bf16 %v6710_v34, %v6709_v22 }
0x13e8   : > { %v8917_v7 = vpop.eup %8916  ;;  %8930 = vrsqrt.f32 %v6639_v28  ;;  %v6696_v50 = vmul.f32 %v11659_v55, %v6674_v27  ;;  %v6689_v63 = vmul.f32 %v11659_v55, %v6667_v8 }
0x13e9   : > { %v8919_v19 = vpop.eup %8918  ;;  %v6640_v9 = vadd.f32 1e-05, %v6624_v54  ;;  %v6647_v32 = vadd.f32 1e-05, %v6631_v0  ;;  %8341 = vmatprep.mubr.bf16.mxu0 %v6725_v25  ;;  %v6668_v1 = vmul.f32 %v8917_v7, %v11574_v33  ;;  %v7436_v7 = vld [vmem:[#allocation15] ss:$0 sm:$0xff] }
0x13ea   : > { %v6616_v26 = vpop.xlane.xlu1 %6615  ;;  %v6718_v11 = vadd.f32 %v11666_v30, %v6696_v50  ;;  %v6675_v2 = vmul.f32 %v8919_v19, %v11581_v58  ;;  %v6711_v61 = vadd.f32 %v11666_v30, %v6689_v63 }
0x13eb   : > { %8932 = vrsqrt.f32 %v6640_v9  ;;  %v6632_v5 = vmul.f32 0.0078125, %v6616_v26  ;;  %v6690_v3 = vmul.f32 %v11659_v55, %v6668_v1 }
0x13ec   : > { %v8921_v12 = vpop.eup %8920  ;;  %8934 = vrsqrt.f32 %v6647_v32  ;;  %v6729_v20 = vpack.c.bf16 %v6718_v11, %v6717_v6  ;;  %v6697_v42 = vmul.f32 %v11659_v55, %v6675_v2 }
0x13ed   : > { %v8923_v39 = vpop.eup %8922  ;;  %v6648_v10 = vadd.f32 1e-05, %v6632_v5  ;;  %v6712_v33 = vadd.f32 %v11666_v30, %v6690_v3  ;;  %v6676_v18 = vmul.f32 %v8921_v12, %v11584_v45 }
0x13ee   : > { %8349 = vmatprep.mubr.bf16.mxu1 %v6729_v20  ;;  %v6669_v58 = vmul.f32 %v8923_v39, %v11591_v43  ;;  %v6719_v59 = vadd.f32 %v11666_v30, %v6697_v42 }
0x13ef   : > { %8936 = vrsqrt.f32 %v6648_v10  ;;  %v6726_v49 = vpack.c.bf16 %v6712_v33, %v6711_v61  ;;  %v6698_v17 = vmul.f32 %v11659_v55, %v6676_v18 }
0x13f0   : > { %v8925_v41 = vpop.eup %8924  ;;  %v6691_v45 = vmul.f32 %v11659_v55, %v6669_v58 }
0x13f1   : > { %v8927_v31 = vpop.eup %8926  ;;  %8342 = vmatmul.mubr.bf16.vlgmr.msra.gmra.mxu0 %v6726_v49  ;;  %v6720_v4 = vadd.f32 %v11666_v30, %v6698_v17  ;;  %v6670_v48 = vmul.f32 %v8925_v41, %v11594_v14 }
0x13f2   : > { %v6677_v21 = vmul.f32 %v8927_v31, %v11604_v62  ;;  %v6713_v13 = vadd.f32 %v11666_v30, %v6691_v45 }
0x13f3   : > { %v6730_v40 = vpack.c.bf16 %v6720_v4, %v6719_v59  ;;  %v6692_v43 = vmul.f32 %v11659_v55, %v6670_v48 }
0x13f4   : > { %v8929_v24 = vpop.eup %8928  ;;  %v6699_v23 = vmul.f32 %v11659_v55, %v6677_v21 }
0x13f5   : > { %v8931_v29 = vpop.eup %8930  ;;  %8350 = vmatmul.mubr.bf16.vlgmr.msra.gmra.mxu1 %v6730_v40  ;;  %v6714_v36 = vadd.f32 %v11666_v30, %v6692_v43  ;;  %v6678_v15 = vmul.f32 %v8929_v24, %v11607_v60 }
0x13f6   : > { %v6671_v14 = vmul.f32 %v8931_v29, %v11617_v44  ;;  %v6721_v22 = vadd.f32 %v11666_v30, %v6699_v23 }
0x13f7   : > { %v6727_v35 = vpack.c.bf16 %v6714_v36, %v6713_v13  ;;  %v6700_v46 = vmul.f32 %v11659_v55, %v6678_v15 }
0x13f8   : > { %v8933_v62 = vpop.eup %8932  ;;  %v6693_v28 = vmul.f32 %v11659_v55, %v6671_v14 }
0x13f9   : > { %v8935_v57 = vpop.eup %8934  ;;  %8345 = vmatprep.mubr.bf16.mxu0 %v6727_v35  ;;  %v6722_v53 = vadd.f32 %v11666_v30, %v6700_v46  ;;  %v6672_v56 = vmul.f32 %v8933_v62, %v11620_v51 }
0x13fa   : > { %v6679_v60 = vmul.f32 %v8935_v57, %v11630_v16  ;;  %v6715_v52 = vadd.f32 %v11666_v30, %v6693_v28 }
0x13fb   : > { %v6731_v34 = vpack.c.bf16 %v6722_v53, %v6721_v22  ;;  %v6694_v27 = vmul.f32 %v11659_v55, %v6672_v56 }
0x13fc   : > { %v8937_v44 = vpop.eup %8936  ;;  %v6701_v8 = vmul.f32 %v11659_v55, %v6679_v60 }
0x13fd   : > { %8353 = vmatprep.mubr.bf16.mxu1 %v6731_v34  ;;  %v6716_v38 = vadd.f32 %v11666_v30, %v6694_v27  ;;  %v6680_v47 = vmul.f32 %v8937_v44, %v11633_v37 }
0x13fe   : > { %v6723_v0 = vadd.f32 %v11666_v30, %v6701_v8 }
0x13ff   : > { %v6728_v54 = vpack.c.bf16 %v6716_v38, %v6715_v52  ;;  %v6702_v51 = vmul.f32 %v11659_v55, %v6680_v47 }
0x1401   : > { %8346 = vmatmul.mubr.bf16.gmra.mxu0 %v6728_v54  ;;  %v6724_v16 = vadd.f32 %v11666_v30, %v6702_v51 }
0x1403   : > { %v6732_v25 = vpack.c.bf16 %v6724_v16, %v6723_v0 }
0x1405   : > { %8354 = vmatmul.mubr.bf16.gmra.mxu1 %v6732_v25 }
0x14b1   : > { %v8343_v50 = vpop.f32.mrf.mxu0 }
0x14b2   : > { %v6847_v63 = vadd.f32 %v8343_v50, %v7436_v7 }
0x14b3   : > { %v6838_v19 = vpop.f32.mrf.mxu0 }
0x14b4   : > { %6903 = vst [vmem:[#allocation17 + $0x10] sm:$0xff] %v6847_v63  ;;  %v6839_v9 = vadd.f32 %v7436_v7, %v6838_v19 }
0x14b5   : > { %v8344_v32 = vpop.f32.mrf.mxu0  ;;  %v8351_v37 = vpop.f32.mrf.mxu1 }
0x14b6   : > { %6901 = vst [vmem:[#allocation17] sm:$0xff] %v6839_v9  ;;  %v6850_v1 = vadd.f32 %v8344_v32, %v7436_v7  ;;  %v6879_v26 = vadd.f32 %v8351_v37, %v7436_v7 }
0x14b7   : > { %v6841_v6 = vpop.f32.mrf.mxu0  ;;  %v6870_v55 = vpop.f32.mrf.mxu1 }
0x14b8   : > { %6904 = vst [vmem:[#allocation17 + $0x18] sm:$0xff] %v6850_v1  ;;  %6911 = vst [vmem:[#allocation17 + $0x50] sm:$0xff] %v6879_v26  ;;  %v6842_v11 = vadd.f32 %v7436_v7, %v6841_v6  ;;  %v6871_v2 = vadd.f32 %v7436_v7, %v6870_v55 }
0x14b9   : > { %v8352_v30 = vpop.f32.mrf.mxu1 }
0x14ba   : > { %6902 = vst [vmem:[#allocation17 + $0x8] sm:$0xff] %v6842_v11  ;;  %6909 = vst [vmem:[#allocation17 + $0x40] sm:$0xff] %v6871_v2  ;;  %v6882_v5 = vadd.f32 %v8352_v30, %v7436_v7 }
0x14bb   : > { %v6873_v3 = vpop.f32.mrf.mxu1 }
0x14bc   : > { %6912 = vst [vmem:[#allocation17 + $0x58] sm:$0xff] %v6882_v5  ;;  %v6874_v12 = vadd.f32 %v7436_v7, %v6873_v3 }
0x14be   : > { %6910 = vst [vmem:[#allocation17 + $0x48] sm:$0xff] %v6874_v12 }
0x14c1   : > { %v8347_v20 = vpop.f32.mrf.mxu0 }
0x14c2   : > { %v6863_v61 = vadd.f32 %v8347_v20, %v7436_v7 }
0x14c3   : > { %v6854_v39 = vpop.f32.mrf.mxu0 }
0x14c4   : > { %6907 = vst [vmem:[#allocation17 + $0x30] sm:$0xff] %v6863_v61  ;;  %v6855_v10 = vadd.f32 %v7436_v7, %v6854_v39 }
0x14c5   : > { %v8348_v33 = vpop.f32.mrf.mxu0  ;;  %v8355_v18 = vpop.f32.mrf.mxu1 }
0x14c6   : > { %6905 = vst [vmem:[#allocation17 + $0x20] sm:$0xff] %v6855_v10  ;;  %v6866_v42 = vadd.f32 %v8348_v33, %v7436_v7  ;;  %v6895_v58 = vadd.f32 %v8355_v18, %v7436_v7 }
0x14c7   : > { %v6857_v49 = vpop.f32.mrf.mxu0  ;;  %v6886_v17 = vpop.f32.mrf.mxu1 }
0x14c8   : > { %6908 = vst [vmem:[#allocation17 + $0x38] sm:$0xff] %v6866_v42  ;;  %6915 = vst [vmem:[#allocation17 + $0x70] sm:$0xff] %v6895_v58  ;;  %v6858_v41 = vadd.f32 %v7436_v7, %v6857_v49  ;;  %v6887_v31 = vadd.f32 %v7436_v7, %v6886_v17 }
0x14c9   : > { %v8356_v59 = vpop.f32.mrf.mxu1 }
0x14ca   : > { %6906 = vst [vmem:[#allocation17 + $0x28] sm:$0xff] %v6858_v41  ;;  %6913 = vst [vmem:[#allocation17 + $0x60] sm:$0xff] %v6887_v31  ;;  %v6898_v4 = vadd.f32 %v8356_v59, %v7436_v7 }
0x14cb   : > { %v6889_v48 = vpop.f32.mrf.mxu1 }
0x14cc   : > { %6916 = vst [vmem:[#allocation17 + $0x78] sm:$0xff] %v6898_v4  ;;  %v6890_v45 = vadd.f32 %v7436_v7, %v6889_v48 }
0x14ce   : > { %6914 = vst [vmem:[#allocation17 + $0x68] sm:$0xff] %v6890_v45 }
0x14cf PF: > { %p8491_p11 = scmp.eq.s32.totalorder %s9518_s25, 1  ;;  %s9262_s17 = smov [#allocation17]  }
0x14d0   : > { %s6923_s29 = sshll.u32 %s9262_s17, 4  ;;  %s6924_s29 = int_to_ptr.vmem [resolvable:$true] %s6923_s29 }
0x14d1   : > { %s9160_s9 = scalar_lea.vmem %s6924_s29, 2048  ;;  %p9167_p12 = scmp.lt.s32.totalorder %s6924_s29, %s6924_s29 }
0x14d2   : > { %p9161_p0 = scmp.ne.s32.totalorder %s6924_s29, %s9160_s9  ;;  %p9168_p3 = scmp.lt.s32.totalorder %s9160_s9, %s9160_s9 }
0x14d4   : > { %p9162_p4 = pnand %p9161_p0, %p8491_p11  ;;  %p9169_p13 = por %p9168_p3, %p9167_p12 }
0x14d6   : > { %p9163_p6 = pneg %p9162_p4 }
0x14d8   : > { %p9170_p1 = pnand %p9169_p13, %p9163_p6 }
0x14da   : > { %9173 = shalt.err (!%p9170_p1)
}
0x14db   : > { %s9263_s16 = smov 128   ;;  %s9264_s26 = smov 8  }
0x14dc   : > { %s11852_s12 = sld [smem:[#allocation44_spill]] }
0x14e2   : > { %8459 = dma.vmem_to_hbm [thread:$0]  (%p8491_p11), %s6924_s29, 2048, %s11852_s12, [#allocation5], %s9263_s16, %s9263_s16, %s9264_s26  }
0x14e3   : > { %9221 = dma.done.wait (%p8491_p11), [#allocation5], 2048  }
0x14e4   : > { %9223 = vsyncadd (%p8491_p11), [#allocation5], 4294965248 }
0x14e5 PF: > { %s11853_s30 = sld [smem:[#allocation25_spill]]  ;;  %s11856_s27 = smov %s9230_s28 }
0x14e6   : > { %s11854_s14 = sld [smem:[#allocation24_spill]] }
0x14e7   : > { %s11855_s29 = sld [smem:[#allocation26_spill]] }
0x14eb   : > { %p39_p7 = scmp.ge.s32.totalorder %s11853_s30, 4  }
0x14ec   : > { %s11857_s28 = smov %s11854_s14 }
0x14ed   :  { %41 = sbr.rel (!%p39_p7) target bundleno = 25 (0x19), region = 225 }
0x14f2   :  { %6939 = vsyncpa [#allocation4], 1 }
0x14f3   :  { %6941 = vsyncpa [#allocation4 + $0x1], 1 }
0x14f4   :  { %6942 = vsyncpa [#allocation7], 1 }
0x14f5   :  { %6944 = vsyncpa [#allocation7 + $0x1], 1 }
0x14f6   :  { %6945 = vsyncpa [#allocation10], 1 }
0x14f7   :  { %6947 = vsyncpa [#allocation10 + $0x1], 1 }
0x14f8   :  { %6948 = vsyncpa [#allocation13], 1 }
0x14f9   :  { %6950 = vsyncpa [#allocation13 + $0x1], 1 }
0x14fa   :  { %6951 = vsyncpa [#allocation16], 1 }
0x14fb   :  { %6952 = vsyncpa [#allocation5], 1 }
0x14fc   :  { %6954 = vsyncpa [#allocation5 + $0x1], 1 }

</bundles_post_ra>
